<compile_context>
chip_gen: v7x
topology: tpu7x:2x2x1
jax: 0.10.0
libtpu: 0.0.40
codegen_flags: <defaults>
</compile_context>

<pallas_src>
import jax
import jax.numpy as jnp
from jax import lax
from jax.experimental import pallas as pl
from jax.experimental.pallas import tpu as pltpu

TM = 1024          # max row tile (rows = flattened pooled (b, hp, wp) positions)
BN_EPS = 1e-5


# ------------- fused conv(3x3,s2,valid) + BN(eval) + ReLU + maxpool(2x2) -------------
def _conv_bn_relu_pool_kernel(q00_ref, q01_ref, q10_ref, q11_ref,
                              w_ref, scale_ref, shift_ref, o_ref):
    """Each q*_ref holds im2col patches for one member of the 2x2 pool window.

    conv-as-matmul on the MXU (bf16 x bf16 -> f32 accumulate), BN affine + ReLU
    in f32, elementwise max over the four pool-window members, bf16 store.
    """
    w = w_ref[...]
    scale = scale_ref[...]
    shift = shift_ref[...]

    def branch(q_ref):
        y = jnp.dot(q_ref[...], w, preferred_element_type=jnp.float32)
        return jnp.maximum(y * scale + shift, 0.0)

    y = branch(q00_ref)
    y = jnp.maximum(y, branch(q01_ref))
    y = jnp.maximum(y, branch(q10_ref))
    y = jnp.maximum(y, branch(q11_ref))
    o_ref[...] = y.astype(o_ref.dtype)


def _pool_quadrant_patches(x_nhwc, ksize=3, stride=2):
    """im2col patches grouped by 2x2-maxpool quadrant.

    Returns four [B*Hp*Wp, ksize*ksize*C] matrices (pool-window members
    (0,0),(0,1),(1,0),(1,1)) and the pooled spatial dims (Hp, Wp).  Only conv
    positions that survive the floor-mode pool are extracted.
    """
    B, H, W, C = x_nhwc.shape
    Ho = (H - ksize) // stride + 1
    Wo = (W - ksize) // stride + 1
    Hp, Wp = Ho // 2, Wo // 2
    quads = []
    for r in (0, 1):
        for s in (0, 1):
            taps = []
            for kh in range(ksize):
                for kw in range(ksize):
                    h0 = stride * r + kh
                    w0 = stride * s + kw
                    taps.append(lax.slice(
                        x_nhwc,
                        (0, h0, w0, 0),
                        (B, h0 + 2 * stride * (Hp - 1) + 1,
                         w0 + 2 * stride * (Wp - 1) + 1, C),
                        (1, 2 * stride, 2 * stride, 1)))
            patches = jnp.stack(taps, axis=3)                   # [B,Hp,Wp,k*k,C]
            quads.append(patches.reshape(B * Hp * Wp, ksize * ksize * C))
    return quads, Hp, Wp


def _row_tile(m, tm_max=TM):
    """Largest row tile <= tm_max keeping MXU/bf16-friendly multiple-of-16 blocks."""
    if m <= 16:
        return m                       # single full-extent block
    return min(tm_max, (m // 16) * 16)


def conv_bn_relu_pool(x_nhwc, p, *, eps=BN_EPS):
    """One fused Pallas call per conv block of the PyTorch model."""
    B = x_nhwc.shape[0]
    cout = p["w"].shape[-1]
    quads, Hp, Wp = _pool_quadrant_patches(x_nhwc.astype(jnp.bfloat16))
    M, K = quads[0].shape

    wmat = p["w"].reshape(K, cout).astype(jnp.bfloat16)         # (kh,kw,Cin) x Cout
    scale = (p["gamma"] / jnp.sqrt(p["var"] + eps)).astype(jnp.float32)
    shift = (p["beta"] + scale * (p["b"] - p["mean"])).astype(jnp.float32)

    tm = _row_tile(M)
    grid = (pl.cdiv(M, tm),)           # ragged last block is masked by Pallas
    row_spec = pl.BlockSpec((tm, K), lambda i: (i, 0))

    out = pl.pallas_call(
        _conv_bn_relu_pool_kernel,
        out_shape=jax.ShapeDtypeStruct((M, cout), jnp.bfloat16),
        grid=grid,
        in_specs=[row_spec, row_spec, row_spec, row_spec,
                  pl.BlockSpec((K, cout), lambda i: (0, 0)),
                  pl.BlockSpec((1, cout), lambda i: (0, 0)),
                  pl.BlockSpec((1, cout), lambda i: (0, 0))],
        out_specs=pl.BlockSpec((tm, cout), lambda i: (i, 0)),
        compiler_params=pltpu.CompilerParams(dimension_semantics=("parallel",)),
    )(*quads, wmat, scale.reshape(1, cout), shift.reshape(1, cout))
    return out.reshape(B, Hp, Wp, cout)


# ---------------------------- fused fc1 + ReLU + fc2 head ----------------------------
def _fc_head_kernel(x_ref, w1_ref, b1_ref, w2_ref, b2_ref, o_ref):
    h = jnp.dot(x_ref[...], w1_ref[...], preferred_element_type=jnp.float32)
    h = jnp.maximum(h + b1_ref[...], 0.0)
    y = jnp.dot(h.astype(w2_ref.dtype), w2_ref[...],
                preferred_element_type=jnp.float32)
    o_ref[...] = y + b2_ref[...]


def fc_head(feat, fc1, fc2):
    B = feat.shape[0]
    n1 = fc1["w"].shape[1]
    n2 = fc2["w"].shape[1]
    x = feat.astype(jnp.bfloat16)
    Bp = max(B, 8)                     # sublane-align the tiny batch (<= 8x576 bf16)
    if Bp != B:
        x = jnp.pad(x, ((0, Bp - B), (0, 0)))
    out = pl.pallas_call(
        _fc_head_kernel,
        out_shape=jax.ShapeDtypeStruct((Bp, n2), jnp.float32),
    )(x,
      fc1["w"].astype(jnp.bfloat16), fc1["b"].reshape(1, n1).astype(jnp.float32),
      fc2["w"].astype(jnp.bfloat16), fc2["b"].reshape(1, n2).astype(jnp.float32))
    return out[:B]


# ------------------------------------ parameters -------------------------------------
def init_params(key):
    def conv_block(k, cin, cout):
        k1, k2, k3, k4, k5, k6 = jax.random.split(k, 6)
        fan_in = cin * 9
        return dict(
            w=jax.random.normal(k1, (3, 3, cin, cout), jnp.float32) / jnp.sqrt(fan_in),
            b=0.1 * jax.random.normal(k2, (cout,), jnp.float32),
            gamma=1.0 + 0.1 * jax.random.normal(k3, (cout,), jnp.float32),
            beta=0.1 * jax.random.normal(k4, (cout,), jnp.float32),
            mean=0.1 * jax.random.normal(k5, (cout,), jnp.float32),
            var=1.0 + 0.1 * jnp.abs(jax.random.normal(k6, (cout,), jnp.float32)),
        )

    ks = jax.random.split(key, 7)
    return dict(
        layer1=conv_block(ks[0], 3, 16),
        layer2=conv_block(ks[1], 16, 32),
        layer3=conv_block(ks[2], 32, 64),
        fc1=dict(
            w=jax.random.normal(ks[3], (576, 10), jnp.float32) / jnp.sqrt(576.0),
            b=0.1 * jax.random.normal(ks[4], (10,), jnp.float32),
        ),
        fc2=dict(
            w=jax.random.normal(ks[5], (10, 2), jnp.float32) / jnp.sqrt(10.0),
            b=0.1 * jax.random.normal(ks[6], (2,), jnp.float32),
        ),
    )


# ----------------------------- full forward (Pallas pipeline) ------------------------
def cnn_forward(params, x_nchw):
    x = jnp.transpose(x_nchw, (0, 2, 3, 1)).astype(jnp.bfloat16)   # NCHW -> NHWC, bf16
    for name in ("layer1", "layer2", "layer3"):
        x = conv_bn_relu_pool(x, params[name])
    B = x.shape[0]
    # PyTorch flattens NCHW memory order (C, H, W): transpose back before flatten.
    feat = jnp.transpose(x, (0, 3, 1, 2)).reshape(B, -1)           # [B, 576]
    return fc_head(feat, params["fc1"], params["fc2"])


# ------------------------------- pure-JAX references ---------------------------------
def cnn_reference_bf16(params, x_nchw, eps=BN_EPS):
    """Precision-matched reference: same bf16 operands / f32 accumulate as the kernels,
    but an independent formulation (lax.conv + reduce_window, unfolded BN)."""
    x = jnp.transpose(x_nchw, (0, 2, 3, 1)).astype(jnp.bfloat16)
    for name in ("layer1", "layer2", "layer3"):
        p = params[name]
        y = lax.conv_general_dilated(
            x, p["w"].astype(jnp.bfloat16), window_strides=(2, 2), padding="VALID",
            dimension_numbers=("NHWC", "HWIO", "NHWC"),
            preferred_element_type=jnp.float32)
        y = y + p["b"]
        y = (y - p["mean"]) / jnp.sqrt(p["var"] + eps) * p["gamma"] + p["beta"]
        y = jnp.maximum(y, 0.0)
        y = lax.reduce_window(y, -jnp.inf, lax.max, (1, 2, 2, 1), (1, 2, 2, 1), "VALID")
        x = y.astype(jnp.bfloat16)
    B = x.shape[0]
    feat = jnp.transpose(x, (0, 3, 1, 2)).reshape(B, -1)
    h = jnp.dot(feat, params["fc1"]["w"].astype(jnp.bfloat16),
                preferred_element_type=jnp.float32) + params["fc1"]["b"]
    h = jnp.maximum(h, 0.0)
    return jnp.dot(h.astype(jnp.bfloat16), params["fc2"]["w"].astype(jnp.bfloat16),
                   preferred_element_type=jnp.float32) + params["fc2"]["b"]


def cnn_reference_f32(params, x_nchw, eps=BN_EPS):
    """Full-f32 ground truth (loose check: the kernels use bf16 MXU operands)."""
    x = x_nchw.astype(jnp.float32)

    def block(x, p):
        w_oihw = jnp.transpose(p["w"], (3, 2, 0, 1))
        y = lax.conv_general_dilated(
            x, w_oihw, window_strides=(2, 2), padding="VALID",
            dimension_numbers=("NCHW", "OIHW", "NCHW"),
            precision=lax.Precision.HIGHEST)
        y = y + p["b"][None, :, None, None]
        scale = (p["gamma"] / jnp.sqrt(p["var"] + eps))[None, :, None, None]
        y = (y - p["mean"][None, :, None, None]) * scale + p["beta"][None, :, None, None]
        y = jnp.maximum(y, 0.0)
        return lax.reduce_window(y, -jnp.inf, lax.max, (1, 1, 2, 2), (1, 1, 2, 2), "VALID")

    for name in ("layer1", "layer2", "layer3"):
        x = block(x, params[name])
    feat = x.reshape(x.shape[0], -1)
    h = jnp.maximum(
        jnp.dot(feat, params["fc1"]["w"], precision=lax.Precision.HIGHEST)
        + params["fc1"]["b"], 0.0)
    return (jnp.dot(h, params["fc2"]["w"], precision=lax.Precision.HIGHEST)
            + params["fc2"]["b"])


if __name__ == "__main__":
    key = jax.random.PRNGKey(0)
    kx, kp = jax.random.split(key)
    params = init_params(kp)
    # 224x224 input is the spatial size implied by fc1 = Linear(3*3*64, 10).
    x = jax.random.normal(kx, (2, 3, 224, 224), jnp.float32)       # NCHW, like PyTorch

    out = jax.block_until_ready(jax.jit(cnn_forward)(params, x))
    assert out.shape == (2, 2), out.shape

    # Structural check vs. a precision-matched (bf16-operand) pure-JAX reference.
    ref_bf16 = jax.jit(cnn_reference_bf16)(params, x)
    assert jnp.allclose(out, ref_bf16, atol=1e-2, rtol=1e-2), (out, ref_bf16)

    # Loose sanity check vs. the full-f32 reference (bf16 MXU operands drift slightly).
    ref_f32 = jax.jit(cnn_reference_f32)(params, x)
    assert jnp.allclose(out, ref_f32, atol=1e-1, rtol=1e-1), (out, ref_f32)

    print("KERNEL_OK")
</pallas_src>

<mosaic_0001>
module attributes {stable_mosaic.version = 11 : i64} {
  func.func @_conv_bn_relu_pool_kernel(%arg0: i32, %arg1: memref<1024x27xbf16, #tpu.memory_space<vmem>>, %arg2: memref<1024x27xbf16, #tpu.memory_space<vmem>>, %arg3: memref<1024x27xbf16, #tpu.memory_space<vmem>>, %arg4: memref<1024x27xbf16, #tpu.memory_space<vmem>>, %arg5: memref<27x16xbf16, #tpu.memory_space<vmem>>, %arg6: memref<1x16xf32, #tpu.memory_space<vmem>>, %arg7: memref<1x16xf32, #tpu.memory_space<vmem>>, %arg8: memref<1024x16xbf16, #tpu.memory_space<vmem>>) attributes {dimension_semantics = [#tpu.dimension_semantics<parallel>], iteration_bounds = array<i64: 6>, scalar_prefetch = 0 : i64, scratch_operands = 0 : i64, tpu.core_type = #tpu.core_type<tc>, window_params = [{transform_indices = @transform_0, window_bounds = array<i64: 1024, 27>}, {transform_indices = @transform_1, window_bounds = array<i64: 1024, 27>}, {transform_indices = @transform_2, window_bounds = array<i64: 1024, 27>}, {transform_indices = @transform_3, window_bounds = array<i64: 1024, 27>}, {pipeline_mode = #tpu.pipeline_mode<synchronous>, transform_indices = @transform_4, window_bounds = array<i64: 27, 16>}, {pipeline_mode = #tpu.pipeline_mode<synchronous>, transform_indices = @transform_5, window_bounds = array<i64: 1, 16>}, {pipeline_mode = #tpu.pipeline_mode<synchronous>, transform_indices = @transform_6, window_bounds = array<i64: 1, 16>}, {transform_indices = @transform_7, window_bounds = array<i64: 1024, 16>}]} {
    %c0 = arith.constant 0 : index
    %c0_0 = arith.constant 0 : index
    %0 = vector.load %arg5[%c0, %c0_0] : memref<27x16xbf16, #tpu.memory_space<vmem>>, vector<27x16xbf16>
    %c0_1 = arith.constant 0 : index
    %c0_2 = arith.constant 0 : index
    %1 = vector.load %arg6[%c0_1, %c0_2] : memref<1x16xf32, #tpu.memory_space<vmem>>, vector<1x16xf32>
    %c0_3 = arith.constant 0 : index
    %c0_4 = arith.constant 0 : index
    %2 = vector.load %arg7[%c0_3, %c0_4] : memref<1x16xf32, #tpu.memory_space<vmem>>, vector<1x16xf32>
    %c0_5 = arith.constant 0 : index
    %c0_6 = arith.constant 0 : index
    %3 = vector.load %arg1[%c0_5, %c0_6] : memref<1024x27xbf16, #tpu.memory_space<vmem>>, vector<1024x27xbf16>
    %cst = arith.constant dense<0.000000e+00> : vector<1024x16xf32>
    %4 = tpu.matmul %3, %0, %cst {dimension_numbers = #tpu.dot_dimension_numbers<[1], [0], [0], [1], [0, 0, 1, 1], [], []>} : vector<1024x27xbf16>, vector<27x16xbf16>, vector<1024x16xf32> -> vector<1024x16xf32>
    %5 = vector.broadcast %1 : vector<1x16xf32> to vector<1024x16xf32>
    %6 = arith.mulf %4, %5 : vector<1024x16xf32>
    %7 = vector.broadcast %2 : vector<1x16xf32> to vector<1024x16xf32>
    %8 = arith.addf %6, %7 : vector<1024x16xf32>
    %cst_7 = arith.constant 0.000000e+00 : f32
    %9 = vector.broadcast %cst_7 : f32 to vector<1024x16xf32>
    %10 = arith.maximumf %8, %9 : vector<1024x16xf32>
    %c0_8 = arith.constant 0 : index
    %c0_9 = arith.constant 0 : index
    %11 = vector.load %arg2[%c0_8, %c0_9] : memref<1024x27xbf16, #tpu.memory_space<vmem>>, vector<1024x27xbf16>
    %cst_10 = arith.constant dense<0.000000e+00> : vector<1024x16xf32>
    %12 = tpu.matmul %11, %0, %cst_10 {dimension_numbers = #tpu.dot_dimension_numbers<[1], [0], [0], [1], [0, 0, 1, 1], [], []>} : vector<1024x27xbf16>, vector<27x16xbf16>, vector<1024x16xf32> -> vector<1024x16xf32>
    %13 = vector.broadcast %1 : vector<1x16xf32> to vector<1024x16xf32>
    %14 = arith.mulf %12, %13 : vector<1024x16xf32>
    %15 = vector.broadcast %2 : vector<1x16xf32> to vector<1024x16xf32>
    %16 = arith.addf %14, %15 : vector<1024x16xf32>
    %cst_11 = arith.constant 0.000000e+00 : f32
    %17 = vector.broadcast %cst_11 : f32 to vector<1024x16xf32>
    %18 = arith.maximumf %16, %17 : vector<1024x16xf32>
    %19 = arith.maximumf %10, %18 : vector<1024x16xf32>
    %c0_12 = arith.constant 0 : index
    %c0_13 = arith.constant 0 : index
    %20 = vector.load %arg3[%c0_12, %c0_13] : memref<1024x27xbf16, #tpu.memory_space<vmem>>, vector<1024x27xbf16>
    %cst_14 = arith.constant dense<0.000000e+00> : vector<1024x16xf32>
    %21 = tpu.matmul %20, %0, %cst_14 {dimension_numbers = #tpu.dot_dimension_numbers<[1], [0], [0], [1], [0, 0, 1, 1], [], []>} : vector<1024x27xbf16>, vector<27x16xbf16>, vector<1024x16xf32> -> vector<1024x16xf32>
    %22 = vector.broadcast %1 : vector<1x16xf32> to vector<1024x16xf32>
    %23 = arith.mulf %21, %22 : vector<1024x16xf32>
    %24 = vector.broadcast %2 : vector<1x16xf32> to vector<1024x16xf32>
    %25 = arith.addf %23, %24 : vector<1024x16xf32>
    %cst_15 = arith.constant 0.000000e+00 : f32
    %26 = vector.broadcast %cst_15 : f32 to vector<1024x16xf32>
    %27 = arith.maximumf %25, %26 : vector<1024x16xf32>
    %28 = arith.maximumf %19, %27 : vector<1024x16xf32>
    %c0_16 = arith.constant 0 : index
    %c0_17 = arith.constant 0 : index
    %29 = vector.load %arg4[%c0_16, %c0_17] : memref<1024x27xbf16, #tpu.memory_space<vmem>>, vector<1024x27xbf16>
    %cst_18 = arith.constant dense<0.000000e+00> : vector<1024x16xf32>
    %30 = tpu.matmul %29, %0, %cst_18 {dimension_numbers = #tpu.dot_dimension_numbers<[1], [0], [0], [1], [0, 0, 1, 1], [], []>} : vector<1024x27xbf16>, vector<27x16xbf16>, vector<1024x16xf32> -> vector<1024x16xf32>
    %31 = vector.broadcast %1 : vector<1x16xf32> to vector<1024x16xf32>
    %32 = arith.mulf %30, %31 : vector<1024x16xf32>
    %33 = vector.broadcast %2 : vector<1x16xf32> to vector<1024x16xf32>
    %34 = arith.addf %32, %33 : vector<1024x16xf32>
    %cst_19 = arith.constant 0.000000e+00 : f32
    %35 = vector.broadcast %cst_19 : f32 to vector<1024x16xf32>
    %36 = arith.maximumf %34, %35 : vector<1024x16xf32>
    %37 = arith.maximumf %28, %36 : vector<1024x16xf32>
    %38 = arith.truncf %37 : vector<1024x16xf32> to vector<1024x16xbf16>
    %c0_20 = arith.constant 0 : index
    %c0_21 = arith.constant 0 : index
    %39 = vector.load %arg8[%c0_20, %c0_21] : memref<1024x16xbf16, #tpu.memory_space<vmem>>, vector<1024x16xbf16>
    tpu.vector_store %arg8[%c0_20, %c0_21], %38 {strides = array<i32>} : memref<1024x16xbf16, #tpu.memory_space<vmem>>, vector<1024x16xbf16>,
    return
  }
  func.func @transform_0(%arg0: i32) -> (i32, i32) {
    %c0_i32 = arith.constant 0 : i32
    %c0_i32_0 = arith.constant 0 : i32
    return %arg0, %c0_i32 : i32, i32
  }
  func.func @transform_1(%arg0: i32) -> (i32, i32) {
    %c0_i32 = arith.constant 0 : i32
    %c0_i32_0 = arith.constant 0 : i32
    return %arg0, %c0_i32 : i32, i32
  }
  func.func @transform_2(%arg0: i32) -> (i32, i32) {
    %c0_i32 = arith.constant 0 : i32
    %c0_i32_0 = arith.constant 0 : i32
    return %arg0, %c0_i32 : i32, i32
  }
  func.func @transform_3(%arg0: i32) -> (i32, i32) {
    %c0_i32 = arith.constant 0 : i32
    %c0_i32_0 = arith.constant 0 : i32
    return %arg0, %c0_i32 : i32, i32
  }
  func.func @transform_4(%arg0: i32) -> (i32, i32) {
    %c0_i32 = arith.constant 0 : i32
    %c0_i32_0 = arith.constant 0 : i32
    %c0_i32_1 = arith.constant 0 : i32
    return %c0_i32, %c0_i32_0 : i32, i32
  }
  func.func @transform_5(%arg0: i32) -> (i32, i32) {
    %c0_i32 = arith.constant 0 : i32
    %c0_i32_0 = arith.constant 0 : i32
    %c0_i32_1 = arith.constant 0 : i32
    return %c0_i32, %c0_i32_0 : i32, i32
  }
  func.func @transform_6(%arg0: i32) -> (i32, i32) {
    %c0_i32 = arith.constant 0 : i32
    %c0_i32_0 = arith.constant 0 : i32
    %c0_i32_1 = arith.constant 0 : i32
    return %c0_i32, %c0_i32_0 : i32, i32
  }
  func.func @transform_7(%arg0: i32) -> (i32, i32) {
    %c0_i32 = arith.constant 0 : i32
    %c0_i32_0 = arith.constant 0 : i32
    return %arg0, %c0_i32 : i32, i32
  }
}

module attributes {stable_mosaic.version = 11 : i64} {
  func.func @_conv_bn_relu_pool_kernel(%arg0: i32, %arg1: memref<336x144xbf16, #tpu.memory_space<vmem>>, %arg2: memref<336x144xbf16, #tpu.memory_space<vmem>>, %arg3: memref<336x144xbf16, #tpu.memory_space<vmem>>, %arg4: memref<336x144xbf16, #tpu.memory_space<vmem>>, %arg5: memref<144x32xbf16, #tpu.memory_space<vmem>>, %arg6: memref<1x32xf32, #tpu.memory_space<vmem>>, %arg7: memref<1x32xf32, #tpu.memory_space<vmem>>, %arg8: memref<336x32xbf16, #tpu.memory_space<vmem>>) attributes {dimension_semantics = [#tpu.dimension_semantics<parallel>], iteration_bounds = array<i64: 2>, scalar_prefetch = 0 : i64, scratch_operands = 0 : i64, tpu.core_type = #tpu.core_type<tc>, window_params = [{transform_indices = @transform_0, window_bounds = array<i64: 336, 144>}, {transform_indices = @transform_1, window_bounds = array<i64: 336, 144>}, {transform_indices = @transform_2, window_bounds = array<i64: 336, 144>}, {transform_indices = @transform_3, window_bounds = array<i64: 336, 144>}, {pipeline_mode = #tpu.pipeline_mode<synchronous>, transform_indices = @transform_4, window_bounds = array<i64: 144, 32>}, {pipeline_mode = #tpu.pipeline_mode<synchronous>, transform_indices = @transform_5, window_bounds = array<i64: 1, 32>}, {pipeline_mode = #tpu.pipeline_mode<synchronous>, transform_indices = @transform_6, window_bounds = array<i64: 1, 32>}, {transform_indices = @transform_7, window_bounds = array<i64: 336, 32>}]} {
    %c0 = arith.constant 0 : index
    %c0_0 = arith.constant 0 : index
    %0 = vector.load %arg5[%c0, %c0_0] : memref<144x32xbf16, #tpu.memory_space<vmem>>, vector<144x32xbf16>
    %c0_1 = arith.constant 0 : index
    %c0_2 = arith.constant 0 : index
    %1 = vector.load %arg6[%c0_1, %c0_2] : memref<1x32xf32, #tpu.memory_space<vmem>>, vector<1x32xf32>
    %c0_3 = arith.constant 0 : index
    %c0_4 = arith.constant 0 : index
    %2 = vector.load %arg7[%c0_3, %c0_4] : memref<1x32xf32, #tpu.memory_space<vmem>>, vector<1x32xf32>
    %c0_5 = arith.constant 0 : index
    %c0_6 = arith.constant 0 : index
    %3 = vector.load %arg1[%c0_5, %c0_6] : memref<336x144xbf16, #tpu.memory_space<vmem>>, vector<336x144xbf16>
    %cst = arith.constant dense<0.000000e+00> : vector<336x32xf32>
    %4 = tpu.matmul %3, %0, %cst {dimension_numbers = #tpu.dot_dimension_numbers<[1], [0], [0], [1], [0, 0, 1, 1], [], []>} : vector<336x144xbf16>, vector<144x32xbf16>, vector<336x32xf32> -> vector<336x32xf32>
    %5 = vector.broadcast %1 : vector<1x32xf32> to vector<336x32xf32>
    %6 = arith.mulf %4, %5 : vector<336x32xf32>
    %7 = vector.broadcast %2 : vector<1x32xf32> to vector<336x32xf32>
    %8 = arith.addf %6, %7 : vector<336x32xf32>
    %cst_7 = arith.constant 0.000000e+00 : f32
    %9 = vector.broadcast %cst_7 : f32 to vector<336x32xf32>
    %10 = arith.maximumf %8, %9 : vector<336x32xf32>
    %c0_8 = arith.constant 0 : index
    %c0_9 = arith.constant 0 : index
    %11 = vector.load %arg2[%c0_8, %c0_9] : memref<336x144xbf16, #tpu.memory_space<vmem>>, vector<336x144xbf16>
    %cst_10 = arith.constant dense<0.000000e+00> : vector<336x32xf32>
    %12 = tpu.matmul %11, %0, %cst_10 {dimension_numbers = #tpu.dot_dimension_numbers<[1], [0], [0], [1], [0, 0, 1, 1], [], []>} : vector<336x144xbf16>, vector<144x32xbf16>, vector<336x32xf32> -> vector<336x32xf32>
    %13 = vector.broadcast %1 : vector<1x32xf32> to vector<336x32xf32>
    %14 = arith.mulf %12, %13 : vector<336x32xf32>
    %15 = vector.broadcast %2 : vector<1x32xf32> to vector<336x32xf32>
    %16 = arith.addf %14, %15 : vector<336x32xf32>
    %cst_11 = arith.constant 0.000000e+00 : f32
    %17 = vector.broadcast %cst_11 : f32 to vector<336x32xf32>
    %18 = arith.maximumf %16, %17 : vector<336x32xf32>
    %19 = arith.maximumf %10, %18 : vector<336x32xf32>
    %c0_12 = arith.constant 0 : index
    %c0_13 = arith.constant 0 : index
    %20 = vector.load %arg3[%c0_12, %c0_13] : memref<336x144xbf16, #tpu.memory_space<vmem>>, vector<336x144xbf16>
    %cst_14 = arith.constant dense<0.000000e+00> : vector<336x32xf32>
    %21 = tpu.matmul %20, %0, %cst_14 {dimension_numbers = #tpu.dot_dimension_numbers<[1], [0], [0], [1], [0, 0, 1, 1], [], []>} : vector<336x144xbf16>, vector<144x32xbf16>, vector<336x32xf32> -> vector<336x32xf32>
    %22 = vector.broadcast %1 : vector<1x32xf32> to vector<336x32xf32>
    %23 = arith.mulf %21, %22 : vector<336x32xf32>
    %24 = vector.broadcast %2 : vector<1x32xf32> to vector<336x32xf32>
    %25 = arith.addf %23, %24 : vector<336x32xf32>
    %cst_15 = arith.constant 0.000000e+00 : f32
    %26 = vector.broadcast %cst_15 : f32 to vector<336x32xf32>
    %27 = arith.maximumf %25, %26 : vector<336x32xf32>
    %28 = arith.maximumf %19, %27 : vector<336x32xf32>
    %c0_16 = arith.constant 0 : index
    %c0_17 = arith.constant 0 : index
    %29 = vector.load %arg4[%c0_16, %c0_17] : memref<336x144xbf16, #tpu.memory_space<vmem>>, vector<336x144xbf16>
    %cst_18 = arith.constant dense<0.000000e+00> : vector<336x32xf32>
    %30 = tpu.matmul %29, %0, %cst_18 {dimension_numbers = #tpu.dot_dimension_numbers<[1], [0], [0], [1], [0, 0, 1, 1], [], []>} : vector<336x144xbf16>, vector<144x32xbf16>, vector<336x32xf32> -> vector<336x32xf32>
    %31 = vector.broadcast %1 : vector<1x32xf32> to vector<336x32xf32>
    %32 = arith.mulf %30, %31 : vector<336x32xf32>
    %33 = vector.broadcast %2 : vector<1x32xf32> to vector<336x32xf32>
    %34 = arith.addf %32, %33 : vector<336x32xf32>
    %cst_19 = arith.constant 0.000000e+00 : f32
    %35 = vector.broadcast %cst_19 : f32 to vector<336x32xf32>
    %36 = arith.maximumf %34, %35 : vector<336x32xf32>
    %37 = arith.maximumf %28, %36 : vector<336x32xf32>
    %38 = arith.truncf %37 : vector<336x32xf32> to vector<336x32xbf16>
    %c0_20 = arith.constant 0 : index
    %c0_21 = arith.constant 0 : index
    %39 = vector.load %arg8[%c0_20, %c0_21] : memref<336x32xbf16, #tpu.memory_space<vmem>>, vector<336x32xbf16>
    tpu.vector_store %arg8[%c0_20, %c0_21], %38 {strides = array<i32>} : memref<336x32xbf16, #tpu.memory_space<vmem>>, vector<336x32xbf16>,
    return
  }
  func.func @transform_0(%arg0: i32) -> (i32, i32) {
    %c0_i32 = arith.constant 0 : i32
    %c0_i32_0 = arith.constant 0 : i32
    return %arg0, %c0_i32 : i32, i32
  }
  func.func @transform_1(%arg0: i32) -> (i32, i32) {
    %c0_i32 = arith.constant 0 : i32
    %c0_i32_0 = arith.constant 0 : i32
    return %arg0, %c0_i32 : i32, i32
  }
  func.func @transform_2(%arg0: i32) -> (i32, i32) {
    %c0_i32 = arith.constant 0 : i32
    %c0_i32_0 = arith.constant 0 : i32
    return %arg0, %c0_i32 : i32, i32
  }
  func.func @transform_3(%arg0: i32) -> (i32, i32) {
    %c0_i32 = arith.constant 0 : i32
    %c0_i32_0 = arith.constant 0 : i32
    return %arg0, %c0_i32 : i32, i32
  }
  func.func @transform_4(%arg0: i32) -> (i32, i32) {
    %c0_i32 = arith.constant 0 : i32
    %c0_i32_0 = arith.constant 0 : i32
    %c0_i32_1 = arith.constant 0 : i32
    return %c0_i32, %c0_i32_0 : i32, i32
  }
  func.func @transform_5(%arg0: i32) -> (i32, i32) {
    %c0_i32 = arith.constant 0 : i32
    %c0_i32_0 = arith.constant 0 : i32
    %c0_i32_1 = arith.constant 0 : i32
    return %c0_i32, %c0_i32_0 : i32, i32
  }
  func.func @transform_6(%arg0: i32) -> (i32, i32) {
    %c0_i32 = arith.constant 0 : i32
    %c0_i32_0 = arith.constant 0 : i32
    %c0_i32_1 = arith.constant 0 : i32
    return %c0_i32, %c0_i32_0 : i32, i32
  }
  func.func @transform_7(%arg0: i32) -> (i32, i32) {
    %c0_i32 = arith.constant 0 : i32
    %c0_i32_0 = arith.constant 0 : i32
    return %arg0, %c0_i32 : i32, i32
  }
}

module attributes {stable_mosaic.version = 11 : i64} {
  func.func @_conv_bn_relu_pool_kernel(%arg0: i32, %arg1: memref<16x288xbf16, #tpu.memory_space<vmem>>, %arg2: memref<16x288xbf16, #tpu.memory_space<vmem>>, %arg3: memref<16x288xbf16, #tpu.memory_space<vmem>>, %arg4: memref<16x288xbf16, #tpu.memory_space<vmem>>, %arg5: memref<288x64xbf16, #tpu.memory_space<vmem>>, %arg6: memref<1x64xf32, #tpu.memory_space<vmem>>, %arg7: memref<1x64xf32, #tpu.memory_space<vmem>>, %arg8: memref<16x64xbf16, #tpu.memory_space<vmem>>) attributes {dimension_semantics = [#tpu.dimension_semantics<parallel>], iteration_bounds = array<i64: 2>, scalar_prefetch = 0 : i64, scratch_operands = 0 : i64, tpu.core_type = #tpu.core_type<tc>, window_params = [{transform_indices = @transform_0, window_bounds = array<i64: 16, 288>}, {transform_indices = @transform_1, window_bounds = array<i64: 16, 288>}, {transform_indices = @transform_2, window_bounds = array<i64: 16, 288>}, {transform_indices = @transform_3, window_bounds = array<i64: 16, 288>}, {pipeline_mode = #tpu.pipeline_mode<synchronous>, transform_indices = @transform_4, window_bounds = array<i64: 288, 64>}, {pipeline_mode = #tpu.pipeline_mode<synchronous>, transform_indices = @transform_5, window_bounds = array<i64: 1, 64>}, {pipeline_mode = #tpu.pipeline_mode<synchronous>, transform_indices = @transform_6, window_bounds = array<i64: 1, 64>}, {transform_indices = @transform_7, window_bounds = array<i64: 16, 64>}]} {
    %c0 = arith.constant 0 : index
    %c0_0 = arith.constant 0 : index
    %0 = vector.load %arg5[%c0, %c0_0] : memref<288x64xbf16, #tpu.memory_space<vmem>>, vector<288x64xbf16>
    %c0_1 = arith.constant 0 : index
    %c0_2 = arith.constant 0 : index
    %1 = vector.load %arg6[%c0_1, %c0_2] : memref<1x64xf32, #tpu.memory_space<vmem>>, vector<1x64xf32>
    %c0_3 = arith.constant 0 : index
    %c0_4 = arith.constant 0 : index
    %2 = vector.load %arg7[%c0_3, %c0_4] : memref<1x64xf32, #tpu.memory_space<vmem>>, vector<1x64xf32>
    %c0_5 = arith.constant 0 : index
    %c0_6 = arith.constant 0 : index
    %3 = vector.load %arg1[%c0_5, %c0_6] : memref<16x288xbf16, #tpu.memory_space<vmem>>, vector<16x288xbf16>
    %cst = arith.constant dense<0.000000e+00> : vector<16x64xf32>
    %4 = tpu.matmul %3, %0, %cst {dimension_numbers = #tpu.dot_dimension_numbers<[1], [0], [0], [1], [0, 0, 1, 1], [], []>} : vector<16x288xbf16>, vector<288x64xbf16>, vector<16x64xf32> -> vector<16x64xf32>
    %5 = vector.broadcast %1 : vector<1x64xf32> to vector<16x64xf32>
    %6 = arith.mulf %4, %5 : vector<16x64xf32>
    %7 = vector.broadcast %2 : vector<1x64xf32> to vector<16x64xf32>
    %8 = arith.addf %6, %7 : vector<16x64xf32>
    %cst_7 = arith.constant 0.000000e+00 : f32
    %9 = vector.broadcast %cst_7 : f32 to vector<16x64xf32>
    %10 = arith.maximumf %8, %9 : vector<16x64xf32>
    %c0_8 = arith.constant 0 : index
    %c0_9 = arith.constant 0 : index
    %11 = vector.load %arg2[%c0_8, %c0_9] : memref<16x288xbf16, #tpu.memory_space<vmem>>, vector<16x288xbf16>
    %cst_10 = arith.constant dense<0.000000e+00> : vector<16x64xf32>
    %12 = tpu.matmul %11, %0, %cst_10 {dimension_numbers = #tpu.dot_dimension_numbers<[1], [0], [0], [1], [0, 0, 1, 1], [], []>} : vector<16x288xbf16>, vector<288x64xbf16>, vector<16x64xf32> -> vector<16x64xf32>
    %13 = vector.broadcast %1 : vector<1x64xf32> to vector<16x64xf32>
    %14 = arith.mulf %12, %13 : vector<16x64xf32>
    %15 = vector.broadcast %2 : vector<1x64xf32> to vector<16x64xf32>
    %16 = arith.addf %14, %15 : vector<16x64xf32>
    %cst_11 = arith.constant 0.000000e+00 : f32
    %17 = vector.broadcast %cst_11 : f32 to vector<16x64xf32>
    %18 = arith.maximumf %16, %17 : vector<16x64xf32>
    %19 = arith.maximumf %10, %18 : vector<16x64xf32>
    %c0_12 = arith.constant 0 : index
    %c0_13 = arith.constant 0 : index
    %20 = vector.load %arg3[%c0_12, %c0_13] : memref<16x288xbf16, #tpu.memory_space<vmem>>, vector<16x288xbf16>
    %cst_14 = arith.constant dense<0.000000e+00> : vector<16x64xf32>
    %21 = tpu.matmul %20, %0, %cst_14 {dimension_numbers = #tpu.dot_dimension_numbers<[1], [0], [0], [1], [0, 0, 1, 1], [], []>} : vector<16x288xbf16>, vector<288x64xbf16>, vector<16x64xf32> -> vector<16x64xf32>
    %22 = vector.broadcast %1 : vector<1x64xf32> to vector<16x64xf32>
    %23 = arith.mulf %21, %22 : vector<16x64xf32>
    %24 = vector.broadcast %2 : vector<1x64xf32> to vector<16x64xf32>
    %25 = arith.addf %23, %24 : vector<16x64xf32>
    %cst_15 = arith.constant 0.000000e+00 : f32
    %26 = vector.broadcast %cst_15 : f32 to vector<16x64xf32>
    %27 = arith.maximumf %25, %26 : vector<16x64xf32>
    %28 = arith.maximumf %19, %27 : vector<16x64xf32>
    %c0_16 = arith.constant 0 : index
    %c0_17 = arith.constant 0 : index
    %29 = vector.load %arg4[%c0_16, %c0_17] : memref<16x288xbf16, #tpu.memory_space<vmem>>, vector<16x288xbf16>
    %cst_18 = arith.constant dense<0.000000e+00> : vector<16x64xf32>
    %30 = tpu.matmul %29, %0, %cst_18 {dimension_numbers = #tpu.dot_dimension_numbers<[1], [0], [0], [1], [0, 0, 1, 1], [], []>} : vector<16x288xbf16>, vector<288x64xbf16>, vector<16x64xf32> -> vector<16x64xf32>
    %31 = vector.broadcast %1 : vector<1x64xf32> to vector<16x64xf32>
    %32 = arith.mulf %30, %31 : vector<16x64xf32>
    %33 = vector.broadcast %2 : vector<1x64xf32> to vector<16x64xf32>
    %34 = arith.addf %32, %33 : vector<16x64xf32>
    %cst_19 = arith.constant 0.000000e+00 : f32
    %35 = vector.broadcast %cst_19 : f32 to vector<16x64xf32>
    %36 = arith.maximumf %34, %35 : vector<16x64xf32>
    %37 = arith.maximumf %28, %36 : vector<16x64xf32>
    %38 = arith.truncf %37 : vector<16x64xf32> to vector<16x64xbf16>
    %c0_20 = arith.constant 0 : index
    %c0_21 = arith.constant 0 : index
    %39 = vector.load %arg8[%c0_20, %c0_21] : memref<16x64xbf16, #tpu.memory_space<vmem>>, vector<16x64xbf16>
    tpu.vector_store %arg8[%c0_20, %c0_21], %38 {strides = array<i32>} : memref<16x64xbf16, #tpu.memory_space<vmem>>, vector<16x64xbf16>,
    return
  }
  func.func @transform_0(%arg0: i32) -> (i32, i32) {
    %c0_i32 = arith.constant 0 : i32
    %c0_i32_0 = arith.constant 0 : i32
    return %arg0, %c0_i32 : i32, i32
  }
  func.func @transform_1(%arg0: i32) -> (i32, i32) {
    %c0_i32 = arith.constant 0 : i32
    %c0_i32_0 = arith.constant 0 : i32
    return %arg0, %c0_i32 : i32, i32
  }
  func.func @transform_2(%arg0: i32) -> (i32, i32) {
    %c0_i32 = arith.constant 0 : i32
    %c0_i32_0 = arith.constant 0 : i32
    return %arg0, %c0_i32 : i32, i32
  }
  func.func @transform_3(%arg0: i32) -> (i32, i32) {
    %c0_i32 = arith.constant 0 : i32
    %c0_i32_0 = arith.constant 0 : i32
    return %arg0, %c0_i32 : i32, i32
  }
  func.func @transform_4(%arg0: i32) -> (i32, i32) {
    %c0_i32 = arith.constant 0 : i32
    %c0_i32_0 = arith.constant 0 : i32
    %c0_i32_1 = arith.constant 0 : i32
    return %c0_i32, %c0_i32_0 : i32, i32
  }
  func.func @transform_5(%arg0: i32) -> (i32, i32) {
    %c0_i32 = arith.constant 0 : i32
    %c0_i32_0 = arith.constant 0 : i32
    %c0_i32_1 = arith.constant 0 : i32
    return %c0_i32, %c0_i32_0 : i32, i32
  }
  func.func @transform_6(%arg0: i32) -> (i32, i32) {
    %c0_i32 = arith.constant 0 : i32
    %c0_i32_0 = arith.constant 0 : i32
    %c0_i32_1 = arith.constant 0 : i32
    return %c0_i32, %c0_i32_0 : i32, i32
  }
  func.func @transform_7(%arg0: i32) -> (i32, i32) {
    %c0_i32 = arith.constant 0 : i32
    %c0_i32_0 = arith.constant 0 : i32
    return %arg0, %c0_i32 : i32, i32
  }
}

module attributes {stable_mosaic.version = 11 : i64} {
  func.func @_fc_head_kernel(%arg0: memref<8x576xbf16, #tpu.memory_space<vmem>>, %arg1: memref<576x10xbf16, #tpu.memory_space<vmem>>, %arg2: memref<1x10xf32, #tpu.memory_space<vmem>>, %arg3: memref<10x2xbf16, #tpu.memory_space<vmem>>, %arg4: memref<1x2xf32, #tpu.memory_space<vmem>>, %arg5: memref<8x2xf32, #tpu.memory_space<vmem>>) attributes {dimension_semantics = [], scalar_prefetch = 0 : i64, scratch_operands = 0 : i64, tpu.core_type = #tpu.core_type<tc>} {
    %c0 = arith.constant 0 : index
    %c0_0 = arith.constant 0 : index
    %0 = vector.load %arg0[%c0, %c0_0] : memref<8x576xbf16, #tpu.memory_space<vmem>>, vector<8x576xbf16>
    %c0_1 = arith.constant 0 : index
    %c0_2 = arith.constant 0 : index
    %1 = vector.load %arg1[%c0_1, %c0_2] : memref<576x10xbf16, #tpu.memory_space<vmem>>, vector<576x10xbf16>
    %cst = arith.constant dense<0.000000e+00> : vector<8x10xf32>
    %2 = tpu.matmul %0, %1, %cst {dimension_numbers = #tpu.dot_dimension_numbers<[1], [0], [0], [1], [0, 0, 1, 1], [], []>} : vector<8x576xbf16>, vector<576x10xbf16>, vector<8x10xf32> -> vector<8x10xf32>
    %c0_3 = arith.constant 0 : index
    %c0_4 = arith.constant 0 : index
    %3 = vector.load %arg2[%c0_3, %c0_4] : memref<1x10xf32, #tpu.memory_space<vmem>>, vector<1x10xf32>
    %4 = vector.broadcast %3 : vector<1x10xf32> to vector<8x10xf32>
    %5 = arith.addf %2, %4 : vector<8x10xf32>
    %cst_5 = arith.constant 0.000000e+00 : f32
    %6 = vector.broadcast %cst_5 : f32 to vector<8x10xf32>
    %7 = arith.maximumf %5, %6 : vector<8x10xf32>
    %8 = arith.truncf %7 : vector<8x10xf32> to vector<8x10xbf16>
    %c0_6 = arith.constant 0 : index
    %c0_7 = arith.constant 0 : index
    %9 = vector.load %arg3[%c0_6, %c0_7] : memref<10x2xbf16, #tpu.memory_space<vmem>>, vector<10x2xbf16>
    %cst_8 = arith.constant dense<0.000000e+00> : vector<8x2xf32>
    %10 = tpu.matmul %8, %9, %cst_8 {dimension_numbers = #tpu.dot_dimension_numbers<[1], [0], [0], [1], [0, 0, 1, 1], [], []>} : vector<8x10xbf16>, vector<10x2xbf16>, vector<8x2xf32> -> vector<8x2xf32>
    %c0_9 = arith.constant 0 : index
    %c0_10 = arith.constant 0 : index
    %11 = vector.load %arg4[%c0_9, %c0_10] : memref<1x2xf32, #tpu.memory_space<vmem>>, vector<1x2xf32>
    %12 = vector.broadcast %11 : vector<1x2xf32> to vector<8x2xf32>
    %13 = arith.addf %10, %12 : vector<8x2xf32>
    %c0_11 = arith.constant 0 : index
    %c0_12 = arith.constant 0 : index
    %14 = vector.load %arg5[%c0_11, %c0_12] : memref<8x2xf32, #tpu.memory_space<vmem>>, vector<8x2xf32>
    tpu.vector_store %arg5[%c0_11, %c0_12], %13 {strides = array<i32>} : memref<8x2xf32, #tpu.memory_space<vmem>>, vector<8x2xf32>,
    return
  }
}

</mosaic_0001>

<bundles_post_ra>
// kernel: cnn_forward.4
= control target key start
LH: loop header
LB: loop body
LE: loop exit
PB: predicated region body
PF: predicated region fallthrough
CT: control target
= control target key end

     0   :  { %s10350_s24 = smov 0   ;;  %s10352_s25 = smov 0   ;;  %s13358_s0 = inlined_call_operand.vmem [shape: bf16[6050,27], index: 0, kind: input, shape index: {}]   ;;  %s13359_s1 = inlined_call_operand.vmem [shape: bf16[6050,27], index: 1, kind: input, shape index: {}]   ;;  %s13360_s2 = inlined_call_operand.vmem [shape: bf16[6050,27], index: 2, kind: input, shape index: {}]   ;;  %s13361_s3 = inlined_call_operand.vmem [shape: bf16[6050,27], index: 3, kind: input, shape index: {}]   ;;  %s13362_s4 = inlined_call_operand.vmem [shape: bf16[27,16], index: 4, kind: input, shape index: {}]   ;;  %s13363_s5 = inlined_call_operand.vmem [shape: f32[1,16], index: 5, kind: input, shape index: {}]   ;;  %s13364_s6 = inlined_call_operand.vmem [shape: f32[1,16], index: 6, kind: input, shape index: {}]   ;;  %s13365_s7 = inlined_call_operand.vmem [shape: bf16[6050,16], index: 7, kind: output, shape index: {}]  }
   0x1   :  { %s10354_s26 = smov 0  }
   0x2 LB: > { %s10363_s27 = sadd.s32 4294967295, %s10275_s26   ;;  %s10365_s28 = sadd.s32 1, %s10275_s26   ;;  %s10275_s26 = sphi %s10354_s26, %s13548_s26   ;;  %s10271_s25 = sphi %s10352_s25, %s13547_s25   ;;  %s10267_s24 = sphi %s10350_s24, %s13546_s24  }
   0x3   : > { %s188_s29 = ssub.s32 %s10275_s26, %s10365_s28  ;;  %s191_s30 = sadd.s32 1, %s10271_s25 }
   0x4   : > { %p189_p0 = scmp.eq.s32.totalorder %s188_s29, 0  ;;  %p201_p1 = scmp.ne.s32.totalorder %s10271_s25, %s10267_s24 }
   0x5   : > { %p202_p2 = scmp.eq.s32.totalorder %s10363_s27, 5  ;;  %p8270_p3 = scmp.ge.s32.totalorder %s10275_s26, 1 }
   0x6   : > { %s10373_s8 = scalar_select %p189_p0, %s10271_s25, %s191_s30  }
   0x7   : > { %p10375_p4 = por %p202_p2, %p201_p1  ;;  %p303_p5 = scmp.lt.s32.totalorder %s10275_s26, 7 }
   0x9   : > { %p304_p6 = pnand %p8270_p3, %p303_p5 }
   0xb   : > { %307 = sbr.rel (%p304_p6) target bundleno = 884 (0x374), region = 48 }
  0x12   : > { %v9953_v0 = vld [vmem:[%s13362_s4] sm:$0xff]   ;;  %vm1085_vm0 = vcmask 1044480   ;;  %v9954_v1 = vld [vmem:[%s13362_s4 + $0x8] sm:$0x3f]   ;;  %vm1086_vm1 = vcmask 1045504   ;;  %s10386_s14 = sshll.u32 %s10363_s27, 7 }
  0x13   : > { %9336 = vmatprep.subr.bf16.mxu0 %v9953_v0  ;;  %9468 = vmatprep.subr.bf16.mxu1 %v9953_v0  ;;  %v10309_v2 = vmov 65535   ;;  %p370_p7 = scmp.lt.s32.totalorder %s10386_s14, 756  ;;  %vm892_vm2 = vcmask 220160   ;;  %s362_s30 = sand.u32 1, %s10267_s24   ;;  %vm7636_vm3 = vcmask 125952  }
  0x14   : > { %9337 = vmatpush3.bf16.msra.mxu0 %v9953_v0  ;;  %9469 = vmatpush3.bf16.msra.mxu1 %v9953_v0  ;;  %v1087_v3 = vsel %vm1085_vm0, 4294967295, %v10309_v2  ;;  %s11714_s24 = sshll.u32 %s362_s30, 9  ;;  %s7773_s23 = ssub.s32 (%p10375_p4), 757, %s10386_s14 }
  0x15   : > { %v1088_v4 = vsel %vm1086_vm1, %v1087_v3, 0  ;;  %s371_s15 = scalar_select %p370_p7, %s10386_s14, 756 }
  0x16   : > { %v1090_v5 = vand.u32 %v9954_v1, %v1088_v4  ;;  %s11733_s10 = scalar_lea.vmem [#allocation2], %s11714_s24   ;;  %s9069_s26 = sshll.u32 (%p10375_p4), %s10363_s27, 9 }
  0x17   : > { %s10390_s16 = sshll.u32 %s371_s15, 2  ;;  %p7774_p8 = scmp.lt.s32.totalorder (%p10375_p4), %s7773_s23, 128 }
  0x18   : > { %9338 = vmatprep.subr.bf16.mxu0 %v1090_v5  ;;  %9470 = vmatprep.subr.bf16.mxu1 %v1090_v5  ;;  %s10396_s19 = scalar_lea.vmem %s13358_s0, %s10390_s16  ;;  %s10402_s22 = scalar_lea.vmem %s13359_s1, %s10390_s16 }
  0x19   : > { %9339 = vmatpush3.bf16.msra.mxu0 %v1090_v5  ;;  %9471 = vmatpush3.bf16.msra.mxu1 %v1090_v5  ;;  %v9955_v6 = vld [vmem:[%s10396_s19] sm:$0xff]   ;;  %v9957_v8 = vld [vmem:[%s10396_s19 + $0x8] sm:$0xff]   ;;  %v9959_v10 = vld [vmem:[%s10396_s19 + $0x10] sm:$0xff]   ;;  %s10543_s29 = scalar_lea.vmem %s13360_s2, %s10390_s16  ;;  %s10550_s11 = scalar_lea.vmem %s13361_s3, %s10390_s16 }
  0x1a   : > { %9600 = vmatprep.subr.bf16.mxu0 %v9953_v0  ;;  %9732 = vmatprep.subr.bf16.mxu1 %v9953_v0  ;;  %v9956_v7 = vld [vmem:[%s10402_s22] sm:$0xff]   ;;  %v9958_v9 = vld [vmem:[%s10402_s22 + $0x8] sm:$0xff]   ;;  %v9960_v11 = vld [vmem:[%s10402_s22 + $0x10] sm:$0xff]   ;;  %s13166_s12 = scalar_lea.vmem (%p10375_p4), %s13365_s7, %s9069_s26  }
  0x1b   : > { %9340 = vmatprep.mubr.msk.bf16.mxu0 %vm892_vm2, %v9955_v6  ;;  %9472 = vmatprep.mubr.msk.bf16.mxu1 %vm892_vm2, %v9956_v7  ;;  %v9961_v12 = vld [vmem:[%s10396_s19 + $0x18] sm:$0xff]   ;;  %v9963_v14 = vld [vmem:[%s10396_s19 + $0x20] sm:$0xff]   ;;  %v9965_v16 = vld [vmem:[%s10396_s19 + $0x28] sm:$0xff]  }
  0x1c   : > { %9341 = vmatmul.mubr.msk.bf16.vlgmr.msra.gmra.mrb[0].mxu0 %vm892_vm2, %v9957_v8  ;;  %9473 = vmatmul.mubr.msk.bf16.vlgmr.msra.gmra.mrb[0].mxu1 %vm892_vm2, %v9958_v9  ;;  %v9962_v13 = vld [vmem:[%s10402_s22 + $0x18] sm:$0xff]   ;;  %v9964_v15 = vld [vmem:[%s10402_s22 + $0x20] sm:$0xff]   ;;  %v9966_v17 = vld [vmem:[%s10402_s22 + $0x28] sm:$0xff]  }
  0x1d   : > { %9601 = vmatpush3.bf16.msra.mxu0 %v9953_v0  ;;  %9733 = vmatpush3.bf16.msra.mxu1 %v9953_v0  ;;  %v9967_v18 = vld [vmem:[%s10396_s19 + $0x30] sm:$0xff]   ;;  %v9969_v20 = vld [vmem:[%s10396_s19 + $0x38] sm:$0xff]   ;;  %v9971_v22 = vld [vmem:[%s10396_s19 + $0x40] sm:$0xff]  }
  0x1e   : > { %9344 = vmatprep.mubr.msk.bf16.mxu0 %vm892_vm2, %v9959_v10  ;;  %9476 = vmatprep.mubr.msk.bf16.mxu1 %vm892_vm2, %v9960_v11  ;;  %v9968_v19 = vld [vmem:[%s10402_s22 + $0x30] sm:$0xff]   ;;  %v9970_v21 = vld [vmem:[%s10402_s22 + $0x38] sm:$0xff]   ;;  %v9972_v23 = vld [vmem:[%s10402_s22 + $0x40] sm:$0xff]  }
  0x1f   : > { %9602 = vmatprep.subr.bf16.mxu0 %v1090_v5  ;;  %9734 = vmatprep.subr.bf16.mxu1 %v1090_v5  ;;  %v9973_v24 = vld [vmem:[%s10396_s19 + $0x48] sm:$0xff]   ;;  %v9975_v26 = vld [vmem:[%s10396_s19 + $0x50] sm:$0xff]   ;;  %v9977_v28 = vld [vmem:[%s10396_s19 + $0x58] sm:$0xff]  }
  0x20   : > { %v9974_v25 = vld [vmem:[%s10402_s22 + $0x48] sm:$0xff]   ;;  %v9976_v27 = vld [vmem:[%s10402_s22 + $0x50] sm:$0xff]   ;;  %v9978_v29 = vld [vmem:[%s10402_s22 + $0x58] sm:$0xff]  }
  0x21   : > { %9603 = vmatpush3.bf16.msra.mxu0 %v1090_v5  ;;  %9735 = vmatpush3.bf16.msra.mxu1 %v1090_v5  ;;  %v9979_v30 = vld [vmem:[%s10396_s19 + $0x60] sm:$0xff]   ;;  %v9981_v32 = vld [vmem:[%s10396_s19 + $0x68] sm:$0xff]   ;;  %v9983_v34 = vld [vmem:[%s10396_s19 + $0x70] sm:$0xff]  }
  0x22   : > { %v9980_v31 = vld [vmem:[%s10402_s22 + $0x60] sm:$0xff]   ;;  %v9982_v33 = vld [vmem:[%s10402_s22 + $0x68] sm:$0xff]   ;;  %v9984_v35 = vld [vmem:[%s10402_s22 + $0x70] sm:$0xff]  }
  0x23   : > { %v9985_v36 = vld [vmem:[%s10396_s19 + $0x78] sm:$0xff]   ;;  %v9987_v38 = vld [vmem:[%s10396_s19 + $0x80] sm:$0xff]   ;;  %v9989_v40 = vld [vmem:[%s10396_s19 + $0x88] sm:$0xff]  }
  0x24   : > { %9345 = vmatmul.mubr.msk.bf16.gmra.mrb[4].mxu0 %vm892_vm2, %v9961_v12  ;;  %9477 = vmatmul.mubr.msk.bf16.gmra.mrb[4].mxu1 %vm892_vm2, %v9962_v13  ;;  %v9986_v37 = vld [vmem:[%s10402_s22 + $0x78] sm:$0xff]   ;;  %v9988_v39 = vld [vmem:[%s10402_s22 + $0x80] sm:$0xff]   ;;  %v9990_v41 = vld [vmem:[%s10402_s22 + $0x88] sm:$0xff]  }
  0x25   : > { %9348 = vmatprep.mubr.msk.bf16.mxu0 %vm892_vm2, %v9963_v14  ;;  %9480 = vmatprep.mubr.msk.bf16.mxu1 %vm892_vm2, %v9964_v15  ;;  %v9991_v42 = vld [vmem:[%s10396_s19 + $0x90] sm:$0xff]   ;;  %v9993_v44 = vld [vmem:[%s10396_s19 + $0x98] sm:$0xff]   ;;  %v9995_v46 = vld [vmem:[%s10396_s19 + $0xa0] sm:$0xff]  }
  0x26   : > { %v9992_v43 = vld [vmem:[%s10402_s22 + $0x90] sm:$0xff]   ;;  %v9994_v45 = vld [vmem:[%s10402_s22 + $0x98] sm:$0xff]   ;;  %v9996_v47 = vld [vmem:[%s10402_s22 + $0xa0] sm:$0xff]  }
  0x27   : > { %v9997_v48 = vld [vmem:[%s10396_s19 + $0xa8] sm:$0xff]   ;;  %v9999_v50 = vld [vmem:[%s10396_s19 + $0xb0] sm:$0xff]   ;;  %v10001_v52 = vld [vmem:[%s10396_s19 + $0xb8] sm:$0xff]  }
  0x28   : > { %v9998_v49 = vld [vmem:[%s10402_s22 + $0xa8] sm:$0xff]   ;;  %v10000_v51 = vld [vmem:[%s10402_s22 + $0xb0] sm:$0xff]   ;;  %v10002_v53 = vld [vmem:[%s10402_s22 + $0xb8] sm:$0xff]  }
  0x29   : > { %v10003_v54 = vld [vmem:[%s10396_s19 + $0xc0] sm:$0xff]   ;;  %v10005_v56 = vld [vmem:[%s10396_s19 + $0xc8] sm:$0xff]   ;;  %v10007_v58 = vld [vmem:[%s10396_s19 + $0xd0] sm:$0xff]  }
  0x2a   : > { %v10004_v55 = vld [vmem:[%s10402_s22 + $0xc0] sm:$0xff]   ;;  %v10006_v57 = vld [vmem:[%s10402_s22 + $0xc8] sm:$0xff]   ;;  %v10008_v59 = vld [vmem:[%s10402_s22 + $0xd0] sm:$0xff]  }
  0x2b   : > { %v10009_v60 = vld [vmem:[%s10396_s19 + $0xd8] sm:$0xff]   ;;  %v10011_v62 = vld [vmem:[%s10396_s19 + $0xe0] sm:$0xff]   ;;  %v10013_v0 = vld [vmem:[%s10396_s19 + $0xe8] sm:$0xff]  }
  0x2c   : > { %9349 = vmatmul.mubr.msk.bf16.gmra.mrb[8].mxu0 %vm892_vm2, %v9965_v16  ;;  %9481 = vmatmul.mubr.msk.bf16.gmra.mrb[8].mxu1 %vm892_vm2, %v9966_v17  ;;  %v10010_v61 = vld [vmem:[%s10402_s22 + $0xd8] sm:$0xff]   ;;  %v10012_v63 = vld [vmem:[%s10402_s22 + $0xe0] sm:$0xff]   ;;  %v10014_v1 = vld [vmem:[%s10402_s22 + $0xe8] sm:$0xff]  }
  0x2d   : > { %9352 = vmatprep.mubr.msk.bf16.mxu0 %vm892_vm2, %v9967_v18  ;;  %9484 = vmatprep.mubr.msk.bf16.mxu1 %vm892_vm2, %v9968_v19  ;;  %v10015_v2 = vld [vmem:[%s10396_s19 + $0xf0] sm:$0xff]   ;;  %v10017_v4 = vld [vmem:[%s10396_s19 + $0xf8] sm:$0xff]   ;;  %v10019_v6 = vld [vmem:[%s10396_s19 + $0x100] sm:$0xff]  }
  0x2e   : > { %v10016_v3 = vld [vmem:[%s10402_s22 + $0xf0] sm:$0xff]   ;;  %v10018_v5 = vld [vmem:[%s10402_s22 + $0xf8] sm:$0xff]   ;;  %v10020_v7 = vld [vmem:[%s10402_s22 + $0x100] sm:$0xff]  }
  0x2f   : > { %v10021_v8 = vld [vmem:[%s10396_s19 + $0x108] sm:$0xff]   ;;  %v10023_v10 = vld [vmem:[%s10396_s19 + $0x110] sm:$0xff]   ;;  %v10025_v12 = vld [vmem:[%s10396_s19 + $0x118] sm:$0xff]  }
  0x30   : > { %v10022_v9 = vld [vmem:[%s10402_s22 + $0x108] sm:$0xff]   ;;  %v10024_v11 = vld [vmem:[%s10402_s22 + $0x110] sm:$0xff]   ;;  %v10026_v13 = vld [vmem:[%s10402_s22 + $0x118] sm:$0xff]  }
  0x31   : > { %v10027_v14 = vld [vmem:[%s10396_s19 + $0x120] sm:$0xff]   ;;  %v10029_v16 = vld [vmem:[%s10396_s19 + $0x128] sm:$0xff]   ;;  %v10031_v18 = vld [vmem:[%s10396_s19 + $0x130] sm:$0xff]  }
  0x32   : > { %v10028_v15 = vld [vmem:[%s10402_s22 + $0x120] sm:$0xff]   ;;  %v10030_v17 = vld [vmem:[%s10402_s22 + $0x128] sm:$0xff]   ;;  %v10032_v19 = vld [vmem:[%s10402_s22 + $0x130] sm:$0xff]  }
  0x34   : > { %9353 = vmatmul.mubr.msk.bf16.gmra.mrb[12].mxu0 %vm892_vm2, %v9969_v20  ;;  %9485 = vmatmul.mubr.msk.bf16.gmra.mrb[12].mxu1 %vm892_vm2, %v9970_v21  ;;  %v10033_v20 = vld [vmem:[%s10396_s19 + $0x138] sm:$0xff]  }
  0x35   : > { %9356 = vmatprep.mubr.msk.bf16.mxu0 %vm892_vm2, %v9971_v22  ;;  %9488 = vmatprep.mubr.msk.bf16.mxu1 %vm892_vm2, %v9972_v23  ;;  %v10034_v21 = vld [vmem:[%s10402_s22 + $0x138] sm:$0xff]   ;;  %v10035_v22 = vld [vmem:[%s10396_s19 + $0x140] sm:$0xff]  }
  0x36   : > { %v10036_v23 = vld [vmem:[%s10402_s22 + $0x140] sm:$0xff]  }
  0x3c   : > { %9357 = vmatmul.mubr.msk.bf16.gmra.mrb[16].mxu0 %vm892_vm2, %v9973_v24  ;;  %9489 = vmatmul.mubr.msk.bf16.gmra.mrb[16].mxu1 %vm892_vm2, %v9974_v25  ;;  %v10037_v24 = vld [vmem:[%s10396_s19 + $0x148] sm:$0xff]  }
  0x3d   : > { %9360 = vmatprep.mubr.msk.bf16.mxu0 %vm892_vm2, %v9975_v26  ;;  %9492 = vmatprep.mubr.msk.bf16.mxu1 %vm892_vm2, %v9976_v27  ;;  %v10038_v25 = vld [vmem:[%s10402_s22 + $0x148] sm:$0xff]   ;;  %v10039_v26 = vld [vmem:[%s10396_s19 + $0x150] sm:$0xff]  }
  0x3e   : > { %v10040_v27 = vld [vmem:[%s10402_s22 + $0x150] sm:$0xff]  }
  0x44   : > { %9361 = vmatmul.mubr.msk.bf16.gmra.mrb[20].mxu0 %vm892_vm2, %v9977_v28  ;;  %9493 = vmatmul.mubr.msk.bf16.gmra.mrb[20].mxu1 %vm892_vm2, %v9978_v29  ;;  %v10041_v28 = vld [vmem:[%s10396_s19 + $0x158] sm:$0xff]  }
  0x45   : > { %9364 = vmatprep.mubr.msk.bf16.mxu0 %vm892_vm2, %v9979_v30  ;;  %9496 = vmatprep.mubr.msk.bf16.mxu1 %vm892_vm2, %v9980_v31  ;;  %v10042_v29 = vld [vmem:[%s10402_s22 + $0x158] sm:$0xff]   ;;  %v10043_v30 = vld [vmem:[%s10396_s19 + $0x160] sm:$0xff]  }
  0x46   : > { %v10044_v31 = vld [vmem:[%s10402_s22 + $0x160] sm:$0xff]  }
  0x4c   : > { %9365 = vmatmul.mubr.msk.bf16.gmra.mrb[24].mxu0 %vm892_vm2, %v9981_v32  ;;  %9497 = vmatmul.mubr.msk.bf16.gmra.mrb[24].mxu1 %vm892_vm2, %v9982_v33  ;;  %v10045_v32 = vld [vmem:[%s10396_s19 + $0x168] sm:$0xff]  }
  0x4d   : > { %9368 = vmatprep.mubr.msk.bf16.mxu0 %vm892_vm2, %v9983_v34  ;;  %9500 = vmatprep.mubr.msk.bf16.mxu1 %vm892_vm2, %v9984_v35  ;;  %v10046_v33 = vld [vmem:[%s10402_s22 + $0x168] sm:$0xff]   ;;  %v10047_v34 = vld [vmem:[%s10396_s19 + $0x170] sm:$0xff]  }
  0x4e   : > { %v10048_v35 = vld [vmem:[%s10402_s22 + $0x170] sm:$0xff]  }
  0x54   : > { %9369 = vmatmul.mubr.msk.bf16.gmra.mrb[28].mxu0 %vm892_vm2, %v9985_v36  ;;  %9501 = vmatmul.mubr.msk.bf16.gmra.mrb[28].mxu1 %vm892_vm2, %v9986_v37  ;;  %v10049_v36 = vld [vmem:[%s10396_s19 + $0x178] sm:$0xff]  }
  0x55   : > { %9372 = vmatprep.mubr.msk.bf16.mxu0 %vm892_vm2, %v9987_v38  ;;  %9504 = vmatprep.mubr.msk.bf16.mxu1 %vm892_vm2, %v9988_v39  ;;  %v10050_v37 = vld [vmem:[%s10402_s22 + $0x178] sm:$0xff]   ;;  %v10051_v38 = vld [vmem:[%s10396_s19 + $0x180] sm:$0xff]  }
  0x56   : > { %v10052_v39 = vld [vmem:[%s10402_s22 + $0x180] sm:$0xff]  }
  0x5c   : > { %9373 = vmatmul.mubr.msk.bf16.gmra.mrb[32].mxu0 %vm892_vm2, %v9989_v40  ;;  %9505 = vmatmul.mubr.msk.bf16.gmra.mrb[32].mxu1 %vm892_vm2, %v9990_v41  ;;  %v10053_v40 = vld [vmem:[%s10396_s19 + $0x188] sm:$0xff]  }
  0x5d   : > { %9376 = vmatprep.mubr.msk.bf16.mxu0 %vm892_vm2, %v9991_v42  ;;  %9508 = vmatprep.mubr.msk.bf16.mxu1 %vm892_vm2, %v9992_v43  ;;  %v10054_v41 = vld [vmem:[%s10402_s22 + $0x188] sm:$0xff]   ;;  %v10055_v42 = vld [vmem:[%s10396_s19 + $0x190] sm:$0xff]  }
  0x5e   : > { %v10056_v43 = vld [vmem:[%s10402_s22 + $0x190] sm:$0xff]  }
  0x64   : > { %9377 = vmatmul.mubr.msk.bf16.gmra.mrb[36].mxu0 %vm892_vm2, %v9993_v44  ;;  %9509 = vmatmul.mubr.msk.bf16.gmra.mrb[36].mxu1 %vm892_vm2, %v9994_v45  ;;  %v10057_v44 = vld [vmem:[%s10396_s19 + $0x198] sm:$0xff]  }
  0x65   : > { %9380 = vmatprep.mubr.msk.bf16.mxu0 %vm892_vm2, %v9995_v46  ;;  %9512 = vmatprep.mubr.msk.bf16.mxu1 %vm892_vm2, %v9996_v47  ;;  %v10058_v45 = vld [vmem:[%s10402_s22 + $0x198] sm:$0xff]   ;;  %v10059_v46 = vld [vmem:[%s10396_s19 + $0x1a0] sm:$0xff]  }
  0x66   : > { %v10060_v47 = vld [vmem:[%s10402_s22 + $0x1a0] sm:$0xff]  }
  0x6c   : > { %9381 = vmatmul.mubr.msk.bf16.gmra.mrb[40].mxu0 %vm892_vm2, %v9997_v48  ;;  %9513 = vmatmul.mubr.msk.bf16.gmra.mrb[40].mxu1 %vm892_vm2, %v9998_v49  ;;  %v10061_v48 = vld [vmem:[%s10396_s19 + $0x1a8] sm:$0xff]  }
  0x6d   : > { %9384 = vmatprep.mubr.msk.bf16.mxu0 %vm892_vm2, %v9999_v50  ;;  %9516 = vmatprep.mubr.msk.bf16.mxu1 %vm892_vm2, %v10000_v51  ;;  %v10062_v49 = vld [vmem:[%s10402_s22 + $0x1a8] sm:$0xff]   ;;  %v10063_v50 = vld [vmem:[%s10396_s19 + $0x1b0] sm:$0xff]  }
  0x6e   : > { %v10064_v51 = vld [vmem:[%s10402_s22 + $0x1b0] sm:$0xff]  }
  0x74   : > { %9385 = vmatmul.mubr.msk.bf16.gmra.mrb[44].mxu0 %vm892_vm2, %v10001_v52  ;;  %9517 = vmatmul.mubr.msk.bf16.gmra.mrb[44].mxu1 %vm892_vm2, %v10002_v53  ;;  %v10635_v52 = vld [vmem:[%s13363_s5] ss:$0 sm:$0xff] }
  0x75   : > { %9388 = vmatprep.mubr.msk.bf16.mxu0 %vm892_vm2, %v10003_v54  ;;  %9520 = vmatprep.mubr.msk.bf16.mxu1 %vm892_vm2, %v10004_v55  ;;  %v10642_v53 = vld [vmem:[%s13364_s6] ss:$0 sm:$0xff]  ;;  %v10065_v54 = vld [vmem:[%s10396_s19 + $0x1b8] sm:$0xff]  }
  0x7c   : > { %9389 = vmatmul.mubr.msk.bf16.gmra.mrb[48].mxu0 %vm892_vm2, %v10005_v56  ;;  %9521 = vmatmul.mubr.msk.bf16.gmra.mrb[48].mxu1 %vm892_vm2, %v10006_v57  ;;  %v10066_v56 = vld [vmem:[%s10402_s22 + $0x1b8] sm:$0xff]   ;;  %v10067_v57 = vld [vmem:[%s10396_s19 + $0x1c0] sm:$0xff]  }
  0x7d   : > { %9392 = vmatprep.mubr.msk.bf16.mxu0 %vm892_vm2, %v10007_v58  ;;  %9524 = vmatprep.mubr.msk.bf16.mxu1 %vm892_vm2, %v10008_v59 }
  0x84   : > { %9393 = vmatmul.mubr.msk.bf16.gmra.mrb[52].mxu0 %vm892_vm2, %v10009_v60  ;;  %9525 = vmatmul.mubr.msk.bf16.gmra.mrb[52].mxu1 %vm892_vm2, %v10010_v61 }
  0x85   : > { %9396 = vmatprep.mubr.msk.bf16.mxu0 %vm892_vm2, %v10011_v62  ;;  %9528 = vmatprep.mubr.msk.bf16.mxu1 %vm892_vm2, %v10012_v63 }
  0x8c   : > { %9397 = vmatmul.mubr.msk.bf16.gmra.mrb[56].mxu0 %vm892_vm2, %v10013_v0  ;;  %9529 = vmatmul.mubr.msk.bf16.gmra.mrb[56].mxu1 %vm892_vm2, %v10014_v1 }
  0x8d   : > { %9400 = vmatprep.mubr.msk.bf16.mxu0 %vm892_vm2, %v10015_v2  ;;  %9532 = vmatprep.mubr.msk.bf16.mxu1 %vm892_vm2, %v10016_v3 }
  0x94   : > { %9401 = vmatmul.mubr.msk.bf16.gmra.mrb[60].mxu0 %vm892_vm2, %v10017_v4  ;;  %9533 = vmatmul.mubr.msk.bf16.gmra.mrb[60].mxu1 %vm892_vm2, %v10018_v5 }
  0x95   : > { %9404 = vmatprep.mubr.msk.bf16.mxu0 %vm892_vm2, %v10019_v6  ;;  %9536 = vmatprep.mubr.msk.bf16.mxu1 %vm892_vm2, %v10020_v7  ;;  %v10068_v6 = vld [vmem:[%s10402_s22 + $0x1c0] sm:$0xff]  }
  0x9c   : > { %9405 = vmatmul.mubr.msk.bf16.gmra.mrb[64].mxu0 %vm892_vm2, %v10021_v8  ;;  %9537 = vmatmul.mubr.msk.bf16.gmra.mrb[64].mxu1 %vm892_vm2, %v10022_v9 }
  0x9d   : > { %9408 = vmatprep.mubr.msk.bf16.mxu0 %vm892_vm2, %v10023_v10  ;;  %9540 = vmatprep.mubr.msk.bf16.mxu1 %vm892_vm2, %v10024_v11 }
  0xa4   : > { %9409 = vmatmul.mubr.msk.bf16.gmra.mrb[68].mxu0 %vm892_vm2, %v10025_v12  ;;  %9541 = vmatmul.mubr.msk.bf16.gmra.mrb[68].mxu1 %vm892_vm2, %v10026_v13 }
  0xa5   : > { %9412 = vmatprep.mubr.msk.bf16.mxu0 %vm892_vm2, %v10027_v14  ;;  %9544 = vmatprep.mubr.msk.bf16.mxu1 %vm892_vm2, %v10028_v15 }
  0xac   : > { %9413 = vmatmul.mubr.msk.bf16.gmra.mrb[72].mxu0 %vm892_vm2, %v10029_v16  ;;  %9545 = vmatmul.mubr.msk.bf16.gmra.mrb[72].mxu1 %vm892_vm2, %v10030_v17 }
  0xad   : > { %9416 = vmatprep.mubr.msk.bf16.mxu0 %vm892_vm2, %v10031_v18  ;;  %9548 = vmatprep.mubr.msk.bf16.mxu1 %vm892_vm2, %v10032_v19 }
  0xb4   : > { %9417 = vmatmul.mubr.msk.bf16.gmra.mrb[76].mxu0 %vm892_vm2, %v10033_v20  ;;  %9549 = vmatmul.mubr.msk.bf16.gmra.mrb[76].mxu1 %vm892_vm2, %v10034_v21 }
  0xb5   : > { %9420 = vmatprep.mubr.msk.bf16.mxu0 %vm892_vm2, %v10035_v22  ;;  %9552 = vmatprep.mubr.msk.bf16.mxu1 %vm892_vm2, %v10036_v23  ;;  %v10069_v23 = vld [vmem:[%s10396_s19 + $0x1c8] sm:$0xff]  }
  0xbc   : > { %9421 = vmatmul.mubr.msk.bf16.gmra.mrb[80].mxu0 %vm892_vm2, %v10037_v24  ;;  %9553 = vmatmul.mubr.msk.bf16.gmra.mrb[80].mxu1 %vm892_vm2, %v10038_v25 }
  0xbd   : > { %9424 = vmatprep.mubr.msk.bf16.mxu0 %vm892_vm2, %v10039_v26  ;;  %9556 = vmatprep.mubr.msk.bf16.mxu1 %vm892_vm2, %v10040_v27 }
  0xc4   : > { %9425 = vmatmul.mubr.msk.bf16.gmra.mrb[84].mxu0 %vm892_vm2, %v10041_v28  ;;  %9557 = vmatmul.mubr.msk.bf16.gmra.mrb[84].mxu1 %vm892_vm2, %v10042_v29  ;;  %v10070_v28 = vld [vmem:[%s10402_s22 + $0x1c8] sm:$0xff]  }
  0xc5   : > { %9428 = vmatprep.mubr.msk.bf16.mxu0 %vm892_vm2, %v10043_v30  ;;  %9560 = vmatprep.mubr.msk.bf16.mxu1 %vm892_vm2, %v10044_v31 }
  0xcc   : > { %9429 = vmatmul.mubr.msk.bf16.gmra.mrb[88].mxu0 %vm892_vm2, %v10045_v32  ;;  %9561 = vmatmul.mubr.msk.bf16.gmra.mrb[88].mxu1 %vm892_vm2, %v10046_v33 }
  0xcd   : > { %9432 = vmatprep.mubr.msk.bf16.mxu0 %vm892_vm2, %v10047_v34  ;;  %9564 = vmatprep.mubr.msk.bf16.mxu1 %vm892_vm2, %v10048_v35  ;;  %v10071_v34 = vld [vmem:[%s10396_s19 + $0x1d0] sm:$0xff]  }
  0xd4   : > { %9433 = vmatmul.mubr.msk.bf16.gmra.mrb[92].mxu0 %vm892_vm2, %v10049_v36  ;;  %9565 = vmatmul.mubr.msk.bf16.gmra.mrb[92].mxu1 %vm892_vm2, %v10050_v37 }
  0xd5   : > { %9436 = vmatprep.mubr.msk.bf16.mxu0 %vm892_vm2, %v10051_v38  ;;  %9568 = vmatprep.mubr.msk.bf16.mxu1 %vm892_vm2, %v10052_v39 }
  0xdc   : > { %9437 = vmatmul.mubr.msk.bf16.gmra.mrb[96].mxu0 %vm892_vm2, %v10053_v40  ;;  %9569 = vmatmul.mubr.msk.bf16.gmra.mrb[96].mxu1 %vm892_vm2, %v10054_v41 }
  0xdd   : > { %9440 = vmatprep.mubr.msk.bf16.mxu0 %vm892_vm2, %v10055_v42  ;;  %9572 = vmatprep.mubr.msk.bf16.mxu1 %vm892_vm2, %v10056_v43 }
  0xe4   : > { %9441 = vmatmul.mubr.msk.bf16.gmra.mrb[100].mxu0 %vm892_vm2, %v10057_v44  ;;  %9573 = vmatmul.mubr.msk.bf16.gmra.mrb[100].mxu1 %vm892_vm2, %v10058_v45 }
  0xe5   : > { %9444 = vmatprep.mubr.msk.bf16.mxu0 %vm892_vm2, %v10059_v46  ;;  %9576 = vmatprep.mubr.msk.bf16.mxu1 %vm892_vm2, %v10060_v47  ;;  %v10072_v46 = vld [vmem:[%s10402_s22 + $0x1d0] sm:$0xff]  }
  0xec   : > { %9445 = vmatmul.mubr.msk.bf16.gmra.mrb[104].mxu0 %vm892_vm2, %v10061_v48  ;;  %9577 = vmatmul.mubr.msk.bf16.gmra.mrb[104].mxu1 %vm892_vm2, %v10062_v49 }
  0xed   : > { %9448 = vmatprep.mubr.msk.bf16.mxu0 %vm892_vm2, %v10063_v50  ;;  %9580 = vmatprep.mubr.msk.bf16.mxu1 %vm892_vm2, %v10064_v51 }
  0xef   : > { %v9342_v55 = vpop.f32.mrb[0].mxu0  ;;  %v9474_v59 = vpop.f32.mrb[0].mxu1 }
  0xf0   : > { %v1645_v58 = vmul.f32 %v9342_v55, %v10635_v52  ;;  %v1126_v60 = vpop.f32.mrb[1].mxu0  ;;  %v3220_v61 = vmul.f32 %v9474_v59, %v10635_v52  ;;  %v2707_v63 = vpop.f32.mrb[1].mxu1 }
  0xf1   : > { %v1643_v62 = vmul.f32 %v10635_v52, %v1126_v60  ;;  %v9343_v0 = vpop.f32.mrb[2].mxu0  ;;  %v3218_v2 = vmul.f32 %v10635_v52, %v2707_v63  ;;  %v9475_v4 = vpop.f32.mrb[2].mxu1 }
  0xf2   : > { %v1779_v1 = vadd.f32 %v10642_v53, %v1645_v58  ;;  %v1646_v3 = vmul.f32 %v9343_v0, %v10635_v52  ;;  %v1129_v5 = vpop.f32.mrb[3].mxu0  ;;  %v3348_v7 = vadd.f32 %v10642_v53, %v3220_v61  ;;  %v3221_v9 = vmul.f32 %v9475_v4, %v10635_v52  ;;  %v2710_v11 = vpop.f32.mrb[3].mxu1 }
  0xf3   : > { %v1777_v8 = vadd.f32 %v10642_v53, %v1643_v62  ;;  %v1644_v10 = vmul.f32 %v10635_v52, %v1129_v5  ;;  %v3346_v13 = vadd.f32 %v10642_v53, %v3218_v2  ;;  %v3219_v15 = vmul.f32 %v10635_v52, %v2710_v11 }
  0xf4   : > { %v1907_v12 = vmax.f32 %v1779_v1, 0.0  ;;  %v1780_v14 = vadd.f32 %v10642_v53, %v1646_v3  ;;  %9449 = vmatmul.mubr.msk.bf16.gmra.mrb[108].mxu0 %vm892_vm2, %v10065_v54  ;;  %v3476_v16 = vmax.f32 %v3348_v7, 0.0  ;;  %v3349_v18 = vadd.f32 %v10642_v53, %v3221_v9  ;;  %9581 = vmatmul.mubr.msk.bf16.gmra.mrb[108].mxu1 %vm892_vm2, %v10066_v56  ;;  %v10073_v1 = vld [vmem:[%s10396_s19 + $0x1d8] sm:$0xff]  }
  0xf5   : > { %v1905_v17 = vmax.f32 %v1777_v8, 0.0  ;;  %v1778_v19 = vadd.f32 %v10642_v53, %v1644_v10  ;;  %9452 = vmatprep.mubr.msk.bf16.mxu0 %vm892_vm2, %v10067_v57  ;;  %v3474_v20 = vmax.f32 %v3346_v13, 0.0  ;;  %v3347_v22 = vadd.f32 %v10642_v53, %v3219_v15  ;;  %9584 = vmatprep.mubr.msk.bf16.mxu1 %vm892_vm2, %v10068_v6  ;;  %v10074_v6 = vld [vmem:[%s10402_s22 + $0x1d8] sm:$0xff]  }
  0xf6   : > { %v1908_v21 = vmax.f32 %v1780_v14, 0.0  ;;  %v10671_v24 = vmax.f32 %v1907_v12, %v3476_v16  ;;  %v3477_v25 = vmax.f32 %v3349_v18, 0.0  ;;  %v10075_v12 = vld [vmem:[%s10396_s19 + $0x1e0] sm:$0xff]  }
  0xf7   : > { %v1906_v26 = vmax.f32 %v1778_v19, 0.0  ;;  %v9346_v27 = vpop.f32.mrb[4].mxu0  ;;  %v10674_v29 = vmax.f32 %v1905_v17, %v3474_v20  ;;  %v3475_v30 = vmax.f32 %v3347_v22, 0.0  ;;  %v9478_v32 = vpop.f32.mrb[4].mxu1 }
  0xf8   : > { %v1649_v31 = vmul.f32 %v9346_v27, %v10635_v52  ;;  %v1142_v33 = vpop.f32.mrb[5].mxu0  ;;  %v10678_v35 = vmax.f32 %v1908_v21, %v3477_v25  ;;  %v3224_v36 = vmul.f32 %v9478_v32, %v10635_v52  ;;  %v2723_v38 = vpop.f32.mrb[5].mxu1  ;;  %v10076_v25 = vld [vmem:[%s10402_s22 + $0x1e0] sm:$0xff]  }
  0xf9   : > { %v1647_v37 = vmul.f32 %v10635_v52, %v1142_v33  ;;  %v9347_v39 = vpop.f32.mrb[6].mxu0  ;;  %v10682_v40 = vmax.f32 %v1906_v26, %v3475_v30  ;;  %v3222_v42 = vmul.f32 %v10635_v52, %v2723_v38  ;;  %v9479_v44 = vpop.f32.mrb[6].mxu1 }
  0xfa   : > { %v1783_v41 = vadd.f32 %v10642_v53, %v1649_v31  ;;  %v1650_v43 = vmul.f32 %v9347_v39, %v10635_v52  ;;  %v1145_v45 = vpop.f32.mrb[7].mxu0  ;;  %v3352_v47 = vadd.f32 %v10642_v53, %v3224_v36  ;;  %v3225_v49 = vmul.f32 %v9479_v44, %v10635_v52  ;;  %v2726_v51 = vpop.f32.mrb[7].mxu1 }
  0xfb   : > { %v1781_v48 = vadd.f32 %v10642_v53, %v1647_v37  ;;  %v1648_v50 = vmul.f32 %v10635_v52, %v1145_v45  ;;  %v3350_v55 = vadd.f32 %v10642_v53, %v3222_v42  ;;  %v3223_v57 = vmul.f32 %v10635_v52, %v2726_v51  ;;  %v10077_v45 = vld [vmem:[%s10396_s19 + $0x1e8] sm:$0xff]  }
  0xfc   : > { %v1911_v54 = vmax.f32 %v1783_v41, 0.0  ;;  %v1784_v56 = vadd.f32 %v10642_v53, %v1650_v43  ;;  %9453 = vmatmul.mubr.msk.bf16.gmra.mrb[112].mxu0 %vm892_vm2, %v10069_v23  ;;  %v3480_v58 = vmax.f32 %v3352_v47, 0.0  ;;  %v3353_v60 = vadd.f32 %v10642_v53, %v3225_v49  ;;  %9585 = vmatmul.mubr.msk.bf16.gmra.mrb[112].mxu1 %vm892_vm2, %v10070_v28 }
  0xfd   : > { %v1909_v59 = vmax.f32 %v1781_v48, 0.0  ;;  %v1782_v61 = vadd.f32 %v10642_v53, %v1648_v50  ;;  %9456 = vmatprep.mubr.msk.bf16.mxu0 %vm892_vm2, %v10071_v34  ;;  %v3478_v62 = vmax.f32 %v3350_v55, 0.0  ;;  %v3351_v0 = vadd.f32 %v10642_v53, %v3223_v57  ;;  %9588 = vmatprep.mubr.msk.bf16.mxu1 %vm892_vm2, %v10072_v46  ;;  %v10078_v50 = vld [vmem:[%s10402_s22 + $0x1e8] sm:$0xff]  }
  0xfe   : > { %v1912_v63 = vmax.f32 %v1784_v56, 0.0  ;;  %v10703_v2 = vmax.f32 %v1911_v54, %v3480_v58  ;;  %v3481_v3 = vmax.f32 %v3353_v60, 0.0  ;;  %v10079_v58 = vld [vmem:[%s10396_s19 + $0x1f0] sm:$0xff]  }
  0xff   : > { %v1910_v4 = vmax.f32 %v1782_v61, 0.0  ;;  %v9350_v5 = vpop.f32.mrb[8].mxu0  ;;  %v10706_v7 = vmax.f32 %v1909_v59, %v3478_v62  ;;  %v3479_v8 = vmax.f32 %v3351_v0, 0.0  ;;  %v9482_v10 = vpop.f32.mrb[8].mxu1 }
 0x100   : > { %v1653_v9 = vmul.f32 %v9350_v5, %v10635_v52  ;;  %v1158_v11 = vpop.f32.mrb[9].mxu0  ;;  %v10710_v13 = vmax.f32 %v1912_v63, %v3481_v3  ;;  %v3228_v14 = vmul.f32 %v9482_v10, %v10635_v52  ;;  %v2739_v16 = vpop.f32.mrb[9].mxu1 }
 0x101   : > { %v1651_v15 = vmul.f32 %v10635_v52, %v1158_v11  ;;  %v9351_v17 = vpop.f32.mrb[10].mxu0  ;;  %v10714_v18 = vmax.f32 %v1910_v4, %v3479_v8  ;;  %v3226_v20 = vmul.f32 %v10635_v52, %v2739_v16  ;;  %v9483_v22 = vpop.f32.mrb[10].mxu1  ;;  %v10080_v8 = vld [vmem:[%s10402_s22 + $0x1f0] sm:$0xff]  }
 0x102   : > { %v1787_v19 = vadd.f32 %v10642_v53, %v1653_v9  ;;  %v1654_v21 = vmul.f32 %v9351_v17, %v10635_v52  ;;  %v1161_v23 = vpop.f32.mrb[11].mxu0  ;;  %v3356_v26 = vadd.f32 %v10642_v53, %v3228_v14  ;;  %v3229_v28 = vmul.f32 %v9483_v22, %v10635_v52  ;;  %v2742_v31 = vpop.f32.mrb[11].mxu1 }
 0x103   : > { %v1785_v27 = vadd.f32 %v10642_v53, %v1651_v15  ;;  %v1652_v30 = vmul.f32 %v10635_v52, %v1161_v23  ;;  %v3354_v33 = vadd.f32 %v10642_v53, %v3226_v20  ;;  %v3227_v36 = vmul.f32 %v10635_v52, %v2742_v31 }
 0x104   : > { %v1915_v32 = vmax.f32 %v1787_v19, 0.0  ;;  %v1788_v34 = vadd.f32 %v10642_v53, %v1654_v21  ;;  %9457 = vmatmul.mubr.msk.bf16.gmra.mrb[116].mxu0 %vm892_vm2, %v10073_v1  ;;  %v3484_v37 = vmax.f32 %v3356_v26, 0.0  ;;  %v3357_v39 = vadd.f32 %v10642_v53, %v3229_v28  ;;  %9589 = vmatmul.mubr.msk.bf16.gmra.mrb[116].mxu1 %vm892_vm2, %v10074_v6 }
 0x105   : > { %v1913_v38 = vmax.f32 %v1785_v27, 0.0  ;;  %v1786_v41 = vadd.f32 %v10642_v53, %v1652_v30  ;;  %9460 = vmatprep.mubr.msk.bf16.mxu0 %vm892_vm2, %v10075_v12  ;;  %v3482_v42 = vmax.f32 %v3354_v33, 0.0  ;;  %v3355_v44 = vadd.f32 %v10642_v53, %v3227_v36  ;;  %9592 = vmatprep.mubr.msk.bf16.mxu1 %vm892_vm2, %v10076_v25 }
 0x106   : > { %v1916_v43 = vmax.f32 %v1788_v34, 0.0  ;;  %v10735_v46 = vmax.f32 %v1915_v32, %v3484_v37  ;;  %v3485_v47 = vmax.f32 %v3357_v39, 0.0  ;;  %v10081_v39 = vld [vmem:[%s10396_s19 + $0x1f8] sm:$0xff]  }
 0x107   : > { %v1914_v48 = vmax.f32 %v1786_v41, 0.0  ;;  %v9354_v49 = vpop.f32.mrb[12].mxu0  ;;  %v10738_v51 = vmax.f32 %v1913_v38, %v3482_v42  ;;  %v3483_v54 = vmax.f32 %v3355_v44, 0.0  ;;  %v9486_v56 = vpop.f32.mrb[12].mxu1 }
 0x108   : > { %v1657_v55 = vmul.f32 %v9354_v49, %v10635_v52  ;;  %v1174_v57 = vpop.f32.mrb[13].mxu0  ;;  %v10742_v59 = vmax.f32 %v1916_v43, %v3485_v47  ;;  %v3232_v60 = vmul.f32 %v9486_v56, %v10635_v52  ;;  %v2755_v62 = vpop.f32.mrb[13].mxu1  ;;  %v10082_v47 = vld [vmem:[%s10402_s22 + $0x1f8] sm:$0xff]  }
 0x109   : > { %v1655_v61 = vmul.f32 %v10635_v52, %v1174_v57  ;;  %v9355_v63 = vpop.f32.mrb[14].mxu0  ;;  %v10746_v0 = vmax.f32 %v1914_v48, %v3483_v54  ;;  %v3230_v3 = vmul.f32 %v10635_v52, %v2755_v62  ;;  %v9487_v5 = vpop.f32.mrb[14].mxu1  ;;  %v10083_v48 = vld [vmem:[%s10543_s29] sm:$0xff]  }
 0x10a   : > { %v1791_v1 = vadd.f32 %v10642_v53, %v1657_v55  ;;  %v1658_v4 = vmul.f32 %v9355_v63, %v10635_v52  ;;  %v1177_v6 = vpop.f32.mrb[15].mxu0  ;;  %v3360_v9 = vadd.f32 %v10642_v53, %v3232_v60  ;;  %v3233_v11 = vmul.f32 %v9487_v5, %v10635_v52  ;;  %v2758_v14 = vpop.f32.mrb[15].mxu1 }
 0x10b   : > { %v1789_v10 = vadd.f32 %v10642_v53, %v1655_v61  ;;  %v1656_v12 = vmul.f32 %v10635_v52, %v1177_v6  ;;  %v3358_v16 = vadd.f32 %v10642_v53, %v3230_v3  ;;  %v3231_v19 = vmul.f32 %v10635_v52, %v2758_v14 }
 0x10c   : > { %v1919_v15 = vmax.f32 %v1791_v1, 0.0  ;;  %v1792_v17 = vadd.f32 %v10642_v53, %v1658_v4  ;;  %9461 = vmatmul.mubr.msk.bf16.gmra.mrb[120].mxu0 %vm892_vm2, %v10077_v45  ;;  %v3488_v20 = vmax.f32 %v3360_v9, 0.0  ;;  %v3361_v22 = vadd.f32 %v10642_v53, %v3233_v11  ;;  %9593 = vmatmul.mubr.msk.bf16.gmra.mrb[120].mxu1 %vm892_vm2, %v10078_v50 }
 0x10d   : > { %v1917_v21 = vmax.f32 %v1789_v10, 0.0  ;;  %v1790_v23 = vadd.f32 %v10642_v53, %v1656_v12  ;;  %9464 = vmatprep.mubr.msk.bf16.mxu0 %vm892_vm2, %v10079_v58  ;;  %v3486_v25 = vmax.f32 %v3358_v16, 0.0  ;;  %v3359_v27 = vadd.f32 %v10642_v53, %v3231_v19  ;;  %9596 = vmatprep.mubr.msk.bf16.mxu1 %vm892_vm2, %v10080_v8  ;;  %v10084_v58 = vld [vmem:[%s10550_s11] sm:$0xff]  }
 0x10e   : > { %v1920_v26 = vmax.f32 %v1792_v17, 0.0  ;;  %v10766_v28 = vmax.f32 %v1919_v15, %v3488_v20  ;;  %v3489_v30 = vmax.f32 %v3361_v22, 0.0 }
 0x10f   : > { %v1918_v31 = vmax.f32 %v1790_v23, 0.0  ;;  %v9358_v32 = vpop.f32.mrb[16].mxu0  ;;  %v10768_v33 = vmax.f32 %v1917_v21, %v3486_v25  ;;  %v3487_v34 = vmax.f32 %v3359_v27, 0.0  ;;  %v9490_v37 = vpop.f32.mrb[16].mxu1  ;;  %v10085_v27 = vld [vmem:[%s10543_s29 + $0x8] sm:$0xff]  }
 0x110   : > { %v1661_v36 = vmul.f32 %v9358_v32, %v10635_v52  ;;  %v1190_v38 = vpop.f32.mrb[17].mxu0  ;;  %v10772_v41 = vmax.f32 %v1920_v26, %v3489_v30  ;;  %v3236_v42 = vmul.f32 %v9490_v37, %v10635_v52  ;;  %v2771_v44 = vpop.f32.mrb[17].mxu1  ;;  %v10086_v37 = vld [vmem:[%s10550_s11 + $0x8] sm:$0xff]  }
 0x111   : > { %v1659_v43 = vmul.f32 %v10635_v52, %v1190_v38  ;;  %v9359_v45 = vpop.f32.mrb[18].mxu0  ;;  %v10778_v49 = vmax.f32 %v1918_v31, %v3487_v34  ;;  %v3234_v54 = vmul.f32 %v10635_v52, %v2771_v44  ;;  %v9491_v56 = vpop.f32.mrb[18].mxu1  ;;  %v10087_v38 = vld [vmem:[%s10543_s29 + $0x10] sm:$0xff]  }
 0x112   : > { %v1795_v50 = vadd.f32 %v10642_v53, %v1661_v36  ;;  %v1662_v55 = vmul.f32 %v9359_v45, %v10635_v52  ;;  %v1193_v57 = vpop.f32.mrb[19].mxu0  ;;  %v3364_v60 = vadd.f32 %v10642_v53, %v3236_v42  ;;  %v3237_v62 = vmul.f32 %v9491_v56, %v10635_v52  ;;  %v2774_v1 = vpop.f32.mrb[19].mxu1 }
 0x113   : > { %v1793_v61 = vadd.f32 %v10642_v53, %v1659_v43  ;;  %v1660_v63 = vmul.f32 %v10635_v52, %v1193_v57  ;;  %v3362_v4 = vadd.f32 %v10642_v53, %v3234_v54  ;;  %v3235_v6 = vmul.f32 %v10635_v52, %v2774_v1 }
 0x114   : > { %v1923_v3 = vmax.f32 %v1795_v50, 0.0  ;;  %v1796_v5 = vadd.f32 %v10642_v53, %v1662_v55  ;;  %9465 = vmatmul.mubr.msk.bf16.gmra.mrb[124].mxu0 %vm892_vm2, %v10081_v39  ;;  %v3492_v8 = vmax.f32 %v3364_v60, 0.0  ;;  %v3365_v10 = vadd.f32 %v10642_v53, %v3237_v62  ;;  %9597 = vmatmul.mubr.msk.bf16.gmra.mrb[124].mxu1 %vm892_vm2, %v10082_v47 }
 0x115   : > { %v1921_v9 = vmax.f32 %v1793_v61, 0.0  ;;  %v1794_v11 = vadd.f32 %v10642_v53, %v1660_v63  ;;  %9604 = vmatprep.mubr.msk.bf16.mxu0 %vm892_vm2, %v10083_v48  ;;  %v3490_v12 = vmax.f32 %v3362_v4, 0.0  ;;  %v3363_v15 = vadd.f32 %v10642_v53, %v3235_v6  ;;  %9736 = vmatprep.mubr.msk.bf16.mxu1 %vm892_vm2, %v10084_v58  ;;  %v10088_v48 = vld [vmem:[%s10550_s11 + $0x10] sm:$0xff]  }
 0x116   : > { %v1924_v14 = vmax.f32 %v1796_v5, 0.0  ;;  %v10798_v16 = vmax.f32 %v1923_v3, %v3492_v8  ;;  %v3493_v17 = vmax.f32 %v3365_v10, 0.0 }
 0x117   : > { %v1922_v19 = vmax.f32 %v1794_v11, 0.0  ;;  %v9362_v20 = vpop.f32.mrb[20].mxu0  ;;  %v10800_v21 = vmax.f32 %v1921_v9, %v3490_v12  ;;  %v3491_v22 = vmax.f32 %v3363_v15, 0.0  ;;  %v9494_v25 = vpop.f32.mrb[20].mxu1 }
 0x118   : > { %v1665_v23 = vmul.f32 %v9362_v20, %v10635_v52  ;;  %v1206_v26 = vpop.f32.mrb[21].mxu0  ;;  %v10804_v30 = vmax.f32 %v1924_v14, %v3493_v17  ;;  %v3240_v31 = vmul.f32 %v9494_v25, %v10635_v52  ;;  %v2787_v34 = vpop.f32.mrb[21].mxu1 }
 0x119   : > { %v1663_v32 = vmul.f32 %v10635_v52, %v1206_v26  ;;  %v9363_v36 = vpop.f32.mrb[22].mxu0  ;;  %v10810_v39 = vmax.f32 %v1922_v19, %v3491_v22  ;;  %v3238_v43 = vmul.f32 %v10635_v52, %v2787_v34  ;;  %v9495_v45 = vpop.f32.mrb[22].mxu1  ;;  %v10089_v22 = vld [vmem:[%s10543_s29 + $0x18] sm:$0xff]   ;;  %v10091_v34 = vld [vmem:[%s10543_s29 + $0x20] sm:$0xff]  }
 0x11a   : > { %v1799_v42 = vadd.f32 %v10642_v53, %v1665_v23  ;;  %v1666_v44 = vmul.f32 %v9363_v36, %v10635_v52  ;;  %v1209_v47 = vpop.f32.mrb[23].mxu0  ;;  %v3368_v50 = vadd.f32 %v10642_v53, %v3240_v31  ;;  %v3241_v55 = vmul.f32 %v9495_v45, %v10635_v52  ;;  %v2790_v57 = vpop.f32.mrb[23].mxu1  ;;  %v10092_v45 = vld [vmem:[%s10550_s11 + $0x20] sm:$0xff]  }
 0x11b   : > { %v1797_v54 = vadd.f32 %v10642_v53, %v1663_v32  ;;  %v1664_v56 = vmul.f32 %v10635_v52, %v1209_v47  ;;  %v3366_v60 = vadd.f32 %v10642_v53, %v3238_v43  ;;  %v3239_v62 = vmul.f32 %v10635_v52, %v2790_v57  ;;  %v10090_v32 = vld [vmem:[%s10550_s11 + $0x18] sm:$0xff]  }
 0x11c   : > { %v1927_v58 = vmax.f32 %v1799_v42, 0.0  ;;  %v1800_v61 = vadd.f32 %v10642_v53, %v1666_v44  ;;  %9605 = vmatmul.mubr.msk.bf16.vlgmr.msra.gmra.mrb[128].mxu0 %vm892_vm2, %v10085_v27  ;;  %v3496_v63 = vmax.f32 %v3368_v50, 0.0  ;;  %v3369_v3 = vadd.f32 %v10642_v53, %v3241_v55  ;;  %9737 = vmatmul.mubr.msk.bf16.vlgmr.msra.gmra.mrb[128].mxu1 %vm892_vm2, %v10086_v37 }
 0x11d   : > { %v1925_v1 = vmax.f32 %v1797_v54, 0.0  ;;  %v1798_v4 = vadd.f32 %v10642_v53, %v1664_v56  ;;  %9608 = vmatprep.mubr.msk.bf16.mxu0 %vm892_vm2, %v10087_v38  ;;  %v3494_v5 = vmax.f32 %v3366_v60, 0.0  ;;  %v3367_v8 = vadd.f32 %v10642_v53, %v3239_v62  ;;  %9740 = vmatprep.mubr.msk.bf16.mxu1 %vm892_vm2, %v10088_v48 }
 0x11e   : > { %v1928_v6 = vmax.f32 %v1800_v61, 0.0  ;;  %v10830_v9 = vmax.f32 %v1927_v58, %v3496_v63  ;;  %v3497_v10 = vmax.f32 %v3369_v3, 0.0 }
 0x11f   : > { %v1926_v11 = vmax.f32 %v1798_v4, 0.0  ;;  %v9366_v12 = vpop.f32.mrb[24].mxu0  ;;  %v10832_v14 = vmax.f32 %v1925_v1, %v3494_v5  ;;  %v3495_v15 = vmax.f32 %v3367_v8, 0.0  ;;  %v9498_v19 = vpop.f32.mrb[24].mxu1 }
 0x120   : > { %v1669_v17 = vmul.f32 %v9366_v12, %v10635_v52  ;;  %v1222_v20 = vpop.f32.mrb[25].mxu0  ;;  %v10836_v23 = vmax.f32 %v1928_v6, %v3497_v10  ;;  %v3244_v25 = vmul.f32 %v9498_v19, %v10635_v52  ;;  %v2803_v27 = vpop.f32.mrb[25].mxu1 }
 0x121   : > { %v1667_v26 = vmul.f32 %v10635_v52, %v1222_v20  ;;  %v9367_v31 = vpop.f32.mrb[26].mxu0  ;;  %v10842_v36 = vmax.f32 %v1926_v11, %v3495_v15  ;;  %v3242_v38 = vmul.f32 %v10635_v52, %v2803_v27  ;;  %v9499_v43 = vpop.f32.mrb[26].mxu1 }
 0x122   : > { %v1803_v37 = vadd.f32 %v10642_v53, %v1669_v17  ;;  %v1670_v42 = vmul.f32 %v9367_v31, %v10635_v52  ;;  %v1225_v44 = vpop.f32.mrb[27].mxu0  ;;  %v3372_v47 = vadd.f32 %v10642_v53, %v3244_v25  ;;  %v3245_v50 = vmul.f32 %v9499_v43, %v10635_v52  ;;  %v2806_v55 = vpop.f32.mrb[27].mxu1 }
 0x123   : > { %v1801_v48 = vadd.f32 %v10642_v53, %v1667_v26  ;;  %v1668_v54 = vmul.f32 %v10635_v52, %v1225_v44  ;;  %v3370_v57 = vadd.f32 %v10642_v53, %v3242_v38  ;;  %v3243_v60 = vmul.f32 %v10635_v52, %v2806_v55 }
 0x124   : > { %v1931_v56 = vmax.f32 %v1803_v37, 0.0  ;;  %v1804_v58 = vadd.f32 %v10642_v53, %v1670_v42  ;;  %9609 = vmatmul.mubr.msk.bf16.gmra.mrb[132].mxu0 %vm892_vm2, %v10089_v22  ;;  %v3500_v61 = vmax.f32 %v3372_v47, 0.0  ;;  %v3373_v63 = vadd.f32 %v10642_v53, %v3245_v50  ;;  %9741 = vmatmul.mubr.msk.bf16.gmra.mrb[132].mxu1 %vm892_vm2, %v10090_v32  ;;  %v10093_v22 = vld [vmem:[%s10543_s29 + $0x28] sm:$0xff]   ;;  %v10095_v37 = vld [vmem:[%s10543_s29 + $0x30] sm:$0xff]  }
 0x125   : > { %v1929_v62 = vmax.f32 %v1801_v48, 0.0  ;;  %v1802_v1 = vadd.f32 %v10642_v53, %v1668_v54  ;;  %9612 = vmatprep.mubr.msk.bf16.mxu0 %vm892_vm2, %v10091_v34  ;;  %v3498_v3 = vmax.f32 %v3370_v57, 0.0  ;;  %v3371_v5 = vadd.f32 %v10642_v53, %v3243_v60  ;;  %9744 = vmatprep.mubr.msk.bf16.mxu1 %vm892_vm2, %v10092_v45  ;;  %v10094_v34 = vld [vmem:[%s10550_s11 + $0x28] sm:$0xff]   ;;  %v10096_v48 = vld [vmem:[%s10550_s11 + $0x30] sm:$0xff]  }
 0x126   : > { %v1932_v4 = vmax.f32 %v1804_v58, 0.0  ;;  %v10862_v6 = vmax.f32 %v1931_v56, %v3500_v61  ;;  %v3501_v8 = vmax.f32 %v3373_v63, 0.0 }
 0x127   : > { %v1930_v10 = vmax.f32 %v1802_v1, 0.0  ;;  %v9370_v11 = vpop.f32.mrb[28].mxu0  ;;  %v10864_v12 = vmax.f32 %v1929_v62, %v3498_v3  ;;  %v3499_v15 = vmax.f32 %v3371_v5, 0.0  ;;  %v9502_v19 = vpop.f32.mrb[28].mxu1 }
 0x128   : > { %v1673_v17 = vmul.f32 %v9370_v11, %v10635_v52  ;;  %v1238_v20 = vpop.f32.mrb[29].mxu0  ;;  %v10868_v25 = vmax.f32 %v1932_v4, %v3501_v8  ;;  %v3248_v26 = vmul.f32 %v9502_v19, %v10635_v52  ;;  %v2819_v31 = vpop.f32.mrb[29].mxu1 }
 0x129   : > { %v1671_v27 = vmul.f32 %v10635_v52, %v1238_v20  ;;  %v9371_v32 = vpop.f32.mrb[30].mxu0  ;;  %v10874_v38 = vmax.f32 %v1930_v10, %v3499_v15  ;;  %v3246_v43 = vmul.f32 %v10635_v52, %v2819_v31  ;;  %v9503_v45 = vpop.f32.mrb[30].mxu1 }
 0x12a   : > { %v1807_v42 = vadd.f32 %v10642_v53, %v1673_v17  ;;  %v1674_v44 = vmul.f32 %v9371_v32, %v10635_v52  ;;  %v1241_v47 = vpop.f32.mrb[31].mxu0  ;;  %v3376_v50 = vadd.f32 %v10642_v53, %v3248_v26  ;;  %v3249_v55 = vmul.f32 %v9503_v45, %v10635_v52  ;;  %v2822_v57 = vpop.f32.mrb[31].mxu1  ;;  %v10097_v32 = vld [vmem:[%s10543_s29 + $0x38] sm:$0xff]  }
 0x12b   : > { %v1805_v54 = vadd.f32 %v10642_v53, %v1671_v27  ;;  %v1672_v56 = vmul.f32 %v10635_v52, %v1241_v47  ;;  %v3374_v60 = vadd.f32 %v10642_v53, %v3246_v43  ;;  %v3247_v62 = vmul.f32 %v10635_v52, %v2822_v57  ;;  %v10098_v45 = vld [vmem:[%s10550_s11 + $0x38] sm:$0xff]   ;;  %v10099_v47 = vld [vmem:[%s10543_s29 + $0x40] sm:$0xff]  }
 0x12c   : > { %v1935_v58 = vmax.f32 %v1807_v42, 0.0  ;;  %v1808_v61 = vadd.f32 %v10642_v53, %v1674_v44  ;;  %9613 = vmatmul.mubr.msk.bf16.gmra.mrb[136].mxu0 %vm892_vm2, %v10093_v22  ;;  %v3504_v63 = vmax.f32 %v3376_v50, 0.0  ;;  %v3377_v3 = vadd.f32 %v10642_v53, %v3249_v55  ;;  %9745 = vmatmul.mubr.msk.bf16.gmra.mrb[136].mxu1 %vm892_vm2, %v10094_v34 }
 0x12d   : > { %v1933_v1 = vmax.f32 %v1805_v54, 0.0  ;;  %v1806_v4 = vadd.f32 %v10642_v53, %v1672_v56  ;;  %9616 = vmatprep.mubr.msk.bf16.mxu0 %vm892_vm2, %v10095_v37  ;;  %v3502_v5 = vmax.f32 %v3374_v60, 0.0  ;;  %v3375_v10 = vadd.f32 %v10642_v53, %v3247_v62  ;;  %9748 = vmatprep.mubr.msk.bf16.mxu1 %vm892_vm2, %v10096_v48 }
 0x12e   : > { %v1936_v8 = vmax.f32 %v1808_v61, 0.0  ;;  %v10894_v11 = vmax.f32 %v1935_v58, %v3504_v63  ;;  %v3505_v15 = vmax.f32 %v3377_v3, 0.0  ;;  %v10100_v58 = vld [vmem:[%s10550_s11 + $0x40] sm:$0xff]  }
 0x12f   : > { %v1934_v17 = vmax.f32 %v1806_v4, 0.0  ;;  %v9374_v19 = vpop.f32.mrb[32].mxu0  ;;  %v10896_v20 = vmax.f32 %v1933_v1, %v3502_v5  ;;  %v3503_v22 = vmax.f32 %v3375_v10, 0.0  ;;  %v9506_v27 = vpop.f32.mrb[32].mxu1 }
 0x130   : > { %v1677_v26 = vmul.f32 %v9374_v19, %v10635_v52  ;;  %v1254_v31 = vpop.f32.mrb[33].mxu0  ;;  %v10900_v34 = vmax.f32 %v1936_v8, %v3505_v15  ;;  %v3252_v37 = vmul.f32 %v9506_v27, %v10635_v52  ;;  %v2835_v43 = vpop.f32.mrb[33].mxu1 }
 0x131   : > { %v1675_v42 = vmul.f32 %v10635_v52, %v1254_v31  ;;  %v9375_v44 = vpop.f32.mrb[34].mxu0  ;;  %v10906_v48 = vmax.f32 %v1934_v17, %v3503_v22  ;;  %v3250_v54 = vmul.f32 %v10635_v52, %v2835_v43  ;;  %v9507_v56 = vpop.f32.mrb[34].mxu1 }
 0x132   : > { %v1811_v50 = vadd.f32 %v10642_v53, %v1677_v26  ;;  %v1678_v55 = vmul.f32 %v9375_v44, %v10635_v52  ;;  %v1257_v57 = vpop.f32.mrb[35].mxu0  ;;  %v3380_v60 = vadd.f32 %v10642_v53, %v3252_v37  ;;  %v3253_v62 = vmul.f32 %v9507_v56, %v10635_v52  ;;  %v2838_v1 = vpop.f32.mrb[35].mxu1 }
 0x133   : > { %v1809_v61 = vadd.f32 %v10642_v53, %v1675_v42  ;;  %v1676_v63 = vmul.f32 %v10635_v52, %v1257_v57  ;;  %v3378_v4 = vadd.f32 %v10642_v53, %v3250_v54  ;;  %v3251_v8 = vmul.f32 %v10635_v52, %v2838_v1  ;;  %v10101_v54 = vld [vmem:[%s10543_s29 + $0x48] sm:$0xff]  }
 0x134   : > { %v1939_v3 = vmax.f32 %v1811_v50, 0.0  ;;  %v1812_v5 = vadd.f32 %v10642_v53, %v1678_v55  ;;  %9617 = vmatmul.mubr.msk.bf16.gmra.mrb[140].mxu0 %vm892_vm2, %v10097_v32  ;;  %v3508_v10 = vmax.f32 %v3380_v60, 0.0  ;;  %v3381_v17 = vadd.f32 %v10642_v53, %v3253_v62  ;;  %9749 = vmatmul.mubr.msk.bf16.gmra.mrb[140].mxu1 %vm892_vm2, %v10098_v45  ;;  %v10103_v62 = vld [vmem:[%s10543_s29 + $0x50] sm:$0xff]  }
 0x135   : > { %v1937_v15 = vmax.f32 %v1809_v61, 0.0  ;;  %v1810_v19 = vadd.f32 %v10642_v53, %v1676_v63  ;;  %9620 = vmatprep.mubr.msk.bf16.mxu0 %vm892_vm2, %v10099_v47  ;;  %v3506_v22 = vmax.f32 %v3378_v4, 0.0  ;;  %v3379_v27 = vadd.f32 %v10642_v53, %v3251_v8  ;;  %9752 = vmatprep.mubr.msk.bf16.mxu1 %vm892_vm2, %v10100_v58  ;;  %v10102_v61 = vld [vmem:[%s10550_s11 + $0x48] sm:$0xff]  }
 0x136   : > { %v1940_v26 = vmax.f32 %v1812_v5, 0.0  ;;  %v10926_v31 = vmax.f32 %v1939_v3, %v3508_v10  ;;  %v3509_v32 = vmax.f32 %v3381_v17, 0.0  ;;  %v10104_v10 = vld [vmem:[%s10550_s11 + $0x50] sm:$0xff]  }
 0x137   : > { %v1938_v37 = vmax.f32 %v1810_v19, 0.0  ;;  %v9378_v42 = vpop.f32.mrb[36].mxu0  ;;  %v10928_v43 = vmax.f32 %v1937_v15, %v3506_v22  ;;  %v3507_v44 = vmax.f32 %v3379_v27, 0.0  ;;  %v9510_v50 = vpop.f32.mrb[36].mxu1 }
 0x138   : > { %v1681_v45 = vmul.f32 %v9378_v42, %v10635_v52  ;;  %v1270_v47 = vpop.f32.mrb[37].mxu0  ;;  %v10932_v55 = vmax.f32 %v1940_v26, %v3509_v32  ;;  %v3256_v56 = vmul.f32 %v9510_v50, %v10635_v52  ;;  %v2851_v58 = vpop.f32.mrb[37].mxu1 }
 0x139   : > { %v1679_v57 = vmul.f32 %v10635_v52, %v1270_v47  ;;  %v9379_v60 = vpop.f32.mrb[38].mxu0  ;;  %v10938_v63 = vmax.f32 %v1938_v37, %v3507_v44  ;;  %v3254_v3 = vmul.f32 %v10635_v52, %v2851_v58  ;;  %v9511_v5 = vpop.f32.mrb[38].mxu1 }
 0x13a   : > { %v1815_v1 = vadd.f32 %v10642_v53, %v1681_v45  ;;  %v1682_v4 = vmul.f32 %v9379_v60, %v10635_v52  ;;  %v1273_v8 = vpop.f32.mrb[39].mxu0  ;;  %v3384_v15 = vadd.f32 %v10642_v53, %v3256_v56  ;;  %v3257_v19 = vmul.f32 %v9511_v5, %v10635_v52  ;;  %v2854_v26 = vpop.f32.mrb[39].mxu1 }
 0x13b   : > { %v1813_v17 = vadd.f32 %v10642_v53, %v1679_v57  ;;  %v1680_v22 = vmul.f32 %v10635_v52, %v1273_v8  ;;  %v3382_v32 = vadd.f32 %v10642_v53, %v3254_v3  ;;  %v3255_v42 = vmul.f32 %v10635_v52, %v2854_v26 }
 0x13c   : > { %v1943_v27 = vmax.f32 %v1815_v1, 0.0  ;;  %v1816_v37 = vadd.f32 %v10642_v53, %v1682_v4  ;;  %9621 = vmatmul.mubr.msk.bf16.gmra.mrb[144].mxu0 %vm892_vm2, %v10101_v54  ;;  %v3512_v44 = vmax.f32 %v3384_v15, 0.0  ;;  %v3385_v50 = vadd.f32 %v10642_v53, %v3257_v19  ;;  %9753 = vmatmul.mubr.msk.bf16.gmra.mrb[144].mxu1 %vm892_vm2, %v10102_v61  ;;  %v10105_v15 = vld [vmem:[%s10543_s29 + $0x58] sm:$0xff]  }
 0x13d   : > { %v1941_v45 = vmax.f32 %v1813_v17, 0.0  ;;  %v1814_v47 = vadd.f32 %v10642_v53, %v1680_v22  ;;  %9624 = vmatprep.mubr.msk.bf16.mxu0 %vm892_vm2, %v10103_v62  ;;  %v3510_v56 = vmax.f32 %v3382_v32, 0.0  ;;  %v3383_v58 = vadd.f32 %v10642_v53, %v3255_v42  ;;  %9756 = vmatprep.mubr.msk.bf16.mxu1 %vm892_vm2, %v10104_v10  ;;  %v10107_v32 = vld [vmem:[%s10543_s29 + $0x60] sm:$0xff]  }
 0x13e   : > { %v1944_v57 = vmax.f32 %v1816_v37, 0.0  ;;  %v10958_v60 = vmax.f32 %v1943_v27, %v3512_v44  ;;  %v3513_v54 = vmax.f32 %v3385_v50, 0.0  ;;  %v10106_v27 = vld [vmem:[%s10550_s11 + $0x58] sm:$0xff]   ;;  %v10976_v44 = vld [vmem:[%s13363_s5] ss:$0 sm:$0xff] }
 0x13f   : > { %v1942_v1 = vmax.f32 %v1814_v47, 0.0  ;;  %v9382_v3 = vpop.f32.mrb[40].mxu0  ;;  %v10960_v4 = vmax.f32 %v1941_v45, %v3510_v56  ;;  %v3511_v5 = vmax.f32 %v3383_v58, 0.0  ;;  %v9514_v8 = vpop.f32.mrb[40].mxu1  ;;  %v10985_v58 = vld [vmem:[%s13364_s6] ss:$0 sm:$0xff] }
 0x140   : > { %v1685_v61 = vmul.f32 %v9382_v3, %v10635_v52  ;;  %v1286_v62 = vpop.f32.mrb[41].mxu0  ;;  %v10964_v17 = vmax.f32 %v1944_v57, %v3513_v54  ;;  %v3260_v10 = vmul.f32 %v9514_v8, %v10635_v52  ;;  %v2867_v22 = vpop.f32.mrb[41].mxu1 }
 0x141   : > { %v1683_v19 = vmul.f32 %v10635_v52, %v1286_v62  ;;  %v9383_v26 = vpop.f32.mrb[42].mxu0  ;;  %v10970_v37 = vmax.f32 %v1942_v1, %v3511_v5  ;;  %v3258_v45 = vmul.f32 %v10976_v44, %v2867_v22  ;;  %v9515_v47 = vpop.f32.mrb[42].mxu1  ;;  %v10108_v52 = vld [vmem:[%s10550_s11 + $0x60] sm:$0xff]  }
 0x142   : > { %v1819_v42 = vadd.f32 %v10642_v53, %v1685_v61  ;;  %v1686_v50 = vmul.f32 %v10976_v44, %v9383_v26  ;;  %v1289_v56 = vpop.f32.mrb[43].mxu0  ;;  %v3388_v57 = vadd.f32 %v10642_v53, %v3260_v10  ;;  %v3261_v1 = vmul.f32 %v10976_v44, %v9515_v47  ;;  %v2870_v5 = vpop.f32.mrb[43].mxu1 }
 0x143   : > { %v1817_v54 = vadd.f32 %v10985_v58, %v1683_v19  ;;  %v1684_v3 = vmul.f32 %v10976_v44, %v1289_v56  ;;  %v3386_v8 = vadd.f32 %v10985_v58, %v3258_v45  ;;  %v3259_v22 = vmul.f32 %v10976_v44, %v2870_v5  ;;  %v10109_v5 = vld [vmem:[%s10543_s29 + $0x68] sm:$0xff]  }
 0x144   : > { %v1947_v61 = vmax.f32 %v1819_v42, 0.0  ;;  %v1820_v62 = vadd.f32 %v10985_v58, %v1686_v50  ;;  %9625 = vmatmul.mubr.msk.bf16.gmra.mrb[148].mxu0 %vm892_vm2, %v10105_v15  ;;  %v3516_v53 = vmax.f32 %v3388_v57, 0.0  ;;  %v3389_v26 = vadd.f32 %v10985_v58, %v3261_v1  ;;  %9757 = vmatmul.mubr.msk.bf16.gmra.mrb[148].mxu1 %vm892_vm2, %v10106_v27 }
 0x145   : > { %v1945_v10 = vmax.f32 %v1817_v54, 0.0  ;;  %v1818_v19 = vadd.f32 %v10985_v58, %v1684_v3  ;;  %9628 = vmatprep.mubr.msk.bf16.mxu0 %vm892_vm2, %v10107_v32  ;;  %v3514_v42 = vmax.f32 %v3386_v8, 0.0  ;;  %v3387_v45 = vadd.f32 %v10985_v58, %v3259_v22  ;;  %9760 = vmatprep.mubr.msk.bf16.mxu1 %vm892_vm2, %v10108_v52 }
 0x146   : > { %v1948_v47 = vmax.f32 %v1820_v62, 0.0  ;;  %v11000_v50 = vmax.f32 %v1947_v61, %v3516_v53  ;;  %v3517_v15 = vmax.f32 %v3389_v26, 0.0  ;;  %v10110_v53 = vld [vmem:[%s10550_s11 + $0x68] sm:$0xff]   ;;  %v10111_v26 = vld [vmem:[%s10543_s29 + $0x70] sm:$0xff]  }
 0x147   : > { %v1946_v56 = vmax.f32 %v1818_v19, 0.0  ;;  %v9386_v57 = vpop.f32.mrb[44].mxu0  ;;  %v11002_v54 = vmax.f32 %v1945_v10, %v3514_v42  ;;  %v3515_v1 = vmax.f32 %v3387_v45, 0.0  ;;  %v9518_v3 = vpop.f32.mrb[44].mxu1 }
 0x148   : > { %13367 = vst [vmem:[#allocation3_spill] sm:$0xff] %v11000_v50  ;;  %v1689_v27 = vmul.f32 %v10976_v44, %v9386_v57  ;;  %v1302_v32 = vpop.f32.mrb[45].mxu0  ;;  %v11006_v8 = vmax.f32 %v1948_v47, %v3517_v15  ;;  %v3264_v52 = vmul.f32 %v10976_v44, %v9518_v3  ;;  %v2883_v62 = vpop.f32.mrb[45].mxu1  ;;  %v10112_v47 = vld [vmem:[%s10550_s11 + $0x70] sm:$0xff]  }
 0x149   : > { %13368 = vst [vmem:[#allocation4_spill] sm:$0xff] %v11002_v54  ;;  %v1687_v61 = vmul.f32 %v10976_v44, %v1302_v32  ;;  %v9387_v22 = vpop.f32.mrb[46].mxu0  ;;  %v11012_v19 = vmax.f32 %v1946_v56, %v3515_v1  ;;  %v3262_v42 = vmul.f32 %v10976_v44, %v2883_v62  ;;  %v9519_v57 = vpop.f32.mrb[46].mxu1 }
 0x14a   : > { %13369 = vst [vmem:[#allocation5_spill] sm:$0xff] %v11006_v8  ;;  %v1823_v10 = vadd.f32 %v10985_v58, %v1689_v27  ;;  %v1690_v45 = vmul.f32 %v10976_v44, %v9387_v22  ;;  %v1305_v54 = vpop.f32.mrb[47].mxu0  ;;  %v3392_v15 = vadd.f32 %v10985_v58, %v3264_v52  ;;  %v3265_v32 = vmul.f32 %v10976_v44, %v9519_v57  ;;  %v2886_v50 = vpop.f32.mrb[47].mxu1 }
 0x14b   : > { %13370 = vst [vmem:[#allocation6_spill] sm:$0xff] %v11012_v19  ;;  %v1821_v3 = vadd.f32 %v10985_v58, %v1687_v61  ;;  %v1688_v8 = vmul.f32 %v10976_v44, %v1305_v54  ;;  %v3390_v1 = vadd.f32 %v10985_v58, %v3262_v42  ;;  %v3263_v62 = vmul.f32 %v10976_v44, %v2886_v50 }
 0x14c   : > { %v1951_v56 = vmax.f32 %v1823_v10, 0.0  ;;  %v1824_v27 = vadd.f32 %v10985_v58, %v1690_v45  ;;  %9629 = vmatmul.mubr.msk.bf16.gmra.mrb[152].mxu0 %vm892_vm2, %v10109_v5  ;;  %v3520_v22 = vmax.f32 %v3392_v15, 0.0  ;;  %v3393_v52 = vadd.f32 %v10985_v58, %v3265_v32  ;;  %9761 = vmatmul.mubr.msk.bf16.gmra.mrb[152].mxu1 %vm892_vm2, %v10110_v53  ;;  %v10113_v32 = vld [vmem:[%s10543_s29 + $0x78] sm:$0xff]  }
 0x14d   : > { %v1949_v19 = vmax.f32 %v1821_v3, 0.0  ;;  %v1822_v61 = vadd.f32 %v10985_v58, %v1688_v8  ;;  %9632 = vmatprep.mubr.msk.bf16.mxu0 %vm892_vm2, %v10111_v26  ;;  %v3518_v54 = vmax.f32 %v3390_v1, 0.0  ;;  %v3391_v42 = vadd.f32 %v10985_v58, %v3263_v62  ;;  %9764 = vmatprep.mubr.msk.bf16.mxu1 %vm892_vm2, %v10112_v47 }
 0x14e   : > { %v1952_v10 = vmax.f32 %v1824_v27, 0.0  ;;  %v11032_v50 = vmax.f32 %v1951_v56, %v3520_v22  ;;  %v3521_v5 = vmax.f32 %v3393_v52, 0.0  ;;  %v10114_v22 = vld [vmem:[%s10550_s11 + $0x78] sm:$0xff]   ;;  %v10115_v52 = vld [vmem:[%s10543_s29 + $0x80] sm:$0xff]  }
 0x14f   : > { %v1950_v45 = vmax.f32 %v1822_v61, 0.0  ;;  %v9390_v57 = vpop.f32.mrb[48].mxu0  ;;  %v11034_v15 = vmax.f32 %v1949_v19, %v3518_v54  ;;  %v3519_v8 = vmax.f32 %v3391_v42, 0.0  ;;  %v9522_v3 = vpop.f32.mrb[48].mxu1 }
 0x150   : > { %13371 = vst [vmem:[#allocation7_spill] sm:$0xff] %v11032_v50  ;;  %v1693_v53 = vmul.f32 %v10976_v44, %v9390_v57  ;;  %v1318_v26 = vpop.f32.mrb[49].mxu0  ;;  %v11038_v1 = vmax.f32 %v1952_v10, %v3521_v5  ;;  %v3268_v47 = vmul.f32 %v10976_v44, %v9522_v3  ;;  %v2899_v27 = vpop.f32.mrb[49].mxu1  ;;  %v10116_v10 = vld [vmem:[%s10550_s11 + $0x80] sm:$0xff]  }
 0x151   : > { %13372 = vst [vmem:[#allocation8_spill] sm:$0xff] %v11034_v15  ;;  %v1691_v56 = vmul.f32 %v10976_v44, %v1318_v26  ;;  %v9391_v62 = vpop.f32.mrb[50].mxu0  ;;  %v11044_v61 = vmax.f32 %v1950_v45, %v3519_v8  ;;  %v3266_v54 = vmul.f32 %v10976_v44, %v2899_v27  ;;  %v9523_v57 = vpop.f32.mrb[50].mxu1 }
 0x152   : > { %13373 = vst [vmem:[#allocation9_spill] sm:$0xff] %v11038_v1  ;;  %v1827_v19 = vadd.f32 %v10985_v58, %v1693_v53  ;;  %v1694_v42 = vmul.f32 %v10976_v44, %v9391_v62  ;;  %v1321_v15 = vpop.f32.mrb[51].mxu0  ;;  %v3396_v5 = vadd.f32 %v10985_v58, %v3268_v47  ;;  %v3269_v26 = vmul.f32 %v10976_v44, %v9523_v57  ;;  %v2902_v50 = vpop.f32.mrb[51].mxu1 }
 0x153   : > { %13374 = vst [vmem:[#allocation10_spill] sm:$0xff] %v11044_v61  ;;  %v1825_v3 = vadd.f32 %v10985_v58, %v1691_v56  ;;  %v1692_v1 = vmul.f32 %v10976_v44, %v1321_v15  ;;  %v3394_v8 = vadd.f32 %v10985_v58, %v3266_v54  ;;  %v3267_v27 = vmul.f32 %v10976_v44, %v2902_v50 }
 0x154   : > { %v1955_v45 = vmax.f32 %v1827_v19, 0.0  ;;  %v1828_v53 = vadd.f32 %v10985_v58, %v1694_v42  ;;  %9633 = vmatmul.mubr.msk.bf16.gmra.mrb[156].mxu0 %vm892_vm2, %v10113_v32  ;;  %v3524_v62 = vmax.f32 %v3396_v5, 0.0  ;;  %v3397_v47 = vadd.f32 %v10985_v58, %v3269_v26  ;;  %9765 = vmatmul.mubr.msk.bf16.gmra.mrb[156].mxu1 %vm892_vm2, %v10114_v22  ;;  %v10117_v26 = vld [vmem:[%s10543_s29 + $0x88] sm:$0xff]  }
 0x155   : > { %v1953_v61 = vmax.f32 %v1825_v3, 0.0  ;;  %v1826_v56 = vadd.f32 %v10985_v58, %v1692_v1  ;;  %9636 = vmatprep.mubr.msk.bf16.mxu0 %vm892_vm2, %v10115_v52  ;;  %v3522_v15 = vmax.f32 %v3394_v8, 0.0  ;;  %v3395_v54 = vadd.f32 %v10985_v58, %v3267_v27  ;;  %9768 = vmatprep.mubr.msk.bf16.mxu1 %vm892_vm2, %v10116_v10 }
 0x156   : > { %v1956_v19 = vmax.f32 %v1828_v53, 0.0  ;;  %v11064_v50 = vmax.f32 %v1955_v45, %v3524_v62  ;;  %v3525_v32 = vmax.f32 %v3397_v47, 0.0  ;;  %v10118_v62 = vld [vmem:[%s10550_s11 + $0x88] sm:$0xff]   ;;  %v10119_v47 = vld [vmem:[%s10543_s29 + $0x90] sm:$0xff]  }
 0x157   : > { %v1954_v42 = vmax.f32 %v1826_v56, 0.0  ;;  %v9394_v57 = vpop.f32.mrb[52].mxu0  ;;  %v11066_v5 = vmax.f32 %v1953_v61, %v3522_v15  ;;  %v3523_v1 = vmax.f32 %v3395_v54, 0.0  ;;  %v9526_v3 = vpop.f32.mrb[52].mxu1 }
 0x158   : > { %13375 = vst [vmem:[#allocation11_spill] sm:$0xff] %v11064_v50  ;;  %v1697_v22 = vmul.f32 %v10976_v44, %v9394_v57  ;;  %v1334_v52 = vpop.f32.mrb[53].mxu0  ;;  %v11070_v8 = vmax.f32 %v1956_v19, %v3525_v32  ;;  %v3272_v10 = vmul.f32 %v10976_v44, %v9526_v3  ;;  %v2915_v53 = vpop.f32.mrb[53].mxu1  ;;  %v10120_v19 = vld [vmem:[%s10550_s11 + $0x90] sm:$0xff]  }
 0x159   : > { %13376 = vst [vmem:[#allocation12_spill] sm:$0xff] %v11066_v5  ;;  %v1695_v45 = vmul.f32 %v10976_v44, %v1334_v52  ;;  %v9395_v27 = vpop.f32.mrb[54].mxu0  ;;  %v11076_v56 = vmax.f32 %v1954_v42, %v3523_v1  ;;  %v3270_v15 = vmul.f32 %v10976_v44, %v2915_v53  ;;  %v9527_v57 = vpop.f32.mrb[54].mxu1 }
 0x15a   : > { %13377 = vst [vmem:[#allocation13_spill] sm:$0xff] %v11070_v8  ;;  %v1831_v61 = vadd.f32 %v10985_v58, %v1697_v22  ;;  %v1698_v54 = vmul.f32 %v10976_v44, %v9395_v27  ;;  %v1337_v5 = vpop.f32.mrb[55].mxu0  ;;  %v3400_v32 = vadd.f32 %v10985_v58, %v3272_v10  ;;  %v3273_v52 = vmul.f32 %v10976_v44, %v9527_v57  ;;  %v2918_v50 = vpop.f32.mrb[55].mxu1 }
 0x15b   : > { %13378 = vst [vmem:[#allocation14_spill] sm:$0xff] %v11076_v56  ;;  %v1829_v3 = vadd.f32 %v10985_v58, %v1695_v45  ;;  %v1696_v8 = vmul.f32 %v10976_v44, %v1337_v5  ;;  %v3398_v1 = vadd.f32 %v10985_v58, %v3270_v15  ;;  %v3271_v53 = vmul.f32 %v10976_v44, %v2918_v50 }
 0x15c   : > { %v1959_v42 = vmax.f32 %v1831_v61, 0.0  ;;  %v1832_v22 = vadd.f32 %v10985_v58, %v1698_v54  ;;  %9637 = vmatmul.mubr.msk.bf16.gmra.mrb[160].mxu0 %vm892_vm2, %v10117_v26  ;;  %v3528_v27 = vmax.f32 %v3400_v32, 0.0  ;;  %v3401_v10 = vadd.f32 %v10985_v58, %v3273_v52  ;;  %9769 = vmatmul.mubr.msk.bf16.gmra.mrb[160].mxu1 %vm892_vm2, %v10118_v62  ;;  %v10121_v52 = vld [vmem:[%s10543_s29 + $0x98] sm:$0xff]  }
 0x15d   : > { %v1957_v56 = vmax.f32 %v1829_v3, 0.0  ;;  %v1830_v45 = vadd.f32 %v10985_v58, %v1696_v8  ;;  %9640 = vmatprep.mubr.msk.bf16.mxu0 %vm892_vm2, %v10119_v47  ;;  %v3526_v5 = vmax.f32 %v3398_v1, 0.0  ;;  %v3399_v15 = vadd.f32 %v10985_v58, %v3271_v53  ;;  %9772 = vmatprep.mubr.msk.bf16.mxu1 %vm892_vm2, %v10120_v19 }
 0x15e   : > { %v1960_v61 = vmax.f32 %v1832_v22, 0.0  ;;  %v11096_v50 = vmax.f32 %v1959_v42, %v3528_v27  ;;  %v3529_v26 = vmax.f32 %v3401_v10, 0.0  ;;  %v10122_v27 = vld [vmem:[%s10550_s11 + $0x98] sm:$0xff]   ;;  %v10123_v10 = vld [vmem:[%s10543_s29 + $0xa0] sm:$0xff]  }
 0x15f   : > { %v1958_v54 = vmax.f32 %v1830_v45, 0.0  ;;  %v9398_v57 = vpop.f32.mrb[56].mxu0  ;;  %v11098_v32 = vmax.f32 %v1957_v56, %v3526_v5  ;;  %v3527_v8 = vmax.f32 %v3399_v15, 0.0  ;;  %v9530_v3 = vpop.f32.mrb[56].mxu1 }
 0x160   : > { %13379 = vst [vmem:[#allocation15_spill] sm:$0xff] %v11096_v50  ;;  %v1701_v62 = vmul.f32 %v10976_v44, %v9398_v57  ;;  %v1350_v47 = vpop.f32.mrb[57].mxu0  ;;  %v11102_v1 = vmax.f32 %v1960_v61, %v3529_v26  ;;  %v3276_v19 = vmul.f32 %v10976_v44, %v9530_v3  ;;  %v2931_v22 = vpop.f32.mrb[57].mxu1  ;;  %v10124_v61 = vld [vmem:[%s10550_s11 + $0xa0] sm:$0xff]  }
 0x161   : > { %13380 = vst [vmem:[#allocation16_spill] sm:$0xff] %v11098_v32  ;;  %v1699_v42 = vmul.f32 %v10976_v44, %v1350_v47  ;;  %v9399_v53 = vpop.f32.mrb[58].mxu0  ;;  %v11108_v45 = vmax.f32 %v1958_v54, %v3527_v8  ;;  %v3274_v5 = vmul.f32 %v10976_v44, %v2931_v22  ;;  %v9531_v57 = vpop.f32.mrb[58].mxu1 }
 0x162   : > { %13381 = vst [vmem:[#allocation17_spill] sm:$0xff] %v11102_v1  ;;  %v1835_v56 = vadd.f32 %v10985_v58, %v1701_v62  ;;  %v1702_v15 = vmul.f32 %v10976_v44, %v9399_v53  ;;  %v1353_v32 = vpop.f32.mrb[59].mxu0  ;;  %v3404_v26 = vadd.f32 %v10985_v58, %v3276_v19  ;;  %v3277_v47 = vmul.f32 %v10976_v44, %v9531_v57  ;;  %v2934_v50 = vpop.f32.mrb[59].mxu1 }
 0x163   : > { %13382 = vst [vmem:[#allocation18_spill] sm:$0xff] %v11108_v45  ;;  %v1833_v3 = vadd.f32 %v10985_v58, %v1699_v42  ;;  %v1700_v1 = vmul.f32 %v10976_v44, %v1353_v32  ;;  %v3402_v8 = vadd.f32 %v10985_v58, %v3274_v5  ;;  %v3275_v22 = vmul.f32 %v10976_v44, %v2934_v50 }
 0x164   : > { %v1963_v54 = vmax.f32 %v1835_v56, 0.0  ;;  %v1836_v62 = vadd.f32 %v10985_v58, %v1702_v15  ;;  %9641 = vmatmul.mubr.msk.bf16.gmra.mrb[164].mxu0 %vm892_vm2, %v10121_v52  ;;  %v3532_v53 = vmax.f32 %v3404_v26, 0.0  ;;  %v3405_v19 = vadd.f32 %v10985_v58, %v3277_v47  ;;  %9773 = vmatmul.mubr.msk.bf16.gmra.mrb[164].mxu1 %vm892_vm2, %v10122_v27  ;;  %v10125_v47 = vld [vmem:[%s10543_s29 + $0xa8] sm:$0xff]  }
 0x165   : > { %v1961_v45 = vmax.f32 %v1833_v3, 0.0  ;;  %v1834_v42 = vadd.f32 %v10985_v58, %v1700_v1  ;;  %9644 = vmatprep.mubr.msk.bf16.mxu0 %vm892_vm2, %v10123_v10  ;;  %v3530_v32 = vmax.f32 %v3402_v8, 0.0  ;;  %v3403_v5 = vadd.f32 %v10985_v58, %v3275_v22  ;;  %9776 = vmatprep.mubr.msk.bf16.mxu1 %vm892_vm2, %v10124_v61 }
 0x166   : > { %v1964_v56 = vmax.f32 %v1836_v62, 0.0  ;;  %v11128_v50 = vmax.f32 %v1963_v54, %v3532_v53  ;;  %v3533_v52 = vmax.f32 %v3405_v19, 0.0  ;;  %v10126_v53 = vld [vmem:[%s10550_s11 + $0xa8] sm:$0xff]   ;;  %v10127_v19 = vld [vmem:[%s10543_s29 + $0xb0] sm:$0xff]  }
 0x167   : > { %v1962_v15 = vmax.f32 %v1834_v42, 0.0  ;;  %v9402_v57 = vpop.f32.mrb[60].mxu0  ;;  %v11130_v26 = vmax.f32 %v1961_v45, %v3530_v32  ;;  %v3531_v1 = vmax.f32 %v3403_v5, 0.0  ;;  %v9534_v3 = vpop.f32.mrb[60].mxu1 }
 0x168   : > { %13383 = vst [vmem:[#allocation19_spill] sm:$0xff] %v11128_v50  ;;  %v1705_v27 = vmul.f32 %v10976_v44, %v9402_v57  ;;  %v1366_v10 = vpop.f32.mrb[61].mxu0  ;;  %v11134_v8 = vmax.f32 %v1964_v56, %v3533_v52  ;;  %v3280_v61 = vmul.f32 %v10976_v44, %v9534_v3  ;;  %v2947_v62 = vpop.f32.mrb[61].mxu1  ;;  %v10128_v56 = vld [vmem:[%s10550_s11 + $0xb0] sm:$0xff]  }
 0x169   : > { %13384 = vst [vmem:[#allocation20_spill] sm:$0xff] %v11130_v26  ;;  %v1703_v54 = vmul.f32 %v10976_v44, %v1366_v10  ;;  %v9403_v22 = vpop.f32.mrb[62].mxu0  ;;  %v11140_v42 = vmax.f32 %v1962_v15, %v3531_v1  ;;  %v3278_v32 = vmul.f32 %v10976_v44, %v2947_v62  ;;  %v9535_v57 = vpop.f32.mrb[62].mxu1 }
 0x16a   : > { %13385 = vst [vmem:[#allocation21_spill] sm:$0xff] %v11134_v8  ;;  %v1839_v45 = vadd.f32 %v10985_v58, %v1705_v27  ;;  %v1706_v5 = vmul.f32 %v10976_v44, %v9403_v22  ;;  %v1369_v26 = vpop.f32.mrb[63].mxu0  ;;  %v3408_v52 = vadd.f32 %v10985_v58, %v3280_v61  ;;  %v3281_v10 = vmul.f32 %v10976_v44, %v9535_v57  ;;  %v2950_v50 = vpop.f32.mrb[63].mxu1 }
 0x16b   : > { %13386 = vst [vmem:[#allocation22_spill] sm:$0xff] %v11140_v42  ;;  %v1837_v3 = vadd.f32 %v10985_v58, %v1703_v54  ;;  %v1704_v8 = vmul.f32 %v10976_v44, %v1369_v26  ;;  %v3406_v1 = vadd.f32 %v10985_v58, %v3278_v32  ;;  %v3279_v62 = vmul.f32 %v10976_v44, %v2950_v50 }
 0x16c   : > { %v1967_v15 = vmax.f32 %v1839_v45, 0.0  ;;  %v1840_v27 = vadd.f32 %v10985_v58, %v1706_v5  ;;  %9645 = vmatmul.mubr.msk.bf16.gmra.mrb[168].mxu0 %vm892_vm2, %v10125_v47  ;;  %v3536_v22 = vmax.f32 %v3408_v52, 0.0  ;;  %v3409_v61 = vadd.f32 %v10985_v58, %v3281_v10  ;;  %9777 = vmatmul.mubr.msk.bf16.gmra.mrb[168].mxu1 %vm892_vm2, %v10126_v53  ;;  %v10129_v10 = vld [vmem:[%s10543_s29 + $0xb8] sm:$0xff]  }
 0x16d   : > { %v1965_v42 = vmax.f32 %v1837_v3, 0.0  ;;  %v1838_v54 = vadd.f32 %v10985_v58, %v1704_v8  ;;  %9648 = vmatprep.mubr.msk.bf16.mxu0 %vm892_vm2, %v10127_v19  ;;  %v3534_v26 = vmax.f32 %v3406_v1, 0.0  ;;  %v3407_v32 = vadd.f32 %v10985_v58, %v3279_v62  ;;  %9780 = vmatprep.mubr.msk.bf16.mxu1 %vm892_vm2, %v10128_v56 }
 0x16e   : > { %v1968_v45 = vmax.f32 %v1840_v27, 0.0  ;;  %v11160_v50 = vmax.f32 %v1967_v15, %v3536_v22  ;;  %v3537_v47 = vmax.f32 %v3409_v61, 0.0  ;;  %v10130_v22 = vld [vmem:[%s10550_s11 + $0xb8] sm:$0xff]   ;;  %v10131_v61 = vld [vmem:[%s10543_s29 + $0xc0] sm:$0xff]  }
 0x16f   : > { %v1966_v5 = vmax.f32 %v1838_v54, 0.0  ;;  %v9406_v57 = vpop.f32.mrb[64].mxu0  ;;  %v11162_v52 = vmax.f32 %v1965_v42, %v3534_v26  ;;  %v3535_v8 = vmax.f32 %v3407_v32, 0.0  ;;  %v9538_v3 = vpop.f32.mrb[64].mxu1 }
 0x170   : > { %13387 = vst [vmem:[#allocation23_spill] sm:$0xff] %v11160_v50  ;;  %v1709_v53 = vmul.f32 %v10976_v44, %v9406_v57  ;;  %v1382_v19 = vpop.f32.mrb[65].mxu0  ;;  %v11166_v1 = vmax.f32 %v1968_v45, %v3537_v47  ;;  %v3284_v56 = vmul.f32 %v10976_v44, %v9538_v3  ;;  %v2963_v27 = vpop.f32.mrb[65].mxu1  ;;  %v10132_v45 = vld [vmem:[%s10550_s11 + $0xc0] sm:$0xff]  }
 0x171   : > { %13388 = vst [vmem:[#allocation24_spill] sm:$0xff] %v11162_v52  ;;  %v1707_v15 = vmul.f32 %v10976_v44, %v1382_v19  ;;  %v9407_v62 = vpop.f32.mrb[66].mxu0  ;;  %v11172_v54 = vmax.f32 %v1966_v5, %v3535_v8  ;;  %v3282_v26 = vmul.f32 %v10976_v44, %v2963_v27  ;;  %v9539_v57 = vpop.f32.mrb[66].mxu1 }
 0x172   : > { %13389 = vst [vmem:[#allocation25_spill] sm:$0xff] %v11166_v1  ;;  %v1843_v42 = vadd.f32 %v10985_v58, %v1709_v53  ;;  %v1710_v32 = vmul.f32 %v10976_v44, %v9407_v62  ;;  %v1385_v52 = vpop.f32.mrb[67].mxu0  ;;  %v3412_v47 = vadd.f32 %v10985_v58, %v3284_v56  ;;  %v3285_v19 = vmul.f32 %v10976_v44, %v9539_v57  ;;  %v2966_v50 = vpop.f32.mrb[67].mxu1 }
 0x173   : > { %13390 = vst [vmem:[#allocation26_spill] sm:$0xff] %v11172_v54  ;;  %v1841_v3 = vadd.f32 %v10985_v58, %v1707_v15  ;;  %v1708_v1 = vmul.f32 %v10976_v44, %v1385_v52  ;;  %v3410_v8 = vadd.f32 %v10985_v58, %v3282_v26  ;;  %v3283_v27 = vmul.f32 %v10976_v44, %v2966_v50 }
 0x174   : > { %v1971_v5 = vmax.f32 %v1843_v42, 0.0  ;;  %v1844_v53 = vadd.f32 %v10985_v58, %v1710_v32  ;;  %9649 = vmatmul.mubr.msk.bf16.gmra.mrb[172].mxu0 %vm892_vm2, %v10129_v10  ;;  %v3540_v62 = vmax.f32 %v3412_v47, 0.0  ;;  %v3413_v56 = vadd.f32 %v10985_v58, %v3285_v19  ;;  %9781 = vmatmul.mubr.msk.bf16.gmra.mrb[172].mxu1 %vm892_vm2, %v10130_v22  ;;  %v10133_v19 = vld [vmem:[%s10543_s29 + $0xc8] sm:$0xff]  }
 0x175   : > { %v1969_v54 = vmax.f32 %v1841_v3, 0.0  ;;  %v1842_v15 = vadd.f32 %v10985_v58, %v1708_v1  ;;  %9652 = vmatprep.mubr.msk.bf16.mxu0 %vm892_vm2, %v10131_v61  ;;  %v3538_v52 = vmax.f32 %v3410_v8, 0.0  ;;  %v3411_v26 = vadd.f32 %v10985_v58, %v3283_v27  ;;  %9784 = vmatprep.mubr.msk.bf16.mxu1 %vm892_vm2, %v10132_v45 }
 0x176   : > { %v1972_v42 = vmax.f32 %v1844_v53, 0.0  ;;  %v11192_v50 = vmax.f32 %v1971_v5, %v3540_v62  ;;  %v3541_v10 = vmax.f32 %v3413_v56, 0.0  ;;  %v10134_v62 = vld [vmem:[%s10550_s11 + $0xc8] sm:$0xff]   ;;  %v10135_v56 = vld [vmem:[%s10543_s29 + $0xd0] sm:$0xff]  }
 0x177   : > { %v1970_v32 = vmax.f32 %v1842_v15, 0.0  ;;  %v9410_v57 = vpop.f32.mrb[68].mxu0  ;;  %v11194_v47 = vmax.f32 %v1969_v54, %v3538_v52  ;;  %v3539_v1 = vmax.f32 %v3411_v26, 0.0  ;;  %v9542_v3 = vpop.f32.mrb[68].mxu1 }
 0x178   : > { %13391 = vst [vmem:[#allocation27_spill] sm:$0xff] %v11192_v50  ;;  %v1713_v22 = vmul.f32 %v10976_v44, %v9410_v57  ;;  %v1398_v61 = vpop.f32.mrb[69].mxu0  ;;  %v11198_v8 = vmax.f32 %v1972_v42, %v3541_v10  ;;  %v3288_v45 = vmul.f32 %v10976_v44, %v9542_v3  ;;  %v2979_v53 = vpop.f32.mrb[69].mxu1  ;;  %v10136_v42 = vld [vmem:[%s10550_s11 + $0xd0] sm:$0xff]  }
 0x179   : > { %13392 = vst [vmem:[#allocation28_spill] sm:$0xff] %v11194_v47  ;;  %v1711_v5 = vmul.f32 %v10976_v44, %v1398_v61  ;;  %v9411_v27 = vpop.f32.mrb[70].mxu0  ;;  %v11204_v15 = vmax.f32 %v1970_v32, %v3539_v1  ;;  %v3286_v52 = vmul.f32 %v10976_v44, %v2979_v53  ;;  %v9543_v57 = vpop.f32.mrb[70].mxu1 }
 0x17a   : > { %13393 = vst [vmem:[#allocation29_spill] sm:$0xff] %v11198_v8  ;;  %v1847_v54 = vadd.f32 %v10985_v58, %v1713_v22  ;;  %v1714_v26 = vmul.f32 %v10976_v44, %v9411_v27  ;;  %v1401_v47 = vpop.f32.mrb[71].mxu0  ;;  %v3416_v10 = vadd.f32 %v10985_v58, %v3288_v45  ;;  %v3289_v61 = vmul.f32 %v10976_v44, %v9543_v57  ;;  %v2982_v50 = vpop.f32.mrb[71].mxu1 }
 0x17b   : > { %13394 = vst [vmem:[#allocation30_spill] sm:$0xff] %v11204_v15  ;;  %v1845_v3 = vadd.f32 %v10985_v58, %v1711_v5  ;;  %v1712_v8 = vmul.f32 %v10976_v44, %v1401_v47  ;;  %v3414_v1 = vadd.f32 %v10985_v58, %v3286_v52  ;;  %v3287_v53 = vmul.f32 %v10976_v44, %v2982_v50 }
 0x17c   : > { %v1975_v32 = vmax.f32 %v1847_v54, 0.0  ;;  %v1848_v22 = vadd.f32 %v10985_v58, %v1714_v26  ;;  %9653 = vmatmul.mubr.msk.bf16.gmra.mrb[176].mxu0 %vm892_vm2, %v10133_v19  ;;  %v3544_v27 = vmax.f32 %v3416_v10, 0.0  ;;  %v3417_v45 = vadd.f32 %v10985_v58, %v3289_v61  ;;  %9785 = vmatmul.mubr.msk.bf16.gmra.mrb[176].mxu1 %vm892_vm2, %v10134_v62  ;;  %v10137_v61 = vld [vmem:[%s10543_s29 + $0xd8] sm:$0xff]  }
 0x17d   : > { %v1973_v15 = vmax.f32 %v1845_v3, 0.0  ;;  %v1846_v5 = vadd.f32 %v10985_v58, %v1712_v8  ;;  %9656 = vmatprep.mubr.msk.bf16.mxu0 %vm892_vm2, %v10135_v56  ;;  %v3542_v47 = vmax.f32 %v3414_v1, 0.0  ;;  %v3415_v52 = vadd.f32 %v10985_v58, %v3287_v53  ;;  %9788 = vmatprep.mubr.msk.bf16.mxu1 %vm892_vm2, %v10136_v42 }
 0x17e   : > { %v1976_v54 = vmax.f32 %v1848_v22, 0.0  ;;  %v11224_v50 = vmax.f32 %v1975_v32, %v3544_v27  ;;  %v3545_v19 = vmax.f32 %v3417_v45, 0.0  ;;  %v10138_v27 = vld [vmem:[%s10550_s11 + $0xd8] sm:$0xff]   ;;  %v10139_v45 = vld [vmem:[%s10543_s29 + $0xe0] sm:$0xff]  }
 0x17f   : > { %v1974_v26 = vmax.f32 %v1846_v5, 0.0  ;;  %v9414_v57 = vpop.f32.mrb[72].mxu0  ;;  %v11226_v10 = vmax.f32 %v1973_v15, %v3542_v47  ;;  %v3543_v8 = vmax.f32 %v3415_v52, 0.0  ;;  %v9546_v3 = vpop.f32.mrb[72].mxu1 }
 0x180   : > { %13395 = vst [vmem:[#allocation31_spill] sm:$0xff] %v11224_v50  ;;  %v1717_v62 = vmul.f32 %v10976_v44, %v9414_v57  ;;  %v1414_v56 = vpop.f32.mrb[73].mxu0  ;;  %v11230_v1 = vmax.f32 %v1976_v54, %v3545_v19  ;;  %v3292_v42 = vmul.f32 %v10976_v44, %v9546_v3  ;;  %v2995_v22 = vpop.f32.mrb[73].mxu1  ;;  %v10140_v54 = vld [vmem:[%s10550_s11 + $0xe0] sm:$0xff]  }
 0x181   : > { %13396 = vst [vmem:[#allocation32_spill] sm:$0xff] %v11226_v10  ;;  %v1715_v32 = vmul.f32 %v10976_v44, %v1414_v56  ;;  %v9415_v53 = vpop.f32.mrb[74].mxu0  ;;  %v11236_v5 = vmax.f32 %v1974_v26, %v3543_v8  ;;  %v3290_v47 = vmul.f32 %v10976_v44, %v2995_v22  ;;  %v9547_v57 = vpop.f32.mrb[74].mxu1 }
 0x182   : > { %13397 = vst [vmem:[#allocation33_spill] sm:$0xff] %v11230_v1  ;;  %v1851_v15 = vadd.f32 %v10985_v58, %v1717_v62  ;;  %v1718_v52 = vmul.f32 %v10976_v44, %v9415_v53  ;;  %v1417_v10 = vpop.f32.mrb[75].mxu0  ;;  %v3420_v19 = vadd.f32 %v10985_v58, %v3292_v42  ;;  %v3293_v56 = vmul.f32 %v10976_v44, %v9547_v57  ;;  %v2998_v50 = vpop.f32.mrb[75].mxu1 }
 0x183   : > { %13398 = vst [vmem:[#allocation34_spill] sm:$0xff] %v11236_v5  ;;  %v1849_v3 = vadd.f32 %v10985_v58, %v1715_v32  ;;  %v1716_v1 = vmul.f32 %v10976_v44, %v1417_v10  ;;  %v3418_v8 = vadd.f32 %v10985_v58, %v3290_v47  ;;  %v3291_v22 = vmul.f32 %v10976_v44, %v2998_v50 }
 0x184   : > { %v1979_v26 = vmax.f32 %v1851_v15, 0.0  ;;  %v1852_v62 = vadd.f32 %v10985_v58, %v1718_v52  ;;  %9657 = vmatmul.mubr.msk.bf16.gmra.mrb[180].mxu0 %vm892_vm2, %v10137_v61  ;;  %v3548_v53 = vmax.f32 %v3420_v19, 0.0  ;;  %v3421_v42 = vadd.f32 %v10985_v58, %v3293_v56  ;;  %9789 = vmatmul.mubr.msk.bf16.gmra.mrb[180].mxu1 %vm892_vm2, %v10138_v27  ;;  %v10141_v56 = vld [vmem:[%s10543_s29 + $0xe8] sm:$0xff]  }
 0x185   : > { %v1977_v5 = vmax.f32 %v1849_v3, 0.0  ;;  %v1850_v32 = vadd.f32 %v10985_v58, %v1716_v1  ;;  %9660 = vmatprep.mubr.msk.bf16.mxu0 %vm892_vm2, %v10139_v45  ;;  %v3546_v10 = vmax.f32 %v3418_v8, 0.0  ;;  %v3419_v47 = vadd.f32 %v10985_v58, %v3291_v22  ;;  %9792 = vmatprep.mubr.msk.bf16.mxu1 %vm892_vm2, %v10140_v54 }
 0x186   : > { %v1980_v15 = vmax.f32 %v1852_v62, 0.0  ;;  %v11256_v50 = vmax.f32 %v1979_v26, %v3548_v53  ;;  %v3549_v61 = vmax.f32 %v3421_v42, 0.0  ;;  %v10142_v53 = vld [vmem:[%s10550_s11 + $0xe8] sm:$0xff]   ;;  %v10143_v42 = vld [vmem:[%s10543_s29 + $0xf0] sm:$0xff]  }
 0x187   : > { %v1978_v52 = vmax.f32 %v1850_v32, 0.0  ;;  %v9418_v57 = vpop.f32.mrb[76].mxu0  ;;  %v11258_v19 = vmax.f32 %v1977_v5, %v3546_v10  ;;  %v3547_v1 = vmax.f32 %v3419_v47, 0.0  ;;  %v9550_v3 = vpop.f32.mrb[76].mxu1 }
 0x188   : > { %13399 = vst [vmem:[#allocation35_spill] sm:$0xff] %v11256_v50  ;;  %v1721_v27 = vmul.f32 %v10976_v44, %v9418_v57  ;;  %v1430_v45 = vpop.f32.mrb[77].mxu0  ;;  %v11262_v8 = vmax.f32 %v1980_v15, %v3549_v61  ;;  %v3296_v54 = vmul.f32 %v10976_v44, %v9550_v3  ;;  %v3011_v62 = vpop.f32.mrb[77].mxu1  ;;  %v10144_v15 = vld [vmem:[%s10550_s11 + $0xf0] sm:$0xff]  }
 0x189   : > { %13400 = vst [vmem:[#allocation36_spill] sm:$0xff] %v11258_v19  ;;  %v1719_v26 = vmul.f32 %v10976_v44, %v1430_v45  ;;  %v9419_v22 = vpop.f32.mrb[78].mxu0  ;;  %v11268_v32 = vmax.f32 %v1978_v52, %v3547_v1  ;;  %v3294_v10 = vmul.f32 %v10976_v44, %v3011_v62  ;;  %v9551_v57 = vpop.f32.mrb[78].mxu1 }
 0x18a   : > { %13401 = vst [vmem:[#allocation37_spill] sm:$0xff] %v11262_v8  ;;  %v1855_v5 = vadd.f32 %v10985_v58, %v1721_v27  ;;  %v1722_v47 = vmul.f32 %v10976_v44, %v9419_v22  ;;  %v1433_v19 = vpop.f32.mrb[79].mxu0  ;;  %v3424_v61 = vadd.f32 %v10985_v58, %v3296_v54  ;;  %v3297_v45 = vmul.f32 %v10976_v44, %v9551_v57  ;;  %v3014_v50 = vpop.f32.mrb[79].mxu1 }
 0x18b   : > { %13402 = vst [vmem:[#allocation38_spill] sm:$0xff] %v11268_v32  ;;  %v1853_v3 = vadd.f32 %v10985_v58, %v1719_v26  ;;  %v1720_v8 = vmul.f32 %v10976_v44, %v1433_v19  ;;  %v3422_v1 = vadd.f32 %v10985_v58, %v3294_v10  ;;  %v3295_v62 = vmul.f32 %v10976_v44, %v3014_v50 }
 0x18c   : > { %v1983_v52 = vmax.f32 %v1855_v5, 0.0  ;;  %v1856_v27 = vadd.f32 %v10985_v58, %v1722_v47  ;;  %9661 = vmatmul.mubr.msk.bf16.gmra.mrb[184].mxu0 %vm892_vm2, %v10141_v56  ;;  %v3552_v22 = vmax.f32 %v3424_v61, 0.0  ;;  %v3425_v54 = vadd.f32 %v10985_v58, %v3297_v45  ;;  %9793 = vmatmul.mubr.msk.bf16.gmra.mrb[184].mxu1 %vm892_vm2, %v10142_v53  ;;  %v10145_v45 = vld [vmem:[%s10543_s29 + $0xf8] sm:$0xff]  }
 0x18d   : > { %v1981_v32 = vmax.f32 %v1853_v3, 0.0  ;;  %v1854_v26 = vadd.f32 %v10985_v58, %v1720_v8  ;;  %9664 = vmatprep.mubr.msk.bf16.mxu0 %vm892_vm2, %v10143_v42  ;;  %v3550_v19 = vmax.f32 %v3422_v1, 0.0  ;;  %v3423_v10 = vadd.f32 %v10985_v58, %v3295_v62  ;;  %9796 = vmatprep.mubr.msk.bf16.mxu1 %vm892_vm2, %v10144_v15 }
 0x18e   : > { %v1984_v5 = vmax.f32 %v1856_v27, 0.0  ;;  %v11288_v50 = vmax.f32 %v1983_v52, %v3552_v22  ;;  %v3553_v56 = vmax.f32 %v3425_v54, 0.0  ;;  %v10146_v22 = vld [vmem:[%s10550_s11 + $0xf8] sm:$0xff]   ;;  %v10147_v54 = vld [vmem:[%s10543_s29 + $0x100] sm:$0xff]  }
 0x18f   : > { %v1982_v47 = vmax.f32 %v1854_v26, 0.0  ;;  %v9422_v57 = vpop.f32.mrb[80].mxu0  ;;  %v11290_v61 = vmax.f32 %v1981_v32, %v3550_v19  ;;  %v3551_v8 = vmax.f32 %v3423_v10, 0.0  ;;  %v9554_v3 = vpop.f32.mrb[80].mxu1 }
 0x190   : > { %13403 = vst [vmem:[#allocation39_spill] sm:$0xff] %v11288_v50  ;;  %v1725_v53 = vmul.f32 %v10976_v44, %v9422_v57  ;;  %v1446_v42 = vpop.f32.mrb[81].mxu0  ;;  %v11294_v1 = vmax.f32 %v1984_v5, %v3553_v56  ;;  %v3300_v15 = vmul.f32 %v10976_v44, %v9554_v3  ;;  %v3027_v27 = vpop.f32.mrb[81].mxu1  ;;  %v10148_v5 = vld [vmem:[%s10550_s11 + $0x100] sm:$0xff]  }
 0x191   : > { %13404 = vst [vmem:[#allocation40_spill] sm:$0xff] %v11290_v61  ;;  %v1723_v52 = vmul.f32 %v10976_v44, %v1446_v42  ;;  %v9423_v62 = vpop.f32.mrb[82].mxu0  ;;  %v11300_v26 = vmax.f32 %v1982_v47, %v3551_v8  ;;  %v3298_v19 = vmul.f32 %v10976_v44, %v3027_v27  ;;  %v9555_v57 = vpop.f32.mrb[82].mxu1 }
 0x192   : > { %13405 = vst [vmem:[#allocation41_spill] sm:$0xff] %v11294_v1  ;;  %v1859_v32 = vadd.f32 %v10985_v58, %v1725_v53  ;;  %v1726_v10 = vmul.f32 %v10976_v44, %v9423_v62  ;;  %v1449_v61 = vpop.f32.mrb[83].mxu0  ;;  %v3428_v56 = vadd.f32 %v10985_v58, %v3300_v15  ;;  %v3301_v42 = vmul.f32 %v10976_v44, %v9555_v57  ;;  %v3030_v50 = vpop.f32.mrb[83].mxu1 }
 0x193   : > { %13406 = vst [vmem:[#allocation42_spill] sm:$0xff] %v11300_v26  ;;  %v1857_v3 = vadd.f32 %v10985_v58, %v1723_v52  ;;  %v1724_v1 = vmul.f32 %v10976_v44, %v1449_v61  ;;  %v3426_v8 = vadd.f32 %v10985_v58, %v3298_v19  ;;  %v3299_v27 = vmul.f32 %v10976_v44, %v3030_v50 }
 0x194   : > { %v1987_v47 = vmax.f32 %v1859_v32, 0.0  ;;  %v1860_v53 = vadd.f32 %v10985_v58, %v1726_v10  ;;  %9665 = vmatmul.mubr.msk.bf16.gmra.mrb[188].mxu0 %vm892_vm2, %v10145_v45  ;;  %v3556_v62 = vmax.f32 %v3428_v56, 0.0  ;;  %v3429_v15 = vadd.f32 %v10985_v58, %v3301_v42  ;;  %9797 = vmatmul.mubr.msk.bf16.gmra.mrb[188].mxu1 %vm892_vm2, %v10146_v22  ;;  %v10149_v42 = vld [vmem:[%s10543_s29 + $0x108] sm:$0xff]  }
 0x195   : > { %v1985_v26 = vmax.f32 %v1857_v3, 0.0  ;;  %v1858_v52 = vadd.f32 %v10985_v58, %v1724_v1  ;;  %9668 = vmatprep.mubr.msk.bf16.mxu0 %vm892_vm2, %v10147_v54  ;;  %v3554_v61 = vmax.f32 %v3426_v8, 0.0  ;;  %v3427_v19 = vadd.f32 %v10985_v58, %v3299_v27  ;;  %9800 = vmatprep.mubr.msk.bf16.mxu1 %vm892_vm2, %v10148_v5 }
 0x196   : > { %v1988_v32 = vmax.f32 %v1860_v53, 0.0  ;;  %v11320_v50 = vmax.f32 %v1987_v47, %v3556_v62  ;;  %v3557_v45 = vmax.f32 %v3429_v15, 0.0  ;;  %v10150_v62 = vld [vmem:[%s10550_s11 + $0x108] sm:$0xff]   ;;  %v10151_v15 = vld [vmem:[%s10543_s29 + $0x110] sm:$0xff]  }
 0x197   : > { %v1986_v10 = vmax.f32 %v1858_v52, 0.0  ;;  %v9426_v57 = vpop.f32.mrb[84].mxu0  ;;  %v11322_v56 = vmax.f32 %v1985_v26, %v3554_v61  ;;  %v3555_v1 = vmax.f32 %v3427_v19, 0.0  ;;  %v9558_v3 = vpop.f32.mrb[84].mxu1 }
 0x198   : > { %13407 = vst [vmem:[#allocation43_spill] sm:$0xff] %v11320_v50  ;;  %v1729_v22 = vmul.f32 %v10976_v44, %v9426_v57  ;;  %v1462_v54 = vpop.f32.mrb[85].mxu0  ;;  %v11326_v8 = vmax.f32 %v1988_v32, %v3557_v45  ;;  %v3304_v5 = vmul.f32 %v10976_v44, %v9558_v3  ;;  %v3043_v53 = vpop.f32.mrb[85].mxu1  ;;  %v10152_v32 = vld [vmem:[%s10550_s11 + $0x110] sm:$0xff]  }
 0x199   : > { %13408 = vst [vmem:[#allocation44_spill] sm:$0xff] %v11322_v56  ;;  %v1727_v47 = vmul.f32 %v10976_v44, %v1462_v54  ;;  %v9427_v27 = vpop.f32.mrb[86].mxu0  ;;  %v11332_v52 = vmax.f32 %v1986_v10, %v3555_v1  ;;  %v3302_v61 = vmul.f32 %v10976_v44, %v3043_v53  ;;  %v9559_v57 = vpop.f32.mrb[86].mxu1 }
 0x19a   : > { %13409 = vst [vmem:[#allocation45_spill] sm:$0xff] %v11326_v8  ;;  %v1863_v26 = vadd.f32 %v10985_v58, %v1729_v22  ;;  %v1730_v19 = vmul.f32 %v10976_v44, %v9427_v27  ;;  %v1465_v56 = vpop.f32.mrb[87].mxu0  ;;  %v3432_v45 = vadd.f32 %v10985_v58, %v3304_v5  ;;  %v3305_v54 = vmul.f32 %v10976_v44, %v9559_v57  ;;  %v3046_v50 = vpop.f32.mrb[87].mxu1 }
 0x19b   : > { %13410 = vst [vmem:[#allocation46_spill] sm:$0xff] %v11332_v52  ;;  %v1861_v3 = vadd.f32 %v10985_v58, %v1727_v47  ;;  %v1728_v8 = vmul.f32 %v10976_v44, %v1465_v56  ;;  %v3430_v1 = vadd.f32 %v10985_v58, %v3302_v61  ;;  %v3303_v53 = vmul.f32 %v10976_v44, %v3046_v50 }
 0x19c   : > { %v1991_v10 = vmax.f32 %v1863_v26, 0.0  ;;  %v1864_v22 = vadd.f32 %v10985_v58, %v1730_v19  ;;  %9669 = vmatmul.mubr.msk.bf16.gmra.mrb[192].mxu0 %vm892_vm2, %v10149_v42  ;;  %v3560_v27 = vmax.f32 %v3432_v45, 0.0  ;;  %v3433_v5 = vadd.f32 %v10985_v58, %v3305_v54  ;;  %9801 = vmatmul.mubr.msk.bf16.gmra.mrb[192].mxu1 %vm892_vm2, %v10150_v62  ;;  %v11359_v62 = vld [vmem:[%s13363_s5] ss:$0 sm:$0xff] }
 0x19d   : > { %v1989_v52 = vmax.f32 %v1861_v3, 0.0  ;;  %v1862_v47 = vadd.f32 %v10985_v58, %v1728_v8  ;;  %9672 = vmatprep.mubr.msk.bf16.mxu0 %vm892_vm2, %v10151_v15  ;;  %v3558_v56 = vmax.f32 %v3430_v1, 0.0  ;;  %v3431_v61 = vadd.f32 %v10985_v58, %v3303_v53  ;;  %9804 = vmatprep.mubr.msk.bf16.mxu1 %vm892_vm2, %v10152_v32  ;;  %v10153_v32 = vld [vmem:[%s10543_s29 + $0x118] sm:$0xff]   ;;  %v10155_v53 = vld [vmem:[%s10543_s29 + $0x120] sm:$0xff]  }
 0x19e   : > { %v1992_v26 = vmax.f32 %v1864_v22, 0.0  ;;  %v11352_v44 = vmax.f32 %v1991_v10, %v3560_v27  ;;  %v3561_v50 = vmax.f32 %v3433_v5, 0.0  ;;  %v10154_v22 = vld [vmem:[%s10550_s11 + $0x118] sm:$0xff]   ;;  %v11374_v5 = vld [vmem:[%s13364_s6] ss:$0 sm:$0xff] }
 0x19f   : > { %v1990_v42 = vmax.f32 %v1862_v47, 0.0  ;;  %v9430_v19 = vpop.f32.mrb[88].mxu0  ;;  %v11354_v57 = vmax.f32 %v1989_v52, %v3558_v56  ;;  %v3559_v8 = vmax.f32 %v3431_v61, 0.0  ;;  %v9562_v58 = vpop.f32.mrb[88].mxu1 }
 0x1a0   : > { %13411 = vst [vmem:[#allocation47_spill] sm:$0xff] %v11352_v44  ;;  %v1733_v15 = vmul.f32 %v11359_v62, %v9430_v19  ;;  %v1478_v45 = vpop.f32.mrb[89].mxu0  ;;  %v11363_v3 = vmax.f32 %v1992_v26, %v3561_v50  ;;  %v3308_v54 = vmul.f32 %v11359_v62, %v9562_v58  ;;  %v3059_v52 = vpop.f32.mrb[89].mxu1  ;;  %v10156_v19 = vld [vmem:[%s10550_s11 + $0x120] sm:$0xff]  }
 0x1a1   : > { %13412 = vst [vmem:[#allocation48_spill] sm:$0xff] %v11354_v57  ;;  %v1731_v10 = vmul.f32 %v11359_v62, %v1478_v45  ;;  %v9431_v1 = vpop.f32.mrb[90].mxu0  ;;  %v11369_v27 = vmax.f32 %v1990_v42, %v3559_v8  ;;  %v3306_v56 = vmul.f32 %v11359_v62, %v3059_v52  ;;  %v9563_v61 = vpop.f32.mrb[90].mxu1 }
 0x1a2   : > { %13413 = vst [vmem:[#allocation49_spill] sm:$0xff] %v11363_v3  ;;  %v1867_v47 = vadd.f32 %v11374_v5, %v1733_v15  ;;  %v1734_v26 = vmul.f32 %v11359_v62, %v9431_v1  ;;  %v1481_v50 = vpop.f32.mrb[91].mxu0  ;;  %v3436_v58 = vadd.f32 %v11374_v5, %v3308_v54  ;;  %v3309_v42 = vmul.f32 %v11359_v62, %v9563_v61 }
 0x1a3   : > { %13414 = vst [vmem:[#allocation50_spill] sm:$0xff] %v11369_v27  ;;  %v1865_v45 = vadd.f32 %v11374_v5, %v1731_v10  ;;  %v1732_v8 = vmul.f32 %v11359_v62, %v1481_v50  ;;  %v3062_v27 = vpop.f32.mrb[91].mxu1  ;;  %v3434_v57 = vadd.f32 %v11374_v5, %v3306_v56 }
 0x1a4   : > { %v1995_v3 = vmax.f32 %v1867_v47, 0.0  ;;  %v1868_v15 = vadd.f32 %v11374_v5, %v1734_v26  ;;  %v3307_v52 = vmul.f32 %v11359_v62, %v3062_v27  ;;  %9673 = vmatmul.mubr.msk.bf16.gmra.mrb[196].mxu0 %vm892_vm2, %v10153_v32  ;;  %v3564_v1 = vmax.f32 %v3436_v58, 0.0  ;;  %9805 = vmatmul.mubr.msk.bf16.gmra.mrb[196].mxu1 %vm892_vm2, %v10154_v22 }
 0x1a5   : > { %v1993_v44 = vmax.f32 %v1865_v45, 0.0  ;;  %v3437_v54 = vadd.f32 %v11374_v5, %v3309_v42  ;;  %v1866_v10 = vadd.f32 %v11374_v5, %v1732_v8  ;;  %9676 = vmatprep.mubr.msk.bf16.mxu0 %vm892_vm2, %v10155_v53  ;;  %v3562_v47 = vmax.f32 %v3434_v57, 0.0  ;;  %9808 = vmatprep.mubr.msk.bf16.mxu1 %vm892_vm2, %v10156_v19  ;;  %v10157_v53 = vld [vmem:[%s10543_s29 + $0x128] sm:$0xff]  }
 0x1a6   : > { %v1996_v61 = vmax.f32 %v1868_v15, 0.0  ;;  %v3435_v56 = vadd.f32 %v11374_v5, %v3307_v52  ;;  %v11394_v27 = vmax.f32 %v1995_v3, %v3564_v1  ;;  %v10158_v1 = vld [vmem:[%s10550_s11 + $0x128] sm:$0xff]  }
 0x1a7   : > { %v3565_v32 = vmax.f32 %v3437_v54, 0.0  ;;  %v1994_v26 = vmax.f32 %v1866_v10, 0.0  ;;  %v9434_v50 = vpop.f32.mrb[92].mxu0  ;;  %v11396_v58 = vmax.f32 %v1993_v44, %v3562_v47  ;;  %v9566_v42 = vpop.f32.mrb[92].mxu1  ;;  %v10159_v54 = vld [vmem:[%s10543_s29 + $0x130] sm:$0xff]  }
 0x1a8   : > { %13415 = vst [vmem:[#allocation51_spill] sm:$0xff] %v11394_v27  ;;  %v3563_v45 = vmax.f32 %v3435_v56, 0.0  ;;  %v1737_v22 = vmul.f32 %v11359_v62, %v9434_v50  ;;  %v1494_v57 = vpop.f32.mrb[93].mxu0  ;;  %v3312_v19 = vmul.f32 %v11359_v62, %v9566_v42  ;;  %v3075_v15 = vpop.f32.mrb[93].mxu1 }
 0x1a9   : > { %13416 = vst [vmem:[#allocation52_spill] sm:$0xff] %v11396_v58  ;;  %v11400_v8 = vmax.f32 %v1996_v61, %v3565_v32  ;;  %v1735_v3 = vmul.f32 %v11359_v62, %v1494_v57  ;;  %v9435_v52 = vpop.f32.mrb[94].mxu0  ;;  %v3310_v47 = vmul.f32 %v11359_v62, %v3075_v15  ;;  %v9567_v50 = vpop.f32.mrb[94].mxu1  ;;  %v10160_v61 = vld [vmem:[%s10550_s11 + $0x130] sm:$0xff]  }
 0x1aa   : > { %v11406_v10 = vmax.f32 %v1994_v26, %v3563_v45  ;;  %v1871_v44 = vadd.f32 %v11374_v5, %v1737_v22  ;;  %v1738_v56 = vmul.f32 %v11359_v62, %v9435_v52  ;;  %v1497_v58 = vpop.f32.mrb[95].mxu0  ;;  %v3440_v32 = vadd.f32 %v11374_v5, %v3312_v19  ;;  %v3078_v27 = vpop.f32.mrb[95].mxu1 }
 0x1ab   : > { %13417 = vst [vmem:[#allocation53_spill] sm:$0xff] %v11400_v8  ;;  %v1869_v42 = vadd.f32 %v11374_v5, %v1735_v3  ;;  %v3313_v57 = vmul.f32 %v11359_v62, %v9567_v50  ;;  %v1736_v8 = vmul.f32 %v11359_v62, %v1497_v58  ;;  %v3438_v45 = vadd.f32 %v11374_v5, %v3310_v47 }
 0x1ac   : > { %13418 = vst [vmem:[#allocation54_spill] sm:$0xff] %v11406_v10  ;;  %v1999_v26 = vmax.f32 %v1871_v44, 0.0  ;;  %v1872_v22 = vadd.f32 %v11374_v5, %v1738_v56  ;;  %v3311_v15 = vmul.f32 %v11359_v62, %v3078_v27  ;;  %9677 = vmatmul.mubr.msk.bf16.gmra.mrb[200].mxu0 %vm892_vm2, %v10157_v53  ;;  %v3568_v52 = vmax.f32 %v3440_v32, 0.0  ;;  %9809 = vmatmul.mubr.msk.bf16.gmra.mrb[200].mxu1 %vm892_vm2, %v10158_v1 }
 0x1ad   : > { %v1997_v10 = vmax.f32 %v1869_v42, 0.0  ;;  %v3441_v19 = vadd.f32 %v11374_v5, %v3313_v57  ;;  %v1870_v3 = vadd.f32 %v11374_v5, %v1736_v8  ;;  %9680 = vmatprep.mubr.msk.bf16.mxu0 %vm892_vm2, %v10159_v54  ;;  %v3566_v58 = vmax.f32 %v3438_v45, 0.0  ;;  %9812 = vmatprep.mubr.msk.bf16.mxu1 %vm892_vm2, %v10160_v61  ;;  %v10161_v57 = vld [vmem:[%s10543_s29 + $0x138] sm:$0xff]  }
 0x1ae   : > { %v2000_v44 = vmax.f32 %v1872_v22, 0.0  ;;  %v3439_v47 = vadd.f32 %v11374_v5, %v3311_v15  ;;  %v11426_v27 = vmax.f32 %v1999_v26, %v3568_v52  ;;  %v10162_v52 = vld [vmem:[%s10550_s11 + $0x138] sm:$0xff]  }
 0x1af   : > { %v3569_v53 = vmax.f32 %v3441_v19, 0.0  ;;  %v1998_v56 = vmax.f32 %v1870_v3, 0.0  ;;  %v9438_v50 = vpop.f32.mrb[96].mxu0  ;;  %v11428_v32 = vmax.f32 %v1997_v10, %v3566_v58  ;;  %v9570_v42 = vpop.f32.mrb[96].mxu1  ;;  %v10163_v19 = vld [vmem:[%s10543_s29 + $0x140] sm:$0xff]  }
 0x1b0   : > { %13419 = vst [vmem:[#allocation55_spill] sm:$0xff] %v11426_v27  ;;  %v3567_v8 = vmax.f32 %v3439_v47, 0.0  ;;  %v1741_v1 = vmul.f32 %v11359_v62, %v9438_v50  ;;  %v1510_v54 = vpop.f32.mrb[97].mxu0  ;;  %v3316_v61 = vmul.f32 %v11359_v62, %v9570_v42  ;;  %v3091_v22 = vpop.f32.mrb[97].mxu1 }
 0x1b1   : > { %13420 = vst [vmem:[#allocation56_spill] sm:$0xff] %v11428_v32  ;;  %v11432_v45 = vmax.f32 %v2000_v44, %v3569_v53  ;;  %v1739_v26 = vmul.f32 %v11359_v62, %v1510_v54  ;;  %v9439_v15 = vpop.f32.mrb[98].mxu0  ;;  %v3314_v58 = vmul.f32 %v11359_v62, %v3091_v22  ;;  %v9571_v50 = vpop.f32.mrb[98].mxu1  ;;  %v10164_v44 = vld [vmem:[%s10550_s11 + $0x140] sm:$0xff]  }
 0x1b2   : > { %v11438_v3 = vmax.f32 %v1998_v56, %v3567_v8  ;;  %v1875_v10 = vadd.f32 %v11374_v5, %v1741_v1  ;;  %v1742_v47 = vmul.f32 %v11359_v62, %v9439_v15  ;;  %v1513_v32 = vpop.f32.mrb[99].mxu0  ;;  %v3444_v53 = vadd.f32 %v11374_v5, %v3316_v61  ;;  %v3094_v27 = vpop.f32.mrb[99].mxu1 }
 0x1b3   : > { %13421 = vst [vmem:[#allocation57_spill] sm:$0xff] %v11432_v45  ;;  %v1873_v42 = vadd.f32 %v11374_v5, %v1739_v26  ;;  %v3317_v54 = vmul.f32 %v11359_v62, %v9571_v50  ;;  %v1740_v45 = vmul.f32 %v11359_v62, %v1513_v32  ;;  %v3442_v8 = vadd.f32 %v11374_v5, %v3314_v58 }
 0x1b4   : > { %13422 = vst [vmem:[#allocation58_spill] sm:$0xff] %v11438_v3  ;;  %v2003_v56 = vmax.f32 %v1875_v10, 0.0  ;;  %v1876_v1 = vadd.f32 %v11374_v5, %v1742_v47  ;;  %v3315_v22 = vmul.f32 %v11359_v62, %v3094_v27  ;;  %9681 = vmatmul.mubr.msk.bf16.gmra.mrb[204].mxu0 %vm892_vm2, %v10161_v57  ;;  %v3572_v15 = vmax.f32 %v3444_v53, 0.0  ;;  %9813 = vmatmul.mubr.msk.bf16.gmra.mrb[204].mxu1 %vm892_vm2, %v10162_v52 }
 0x1b5   : > { %v2001_v3 = vmax.f32 %v1873_v42, 0.0  ;;  %v3445_v61 = vadd.f32 %v11374_v5, %v3317_v54  ;;  %v1874_v26 = vadd.f32 %v11374_v5, %v1740_v45  ;;  %9684 = vmatprep.mubr.msk.bf16.mxu0 %vm892_vm2, %v10163_v19  ;;  %v3570_v32 = vmax.f32 %v3442_v8, 0.0  ;;  %9816 = vmatprep.mubr.msk.bf16.mxu1 %vm892_vm2, %v10164_v44  ;;  %v10165_v54 = vld [vmem:[%s10543_s29 + $0x148] sm:$0xff]  }
 0x1b6   : > { %v2004_v10 = vmax.f32 %v1876_v1, 0.0  ;;  %v3443_v58 = vadd.f32 %v11374_v5, %v3315_v22  ;;  %v11458_v27 = vmax.f32 %v2003_v56, %v3572_v15  ;;  %v10166_v15 = vld [vmem:[%s10550_s11 + $0x148] sm:$0xff]  }
 0x1b7   : > { %v3573_v57 = vmax.f32 %v3445_v61, 0.0  ;;  %v2002_v47 = vmax.f32 %v1874_v26, 0.0  ;;  %v9442_v50 = vpop.f32.mrb[100].mxu0  ;;  %v11460_v53 = vmax.f32 %v2001_v3, %v3570_v32  ;;  %v9574_v42 = vpop.f32.mrb[100].mxu1  ;;  %v10167_v61 = vld [vmem:[%s10543_s29 + $0x150] sm:$0xff]  }
 0x1b8   : > { %13423 = vst [vmem:[#allocation59_spill] sm:$0xff] %v11458_v27  ;;  %v3571_v45 = vmax.f32 %v3443_v58, 0.0  ;;  %v1745_v52 = vmul.f32 %v11359_v62, %v9442_v50  ;;  %v1526_v19 = vpop.f32.mrb[101].mxu0  ;;  %v3320_v44 = vmul.f32 %v11359_v62, %v9574_v42  ;;  %v3107_v1 = vpop.f32.mrb[101].mxu1 }
 0x1b9   : > { %13424 = vst [vmem:[#allocation60_spill] sm:$0xff] %v11460_v53  ;;  %v11464_v8 = vmax.f32 %v2004_v10, %v3573_v57  ;;  %v1743_v56 = vmul.f32 %v11359_v62, %v1526_v19  ;;  %v9443_v22 = vpop.f32.mrb[102].mxu0  ;;  %v3318_v32 = vmul.f32 %v11359_v62, %v3107_v1  ;;  %v9575_v50 = vpop.f32.mrb[102].mxu1  ;;  %v10168_v10 = vld [vmem:[%s10550_s11 + $0x150] sm:$0xff]  }
 0x1ba   : > { %v11470_v26 = vmax.f32 %v2002_v47, %v3571_v45  ;;  %v1879_v3 = vadd.f32 %v11374_v5, %v1745_v52  ;;  %v1746_v58 = vmul.f32 %v11359_v62, %v9443_v22  ;;  %v1529_v53 = vpop.f32.mrb[103].mxu0  ;;  %v3448_v57 = vadd.f32 %v11374_v5, %v3320_v44  ;;  %v3110_v27 = vpop.f32.mrb[103].mxu1 }
 0x1bb   : > { %13425 = vst [vmem:[#allocation61_spill] sm:$0xff] %v11464_v8  ;;  %v1877_v42 = vadd.f32 %v11374_v5, %v1743_v56  ;;  %v3321_v19 = vmul.f32 %v11359_v62, %v9575_v50  ;;  %v1744_v8 = vmul.f32 %v11359_v62, %v1529_v53  ;;  %v3446_v45 = vadd.f32 %v11374_v5, %v3318_v32 }
 0x1bc   : > { %13426 = vst [vmem:[#allocation62_spill] sm:$0xff] %v11470_v26  ;;  %v2007_v47 = vmax.f32 %v1879_v3, 0.0  ;;  %v1880_v52 = vadd.f32 %v11374_v5, %v1746_v58  ;;  %v3319_v1 = vmul.f32 %v11359_v62, %v3110_v27  ;;  %9685 = vmatmul.mubr.msk.bf16.gmra.mrb[208].mxu0 %vm892_vm2, %v10165_v54  ;;  %v3576_v22 = vmax.f32 %v3448_v57, 0.0  ;;  %9817 = vmatmul.mubr.msk.bf16.gmra.mrb[208].mxu1 %vm892_vm2, %v10166_v15 }
 0x1bd   : > { %v2005_v26 = vmax.f32 %v1877_v42, 0.0  ;;  %v3449_v44 = vadd.f32 %v11374_v5, %v3321_v19  ;;  %v1878_v56 = vadd.f32 %v11374_v5, %v1744_v8  ;;  %9688 = vmatprep.mubr.msk.bf16.mxu0 %vm892_vm2, %v10167_v61  ;;  %v3574_v53 = vmax.f32 %v3446_v45, 0.0  ;;  %9820 = vmatprep.mubr.msk.bf16.mxu1 %vm892_vm2, %v10168_v10  ;;  %v10169_v19 = vld [vmem:[%s10543_s29 + $0x158] sm:$0xff]  }
 0x1be   : > { %v2008_v3 = vmax.f32 %v1880_v52, 0.0  ;;  %v3447_v32 = vadd.f32 %v11374_v5, %v3319_v1  ;;  %v11490_v27 = vmax.f32 %v2007_v47, %v3576_v22  ;;  %v10170_v22 = vld [vmem:[%s10550_s11 + $0x158] sm:$0xff]  }
 0x1bf   : > { %v3577_v54 = vmax.f32 %v3449_v44, 0.0  ;;  %v2006_v58 = vmax.f32 %v1878_v56, 0.0  ;;  %v9446_v50 = vpop.f32.mrb[104].mxu0  ;;  %v11492_v57 = vmax.f32 %v2005_v26, %v3574_v53  ;;  %v9578_v42 = vpop.f32.mrb[104].mxu1  ;;  %v10171_v44 = vld [vmem:[%s10543_s29 + $0x160] sm:$0xff]  }
 0x1c0   : > { %13427 = vst [vmem:[#allocation63_spill] sm:$0xff] %v11490_v27  ;;  %v3575_v8 = vmax.f32 %v3447_v32, 0.0  ;;  %v1749_v15 = vmul.f32 %v11359_v62, %v9446_v50  ;;  %v1542_v61 = vpop.f32.mrb[105].mxu0  ;;  %v3324_v10 = vmul.f32 %v11359_v62, %v9578_v42  ;;  %v3123_v52 = vpop.f32.mrb[105].mxu1 }
 0x1c1   : > { %13428 = vst [vmem:[#allocation64_spill] sm:$0xff] %v11492_v57  ;;  %v11496_v45 = vmax.f32 %v2008_v3, %v3577_v54  ;;  %v1747_v47 = vmul.f32 %v11359_v62, %v1542_v61  ;;  %v9447_v1 = vpop.f32.mrb[106].mxu0  ;;  %v3322_v53 = vmul.f32 %v11359_v62, %v3123_v52  ;;  %v9579_v50 = vpop.f32.mrb[106].mxu1  ;;  %v10172_v3 = vld [vmem:[%s10550_s11 + $0x160] sm:$0xff]  }
 0x1c2   : > { %v11502_v56 = vmax.f32 %v2006_v58, %v3575_v8  ;;  %v1883_v26 = vadd.f32 %v11374_v5, %v1749_v15  ;;  %v1750_v32 = vmul.f32 %v11359_v62, %v9447_v1  ;;  %v1545_v57 = vpop.f32.mrb[107].mxu0  ;;  %v3452_v54 = vadd.f32 %v11374_v5, %v3324_v10  ;;  %v3126_v27 = vpop.f32.mrb[107].mxu1 }
 0x1c3   : > { %13429 = vst [vmem:[#allocation65_spill] sm:$0xff] %v11496_v45  ;;  %v1881_v42 = vadd.f32 %v11374_v5, %v1747_v47  ;;  %v3325_v61 = vmul.f32 %v11359_v62, %v9579_v50  ;;  %v1748_v45 = vmul.f32 %v11359_v62, %v1545_v57  ;;  %v3450_v8 = vadd.f32 %v11374_v5, %v3322_v53 }
 0x1c4   : > { %13430 = vst [vmem:[#allocation66_spill] sm:$0xff] %v11502_v56  ;;  %v2011_v58 = vmax.f32 %v1883_v26, 0.0  ;;  %v1884_v15 = vadd.f32 %v11374_v5, %v1750_v32  ;;  %v3323_v52 = vmul.f32 %v11359_v62, %v3126_v27  ;;  %9689 = vmatmul.mubr.msk.bf16.gmra.mrb[212].mxu0 %vm892_vm2, %v10169_v19  ;;  %v3580_v1 = vmax.f32 %v3452_v54, 0.0  ;;  %9821 = vmatmul.mubr.msk.bf16.gmra.mrb[212].mxu1 %vm892_vm2, %v10170_v22 }
 0x1c5   : > { %v2009_v56 = vmax.f32 %v1881_v42, 0.0  ;;  %v3453_v10 = vadd.f32 %v11374_v5, %v3325_v61  ;;  %v1882_v47 = vadd.f32 %v11374_v5, %v1748_v45  ;;  %9692 = vmatprep.mubr.msk.bf16.mxu0 %vm892_vm2, %v10171_v44  ;;  %v3578_v57 = vmax.f32 %v3450_v8, 0.0  ;;  %9824 = vmatprep.mubr.msk.bf16.mxu1 %vm892_vm2, %v10172_v3  ;;  %v10173_v61 = vld [vmem:[%s10543_s29 + $0x168] sm:$0xff]  }
 0x1c6   : > { %v2012_v26 = vmax.f32 %v1884_v15, 0.0  ;;  %v3451_v53 = vadd.f32 %v11374_v5, %v3323_v52  ;;  %v11522_v27 = vmax.f32 %v2011_v58, %v3580_v1  ;;  %v10174_v1 = vld [vmem:[%s10550_s11 + $0x168] sm:$0xff]  }
 0x1c7   : > { %v3581_v19 = vmax.f32 %v3453_v10, 0.0  ;;  %v2010_v32 = vmax.f32 %v1882_v47, 0.0  ;;  %v9450_v50 = vpop.f32.mrb[108].mxu0  ;;  %v11524_v54 = vmax.f32 %v2009_v56, %v3578_v57  ;;  %v9582_v42 = vpop.f32.mrb[108].mxu1  ;;  %v10175_v10 = vld [vmem:[%s10543_s29 + $0x170] sm:$0xff]  }
 0x1c8   : > { %13431 = vst [vmem:[#allocation67_spill] sm:$0xff] %v11522_v27  ;;  %v3579_v45 = vmax.f32 %v3451_v53, 0.0  ;;  %v1753_v22 = vmul.f32 %v11359_v62, %v9450_v50  ;;  %v1558_v44 = vpop.f32.mrb[109].mxu0  ;;  %v3328_v3 = vmul.f32 %v11359_v62, %v9582_v42  ;;  %v3139_v15 = vpop.f32.mrb[109].mxu1 }
 0x1c9   : > { %13432 = vst [vmem:[#allocation68_spill] sm:$0xff] %v11524_v54  ;;  %v11528_v8 = vmax.f32 %v2012_v26, %v3581_v19  ;;  %v1751_v58 = vmul.f32 %v11359_v62, %v1558_v44  ;;  %v9451_v52 = vpop.f32.mrb[110].mxu0  ;;  %v3326_v57 = vmul.f32 %v11359_v62, %v3139_v15  ;;  %v9583_v50 = vpop.f32.mrb[110].mxu1  ;;  %v10176_v26 = vld [vmem:[%s10550_s11 + $0x170] sm:$0xff]  }
 0x1ca   : > { %v11534_v47 = vmax.f32 %v2010_v32, %v3579_v45  ;;  %v1887_v56 = vadd.f32 %v11374_v5, %v1753_v22  ;;  %v1754_v53 = vmul.f32 %v11359_v62, %v9451_v52  ;;  %v1561_v54 = vpop.f32.mrb[111].mxu0  ;;  %v3456_v19 = vadd.f32 %v11374_v5, %v3328_v3  ;;  %v3142_v27 = vpop.f32.mrb[111].mxu1 }
 0x1cb   : > { %13433 = vst [vmem:[#allocation69_spill] sm:$0xff] %v11528_v8  ;;  %v1885_v42 = vadd.f32 %v11374_v5, %v1751_v58  ;;  %v3329_v44 = vmul.f32 %v11359_v62, %v9583_v50  ;;  %v1752_v8 = vmul.f32 %v11359_v62, %v1561_v54  ;;  %v3454_v45 = vadd.f32 %v11374_v5, %v3326_v57 }
 0x1cc   : > { %13434 = vst [vmem:[#allocation70_spill] sm:$0xff] %v11534_v47  ;;  %v2015_v32 = vmax.f32 %v1887_v56, 0.0  ;;  %v1888_v22 = vadd.f32 %v11374_v5, %v1754_v53  ;;  %v3327_v15 = vmul.f32 %v11359_v62, %v3142_v27  ;;  %9693 = vmatmul.mubr.msk.bf16.gmra.mrb[216].mxu0 %vm892_vm2, %v10173_v61  ;;  %v3584_v52 = vmax.f32 %v3456_v19, 0.0  ;;  %9825 = vmatmul.mubr.msk.bf16.gmra.mrb[216].mxu1 %vm892_vm2, %v10174_v1 }
 0x1cd   : > { %v2013_v47 = vmax.f32 %v1885_v42, 0.0  ;;  %v3457_v3 = vadd.f32 %v11374_v5, %v3329_v44  ;;  %v1886_v58 = vadd.f32 %v11374_v5, %v1752_v8  ;;  %9696 = vmatprep.mubr.msk.bf16.mxu0 %vm892_vm2, %v10175_v10  ;;  %v3582_v54 = vmax.f32 %v3454_v45, 0.0  ;;  %9828 = vmatprep.mubr.msk.bf16.mxu1 %vm892_vm2, %v10176_v26  ;;  %v10177_v44 = vld [vmem:[%s10543_s29 + $0x178] sm:$0xff]  }
 0x1ce   : > { %v2016_v56 = vmax.f32 %v1888_v22, 0.0  ;;  %v3455_v57 = vadd.f32 %v11374_v5, %v3327_v15  ;;  %v11554_v27 = vmax.f32 %v2015_v32, %v3584_v52  ;;  %v10178_v52 = vld [vmem:[%s10550_s11 + $0x178] sm:$0xff]  }
 0x1cf   : > { %v3585_v61 = vmax.f32 %v3457_v3, 0.0  ;;  %v2014_v53 = vmax.f32 %v1886_v58, 0.0  ;;  %v9454_v50 = vpop.f32.mrb[112].mxu0  ;;  %v11556_v19 = vmax.f32 %v2013_v47, %v3582_v54  ;;  %v9586_v42 = vpop.f32.mrb[112].mxu1  ;;  %v10179_v3 = vld [vmem:[%s10543_s29 + $0x180] sm:$0xff]  }
 0x1d0   : > { %13435 = vst [vmem:[#allocation71_spill] sm:$0xff] %v11554_v27  ;;  %v3583_v8 = vmax.f32 %v3455_v57, 0.0  ;;  %v1757_v1 = vmul.f32 %v11359_v62, %v9454_v50  ;;  %v1574_v10 = vpop.f32.mrb[113].mxu0  ;;  %v3332_v26 = vmul.f32 %v11359_v62, %v9586_v42  ;;  %v3155_v22 = vpop.f32.mrb[113].mxu1 }
 0x1d1   : > { %13436 = vst [vmem:[#allocation72_spill] sm:$0xff] %v11556_v19  ;;  %v11560_v45 = vmax.f32 %v2016_v56, %v3585_v61  ;;  %v1755_v32 = vmul.f32 %v11359_v62, %v1574_v10  ;;  %v9455_v15 = vpop.f32.mrb[114].mxu0  ;;  %v3330_v54 = vmul.f32 %v11359_v62, %v3155_v22  ;;  %v9587_v50 = vpop.f32.mrb[114].mxu1  ;;  %v10180_v56 = vld [vmem:[%s10550_s11 + $0x180] sm:$0xff]  }
 0x1d2   : > { %v11566_v58 = vmax.f32 %v2014_v53, %v3583_v8  ;;  %v1891_v47 = vadd.f32 %v11374_v5, %v1757_v1  ;;  %v1758_v57 = vmul.f32 %v11359_v62, %v9455_v15  ;;  %v1577_v19 = vpop.f32.mrb[115].mxu0  ;;  %v3460_v61 = vadd.f32 %v11374_v5, %v3332_v26  ;;  %v3158_v27 = vpop.f32.mrb[115].mxu1 }
 0x1d3   : > { %13437 = vst [vmem:[#allocation73_spill] sm:$0xff] %v11560_v45  ;;  %v1889_v42 = vadd.f32 %v11374_v5, %v1755_v32  ;;  %v3333_v10 = vmul.f32 %v11359_v62, %v9587_v50  ;;  %v1756_v45 = vmul.f32 %v11359_v62, %v1577_v19  ;;  %v3458_v8 = vadd.f32 %v11374_v5, %v3330_v54 }
 0x1d4   : > { %13438 = vst [vmem:[#allocation74_spill] sm:$0xff] %v11566_v58  ;;  %v2019_v53 = vmax.f32 %v1891_v47, 0.0  ;;  %v1892_v1 = vadd.f32 %v11374_v5, %v1758_v57  ;;  %v3331_v22 = vmul.f32 %v11359_v62, %v3158_v27  ;;  %9697 = vmatmul.mubr.msk.bf16.gmra.mrb[220].mxu0 %vm892_vm2, %v10177_v44  ;;  %v3588_v15 = vmax.f32 %v3460_v61, 0.0  ;;  %9829 = vmatmul.mubr.msk.bf16.gmra.mrb[220].mxu1 %vm892_vm2, %v10178_v52 }
 0x1d5   : > { %v2017_v58 = vmax.f32 %v1889_v42, 0.0  ;;  %v3461_v26 = vadd.f32 %v11374_v5, %v3333_v10  ;;  %v1890_v32 = vadd.f32 %v11374_v5, %v1756_v45  ;;  %9700 = vmatprep.mubr.msk.bf16.mxu0 %vm892_vm2, %v10179_v3  ;;  %v3586_v19 = vmax.f32 %v3458_v8, 0.0  ;;  %9832 = vmatprep.mubr.msk.bf16.mxu1 %vm892_vm2, %v10180_v56  ;;  %v10181_v10 = vld [vmem:[%s10543_s29 + $0x188] sm:$0xff]  }
 0x1d6   : > { %v2020_v47 = vmax.f32 %v1892_v1, 0.0  ;;  %v3459_v54 = vadd.f32 %v11374_v5, %v3331_v22  ;;  %v11586_v27 = vmax.f32 %v2019_v53, %v3588_v15  ;;  %v10182_v15 = vld [vmem:[%s10550_s11 + $0x188] sm:$0xff]  }
 0x1d7   : > { %v3589_v44 = vmax.f32 %v3461_v26, 0.0  ;;  %v2018_v57 = vmax.f32 %v1890_v32, 0.0  ;;  %v9458_v50 = vpop.f32.mrb[116].mxu0  ;;  %v11588_v61 = vmax.f32 %v2017_v58, %v3586_v19  ;;  %v9590_v42 = vpop.f32.mrb[116].mxu1  ;;  %v10183_v26 = vld [vmem:[%s10543_s29 + $0x190] sm:$0xff]  }
 0x1d8   : > { %13439 = vst [vmem:[#allocation75_spill] sm:$0xff] %v11586_v27  ;;  %v3587_v45 = vmax.f32 %v3459_v54, 0.0  ;;  %v1761_v52 = vmul.f32 %v11359_v62, %v9458_v50  ;;  %v1590_v3 = vpop.f32.mrb[117].mxu0  ;;  %v3336_v56 = vmul.f32 %v11359_v62, %v9590_v42  ;;  %v3171_v1 = vpop.f32.mrb[117].mxu1 }
 0x1d9   : > { %13440 = vst [vmem:[#allocation76_spill] sm:$0xff] %v11588_v61  ;;  %v11592_v8 = vmax.f32 %v2020_v47, %v3589_v44  ;;  %v1759_v53 = vmul.f32 %v11359_v62, %v1590_v3  ;;  %v9459_v22 = vpop.f32.mrb[118].mxu0  ;;  %v3334_v19 = vmul.f32 %v11359_v62, %v3171_v1  ;;  %v9591_v50 = vpop.f32.mrb[118].mxu1  ;;  %v10184_v47 = vld [vmem:[%s10550_s11 + $0x190] sm:$0xff]  }
 0x1da   : > { %v11598_v32 = vmax.f32 %v2018_v57, %v3587_v45  ;;  %v1895_v58 = vadd.f32 %v11374_v5, %v1761_v52  ;;  %v1762_v54 = vmul.f32 %v11359_v62, %v9459_v22  ;;  %v1593_v61 = vpop.f32.mrb[119].mxu0  ;;  %v3464_v44 = vadd.f32 %v11374_v5, %v3336_v56  ;;  %v3174_v27 = vpop.f32.mrb[119].mxu1 }
 0x1db   : > { %13441 = vst [vmem:[#allocation77_spill] sm:$0xff] %v11592_v8  ;;  %v1893_v42 = vadd.f32 %v11374_v5, %v1759_v53  ;;  %v3337_v3 = vmul.f32 %v11359_v62, %v9591_v50  ;;  %v1760_v8 = vmul.f32 %v11359_v62, %v1593_v61  ;;  %v3462_v45 = vadd.f32 %v11374_v5, %v3334_v19 }
 0x1dc   : > { %13442 = vst [vmem:[#allocation78_spill] sm:$0xff] %v11598_v32  ;;  %v2023_v57 = vmax.f32 %v1895_v58, 0.0  ;;  %v1896_v52 = vadd.f32 %v11374_v5, %v1762_v54  ;;  %v3335_v1 = vmul.f32 %v11359_v62, %v3174_v27  ;;  %9701 = vmatmul.mubr.msk.bf16.gmra.mrb[224].mxu0 %vm892_vm2, %v10181_v10  ;;  %v3592_v22 = vmax.f32 %v3464_v44, 0.0  ;;  %9833 = vmatmul.mubr.msk.bf16.gmra.mrb[224].mxu1 %vm892_vm2, %v10182_v15 }
 0x1dd   : > { %v2021_v32 = vmax.f32 %v1893_v42, 0.0  ;;  %v3465_v56 = vadd.f32 %v11374_v5, %v3337_v3  ;;  %v1894_v53 = vadd.f32 %v11374_v5, %v1760_v8  ;;  %9704 = vmatprep.mubr.msk.bf16.mxu0 %vm892_vm2, %v10183_v26  ;;  %v3590_v61 = vmax.f32 %v3462_v45, 0.0  ;;  %9836 = vmatprep.mubr.msk.bf16.mxu1 %vm892_vm2, %v10184_v47  ;;  %v10185_v3 = vld [vmem:[%s10543_s29 + $0x198] sm:$0xff]  }
 0x1de   : > { %v2024_v58 = vmax.f32 %v1896_v52, 0.0  ;;  %v3463_v19 = vadd.f32 %v11374_v5, %v3335_v1  ;;  %v11618_v27 = vmax.f32 %v2023_v57, %v3592_v22  ;;  %v10186_v22 = vld [vmem:[%s10550_s11 + $0x198] sm:$0xff]  }
 0x1df   : > { %v3593_v10 = vmax.f32 %v3465_v56, 0.0  ;;  %v2022_v54 = vmax.f32 %v1894_v53, 0.0  ;;  %v9462_v50 = vpop.f32.mrb[120].mxu0  ;;  %v11620_v44 = vmax.f32 %v2021_v32, %v3590_v61  ;;  %v9594_v42 = vpop.f32.mrb[120].mxu1  ;;  %v10187_v56 = vld [vmem:[%s10543_s29 + $0x1a0] sm:$0xff]  }
 0x1e0   : > { %13443 = vst [vmem:[#allocation79_spill] sm:$0xff] %v11618_v27  ;;  %v3591_v8 = vmax.f32 %v3463_v19, 0.0  ;;  %v1765_v15 = vmul.f32 %v11359_v62, %v9462_v50  ;;  %v1606_v26 = vpop.f32.mrb[121].mxu0  ;;  %v3340_v47 = vmul.f32 %v11359_v62, %v9594_v42  ;;  %v3187_v52 = vpop.f32.mrb[121].mxu1 }
 0x1e1   : > { %13444 = vst [vmem:[#allocation80_spill] sm:$0xff] %v11620_v44  ;;  %v11624_v45 = vmax.f32 %v2024_v58, %v3593_v10  ;;  %v1763_v57 = vmul.f32 %v11359_v62, %v1606_v26  ;;  %v9463_v1 = vpop.f32.mrb[122].mxu0  ;;  %v3338_v61 = vmul.f32 %v11359_v62, %v3187_v52  ;;  %v9595_v50 = vpop.f32.mrb[122].mxu1  ;;  %v10188_v58 = vld [vmem:[%s10550_s11 + $0x1a0] sm:$0xff]  }
 0x1e2   : > { %v11630_v53 = vmax.f32 %v2022_v54, %v3591_v8  ;;  %v1899_v32 = vadd.f32 %v11374_v5, %v1765_v15  ;;  %v1766_v19 = vmul.f32 %v11359_v62, %v9463_v1  ;;  %v1609_v44 = vpop.f32.mrb[123].mxu0  ;;  %v3468_v10 = vadd.f32 %v11374_v5, %v3340_v47  ;;  %v3190_v27 = vpop.f32.mrb[123].mxu1 }
 0x1e3   : > { %13445 = vst [vmem:[#allocation81_spill] sm:$0xff] %v11624_v45  ;;  %v1897_v42 = vadd.f32 %v11374_v5, %v1763_v57  ;;  %v3341_v26 = vmul.f32 %v11359_v62, %v9595_v50  ;;  %v1764_v45 = vmul.f32 %v11359_v62, %v1609_v44  ;;  %v3466_v8 = vadd.f32 %v11374_v5, %v3338_v61 }
 0x1e4   : > { %13446 = vst [vmem:[#allocation82_spill] sm:$0xff] %v11630_v53  ;;  %v2027_v54 = vmax.f32 %v1899_v32, 0.0  ;;  %v1900_v15 = vadd.f32 %v11374_v5, %v1766_v19  ;;  %v3339_v52 = vmul.f32 %v11359_v62, %v3190_v27  ;;  %9705 = vmatmul.mubr.msk.bf16.gmra.mrb[228].mxu0 %vm892_vm2, %v10185_v3  ;;  %v3596_v1 = vmax.f32 %v3468_v10, 0.0  ;;  %9837 = vmatmul.mubr.msk.bf16.gmra.mrb[228].mxu1 %vm892_vm2, %v10186_v22 }
 0x1e5   : > { %v2025_v53 = vmax.f32 %v1897_v42, 0.0  ;;  %v3469_v47 = vadd.f32 %v11374_v5, %v3341_v26  ;;  %v1898_v57 = vadd.f32 %v11374_v5, %v1764_v45  ;;  %9708 = vmatprep.mubr.msk.bf16.mxu0 %vm892_vm2, %v10187_v56  ;;  %v3594_v44 = vmax.f32 %v3466_v8, 0.0  ;;  %9840 = vmatprep.mubr.msk.bf16.mxu1 %vm892_vm2, %v10188_v58  ;;  %v10189_v26 = vld [vmem:[%s10543_s29 + $0x1a8] sm:$0xff]  }
 0x1e6   : > { %v2028_v32 = vmax.f32 %v1900_v15, 0.0  ;;  %v3467_v61 = vadd.f32 %v11374_v5, %v3339_v52  ;;  %v11650_v27 = vmax.f32 %v2027_v54, %v3596_v1  ;;  %v10190_v1 = vld [vmem:[%s10550_s11 + $0x1a8] sm:$0xff]  }
 0x1e7   : > { %v3597_v3 = vmax.f32 %v3469_v47, 0.0  ;;  %v2026_v19 = vmax.f32 %v1898_v57, 0.0  ;;  %v9466_v50 = vpop.f32.mrb[124].mxu0  ;;  %v11652_v10 = vmax.f32 %v2025_v53, %v3594_v44  ;;  %v9598_v42 = vpop.f32.mrb[124].mxu1  ;;  %v10191_v47 = vld [vmem:[%s10543_s29 + $0x1b0] sm:$0xff]  }
 0x1e8   : > { %13447 = vst [vmem:[#allocation83_spill] sm:$0xff] %v11650_v27  ;;  %v3595_v45 = vmax.f32 %v3467_v61, 0.0  ;;  %v1769_v22 = vmul.f32 %v11359_v62, %v9466_v50  ;;  %v1622_v56 = vpop.f32.mrb[125].mxu0  ;;  %v3344_v58 = vmul.f32 %v11359_v62, %v9598_v42  ;;  %v3203_v15 = vpop.f32.mrb[125].mxu1 }
 0x1e9   : > { %13448 = vst [vmem:[#allocation84_spill] sm:$0xff] %v11652_v10  ;;  %v11656_v8 = vmax.f32 %v2028_v32, %v3597_v3  ;;  %v1767_v54 = vmul.f32 %v11359_v62, %v1622_v56  ;;  %v9467_v52 = vpop.f32.mrb[126].mxu0  ;;  %v3342_v44 = vmul.f32 %v11359_v62, %v3203_v15  ;;  %v9599_v50 = vpop.f32.mrb[126].mxu1  ;;  %v10192_v32 = vld [vmem:[%s10550_s11 + $0x1b0] sm:$0xff]  }
 0x1ea   : > { %v11662_v57 = vmax.f32 %v2026_v19, %v3595_v45  ;;  %v1903_v53 = vadd.f32 %v11374_v5, %v1769_v22  ;;  %v1770_v61 = vmul.f32 %v11359_v62, %v9467_v52  ;;  %v1625_v10 = vpop.f32.mrb[127].mxu0  ;;  %v3472_v3 = vadd.f32 %v11374_v5, %v3344_v58  ;;  %v3206_v27 = vpop.f32.mrb[127].mxu1 }
 0x1eb   : > { %13449 = vst [vmem:[#allocation85_spill] sm:$0xff] %v11656_v8  ;;  %v1901_v42 = vadd.f32 %v11374_v5, %v1767_v54  ;;  %v3345_v56 = vmul.f32 %v11359_v62, %v9599_v50  ;;  %v1768_v8 = vmul.f32 %v11359_v62, %v1625_v10  ;;  %v3470_v45 = vadd.f32 %v11374_v5, %v3342_v44 }
 0x1ec   : > { %13450 = vst [vmem:[#allocation86_spill] sm:$0xff] %v11662_v57  ;;  %v2031_v19 = vmax.f32 %v1903_v53, 0.0  ;;  %v1904_v22 = vadd.f32 %v11374_v5, %v1770_v61  ;;  %v3343_v15 = vmul.f32 %v11359_v62, %v3206_v27  ;;  %9709 = vmatmul.mubr.msk.bf16.gmra.mrb[232].mxu0 %vm892_vm2, %v10189_v26  ;;  %v3600_v52 = vmax.f32 %v3472_v3, 0.0  ;;  %9841 = vmatmul.mubr.msk.bf16.gmra.mrb[232].mxu1 %vm892_vm2, %v10190_v1 }
 0x1ed   : > { %v2029_v57 = vmax.f32 %v1901_v42, 0.0  ;;  %v3473_v58 = vadd.f32 %v11374_v5, %v3345_v56  ;;  %v1902_v54 = vadd.f32 %v11374_v5, %v1768_v8  ;;  %9712 = vmatprep.mubr.msk.bf16.mxu0 %vm892_vm2, %v10191_v47  ;;  %v3598_v10 = vmax.f32 %v3470_v45, 0.0  ;;  %9844 = vmatprep.mubr.msk.bf16.mxu1 %vm892_vm2, %v10192_v32  ;;  %v10193_v56 = vld [vmem:[%s10543_s29 + $0x1b8] sm:$0xff]  }
 0x1ee   : > { %v2032_v53 = vmax.f32 %v1904_v22, 0.0  ;;  %v3471_v44 = vadd.f32 %v11374_v5, %v3343_v15  ;;  %v11682_v27 = vmax.f32 %v2031_v19, %v3600_v52  ;;  %v10194_v52 = vld [vmem:[%s10550_s11 + $0x1b8] sm:$0xff]  }
 0x1ef   : > { %v3601_v26 = vmax.f32 %v3473_v58, 0.0  ;;  %v2030_v61 = vmax.f32 %v1902_v54, 0.0  ;;  %v9606_v50 = vpop.f32.mrb[128].mxu0  ;;  %v11684_v3 = vmax.f32 %v2029_v57, %v3598_v10  ;;  %v9738_v42 = vpop.f32.mrb[128].mxu1  ;;  %v10195_v58 = vld [vmem:[%s10543_s29 + $0x1c0] sm:$0xff]  }
 0x1f0   : > { %13451 = vst [vmem:[#allocation87_spill] sm:$0xff] %v11682_v27  ;;  %v3599_v8 = vmax.f32 %v3471_v44, 0.0  ;;  %v4917_v1 = vmul.f32 %v11359_v62, %v9606_v50  ;;  %v4404_v47 = vpop.f32.mrb[129].mxu0  ;;  %v6614_v32 = vmul.f32 %v11359_v62, %v9738_v42  ;;  %v6101_v22 = vpop.f32.mrb[129].mxu1 }
 0x1f1   : > { %13452 = vst [vmem:[#allocation88_spill] sm:$0xff] %v11684_v3  ;;  %v11688_v45 = vmax.f32 %v2032_v53, %v3601_v26  ;;  %v4915_v19 = vmul.f32 %v11359_v62, %v4404_v47  ;;  %v9607_v15 = vpop.f32.mrb[130].mxu0  ;;  %v6612_v10 = vmul.f32 %v11359_v62, %v6101_v22  ;;  %v9739_v50 = vpop.f32.mrb[130].mxu1  ;;  %v10196_v53 = vld [vmem:[%s10550_s11 + $0x1c0] sm:$0xff]  }
 0x1f2   : > { %v11694_v57 = vmax.f32 %v2030_v61, %v3599_v8  ;;  %v5045_v54 = vadd.f32 %v11374_v5, %v4917_v1  ;;  %v4918_v44 = vmul.f32 %v11359_v62, %v9607_v15  ;;  %v4407_v3 = vpop.f32.mrb[131].mxu0  ;;  %v6742_v26 = vadd.f32 %v11374_v5, %v6614_v32  ;;  %v6104_v61 = vpop.f32.mrb[131].mxu1 }
 0x1f3   : > { %13453 = vst [vmem:[#allocation89_spill] sm:$0xff] %v11688_v45  ;;  %v5043_v42 = vadd.f32 %v11374_v5, %v4915_v19  ;;  %v6615_v47 = vmul.f32 %v11359_v62, %v9739_v50  ;;  %v4916_v45 = vmul.f32 %v11359_v62, %v4407_v3  ;;  %v6740_v1 = vadd.f32 %v11374_v5, %v6612_v10 }
 0x1f4   : > { %13454 = vst [vmem:[#allocation90_spill] sm:$0xff] %v11694_v57  ;;  %v5173_v8 = vmax.f32 %v5045_v54, 0.0  ;;  %v5046_v22 = vadd.f32 %v11374_v5, %v4918_v44  ;;  %v6613_v15 = vmul.f32 %v11359_v62, %v6104_v61  ;;  %9713 = vmatmul.mubr.msk.bf16.gmra.mrb[236].mxu0 %vm892_vm2, %v10193_v56  ;;  %v6870_v57 = vmax.f32 %v6742_v26, 0.0  ;;  %9845 = vmatmul.mubr.msk.bf16.gmra.mrb[236].mxu1 %vm892_vm2, %v10194_v52 }
 0x1f5   : > { %v5171_v27 = vmax.f32 %v5043_v42, 0.0  ;;  %v6743_v32 = vadd.f32 %v11374_v5, %v6615_v47  ;;  %v5044_v19 = vadd.f32 %v11374_v5, %v4916_v45  ;;  %9716 = vmatprep.mubr.msk.bf16.mxu0 %vm892_vm2, %v10195_v58  ;;  %v6868_v54 = vmax.f32 %v6740_v1, 0.0  ;;  %9848 = vmatprep.mubr.msk.bf16.mxu1 %vm892_vm2, %v10196_v53 }
 0x1f6   : > { %v5301_v3 = vmax.f32 %v10671_v24, %v5173_v8  ;;  %v5174_v10 = vmax.f32 %v5046_v22, 0.0  ;;  %v6741_v44 = vadd.f32 %v11374_v5, %v6613_v15  ;;  %v10197_v8 = vld [vmem:[%s10543_s29 + $0x1c8] sm:$0xff]  }
 0x1f7   : > { %v5299_v56 = vmax.f32 %v10674_v29, %v5171_v27  ;;  %v6871_v50 = vmax.f32 %v6743_v32, 0.0  ;;  %v5172_v45 = vmax.f32 %v5044_v19, 0.0  ;;  %v9610_v52 = vpop.f32.mrb[132].mxu0  ;;  %v9742_v47 = vpop.f32.mrb[132].mxu1  ;;  %v10199_v32 = vld [vmem:[%s10543_s29 + $0x1d0] sm:$0xff]  }
 0x1f8   : > { %v6998_v58 = vmax.f32 %v5301_v3, %v6870_v57  ;;  %v5302_v24 = vmax.f32 %v10678_v35, %v5174_v10  ;;  %v6869_v26 = vmax.f32 %v6741_v44, 0.0  ;;  %v4921_v42 = vmul.f32 %v11359_v62, %v9610_v52  ;;  %v4420_v61 = vpop.f32.mrb[133].mxu0  ;;  %v6117_v22 = vpop.f32.mrb[133].mxu1  ;;  %v10198_v57 = vld [vmem:[%s10550_s11 + $0x1c8] sm:$0xff]  }
 0x1f9   : > { %v6996_v1 = vmax.f32 %v5299_v56, %v6868_v54  ;;  %v5300_v53 = vmax.f32 %v10682_v40, %v5172_v45  ;;  %v6618_v29 = vmul.f32 %v11359_v62, %v9742_v47  ;;  %v4919_v27 = vmul.f32 %v11359_v62, %v4420_v61  ;;  %v9611_v15 = vpop.f32.mrb[134].mxu0  ;;  %v9743_v44 = vpop.f32.mrb[134].mxu1  ;;  %v10200_v54 = vld [vmem:[%s10550_s11 + $0x1d0] sm:$0xff]  }
 0x1fa   : > { %v8943_v35 = vpack.c.bf16 %v6998_v58, %v6998_v58  ;;  %v6999_v19 = vmax.f32 %v5302_v24, %v6871_v50  ;;  %v5049_v3 = vadd.f32 %v11374_v5, %v4921_v42  ;;  %v6616_v10 = vmul.f32 %v11359_v62, %v6117_v22  ;;  %v4423_v52 = vpop.f32.mrb[135].mxu0  ;;  %v6120_v61 = vpop.f32.mrb[135].mxu1  ;;  %v11741_v24 = vld [vmem:[%s13363_s5] ss:$0 sm:$0xff] }
 0x1fb   : > { %v8941_v56 = vpack.c.bf16 %v6996_v1, %v6996_v1  ;;  %v6997_v40 = vmax.f32 %v5300_v53, %v6869_v26  ;;  %v6746_v45 = vadd.f32 %v11374_v5, %v6618_v29  ;;  %v5047_v47 = vadd.f32 %v11374_v5, %v4919_v27 }
 0x1fc   : > { %7639 = vst.msk [vmem:[%s11733_s10 + $0x8] sm:$0xf] %vm7636_vm3, %v8943_v35  ;;  %v8944_v50 = vpack.c.bf16 %v6999_v19, %v6999_v19  ;;  %v5177_v58 = vmax.f32 %v5049_v3, 0.0  ;;  %v6744_v62 = vadd.f32 %v11374_v5, %v6616_v10  ;;  %v4922_v26 = vmul.f32 %v11741_v24, %v9611_v15  ;;  %9717 = vmatmul.mubr.msk.bf16.gmra.mrb[240].mxu0 %vm892_vm2, %v10197_v8  ;;  %v11756_v8 = vld [vmem:[%s13364_s6] ss:$0 sm:$0xff] }
 0x1fd   : > { %7637 = vst.msk [vmem:[%s11733_s10] sm:$0xf] %vm7636_vm3, %v8941_v56  ;;  %v8942_v42 = vpack.c.bf16 %v6997_v40, %v6997_v40  ;;  %v6874_v1 = vmax.f32 %v6746_v45, 0.0  ;;  %v5175_v53 = vmax.f32 %v5047_v47, 0.0  ;;  %v6619_v29 = vmul.f32 %v11741_v24, %v9743_v44  ;;  %9849 = vmatmul.mubr.msk.bf16.gmra.mrb[240].mxu1 %vm892_vm2, %v10198_v57  ;;  %9720 = vmatprep.mubr.msk.bf16.mxu0 %vm892_vm2, %v10199_v32 }
 0x1fe   : > { %7640 = vst.msk [vmem:[%s11733_s10 + $0xc] sm:$0xf] %vm7636_vm3, %v8944_v50  ;;  %v5305_v5 = vmax.f32 %v10703_v2, %v5177_v58  ;;  %v6872_v27 = vmax.f32 %v6744_v62, 0.0  ;;  %v5050_v22 = vadd.f32 %v11756_v8, %v4922_v26  ;;  %v4920_v15 = vmul.f32 %v11741_v24, %v4423_v52  ;;  %9852 = vmatprep.mubr.msk.bf16.mxu1 %vm892_vm2, %v10200_v54  ;;  %v10201_v54 = vld [vmem:[%s10543_s29 + $0x1d8] sm:$0xff]   ;;  %v10203_v62 = vld [vmem:[%s10543_s29 + $0x1e0] sm:$0xff]  }
 0x1ff   : > { %7638 = vst.msk [vmem:[%s11733_s10 + $0x4] sm:$0xf] %vm7636_vm3, %v8942_v42  ;;  %v5303_v57 = vmax.f32 %v10706_v7, %v5175_v53  ;;  %v6747_v32 = vadd.f32 %v11756_v8, %v6619_v29  ;;  %v6617_v2 = vmul.f32 %v11741_v24, %v6120_v61  ;;  %v9614_v35 = vpop.f32.mrb[136].mxu0  ;;  %v9746_v52 = vpop.f32.mrb[136].mxu1  ;;  %v10202_v58 = vld [vmem:[%s10550_s11 + $0x1d8] sm:$0xff]  }
 0x200   : > { %v7002_v19 = vmax.f32 %v5305_v5, %v6874_v1  ;;  %v5178_v3 = vmax.f32 %v5050_v22, 0.0  ;;  %v5048_v10 = vadd.f32 %v11756_v8, %v4920_v15  ;;  %v4925_v44 = vmul.f32 %v11741_v24, %v9614_v35  ;;  %v4436_v56 = vpop.f32.mrb[137].mxu0  ;;  %v6133_v50 = vpop.f32.mrb[137].mxu1 }
 0x201   : > { %v7000_v40 = vmax.f32 %v5303_v57, %v6872_v27  ;;  %v6875_v45 = vmax.f32 %v6747_v32, 0.0  ;;  %v6745_v7 = vadd.f32 %v11756_v8, %v6617_v2  ;;  %v6622_v47 = vmul.f32 %v11741_v24, %v9746_v52  ;;  %v9615_v61 = vpop.f32.mrb[138].mxu0  ;;  %v9747_v29 = vpop.f32.mrb[138].mxu1  ;;  %v10204_v27 = vld [vmem:[%s10550_s11 + $0x1e0] sm:$0xff]  }
 0x202   : > { %v8947_v26 = vpack.c.bf16 %v7002_v19, %v7002_v19  ;;  %v5306_v42 = vmax.f32 %v10710_v13, %v5178_v3  ;;  %v5176_v1 = vmax.f32 %v5048_v10, 0.0  ;;  %v5053_v53 = vadd.f32 %v11756_v8, %v4925_v44  ;;  %v4439_v5 = vpop.f32.mrb[139].mxu0  ;;  %v6136_v2 = vpop.f32.mrb[139].mxu1 }
 0x203   : > { %v8945_v22 = vpack.c.bf16 %v7000_v40, %v7000_v40  ;;  %v6873_v15 = vmax.f32 %v6745_v7, 0.0  ;;  %v6750_v57 = vadd.f32 %v11756_v8, %v6622_v47  ;;  %v4923_v32 = vmul.f32 %v11741_v24, %v4436_v56 }
 0x204   : > { %7643 = vst.msk [vmem:[%s11733_s10 + $0x18] sm:$0xf] %vm7636_vm3, %v8947_v26  ;;  %v7003_v35 = vmax.f32 %v5306_v42, %v6875_v45  ;;  %v5304_v19 = vmax.f32 %v10714_v18, %v5176_v1  ;;  %v5181_v13 = vmax.f32 %v5053_v53, 0.0  ;;  %v6620_v3 = vmul.f32 %v11741_v24, %v6133_v50  ;;  %9721 = vmatmul.mubr.msk.bf16.gmra.mrb[244].mxu0 %vm892_vm2, %v10201_v54 }
 0x205   : > { %7641 = vst.msk [vmem:[%s11733_s10 + $0x10] sm:$0xf] %vm7636_vm3, %v8945_v22  ;;  %v6878_v10 = vmax.f32 %v6750_v57, 0.0  ;;  %v5051_v44 = vadd.f32 %v11756_v8, %v4923_v32  ;;  %v4926_v52 = vmul.f32 %v11741_v24, %v9615_v61  ;;  %v6623_v56 = vmul.f32 %v11741_v24, %v9747_v29  ;;  %9853 = vmatmul.mubr.msk.bf16.gmra.mrb[244].mxu1 %vm892_vm2, %v10202_v58  ;;  %v10205_v29 = vld [vmem:[%s10543_s29 + $0x1e8] sm:$0xff]  }
 0x206   : > { %9724 = vmatprep.mubr.msk.bf16.mxu0 %vm892_vm2, %v10203_v62  ;;  %v8948_v18 = vpack.c.bf16 %v7003_v35, %v7003_v35  ;;  %v7001_v40 = vmax.f32 %v5304_v19, %v6873_v15  ;;  %v5309_v45 = vmax.f32 %v10735_v46, %v5181_v13  ;;  %v6748_v54 = vadd.f32 %v11756_v8, %v6620_v3  ;;  %v10206_v35 = vld [vmem:[%s10550_s11 + $0x1e8] sm:$0xff]  }
 0x207   : > { %9856 = vmatprep.mubr.msk.bf16.mxu1 %vm892_vm2, %v10204_v27  ;;  %v5179_v7 = vmax.f32 %v5051_v44, 0.0  ;;  %v5054_v47 = vadd.f32 %v11756_v8, %v4926_v52  ;;  %v6751_v50 = vadd.f32 %v11756_v8, %v6623_v56  ;;  %v4924_v61 = vmul.f32 %v11741_v24, %v4439_v5  ;;  %v9618_v58 = vpop.f32.mrb[140].mxu0  ;;  %v9750_v1 = vpop.f32.mrb[140].mxu1  ;;  %v10208_v52 = vld [vmem:[%s10550_s11 + $0x1f0] sm:$0xff]  }
 0x208   : > { %7644 = vst.msk [vmem:[%s11733_s10 + $0x1c] sm:$0xf] %vm7636_vm3, %v8948_v18  ;;  %v8946_v62 = vpack.c.bf16 %v7001_v40, %v7001_v40  ;;  %v7006_v26 = vmax.f32 %v5309_v45, %v6878_v10  ;;  %v6876_v42 = vmax.f32 %v6748_v54, 0.0  ;;  %v6621_v46 = vmul.f32 %v11741_v24, %v6136_v2  ;;  %v4452_v53 = vpop.f32.mrb[141].mxu0  ;;  %v6149_v57 = vpop.f32.mrb[141].mxu1 }
 0x209   : > { %v5307_v27 = vmax.f32 %v10738_v51, %v5179_v7  ;;  %v5182_v22 = vmax.f32 %v5054_v47, 0.0  ;;  %v6879_v15 = vmax.f32 %v6751_v50, 0.0  ;;  %v5052_v5 = vadd.f32 %v11756_v8, %v4924_v61  ;;  %v9619_v32 = vpop.f32.mrb[142].mxu0  ;;  %v9751_v10 = vpop.f32.mrb[142].mxu1  ;;  %v10207_v51 = vld [vmem:[%s10543_s29 + $0x1f0] sm:$0xff]  }
 0x20a   : > { %7642 = vst.msk [vmem:[%s11733_s10 + $0x14] sm:$0xf] %vm7636_vm3, %v8946_v62  ;;  %v8951_v19 = vpack.c.bf16 %v7006_v26, %v7006_v26  ;;  %v6749_v2 = vadd.f32 %v11756_v8, %v6621_v46  ;;  %v4929_v13 = vmul.f32 %v11741_v24, %v9618_v58  ;;  %v6626_v3 = vmul.f32 %v11741_v24, %v9750_v1  ;;  %v4455_v44 = vpop.f32.mrb[143].mxu0  ;;  %v6152_v54 = vpop.f32.mrb[143].mxu1 }
 0x20b   : > { %v7004_v56 = vmax.f32 %v5307_v27, %v6876_v42  ;;  %v5310_v18 = vmax.f32 %v10742_v59, %v5182_v22  ;;  %v5180_v40 = vmax.f32 %v5052_v5, 0.0  ;;  %v4927_v45 = vmul.f32 %v11741_v24, %v4452_v53 }
 0x20c   : > { %7647 = vst.msk [vmem:[%s11733_s10 + $0x28] sm:$0xf] %vm7636_vm3, %v8951_v19  ;;  %v6877_v7 = vmax.f32 %v6749_v2, 0.0  ;;  %v5057_v47 = vadd.f32 %v11756_v8, %v4929_v13  ;;  %v6754_v50 = vadd.f32 %v11756_v8, %v6626_v3  ;;  %v6624_v61 = vmul.f32 %v11741_v24, %v6149_v57  ;;  %9725 = vmatmul.mubr.msk.bf16.gmra.mrb[248].mxu0 %vm892_vm2, %v10205_v29  ;;  %v10209_v13 = vld [vmem:[%s10543_s29 + $0x1f8] sm:$0xff]  }
 0x20d   : > { %v8949_v58 = vpack.c.bf16 %v7004_v56, %v7004_v56  ;;  %v7007_v62 = vmax.f32 %v5310_v18, %v6879_v15  ;;  %v5308_v59 = vmax.f32 %v10746_v0, %v5180_v40  ;;  %v5055_v26 = vadd.f32 %v11756_v8, %v4927_v45  ;;  %9857 = vmatmul.mubr.msk.bf16.gmra.mrb[248].mxu1 %vm892_vm2, %v10206_v35  ;;  %v10210_v18 = vld [vmem:[%s10550_s11 + $0x1f8] sm:$0xff]  }
 0x20e   : > { %v5185_v42 = vmax.f32 %v5057_v47, 0.0  ;;  %v6882_v46 = vmax.f32 %v6754_v50, 0.0  ;;  %v6752_v1 = vadd.f32 %v11756_v8, %v6624_v61  ;;  %v4930_v53 = vmul.f32 %v11741_v24, %v9619_v32  ;;  %9728 = vmatprep.mubr.msk.bf16.mxu0 %vm892_vm2, %v10207_v51  ;;  %9860 = vmatprep.mubr.msk.bf16.mxu1 %vm892_vm2, %v10208_v52 }
 0x20f   : > { %7645 = vst.msk [vmem:[%s11733_s10 + $0x20] sm:$0xf] %vm7636_vm3, %v8949_v58  ;;  %v8952_v29 = vpack.c.bf16 %v7007_v62, %v7007_v62  ;;  %v7005_v0 = vmax.f32 %v5308_v59, %v6877_v7  ;;  %v5183_v27 = vmax.f32 %v5055_v26, 0.0  ;;  %v6627_v22 = vmul.f32 %v11741_v24, %v9751_v10  ;;  %v9622_v15 = vpop.f32.mrb[144].mxu0  ;;  %v9754_v19 = vpop.f32.mrb[144].mxu1 }
 0x210   : > { %v5313_v5 = vmax.f32 %v10766_v28, %v5185_v42  ;;  %v6880_v57 = vmax.f32 %v6752_v1, 0.0  ;;  %v5058_v35 = vadd.f32 %v11756_v8, %v4930_v53  ;;  %v4928_v32 = vmul.f32 %v11741_v24, %v4455_v44  ;;  %v4468_v2 = vpop.f32.mrb[145].mxu0  ;;  %v6165_v56 = vpop.f32.mrb[145].mxu1 }
 0x211   : > { %7648 = vst.msk [vmem:[%s11733_s10 + $0x2c] sm:$0xf] %vm7636_vm3, %v8952_v29  ;;  %v8950_v3 = vpack.c.bf16 %v7005_v0, %v7005_v0  ;;  %v5311_v51 = vmax.f32 %v10768_v33, %v5183_v27  ;;  %v6755_v10 = vadd.f32 %v11756_v8, %v6627_v22  ;;  %v6625_v52 = vmul.f32 %v11741_v24, %v6152_v54  ;;  %v9623_v28 = vpop.f32.mrb[146].mxu0  ;;  %v9755_v47 = vpop.f32.mrb[146].mxu1 }
 0x212   : > { %v7010_v40 = vmax.f32 %v5313_v5, %v6882_v46  ;;  %v5186_v45 = vmax.f32 %v5058_v35, 0.0  ;;  %v5056_v44 = vadd.f32 %v11756_v8, %v4928_v32  ;;  %v4933_v7 = vmul.f32 %v11741_v24, %v9622_v15  ;;  %v4471_v50 = vpop.f32.mrb[147].mxu0  ;;  %v6168_v62 = vpop.f32.mrb[147].mxu1 }
 0x213   : > { %7646 = vst.msk [vmem:[%s11733_s10 + $0x24] sm:$0xf] %vm7636_vm3, %v8950_v3  ;;  %v7008_v61 = vmax.f32 %v5311_v51, %v6880_v57  ;;  %v6883_v33 = vmax.f32 %v6755_v10, 0.0  ;;  %v6753_v58 = vadd.f32 %v11756_v8, %v6625_v52  ;;  %v6630_v54 = vmul.f32 %v11741_v24, %v9754_v19 }
 0x214   : > { %v8955_v59 = vpack.c.bf16 %v7010_v40, %v7010_v40  ;;  %v5314_v26 = vmax.f32 %v10772_v41, %v5186_v45  ;;  %v5184_v42 = vmax.f32 %v5056_v44, 0.0  ;;  %v5061_v46 = vadd.f32 %v11756_v8, %v4933_v7  ;;  %9729 = vmatmul.mubr.msk.bf16.gmra.mrb[252].mxu0 %vm892_vm2, %v10209_v13 }
 0x215   : > { %v8953_v1 = vpack.c.bf16 %v7008_v61, %v7008_v61  ;;  %v6881_v53 = vmax.f32 %v6753_v58, 0.0  ;;  %v6758_v29 = vadd.f32 %v11756_v8, %v6630_v54  ;;  %v4931_v0 = vmul.f32 %v11741_v24, %v4468_v2  ;;  %9861 = vmatmul.mubr.msk.bf16.gmra.mrb[252].mxu1 %vm892_vm2, %v10210_v18 }
 0x216   : > { %7651 = vst.msk [vmem:[%s11733_s10 + $0x38] sm:$0xf] %vm7636_vm3, %v8955_v59  ;;  %v7011_v27 = vmax.f32 %v5314_v26, %v6883_v33  ;;  %v5312_v22 = vmax.f32 %v10778_v49, %v5184_v42  ;;  %v5189_v15 = vmax.f32 %v5061_v46, 0.0  ;;  %v6628_v41 = vmul.f32 %v11741_v24, %v6165_v56 }
 0x217   : > { %7649 = vst.msk [vmem:[%s11733_s10 + $0x30] sm:$0xf] %vm7636_vm3, %v8953_v1  ;;  %v6886_v5 = vmax.f32 %v6758_v29, 0.0  ;;  %v5059_v57 = vadd.f32 %v11756_v8, %v4931_v0  ;;  %v4934_v35 = vmul.f32 %v11741_v24, %v9623_v28  ;;  %v6631_v32 = vmul.f32 %v11741_v24, %v9755_v47  ;;  %v9626_v19 = vpop.f32.mrb[148].mxu0  ;;  %v9758_v51 = vpop.f32.mrb[148].mxu1 }
 0x218   : > { %v8956_v2 = vpack.c.bf16 %v7011_v27, %v7011_v27  ;;  %v7009_v13 = vmax.f32 %v5312_v22, %v6881_v53  ;;  %v5317_v3 = vmax.f32 %v10798_v16, %v5189_v15  ;;  %v6756_v49 = vadd.f32 %v11756_v8, %v6628_v41  ;;  %v4484_v10 = vpop.f32.mrb[149].mxu0  ;;  %v6181_v28 = vpop.f32.mrb[149].mxu1 }
 0x219   : > { %v5187_v52 = vmax.f32 %v5059_v57, 0.0  ;;  %v5062_v56 = vadd.f32 %v11756_v8, %v4934_v35  ;;  %v6759_v18 = vadd.f32 %v11756_v8, %v6631_v32  ;;  %v4932_v40 = vmul.f32 %v11741_v24, %v4471_v50  ;;  %v9627_v45 = vpop.f32.mrb[150].mxu0  ;;  %v9759_v61 = vpop.f32.mrb[150].mxu1 }
 0x21a   : > { %7652 = vst.msk [vmem:[%s11733_s10 + $0x3c] sm:$0xf] %vm7636_vm3, %v8956_v2  ;;  %v8954_v44 = vpack.c.bf16 %v7009_v13, %v7009_v13  ;;  %v7014_v7 = vmax.f32 %v5317_v3, %v6886_v5  ;;  %v6884_v47 = vmax.f32 %v6756_v49, 0.0  ;;  %v6629_v16 = vmul.f32 %v11741_v24, %v6168_v62  ;;  %v4487_v33 = vpop.f32.mrb[151].mxu0  ;;  %v6184_v42 = vpop.f32.mrb[151].mxu1 }
 0x21b   : > { %v5315_v58 = vmax.f32 %v10800_v21, %v5187_v52  ;;  %v5190_v54 = vmax.f32 %v5062_v56, 0.0  ;;  %v6887_v59 = vmax.f32 %v6759_v18, 0.0  ;;  %v5060_v26 = vadd.f32 %v11756_v8, %v4932_v40 }
 0x21c   : > { %7650 = vst.msk [vmem:[%s11733_s10 + $0x34] sm:$0xf] %vm7636_vm3, %v8954_v44  ;;  %v8959_v50 = vpack.c.bf16 %v7014_v7, %v7014_v7  ;;  %v6757_v46 = vadd.f32 %v11756_v8, %v6629_v16  ;;  %v4937_v1 = vmul.f32 %v11741_v24, %v9626_v19  ;;  %v6634_v53 = vmul.f32 %v11741_v24, %v9758_v51 }
 0x21d   : > { %v7012_v62 = vmax.f32 %v5315_v58, %v6884_v47  ;;  %v5318_v29 = vmax.f32 %v10804_v30, %v5190_v54  ;;  %v5188_v0 = vmax.f32 %v5060_v26, 0.0  ;;  %v4935_v21 = vmul.f32 %v11741_v24, %v4484_v10 }
 0x21e   : > { %7655 = vst.msk [vmem:[%s11733_s10 + $0x48] sm:$0xf] %vm7636_vm3, %v8959_v50  ;;  %v6885_v27 = vmax.f32 %v6757_v46, 0.0  ;;  %v5065_v22 = vadd.f32 %v11756_v8, %v4937_v1  ;;  %v6762_v15 = vadd.f32 %v11756_v8, %v6634_v53  ;;  %v6632_v41 = vmul.f32 %v11741_v24, %v6181_v28 }
 0x21f   : > { %v8957_v5 = vpack.c.bf16 %v7012_v62, %v7012_v62  ;;  %v7015_v57 = vmax.f32 %v5318_v29, %v6887_v59  ;;  %v5316_v35 = vmax.f32 %v10810_v39, %v5188_v0  ;;  %v5063_v32 = vadd.f32 %v11756_v8, %v4935_v21  ;;  %v9630_v30 = vpop.f32.mrb[152].mxu0  ;;  %v9762_v49 = vpop.f32.mrb[152].mxu1 }
 0x220   : > { %v5193_v19 = vmax.f32 %v5065_v22, 0.0  ;;  %v6890_v2 = vmax.f32 %v6762_v15, 0.0  ;;  %v6760_v13 = vadd.f32 %v11756_v8, %v6632_v41  ;;  %v4938_v3 = vmul.f32 %v11741_v24, %v9627_v45  ;;  %v4500_v51 = vpop.f32.mrb[153].mxu0  ;;  %v6197_v39 = vpop.f32.mrb[153].mxu1 }
 0x221   : > { %7653 = vst.msk [vmem:[%s11733_s10 + $0x40] sm:$0xf] %vm7636_vm3, %v8957_v5  ;;  %v8960_v10 = vpack.c.bf16 %v7015_v57, %v7015_v57  ;;  %v7013_v52 = vmax.f32 %v5316_v35, %v6885_v27  ;;  %v5191_v56 = vmax.f32 %v5063_v32, 0.0  ;;  %v6635_v18 = vmul.f32 %v11741_v24, %v9759_v61  ;;  %v9631_v40 = vpop.f32.mrb[154].mxu0  ;;  %v9763_v47 = vpop.f32.mrb[154].mxu1 }
 0x222   : > { %v5321_v28 = vmax.f32 %v10830_v9, %v5193_v19  ;;  %v6888_v44 = vmax.f32 %v6760_v13, 0.0  ;;  %v5066_v7 = vadd.f32 %v11756_v8, %v4938_v3  ;;  %v4936_v45 = vmul.f32 %v11741_v24, %v4487_v33  ;;  %v4503_v16 = vpop.f32.mrb[155].mxu0  ;;  %v6200_v26 = vpop.f32.mrb[155].mxu1 }
 0x223   : > { %7656 = vst.msk [vmem:[%s11733_s10 + $0x4c] sm:$0xf] %vm7636_vm3, %v8960_v10  ;;  %v8958_v58 = vpack.c.bf16 %v7013_v52, %v7013_v52  ;;  %v5319_v54 = vmax.f32 %v10832_v14, %v5191_v56  ;;  %v6763_v59 = vadd.f32 %v11756_v8, %v6635_v18  ;;  %v6633_v61 = vmul.f32 %v11741_v24, %v6184_v42 }
 0x224   : > { %v7018_v50 = vmax.f32 %v5321_v28, %v6890_v2  ;;  %v5194_v9 = vmax.f32 %v5066_v7, 0.0  ;;  %v5064_v46 = vadd.f32 %v11756_v8, %v4936_v45  ;;  %v4941_v1 = vmul.f32 %v11741_v24, %v9630_v30 }
 0x225   : > { %7654 = vst.msk [vmem:[%s11733_s10 + $0x44] sm:$0xf] %vm7636_vm3, %v8958_v58  ;;  %v7016_v33 = vmax.f32 %v5319_v54, %v6888_v44  ;;  %v6891_v53 = vmax.f32 %v6763_v59, 0.0  ;;  %v6761_v62 = vadd.f32 %v11756_v8, %v6633_v61  ;;  %v6638_v14 = vmul.f32 %v11741_v24, %v9762_v49 }
 0x226   : > { %v8963_v29 = vpack.c.bf16 %v7018_v50, %v7018_v50  ;;  %v5322_v42 = vmax.f32 %v10836_v23, %v5194_v9  ;;  %v5192_v0 = vmax.f32 %v5064_v46, 0.0  ;;  %v5069_v21 = vadd.f32 %v11756_v8, %v4941_v1 }
 0x227   : > { %v8961_v27 = vpack.c.bf16 %v7016_v33, %v7016_v33  ;;  %v6889_v22 = vmax.f32 %v6761_v62, 0.0  ;;  %v6766_v15 = vadd.f32 %v11756_v8, %v6638_v14  ;;  %v4939_v41 = vmul.f32 %v11741_v24, %v4500_v51  ;;  %v9634_v5 = vpop.f32.mrb[156].mxu0  ;;  %v9766_v19 = vpop.f32.mrb[156].mxu1 }
 0x228   : > { %7659 = vst.msk [vmem:[%s11733_s10 + $0x58] sm:$0xf] %vm7636_vm3, %v8963_v29  ;;  %v7019_v57 = vmax.f32 %v5322_v42, %v6891_v53  ;;  %v5320_v35 = vmax.f32 %v10842_v36, %v5192_v0  ;;  %v5197_v32 = vmax.f32 %v5069_v21, 0.0  ;;  %v6636_v30 = vmul.f32 %v11741_v24, %v6197_v39  ;;  %v4516_v23 = vpop.f32.mrb[157].mxu0  ;;  %v6213_v51 = vpop.f32.mrb[157].mxu1 }
 0x229   : > { %7657 = vst.msk [vmem:[%s11733_s10 + $0x50] sm:$0xf] %vm7636_vm3, %v8961_v27  ;;  %v6894_v2 = vmax.f32 %v6766_v15, 0.0  ;;  %v5067_v13 = vadd.f32 %v11756_v8, %v4939_v41  ;;  %v4942_v3 = vmul.f32 %v11741_v24, %v9631_v40  ;;  %v6639_v49 = vmul.f32 %v11741_v24, %v9763_v47  ;;  %v9635_v10 = vpop.f32.mrb[158].mxu0  ;;  %v9767_v39 = vpop.f32.mrb[158].mxu1 }
 0x22a   : > { %v8964_v52 = vpack.c.bf16 %v7019_v57, %v7019_v57  ;;  %v7017_v56 = vmax.f32 %v5320_v35, %v6889_v22  ;;  %v5325_v36 = vmax.f32 %v10862_v6, %v5197_v32  ;;  %v6764_v18 = vadd.f32 %v11756_v8, %v6636_v30  ;;  %v4519_v28 = vpop.f32.mrb[159].mxu0  ;;  %v6216_v58 = vpop.f32.mrb[159].mxu1 }
 0x22b   : > { %v5195_v44 = vmax.f32 %v5067_v13, 0.0  ;;  %v5070_v7 = vadd.f32 %v11756_v8, %v4942_v3  ;;  %v6767_v45 = vadd.f32 %v11756_v8, %v6639_v49  ;;  %v4940_v40 = vmul.f32 %v11741_v24, %v4503_v16 }
 0x22c   : > { %7660 = vst.msk [vmem:[%s11733_s10 + $0x5c] sm:$0xf] %vm7636_vm3, %v8964_v52  ;;  %v8962_v47 = vpack.c.bf16 %v7017_v56, %v7017_v56  ;;  %v7022_v54 = vmax.f32 %v5325_v36, %v6894_v2  ;;  %v6892_v59 = vmax.f32 %v6764_v18, 0.0  ;;  %v6637_v6 = vmul.f32 %v11741_v24, %v6200_v26 }
 0x22d   : > { %v5323_v61 = vmax.f32 %v10864_v12, %v5195_v44  ;;  %v5198_v50 = vmax.f32 %v5070_v7, 0.0  ;;  %v6895_v9 = vmax.f32 %v6767_v45, 0.0  ;;  %v5068_v46 = vadd.f32 %v11756_v8, %v4940_v40 }
 0x22e   : > { %7658 = vst.msk [vmem:[%s11733_s10 + $0x54] sm:$0xf] %vm7636_vm3, %v8962_v47  ;;  %v8967_v1 = vpack.c.bf16 %v7022_v54, %v7022_v54  ;;  %v6765_v16 = vadd.f32 %v11756_v8, %v6637_v6  ;;  %v4945_v33 = vmul.f32 %v11741_v24, %v9634_v5  ;;  %v6642_v53 = vmul.f32 %v11741_v24, %v9766_v19 }
 0x22f   : > { %v7020_v62 = vmax.f32 %v5323_v61, %v6892_v59  ;;  %v5326_v14 = vmax.f32 %v10868_v25, %v5198_v50  ;;  %v5196_v29 = vmax.f32 %v5068_v46, 0.0  ;;  %v4943_v26 = vmul.f32 %v11741_v24, %v4516_v23  ;;  %v9638_v12 = vpop.f32.mrb[160].mxu0  ;;  %v9770_v22 = vpop.f32.mrb[160].mxu1 }
 0x230   : > { %7663 = vst.msk [vmem:[%s11733_s10 + $0x68] sm:$0xf] %vm7636_vm3, %v8967_v1  ;;  %v6893_v42 = vmax.f32 %v6765_v16, 0.0  ;;  %v5073_v0 = vadd.f32 %v11756_v8, %v4945_v33  ;;  %v6770_v21 = vadd.f32 %v11756_v8, %v6642_v53  ;;  %v6640_v27 = vmul.f32 %v11741_v24, %v6213_v51  ;;  %v4532_v15 = vpop.f32.mrb[161].mxu0  ;;  %v6229_v35 = vpop.f32.mrb[161].mxu1 }
 0x231   : > { %v8965_v41 = vpack.c.bf16 %v7020_v62, %v7020_v62  ;;  %v7023_v5 = vmax.f32 %v5326_v14, %v6895_v9  ;;  %v5324_v25 = vmax.f32 %v10874_v38, %v5196_v29  ;;  %v5071_v57 = vadd.f32 %v11756_v8, %v4943_v26  ;;  %v9639_v32 = vpop.f32.mrb[162].mxu0  ;;  %v9771_v13 = vpop.f32.mrb[162].mxu1 }
 0x232   : > { %v5201_v30 = vmax.f32 %v5073_v0, 0.0  ;;  %v6898_v19 = vmax.f32 %v6770_v21, 0.0  ;;  %v6768_v23 = vadd.f32 %v11756_v8, %v6640_v27  ;;  %v4946_v2 = vmul.f32 %v11741_v24, %v9635_v10  ;;  %v4535_v3 = vpop.f32.mrb[163].mxu0  ;;  %v6232_v56 = vpop.f32.mrb[163].mxu1 }
 0x233   : > { %7661 = vst.msk [vmem:[%s11733_s10 + $0x60] sm:$0xf] %vm7636_vm3, %v8965_v41  ;;  %v8968_v49 = vpack.c.bf16 %v7023_v5, %v7023_v5  ;;  %v7021_v51 = vmax.f32 %v5324_v25, %v6893_v42  ;;  %v5199_v52 = vmax.f32 %v5071_v57, 0.0  ;;  %v6643_v38 = vmul.f32 %v11741_v24, %v9767_v39 }
 0x234   : > { %v5329_v36 = vmax.f32 %v10894_v11, %v5201_v30  ;;  %v6896_v18 = vmax.f32 %v6768_v23, 0.0  ;;  %v5074_v44 = vadd.f32 %v11756_v8, %v4946_v2  ;;  %v4944_v7 = vmul.f32 %v11741_v24, %v4519_v28 }
 0x235   : > { %7664 = vst.msk [vmem:[%s11733_s10 + $0x6c] sm:$0xf] %vm7636_vm3, %v8968_v49  ;;  %v8966_v10 = vpack.c.bf16 %v7021_v51, %v7021_v51  ;;  %v5327_v45 = vmax.f32 %v10896_v20, %v5199_v52  ;;  %v6771_v40 = vadd.f32 %v11756_v8, %v6643_v38  ;;  %v6641_v47 = vmul.f32 %v11741_v24, %v6216_v58 }
 0x236   : > { %v7026_v54 = vmax.f32 %v5329_v36, %v6898_v19  ;;  %v5202_v59 = vmax.f32 %v5074_v44, 0.0  ;;  %v5072_v39 = vadd.f32 %v11756_v8, %v4944_v7  ;;  %v4949_v11 = vmul.f32 %v11741_v24, %v9638_v12 }
 0x237   : > { %7662 = vst.msk [vmem:[%s11733_s10 + $0x64] sm:$0xf] %vm7636_vm3, %v8966_v10  ;;  %v7024_v6 = vmax.f32 %v5327_v45, %v6896_v18  ;;  %v6899_v61 = vmax.f32 %v6771_v40, 0.0  ;;  %v6769_v28 = vadd.f32 %v11756_v8, %v6641_v47  ;;  %v6646_v50 = vmul.f32 %v11741_v24, %v9770_v22  ;;  %v9642_v20 = vpop.f32.mrb[164].mxu0  ;;  %v9774_v16 = vpop.f32.mrb[164].mxu1 }
 0x238   : > { %v8971_v9 = vpack.c.bf16 %v7026_v54, %v7026_v54  ;;  %v5330_v46 = vmax.f32 %v10900_v34, %v5202_v59  ;;  %v5200_v58 = vmax.f32 %v5072_v39, 0.0  ;;  %v5077_v1 = vadd.f32 %v11756_v8, %v4949_v11  ;;  %v4548_v33 = vpop.f32.mrb[165].mxu0  ;;  %v6245_v26 = vpop.f32.mrb[165].mxu1 }
 0x239   : > { %v8969_v53 = vpack.c.bf16 %v7024_v6, %v7024_v6  ;;  %v6897_v62 = vmax.f32 %v6769_v28, 0.0  ;;  %v6774_v14 = vadd.f32 %v11756_v8, %v6646_v50  ;;  %v4947_v29 = vmul.f32 %v11741_v24, %v4532_v15  ;;  %v9643_v12 = vpop.f32.mrb[166].mxu0  ;;  %v9775_v27 = vpop.f32.mrb[166].mxu1 }
 0x23a   : > { %7667 = vst.msk [vmem:[%s11733_s10 + $0x78] sm:$0xf] %vm7636_vm3, %v8971_v9  ;;  %v7027_v42 = vmax.f32 %v5330_v46, %v6899_v61  ;;  %v5328_v0 = vmax.f32 %v10906_v48, %v5200_v58  ;;  %v5205_v34 = vmax.f32 %v5077_v1, 0.0  ;;  %v6644_v21 = vmul.f32 %v11741_v24, %v6229_v35  ;;  %v4551_v22 = vpop.f32.mrb[167].mxu0  ;;  %v6248_v57 = vpop.f32.mrb[167].mxu1 }
 0x23b   : > { %7665 = vst.msk [vmem:[%s11733_s10 + $0x70] sm:$0xf] %vm7636_vm3, %v8969_v53  ;;  %v6902_v41 = vmax.f32 %v6774_v14, 0.0  ;;  %v5075_v5 = vadd.f32 %v11756_v8, %v4947_v29  ;;  %v4950_v15 = vmul.f32 %v11741_v24, %v9639_v32  ;;  %v6647_v25 = vmul.f32 %v11741_v24, %v9771_v13 }
 0x23c   : > { %v8972_v30 = vpack.c.bf16 %v7027_v42, %v7027_v42  ;;  %v7025_v19 = vmax.f32 %v5328_v0, %v6897_v62  ;;  %v5333_v48 = vmax.f32 %v10926_v31, %v5205_v34  ;;  %v6772_v35 = vadd.f32 %v11756_v8, %v6644_v21 }
 0x23d   : > { %v5203_v23 = vmax.f32 %v5075_v5, 0.0  ;;  %v5078_v2 = vadd.f32 %v11756_v8, %v4950_v15  ;;  %v6775_v49 = vadd.f32 %v11756_v8, %v6647_v25  ;;  %v4948_v51 = vmul.f32 %v11741_v24, %v4535_v3 }
 0x23e   : > { %7668 = vst.msk [vmem:[%s11733_s10 + $0x7c] sm:$0xf] %vm7636_vm3, %v8972_v30  ;;  %v8970_v32 = vpack.c.bf16 %v7025_v19, %v7025_v19  ;;  %v7030_v52 = vmax.f32 %v5333_v48, %v6902_v41  ;;  %v6900_v13 = vmax.f32 %v6772_v35, 0.0  ;;  %v6645_v38 = vmul.f32 %v11741_v24, %v6232_v56 }
 0x23f   : > { %v5331_v36 = vmax.f32 %v10928_v43, %v5203_v23  ;;  %v5206_v31 = vmax.f32 %v5078_v2, 0.0  ;;  %v6903_v18 = vmax.f32 %v6775_v49, 0.0  ;;  %v5076_v44 = vadd.f32 %v11756_v8, %v4948_v51  ;;  %v9646_v7 = vpop.f32.mrb[168].mxu0  ;;  %v9778_v47 = vpop.f32.mrb[168].mxu1 }
 0x240   : > { %7666 = vst.msk [vmem:[%s11733_s10 + $0x74] sm:$0xf] %vm7636_vm3, %v8970_v32  ;;  %v8975_v10 = vpack.c.bf16 %v7030_v52, %v7030_v52  ;;  %v6773_v3 = vadd.f32 %v11756_v8, %v6645_v38  ;;  %v4953_v45 = vmul.f32 %v11741_v24, %v9642_v20  ;;  %v6650_v40 = vmul.f32 %v11741_v24, %v9774_v16  ;;  %v4564_v54 = vpop.f32.mrb[169].mxu0  ;;  %v6261_v11 = vpop.f32.mrb[169].mxu1 }
 0x241   : > { %v7028_v56 = vmax.f32 %v5331_v36, %v6900_v13  ;;  %v5334_v43 = vmax.f32 %v10932_v55, %v5206_v31  ;;  %v5204_v59 = vmax.f32 %v5076_v44, 0.0  ;;  %v4951_v39 = vmul.f32 %v11741_v24, %v4548_v33  ;;  %v11988_v6 = vpop.f32.mrb[170].mxu0  ;;  %v9779_v9 = vpop.f32.mrb[170].mxu1 }
 0x242   : > { %7671 = vst.msk [vmem:[%s11733_s10 + $0x88] sm:$0xf] %vm7636_vm3, %v8975_v10  ;;  %v6901_v61 = vmax.f32 %v6773_v3, 0.0  ;;  %v5081_v28 = vadd.f32 %v11756_v8, %v4953_v45  ;;  %v6778_v50 = vadd.f32 %v11756_v8, %v6650_v40  ;;  %v6648_v20 = vmul.f32 %v11741_v24, %v6245_v26  ;;  %v11995_v46 = vpop.f32.mrb[171].mxu0  ;;  %v11999_v33 = vpop.f32.mrb[171].mxu1 }
 0x243   : > { %v8973_v55 = vpack.c.bf16 %v7028_v56, %v7028_v56  ;;  %v7031_v58 = vmax.f32 %v5334_v43, %v6903_v18  ;;  %v5332_v1 = vmax.f32 %v10938_v63, %v5204_v59  ;;  %v5079_v16 = vadd.f32 %v11756_v8, %v4951_v39 }
 0x244   : > { %v5209_v53 = vmax.f32 %v5081_v28, 0.0  ;;  %v6906_v62 = vmax.f32 %v6778_v50, 0.0  ;;  %v6776_v14 = vadd.f32 %v11756_v8, %v6648_v20  ;;  %v4954_v29 = vmul.f32 %v11741_v24, %v9643_v12  ;;  %v13455_v50 = vld [vmem:[#allocation3_spill] sm:$0xff] }
 0x245   : > { %7669 = vst.msk [vmem:[%s11733_s10 + $0x80] sm:$0xf] %vm7636_vm3, %v8973_v55  ;;  %v8976_v26 = vpack.c.bf16 %v7031_v58, %v7031_v58  ;;  %v7029_v42 = vmax.f32 %v5332_v1, %v6901_v61  ;;  %v5207_v0 = vmax.f32 %v5079_v16, 0.0  ;;  %v6651_v34 = vmul.f32 %v11741_v24, %v9775_v27 }
 0x246   : > { %v5337_v63 = vmax.f32 %v10958_v60, %v5209_v53  ;;  %v6904_v21 = vmax.f32 %v6776_v14, 0.0  ;;  %v5082_v41 = vadd.f32 %v11756_v8, %v4954_v29  ;;  %v4952_v5 = vmul.f32 %v11741_v24, %v4551_v22 }
 0x247   : > { %7672 = vst.msk [vmem:[%s11733_s10 + $0x8c] sm:$0xf] %vm7636_vm3, %v8976_v26  ;;  %v8974_v15 = vpack.c.bf16 %v7029_v42, %v7029_v42  ;;  %v5335_v12 = vmax.f32 %v10960_v4, %v5207_v0  ;;  %v6779_v25 = vadd.f32 %v11756_v8, %v6651_v34  ;;  %v6649_v30 = vmul.f32 %v11741_v24, %v6248_v57  ;;  %v9650_v19 = vpop.f32.mrb[172].mxu0  ;;  %v9782_v23 = vpop.f32.mrb[172].mxu1  ;;  %v13456_v26 = vld [vmem:[#allocation4_spill] sm:$0xff] }
 0x248   : > { %v7034_v48 = vmax.f32 %v5337_v63, %v6906_v62  ;;  %v5210_v27 = vmax.f32 %v5082_v41, 0.0  ;;  %v5080_v60 = vadd.f32 %v11756_v8, %v4952_v5  ;;  %v4957_v35 = vmul.f32 %v11741_v24, %v9646_v7  ;;  %v4580_v2 = vpop.f32.mrb[173].mxu0  ;;  %v6277_v32 = vpop.f32.mrb[173].mxu1 }
 0x249   : > { %7670 = vst.msk [vmem:[%s11733_s10 + $0x84] sm:$0xf] %vm7636_vm3, %v8974_v15  ;;  %v7032_v22 = vmax.f32 %v5335_v12, %v6904_v21  ;;  %v6907_v49 = vmax.f32 %v6779_v25, 0.0  ;;  %v6777_v4 = vadd.f32 %v11756_v8, %v6649_v30  ;;  %v6654_v51 = vmul.f32 %v11741_v24, %v9778_v47  ;;  %v12020_v57 = vpop.f32.mrb[174].mxu0  ;;  %v12024_v31 = vpop.f32.mrb[174].mxu1 }
 0x24a   : > { %v8979_v52 = vpack.c.bf16 %v7034_v48, %v7034_v48  ;;  %v5338_v13 = vmax.f32 %v10964_v17, %v5210_v27  ;;  %v5208_v38 = vmax.f32 %v5080_v60, 0.0  ;;  %v5085_v36 = vadd.f32 %v11756_v8, %v4957_v35  ;;  %v12026_v18 = vpop.f32.mrb[175].mxu0  ;;  %v12030_v45 = vpop.f32.mrb[175].mxu1  ;;  %v13457_v48 = vld [vmem:[#allocation5_spill] sm:$0xff] }
 0x24b   : > { %v8977_v44 = vpack.c.bf16 %v7032_v22, %v7032_v22  ;;  %v6905_v7 = vmax.f32 %v6777_v4, 0.0  ;;  %v6782_v10 = vadd.f32 %v11756_v8, %v6654_v51  ;;  %v4955_v3 = vmul.f32 %v11741_v24, %v4564_v54 }
 0x24c   : > { %7675 = vst.msk [vmem:[%s11733_s10 + $0x98] sm:$0xf] %vm7636_vm3, %v8979_v52  ;;  %v7035_v40 = vmax.f32 %v5338_v13, %v6907_v49  ;;  %v5336_v17 = vmax.f32 %v10970_v37, %v5208_v38  ;;  %v5213_v47 = vmax.f32 %v5085_v36, 0.0  ;;  %v6652_v56 = vmul.f32 %v11741_v24, %v6261_v11  ;;  %v13458_v13 = vld [vmem:[#allocation6_spill] sm:$0xff] }
 0x24d   : > { %7673 = vst.msk [vmem:[%s11733_s10 + $0x90] sm:$0xf] %vm7636_vm3, %v8977_v44  ;;  %v6910_v43 = vmax.f32 %v6782_v10, 0.0  ;;  %v5083_v59 = vadd.f32 %v11756_v8, %v4955_v3  ;;  %v4958_v39 = vmul.f32 %v11741_v24, %v11988_v6  ;;  %v6655_v54 = vmul.f32 %v11741_v24, %v9779_v9 }
 0x24e   : > { %v8980_v61 = vpack.c.bf16 %v7035_v40, %v7035_v40  ;;  %v7033_v28 = vmax.f32 %v5336_v17, %v6905_v7  ;;  %v5341_v20 = vmax.f32 %v13455_v50, %v5213_v47  ;;  %v6780_v37 = vadd.f32 %v11756_v8, %v6652_v56  ;;  %v13460_v50 = vld [vmem:[#allocation8_spill] sm:$0xff] }
 0x24f   : > { %v5211_v55 = vmax.f32 %v5083_v59, 0.0  ;;  %v5086_v58 = vadd.f32 %v11756_v8, %v4958_v39  ;;  %v6783_v11 = vadd.f32 %v11756_v8, %v6655_v54  ;;  %v4956_v1 = vmul.f32 %v11741_v24, %v11995_v46  ;;  %v12048_v16 = vpop.f32.mrb[176].mxu0  ;;  %v12054_v14 = vpop.f32.mrb[176].mxu1 }
 0x250   : > { %7676 = vst.msk [vmem:[%s11733_s10 + $0x9c] sm:$0xf] %vm7636_vm3, %v8980_v61  ;;  %v8978_v6 = vpack.c.bf16 %v7033_v28, %v7033_v28  ;;  %v7038_v9 = vmax.f32 %v5341_v20, %v6910_v43  ;;  %v6908_v53 = vmax.f32 %v6780_v37, 0.0  ;;  %v6653_v62 = vmul.f32 %v11741_v24, %v11999_v33  ;;  %v12056_v29 = vpop.f32.mrb[177].mxu0  ;;  %v12060_v63 = vpop.f32.mrb[177].mxu1  ;;  %v13459_v43 = vld [vmem:[#allocation7_spill] sm:$0xff] }
 0x251   : > { %v5339_v42 = vmax.f32 %v13456_v26, %v5211_v55  ;;  %v5214_v0 = vmax.f32 %v5086_v58, 0.0  ;;  %v6911_v34 = vmax.f32 %v6783_v11, 0.0  ;;  %v5084_v46 = vadd.f32 %v11756_v8, %v4956_v1  ;;  %v12062_v21 = vpop.f32.mrb[178].mxu0  ;;  %v12069_v12 = vpop.f32.mrb[178].mxu1  ;;  %v12112_v20 = vld [vmem:[%s13364_s6] ss:$0 sm:$0xff] }
 0x252   : > { %7674 = vst.msk [vmem:[%s11733_s10 + $0x94] sm:$0xf] %vm7636_vm3, %v8978_v6  ;;  %v8983_v41 = vpack.c.bf16 %v7038_v9, %v7038_v9  ;;  %v6781_v33 = vadd.f32 %v11756_v8, %v6653_v62  ;;  %v4961_v5 = vmul.f32 %v11741_v24, %v9650_v19  ;;  %v6658_v15 = vmul.f32 %v11741_v24, %v9782_v23  ;;  %v12071_v25 = vpop.f32.mrb[179].mxu0  ;;  %v12075_v22 = vpop.f32.mrb[179].mxu1 }
 0x253   : > { %v7036_v30 = vmax.f32 %v5339_v42, %v6908_v53  ;;  %v5342_v27 = vmax.f32 %v13457_v48, %v5214_v0  ;;  %v5212_v60 = vmax.f32 %v5084_v46, 0.0  ;;  %v4959_v35 = vmul.f32 %v11741_v24, %v4580_v2  ;;  %v13461_v46 = vld [vmem:[#allocation9_spill] sm:$0xff] }
 0x254   : > { %7679 = vst.msk [vmem:[%s11733_s10 + $0xa8] sm:$0xf] %vm7636_vm3, %v8983_v41  ;;  %v6909_v49 = vmax.f32 %v6781_v33, 0.0  ;;  %v5089_v19 = vadd.f32 %v11756_v8, %v4961_v5  ;;  %v6786_v23 = vadd.f32 %v11756_v8, %v6658_v15  ;;  %v6656_v4 = vmul.f32 %v11741_v24, %v6277_v32  ;;  %v12092_v32 = vld [vmem:[%s13363_s5] ss:$0 sm:$0xff] }
 0x255   : > { %v8981_v51 = vpack.c.bf16 %v7036_v30, %v7036_v30  ;;  %v7039_v52 = vmax.f32 %v5342_v27, %v6911_v34  ;;  %v5340_v38 = vmax.f32 %v13458_v13, %v5212_v60  ;;  %v5087_v36 = vadd.f32 %v11756_v8, %v4959_v35  ;;  %v13462_v60 = vld [vmem:[#allocation10_spill] sm:$0xff] }
 0x256   : > { %v5217_v44 = vmax.f32 %v5089_v19, 0.0  ;;  %v6914_v7 = vmax.f32 %v6786_v23, 0.0  ;;  %v6784_v2 = vadd.f32 %v11756_v8, %v6656_v4  ;;  %v4962_v10 = vmul.f32 %v11741_v24, %v12020_v57 }
 0x257   : > { %7677 = vst.msk [vmem:[%s11733_s10 + $0xa0] sm:$0xf] %vm7636_vm3, %v8981_v51  ;;  %v8984_v3 = vpack.c.bf16 %v7039_v52, %v7039_v52  ;;  %v7037_v40 = vmax.f32 %v5340_v38, %v6909_v49  ;;  %v5215_v17 = vmax.f32 %v5087_v36, 0.0  ;;  %v6659_v47 = vmul.f32 %v12092_v32, %v12024_v31  ;;  %v12096_v56 = vpop.f32.mrb[180].mxu0  ;;  %v12102_v54 = vpop.f32.mrb[180].mxu1  ;;  %v13463_v38 = vld [vmem:[#allocation11_spill] sm:$0xff] }
 0x258   : > { %v5345_v59 = vmax.f32 %v13459_v43, %v5217_v44  ;;  %v6912_v39 = vmax.f32 %v6784_v2, 0.0  ;;  %v5090_v24 = vadd.f32 %v11756_v8, %v4962_v10  ;;  %v4960_v57 = vmul.f32 %v12092_v32, %v12026_v18  ;;  %v12104_v61 = vpop.f32.mrb[181].mxu0  ;;  %v12117_v37 = vpop.f32.mrb[181].mxu1 }
 0x259   : > { %7680 = vst.msk [vmem:[%s11733_s10 + $0xac] sm:$0xf] %vm7636_vm3, %v8984_v3  ;;  %v8982_v28 = vpack.c.bf16 %v7037_v40, %v7037_v40  ;;  %v5343_v31 = vmax.f32 %v13460_v50, %v5215_v17  ;;  %v6787_v8 = vadd.f32 %v12112_v20, %v6659_v47  ;;  %v6657_v18 = vmul.f32 %v12092_v32, %v12030_v45  ;;  %v12119_v55 = vpop.f32.mrb[182].mxu0  ;;  %v12124_v9 = vpop.f32.mrb[182].mxu1 }
 0x25a   : > { %v7042_v58 = vmax.f32 %v5345_v59, %v6914_v7  ;;  %v5218_v11 = vmax.f32 %v5090_v24, 0.0  ;;  %v5088_v1 = vadd.f32 %v12112_v20, %v4960_v57  ;;  %v4965_v6 = vmul.f32 %v12092_v32, %v12048_v16  ;;  %v12126_v53 = vpop.f32.mrb[183].mxu0  ;;  %v12133_v0 = vpop.f32.mrb[183].mxu1  ;;  %v13464_v57 = vld [vmem:[#allocation12_spill] sm:$0xff] }
 0x25b   : > { %7678 = vst.msk [vmem:[%s11733_s10 + $0xa4] sm:$0xf] %vm7636_vm3, %v8982_v28  ;;  %v7040_v62 = vmax.f32 %v5343_v31, %v6912_v39  ;;  %v6915_v45 = vmax.f32 %v6787_v8, 0.0  ;;  %v6785_v26 = vadd.f32 %v12112_v20, %v6657_v18  ;;  %v6662_v42 = vmul.f32 %v12092_v32, %v12054_v14 }
 0x25c   : > { %v8987_v34 = vpack.c.bf16 %v7042_v58, %v7042_v58  ;;  %v5346_v16 = vmax.f32 %v13461_v46, %v5218_v11  ;;  %v5216_v41 = vmax.f32 %v5088_v1, 0.0  ;;  %v5093_v33 = vadd.f32 %v12112_v20, %v4965_v6  ;;  %v13465_v6 = vld [vmem:[#allocation13_spill] sm:$0xff] }
 0x25d   : > { %v8985_v5 = vpack.c.bf16 %v7040_v62, %v7040_v62  ;;  %v6913_v15 = vmax.f32 %v6785_v26, 0.0  ;;  %v6790_v30 = vadd.f32 %v12112_v20, %v6662_v42  ;;  %v4963_v48 = vmul.f32 %v12092_v32, %v12056_v29 }
 0x25e   : > { %7683 = vst.msk [vmem:[%s11733_s10 + $0xb8] sm:$0xf] %vm7636_vm3, %v8987_v34  ;;  %v7043_v27 = vmax.f32 %v5346_v16, %v6915_v45  ;;  %v5344_v14 = vmax.f32 %v13462_v60, %v5216_v41  ;;  %v5221_v35 = vmax.f32 %v5093_v33, 0.0  ;;  %v6660_v49 = vmul.f32 %v12092_v32, %v12060_v63  ;;  %v13466_v41 = vld [vmem:[#allocation14_spill] sm:$0xff] }
 0x25f   : > { %7681 = vst.msk [vmem:[%s11733_s10 + $0xb0] sm:$0xf] %vm7636_vm3, %v8985_v5  ;;  %v6918_v19 = vmax.f32 %v6790_v30, 0.0  ;;  %v5091_v23 = vadd.f32 %v12112_v20, %v4963_v48  ;;  %v4966_v4 = vmul.f32 %v12092_v32, %v12062_v21  ;;  %v6663_v29 = vmul.f32 %v12092_v32, %v12069_v12  ;;  %v12152_v51 = vpop.f32.mrb[184].mxu0  ;;  %v12156_v44 = vpop.f32.mrb[184].mxu1 }
 0x260   : > { %v8988_v52 = vpack.c.bf16 %v7043_v27, %v7043_v27  ;;  %v7041_v13 = vmax.f32 %v5344_v14, %v6913_v15  ;;  %v5349_v36 = vmax.f32 %v13463_v38, %v5221_v35  ;;  %v6788_v63 = vadd.f32 %v12112_v20, %v6660_v49  ;;  %v12158_v7 = vpop.f32.mrb[185].mxu0  ;;  %v12164_v3 = vpop.f32.mrb[185].mxu1 }
 0x261   : > { %v5219_v2 = vmax.f32 %v5091_v23, 0.0  ;;  %v5094_v10 = vadd.f32 %v12112_v20, %v4966_v4  ;;  %v6791_v21 = vadd.f32 %v12112_v20, %v6663_v29  ;;  %v4964_v12 = vmul.f32 %v12092_v32, %v12071_v25  ;;  %v12166_v40 = vpop.f32.mrb[186].mxu0  ;;  %v12172_v39 = vpop.f32.mrb[186].mxu1  ;;  %v13467_v29 = vld [vmem:[#allocation15_spill] sm:$0xff] }
 0x262   : > { %7684 = vst.msk [vmem:[%s11733_s10 + $0xbc] sm:$0xf] %vm7636_vm3, %v8988_v52  ;;  %v8986_v17 = vpack.c.bf16 %v7041_v13, %v7041_v13  ;;  %v7046_v47 = vmax.f32 %v5349_v36, %v6918_v19  ;;  %v6916_v43 = vmax.f32 %v6788_v63, 0.0  ;;  %v6661_v59 = vmul.f32 %v12092_v32, %v12075_v22  ;;  %v12174_v24 = vpop.f32.mrb[187].mxu0  ;;  %v12178_v8 = vpop.f32.mrb[187].mxu1 }
 0x263   : > { %v5347_v28 = vmax.f32 %v13464_v57, %v5219_v2  ;;  %v5222_v25 = vmax.f32 %v5094_v10, 0.0  ;;  %v6919_v50 = vmax.f32 %v6791_v21, 0.0  ;;  %v5092_v31 = vadd.f32 %v12112_v20, %v4964_v12  ;;  %v13468_v2 = vld [vmem:[#allocation16_spill] sm:$0xff] }
 0x264   : > { %7682 = vst.msk [vmem:[%s11733_s10 + $0xb4] sm:$0xf] %vm7636_vm3, %v8986_v17  ;;  %v8991_v18 = vpack.c.bf16 %v7046_v47, %v7046_v47  ;;  %v6789_v58 = vadd.f32 %v12112_v20, %v6661_v59  ;;  %v4969_v22 = vmul.f32 %v12092_v32, %v12096_v56  ;;  %v6666_v11 = vmul.f32 %v12092_v32, %v12102_v54 }
 0x265   : > { %v7044_v1 = vmax.f32 %v5347_v28, %v6916_v43  ;;  %v5350_v62 = vmax.f32 %v13465_v6, %v5222_v25  ;;  %v5220_v45 = vmax.f32 %v5092_v31, 0.0  ;;  %v4967_v26 = vmul.f32 %v12092_v32, %v12104_v61  ;;  %v13469_v31 = vld [vmem:[#allocation17_spill] sm:$0xff] }
 0x266   : > { %7687 = vst.msk [vmem:[%s11733_s10 + $0xc8] sm:$0xf] %vm7636_vm3, %v8991_v18  ;;  %v6917_v42 = vmax.f32 %v6789_v58, 0.0  ;;  %v5097_v34 = vadd.f32 %v12112_v20, %v4969_v22  ;;  %v6794_v46 = vadd.f32 %v12112_v20, %v6666_v11  ;;  %v6664_v56 = vmul.f32 %v12092_v32, %v12117_v37 }
 0x267   : > { %v8989_v16 = vpack.c.bf16 %v7044_v1, %v7044_v1  ;;  %v7047_v54 = vmax.f32 %v5350_v62, %v6919_v50  ;;  %v5348_v33 = vmax.f32 %v13466_v41, %v5220_v45  ;;  %v5095_v5 = vadd.f32 %v12112_v20, %v4967_v26  ;;  %v12198_v15 = vpop.f32.mrb[188].mxu0  ;;  %v12203_v60 = vpop.f32.mrb[188].mxu1 }
 0x268   : > { %v5225_v61 = vmax.f32 %v5097_v34, 0.0  ;;  %v6922_v30 = vmax.f32 %v6794_v46, 0.0  ;;  %v6792_v48 = vadd.f32 %v12112_v20, %v6664_v56  ;;  %v4970_v27 = vmul.f32 %v12092_v32, %v12119_v55  ;;  %v12205_v14 = vpop.f32.mrb[189].mxu0  ;;  %v12211_v23 = vpop.f32.mrb[189].mxu1 }
 0x269   : > { %7685 = vst.msk [vmem:[%s11733_s10 + $0xc0] sm:$0xf] %vm7636_vm3, %v8989_v16  ;;  %v8992_v37 = vpack.c.bf16 %v7047_v54, %v7047_v54  ;;  %v7045_v35 = vmax.f32 %v5348_v33, %v6917_v42  ;;  %v5223_v49 = vmax.f32 %v5095_v5, 0.0  ;;  %v6667_v19 = vmul.f32 %v12092_v32, %v12124_v9  ;;  %v12213_v4 = vpop.f32.mrb[190].mxu0  ;;  %v12219_v36 = vpop.f32.mrb[190].mxu1 }
 0x26a   : > { %v5353_v52 = vmax.f32 %v13467_v29, %v5225_v61  ;;  %v6920_v55 = vmax.f32 %v6792_v48, 0.0  ;;  %v5098_v13 = vadd.f32 %v12112_v20, %v4970_v27  ;;  %v4968_v38 = vmul.f32 %v12092_v32, %v12126_v53  ;;  %v12221_v63 = vpop.f32.mrb[191].mxu0  ;;  %v12229_v17 = vpop.f32.mrb[191].mxu1 }
 0x26b   : > { %7688 = vst.msk [vmem:[%s11733_s10 + $0xcc] sm:$0xf] %vm7636_vm3, %v8992_v37  ;;  %v8990_v9 = vpack.c.bf16 %v7045_v35, %v7045_v35  ;;  %v5351_v10 = vmax.f32 %v13468_v2, %v5223_v49  ;;  %v6795_v21 = vadd.f32 %v12112_v20, %v6667_v19  ;;  %v6665_v12 = vmul.f32 %v12092_v32, %v12133_v0 }
 0x26c   : > { %v7050_v47 = vmax.f32 %v5353_v52, %v6922_v30  ;;  %v5226_v43 = vmax.f32 %v5098_v13, 0.0  ;;  %v5096_v53 = vadd.f32 %v12112_v20, %v4968_v38  ;;  %v4973_v59 = vmul.f32 %v12092_v32, %v12152_v51  ;;  %v13471_v30 = vld [vmem:[#allocation19_spill] sm:$0xff] }
 0x26d   : > { %7686 = vst.msk [vmem:[%s11733_s10 + $0xc4] sm:$0xf] %vm7636_vm3, %v8990_v9  ;;  %v7048_v57 = vmax.f32 %v5351_v10, %v6920_v55  ;;  %v6923_v28 = vmax.f32 %v6795_v21, 0.0  ;;  %v6793_v25 = vadd.f32 %v12112_v20, %v6665_v12  ;;  %v6670_v50 = vmul.f32 %v12092_v32, %v12156_v44  ;;  %v13470_v44 = vld [vmem:[#allocation18_spill] sm:$0xff]  ;;  %v13472_v9 = vld [vmem:[#allocation20_spill] sm:$0xff] }
 0x26e   : > { %v8995_v0 = vpack.c.bf16 %v7050_v47, %v7050_v47  ;;  %v5354_v18 = vmax.f32 %v13469_v31, %v5226_v43  ;;  %v5224_v58 = vmax.f32 %v5096_v53, 0.0  ;;  %v5101_v22 = vadd.f32 %v12112_v20, %v4973_v59 }
 0x26f   : > { %v8993_v11 = vpack.c.bf16 %v7048_v57, %v7048_v57  ;;  %v6921_v1 = vmax.f32 %v6793_v25, 0.0  ;;  %v6798_v51 = vadd.f32 %v12112_v20, %v6670_v50  ;;  %v4971_v6 = vmul.f32 %v12092_v32, %v12158_v7  ;;  %v12244_v62 = vpop.f32.mrb[192].mxu0  ;;  %v12251_v46 = vpop.f32.mrb[192].mxu1  ;;  %v13473_v57 = vld [vmem:[#allocation21_spill] sm:$0xff] }
 0x270   : > { %7691 = vst.msk [vmem:[%s11733_s10 + $0xd8] sm:$0xf] %vm7636_vm3, %v8995_v0  ;;  %v7051_v45 = vmax.f32 %v5354_v18, %v6923_v28  ;;  %v5352_v26 = vmax.f32 %v13470_v44, %v5224_v58  ;;  %v5229_v42 = vmax.f32 %v5101_v22, 0.0  ;;  %v6668_v34 = vmul.f32 %v12092_v32, %v12164_v3  ;;  %v12253_v56 = vpop.f32.mrb[193].mxu0  ;;  %v12262_v33 = vpop.f32.mrb[193].mxu1 }
 0x271   : > { %7689 = vst.msk [vmem:[%s11733_s10 + $0xd0] sm:$0xf] %vm7636_vm3, %v8993_v11  ;;  %v6926_v16 = vmax.f32 %v6798_v51, 0.0  ;;  %v5099_v7 = vadd.f32 %v12112_v20, %v4971_v6  ;;  %v4974_v54 = vmul.f32 %v12092_v32, %v12166_v40  ;;  %v6671_v41 = vmul.f32 %v12092_v32, %v12172_v39  ;;  %v12264_v5 = vpop.f32.mrb[194].mxu0  ;;  %v12268_v37 = vpop.f32.mrb[194].mxu1 }
 0x272   : > { %v8996_v3 = vpack.c.bf16 %v7051_v45, %v7051_v45  ;;  %v7049_v61 = vmax.f32 %v5352_v26, %v6921_v1  ;;  %v5357_v48 = vmax.f32 %v13471_v30, %v5229_v42  ;;  %v6796_v27 = vadd.f32 %v12112_v20, %v6668_v34  ;;  %v12270_v35 = vpop.f32.mrb[195].mxu0  ;;  %v12276_v29 = vpop.f32.mrb[195].mxu1  ;;  %v13475_v30 = vld [vmem:[#allocation23_spill] sm:$0xff] }
 0x273   : > { %v5227_v49 = vmax.f32 %v5099_v7, 0.0  ;;  %v5102_v40 = vadd.f32 %v12112_v20, %v4974_v54  ;;  %v6799_v39 = vadd.f32 %v12112_v20, %v6671_v41  ;;  %v4972_v19 = vmul.f32 %v12092_v32, %v12174_v24 }
 0x274   : > { %7692 = vst.msk [vmem:[%s11733_s10 + $0xdc] sm:$0xf] %vm7636_vm3, %v8996_v3  ;;  %v8994_v52 = vpack.c.bf16 %v7049_v61, %v7049_v61  ;;  %v7054_v55 = vmax.f32 %v5357_v48, %v6926_v16  ;;  %v6924_v13 = vmax.f32 %v6796_v27, 0.0  ;;  %v6669_v38 = vmul.f32 %v12092_v32, %v12178_v8 }
 0x275   : > { %v5355_v2 = vmax.f32 %v13472_v9, %v5227_v49  ;;  %v5230_v10 = vmax.f32 %v5102_v40, 0.0  ;;  %v6927_v21 = vmax.f32 %v6799_v39, 0.0  ;;  %v5100_v12 = vadd.f32 %v12112_v20, %v4972_v19  ;;  %v13476_v39 = vld [vmem:[#allocation24_spill] sm:$0xff] }
 0x276   : > { %7690 = vst.msk [vmem:[%s11733_s10 + $0xd4] sm:$0xf] %vm7636_vm3, %v8994_v52  ;;  %v8999_v24 = vpack.c.bf16 %v7054_v55, %v7054_v55  ;;  %v6797_v47 = vadd.f32 %v12112_v20, %v6669_v38  ;;  %v4977_v43 = vmul.f32 %v12092_v32, %v12198_v15  ;;  %v6674_v53 = vmul.f32 %v12092_v32, %v12203_v60 }
 0x277   : > { %v7052_v59 = vmax.f32 %v5355_v2, %v6924_v13  ;;  %v5358_v8 = vmax.f32 %v13473_v57, %v5230_v10  ;;  %v5228_v28 = vmax.f32 %v5100_v12, 0.0  ;;  %v4975_v25 = vmul.f32 %v12092_v32, %v12205_v14  ;;  %v12294_v50 = vpop.f32.mrb[196].mxu0  ;;  %v12302_v60 = vpop.f32.mrb[196].mxu1  ;;  %v13474_v14 = vld [vmem:[#allocation22_spill] sm:$0xff] }
 0x278   : > { %7695 = vst.msk [vmem:[%s11733_s10 + $0xe8] sm:$0xf] %vm7636_vm3, %v8999_v24  ;;  %v6925_v0 = vmax.f32 %v6797_v47, 0.0  ;;  %v5105_v31 = vadd.f32 %v12112_v20, %v4977_v43  ;;  %v6802_v18 = vadd.f32 %v12112_v20, %v6674_v53  ;;  %v6672_v15 = vmul.f32 %v12092_v32, %v12211_v23  ;;  %v12304_v58 = vpop.f32.mrb[197].mxu0  ;;  %v12308_v6 = vpop.f32.mrb[197].mxu1  ;;  %v13477_v24 = vld [vmem:[#allocation25_spill] sm:$0xff] }
 0x279   : > { %v8997_v22 = vpack.c.bf16 %v7052_v59, %v7052_v59  ;;  %v7055_v11 = vmax.f32 %v5358_v8, %v6927_v21  ;;  %v5356_v1 = vmax.f32 %v13474_v14, %v5228_v28  ;;  %v5103_v51 = vadd.f32 %v12112_v20, %v4975_v25  ;;  %v12310_v45 = vpop.f32.mrb[198].mxu0  ;;  %v12315_v34 = vpop.f32.mrb[198].mxu1 }
 0x27a   : > { %v5233_v44 = vmax.f32 %v5105_v31, 0.0  ;;  %v6930_v26 = vmax.f32 %v6802_v18, 0.0  ;;  %v6800_v42 = vadd.f32 %v12112_v20, %v6672_v15  ;;  %v4978_v23 = vmul.f32 %v12092_v32, %v12213_v4  ;;  %v12317_v16 = vpop.f32.mrb[199].mxu0  ;;  %v12323_v61 = vpop.f32.mrb[199].mxu1  ;;  %v13478_v18 = vld [vmem:[#allocation26_spill] sm:$0xff] }
 0x27b   : > { %7693 = vst.msk [vmem:[%s11733_s10 + $0xe0] sm:$0xf] %vm7636_vm3, %v8997_v22  ;;  %v9000_v7 = vpack.c.bf16 %v7055_v11, %v7055_v11  ;;  %v7053_v54 = vmax.f32 %v5356_v1, %v6925_v0  ;;  %v5231_v41 = vmax.f32 %v5103_v51, 0.0  ;;  %v6675_v3 = vmul.f32 %v12092_v32, %v12219_v36 }
 0x27c   : > { %v5361_v48 = vmax.f32 %v13475_v30, %v5233_v44  ;;  %v6928_v27 = vmax.f32 %v6800_v42, 0.0  ;;  %v5106_v4 = vadd.f32 %v12112_v20, %v4978_v23  ;;  %v4976_v49 = vmul.f32 %v12092_v32, %v12221_v63 }
 0x27d   : > { %7696 = vst.msk [vmem:[%s11733_s10 + $0xec] sm:$0xf] %vm7636_vm3, %v9000_v7  ;;  %v8998_v40 = vpack.c.bf16 %v7053_v54, %v7053_v54  ;;  %v5359_v19 = vmax.f32 %v13476_v39, %v5231_v41  ;;  %v6803_v52 = vadd.f32 %v12112_v20, %v6675_v3  ;;  %v6673_v36 = vmul.f32 %v12092_v32, %v12229_v17  ;;  %v13479_v7 = vld [vmem:[#allocation27_spill] sm:$0xff] }
 0x27e   : > { %v7058_v55 = vmax.f32 %v5361_v48, %v6930_v26  ;;  %v5234_v13 = vmax.f32 %v5106_v4, 0.0  ;;  %v5104_v38 = vadd.f32 %v12112_v20, %v4976_v49  ;;  %v4981_v9 = vmul.f32 %v12092_v32, %v12244_v62 }
 0x27f   : > { %7694 = vst.msk [vmem:[%s11733_s10 + $0xe4] sm:$0xf] %vm7636_vm3, %v8998_v40  ;;  %v7056_v63 = vmax.f32 %v5359_v19, %v6928_v27  ;;  %v6931_v2 = vmax.f32 %v6803_v52, 0.0  ;;  %v6801_v10 = vadd.f32 %v12112_v20, %v6673_v36  ;;  %v6678_v21 = vmul.f32 %v12092_v32, %v12251_v46  ;;  %v12343_v12 = vpop.f32.mrb[200].mxu0  ;;  %v12347_v62 = vpop.f32.mrb[200].mxu1  ;;  %v13480_v40 = vld [vmem:[#allocation28_spill] sm:$0xff] }
 0x280   : > { %v9003_v17 = vpack.c.bf16 %v7058_v55, %v7058_v55  ;;  %v5362_v47 = vmax.f32 %v13477_v24, %v5234_v13  ;;  %v5232_v43 = vmax.f32 %v5104_v38, 0.0  ;;  %v5109_v53 = vadd.f32 %v12112_v20, %v4981_v9  ;;  %v12349_v59 = vpop.f32.mrb[201].mxu0  ;;  %v12354_v25 = vpop.f32.mrb[201].mxu1 }
 0x281   : > { %v9001_v57 = vpack.c.bf16 %v7056_v63, %v7056_v63  ;;  %v6929_v8 = vmax.f32 %v6801_v10, 0.0  ;;  %v6806_v28 = vadd.f32 %v12112_v20, %v6678_v21  ;;  %v4979_v46 = vmul.f32 %v12092_v32, %v12253_v56  ;;  %v12356_v0 = vpop.f32.mrb[202].mxu0  ;;  %v12363_v14 = vpop.f32.mrb[202].mxu1  ;;  %v13481_v10 = vld [vmem:[#allocation29_spill] sm:$0xff] }
 0x282   : > { %7699 = vst.msk [vmem:[%s11733_s10 + $0xf8] sm:$0xf] %vm7636_vm3, %v9003_v17  ;;  %v7059_v31 = vmax.f32 %v5362_v47, %v6931_v2  ;;  %v5360_v15 = vmax.f32 %v13478_v18, %v5232_v43  ;;  %v5237_v22 = vmax.f32 %v5109_v53, 0.0  ;;  %v6676_v11 = vmul.f32 %v12092_v32, %v12262_v33  ;;  %v12365_v1 = vpop.f32.mrb[203].mxu0  ;;  %v12374_v42 = vpop.f32.mrb[203].mxu1 }
 0x283   : > { %7697 = vst.msk [vmem:[%s11733_s10 + $0xf0] sm:$0xf] %vm7636_vm3, %v9001_v57  ;;  %v6934_v56 = vmax.f32 %v6806_v28, 0.0  ;;  %v5107_v51 = vadd.f32 %v12112_v20, %v4979_v46  ;;  %v4982_v44 = vmul.f32 %v12092_v32, %v12264_v5  ;;  %v6679_v26 = vmul.f32 %v12092_v32, %v12268_v37 }
 0x284   : > { %v9004_v23 = vpack.c.bf16 %v7059_v31, %v7059_v31  ;;  %v7057_v33 = vmax.f32 %v5360_v15, %v6929_v8  ;;  %v5365_v54 = vmax.f32 %v13479_v7, %v5237_v22  ;;  %v6804_v41 = vadd.f32 %v12112_v20, %v6676_v11  ;;  %v13482_v31 = vld [vmem:[#allocation30_spill] sm:$0xff]  ;;  %v13483_v7 = vld [vmem:[#allocation31_spill] sm:$0xff] }
 0x285   : > { %v5235_v3 = vmax.f32 %v5107_v51, 0.0  ;;  %v5110_v30 = vadd.f32 %v12112_v20, %v4982_v44  ;;  %v6807_v48 = vadd.f32 %v12112_v20, %v6679_v26  ;;  %v4980_v5 = vmul.f32 %v12092_v32, %v12270_v35 }
 0x286   : > { %7700 = vst.msk [vmem:[%s11733_s10 + $0xfc] sm:$0xf] %vm7636_vm3, %v9004_v23  ;;  %v9002_v37 = vpack.c.bf16 %v7057_v33, %v7057_v33  ;;  %v7062_v27 = vmax.f32 %v5365_v54, %v6934_v56  ;;  %v6932_v4 = vmax.f32 %v6804_v41, 0.0  ;;  %v6677_v49 = vmul.f32 %v12092_v32, %v12276_v29 }
 0x287   : > { %v5363_v39 = vmax.f32 %v13480_v40, %v5235_v3  ;;  %v5238_v19 = vmax.f32 %v5110_v30, 0.0  ;;  %v6935_v52 = vmax.f32 %v6807_v48, 0.0  ;;  %v5108_v36 = vadd.f32 %v12112_v20, %v4980_v5  ;;  %v12388_v55 = vpop.f32.mrb[204].mxu0  ;;  %v12397_v9 = vpop.f32.mrb[204].mxu1  ;;  %v13484_v48 = vld [vmem:[#allocation32_spill] sm:$0xff] }
 0x288   : > { %7698 = vst.msk [vmem:[%s11733_s10 + $0xf4] sm:$0xf] %vm7636_vm3, %v9002_v37  ;;  %v9007_v35 = vpack.c.bf16 %v7062_v27, %v7062_v27  ;;  %v6805_v13 = vadd.f32 %v12112_v20, %v6677_v49  ;;  %v4985_v38 = vmul.f32 %v12092_v32, %v12294_v50  ;;  %v6682_v29 = vmul.f32 %v12092_v32, %v12302_v60  ;;  %v12399_v63 = vpop.f32.mrb[205].mxu0  ;;  %v12404_v47 = vpop.f32.mrb[205].mxu1 }
 0x289   : > { %v7060_v2 = vmax.f32 %v5363_v39, %v6932_v4  ;;  %v5366_v21 = vmax.f32 %v13481_v10, %v5238_v19  ;;  %v5236_v17 = vmax.f32 %v5108_v36, 0.0  ;;  %v4983_v24 = vmul.f32 %v12092_v32, %v12304_v58  ;;  %v12406_v43 = vpop.f32.mrb[206].mxu0  ;;  %v12414_v8 = vpop.f32.mrb[206].mxu1 }
 0x28a   : > { %7703 = vst.msk [vmem:[%s11733_s10 + $0x108] sm:$0xf] %vm7636_vm3, %v9007_v35  ;;  %v6933_v50 = vmax.f32 %v6805_v13, 0.0  ;;  %v5113_v60 = vadd.f32 %v12112_v20, %v4985_v38  ;;  %v6810_v53 = vadd.f32 %v12112_v20, %v6682_v29  ;;  %v6680_v57 = vmul.f32 %v12092_v32, %v12308_v6  ;;  %v12416_v28 = vpop.f32.mrb[207].mxu0  ;;  %v12420_v22 = vpop.f32.mrb[207].mxu1 }
 0x28b   : > { %v9005_v58 = vpack.c.bf16 %v7060_v2, %v7060_v2  ;;  %v7063_v46 = vmax.f32 %v5366_v21, %v6935_v52  ;;  %v5364_v18 = vmax.f32 %v13482_v31, %v5236_v17  ;;  %v5111_v15 = vadd.f32 %v12112_v20, %v4983_v24 }
 0x28c   : > { %v5241_v11 = vmax.f32 %v5113_v60, 0.0  ;;  %v6938_v56 = vmax.f32 %v6810_v53, 0.0  ;;  %v6808_v51 = vadd.f32 %v12112_v20, %v6680_v57  ;;  %v4986_v6 = vmul.f32 %v12092_v32, %v12310_v45 }
 0x28d   : > { %7701 = vst.msk [vmem:[%s11733_s10 + $0x100] sm:$0xf] %vm7636_vm3, %v9005_v58  ;;  %v9008_v44 = vpack.c.bf16 %v7063_v46, %v7063_v46  ;;  %v7061_v26 = vmax.f32 %v5364_v18, %v6933_v50  ;;  %v5239_v23 = vmax.f32 %v5111_v15, 0.0  ;;  %v6683_v33 = vmul.f32 %v12092_v32, %v12315_v34  ;;  %v13486_v46 = vld [vmem:[#allocation34_spill] sm:$0xff] }
 0x28e   : > { %v5369_v54 = vmax.f32 %v13483_v7, %v5241_v11  ;;  %v6936_v41 = vmax.f32 %v6808_v51, 0.0  ;;  %v5114_v3 = vadd.f32 %v12112_v20, %v4986_v6  ;;  %v4984_v30 = vmul.f32 %v12092_v32, %v12317_v16 }
 0x28f   : > { %7704 = vst.msk [vmem:[%s11733_s10 + $0x10c] sm:$0xf] %vm7636_vm3, %v9008_v44  ;;  %v9006_v45 = vpack.c.bf16 %v7061_v26, %v7061_v26  ;;  %v5367_v5 = vmax.f32 %v13484_v48, %v5239_v23  ;;  %v6811_v37 = vadd.f32 %v12112_v20, %v6683_v33  ;;  %v6681_v27 = vmul.f32 %v12092_v32, %v12323_v61  ;;  %v12439_v34 = vpop.f32.mrb[208].mxu0  ;;  %v12444_v16 = vpop.f32.mrb[208].mxu1  ;;  %v13487_v26 = vld [vmem:[#allocation35_spill] sm:$0xff] }
 0x290   : > { %v7066_v4 = vmax.f32 %v5369_v54, %v6938_v56  ;;  %v5242_v49 = vmax.f32 %v5114_v3, 0.0  ;;  %v5112_v40 = vadd.f32 %v12112_v20, %v4984_v30  ;;  %v4989_v39 = vmul.f32 %v12092_v32, %v12343_v12  ;;  %v12446_v19 = vpop.f32.mrb[209].mxu0  ;;  %v12453_v13 = vpop.f32.mrb[209].mxu1  ;;  %v13485_v12 = vld [vmem:[#allocation33_spill] sm:$0xff] }
 0x291   : > { %7702 = vst.msk [vmem:[%s11733_s10 + $0x104] sm:$0xf] %vm7636_vm3, %v9006_v45  ;;  %v7064_v52 = vmax.f32 %v5367_v5, %v6936_v41  ;;  %v6939_v36 = vmax.f32 %v6811_v37, 0.0  ;;  %v6809_v61 = vadd.f32 %v12112_v20, %v6681_v27  ;;  %v6686_v35 = vmul.f32 %v12092_v32, %v12347_v62  ;;  %v12455_v38 = vpop.f32.mrb[210].mxu0  ;;  %v12459_v17 = vpop.f32.mrb[210].mxu1  ;;  %v13488_v37 = vld [vmem:[#allocation36_spill] sm:$0xff] }
 0x292   : > { %v9011_v29 = vpack.c.bf16 %v7066_v4, %v7066_v4  ;;  %v5370_v2 = vmax.f32 %v13485_v12, %v5242_v49  ;;  %v5240_v10 = vmax.f32 %v5112_v40, 0.0  ;;  %v5117_v21 = vadd.f32 %v12112_v20, %v4989_v39  ;;  %v12461_v24 = vpop.f32.mrb[211].mxu0  ;;  %v12466_v57 = vpop.f32.mrb[211].mxu1 }
 0x293   : > { %v9009_v50 = vpack.c.bf16 %v7064_v52, %v7064_v52  ;;  %v6937_v60 = vmax.f32 %v6809_v61, 0.0  ;;  %v6814_v53 = vadd.f32 %v12112_v20, %v6686_v35  ;;  %v4987_v62 = vmul.f32 %v12092_v32, %v12349_v59 }
 0x294   : > { %7707 = vst.msk [vmem:[%s11733_s10 + $0x118] sm:$0xf] %vm7636_vm3, %v9011_v29  ;;  %v7067_v58 = vmax.f32 %v5370_v2, %v6939_v36  ;;  %v5368_v31 = vmax.f32 %v13486_v46, %v5240_v10  ;;  %v5245_v18 = vmax.f32 %v5117_v21, 0.0  ;;  %v6684_v15 = vmul.f32 %v12092_v32, %v12354_v25  ;;  %v13489_v2 = vld [vmem:[#allocation37_spill] sm:$0xff] }
 0x295   : > { %7705 = vst.msk [vmem:[%s11733_s10 + $0x110] sm:$0xf] %vm7636_vm3, %v9009_v50  ;;  %v6942_v11 = vmax.f32 %v6814_v53, 0.0  ;;  %v5115_v56 = vadd.f32 %v12112_v20, %v4987_v62  ;;  %v4990_v59 = vmul.f32 %v12092_v32, %v12356_v0  ;;  %v6687_v51 = vmul.f32 %v12092_v32, %v12363_v14 }
 0x296   : > { %v9012_v6 = vpack.c.bf16 %v7067_v58, %v7067_v58  ;;  %v7065_v44 = vmax.f32 %v5368_v31, %v6937_v60  ;;  %v5373_v23 = vmax.f32 %v13487_v26, %v5245_v18  ;;  %v6812_v33 = vadd.f32 %v12112_v20, %v6684_v15  ;;  %v13490_v31 = vld [vmem:[#allocation38_spill] sm:$0xff] }
 0x297   : > { %v5243_v7 = vmax.f32 %v5115_v56, 0.0  ;;  %v5118_v25 = vadd.f32 %v12112_v20, %v4990_v59  ;;  %v6815_v54 = vadd.f32 %v12112_v20, %v6687_v51  ;;  %v4988_v41 = vmul.f32 %v12092_v32, %v12365_v1  ;;  %v12486_v3 = vpop.f32.mrb[212].mxu0  ;;  %v12492_v48 = vpop.f32.mrb[212].mxu1 }
 0x298   : > { %7708 = vst.msk [vmem:[%s11733_s10 + $0x11c] sm:$0xf] %vm7636_vm3, %v9012_v6  ;;  %v9010_v0 = vpack.c.bf16 %v7065_v44, %v7065_v44  ;;  %v7070_v14 = vmax.f32 %v5373_v23, %v6942_v11  ;;  %v6940_v30 = vmax.f32 %v6812_v33, 0.0  ;;  %v6685_v45 = vmul.f32 %v12092_v32, %v12374_v42  ;;  %v12494_v5 = vpop.f32.mrb[213].mxu0  ;;  %v12498_v40 = vpop.f32.mrb[213].mxu1  ;;  %v13491_v23 = vld [vmem:[#allocation39_spill] sm:$0xff] }
 0x299   : > { %v5371_v27 = vmax.f32 %v13488_v37, %v5243_v7  ;;  %v5246_v4 = vmax.f32 %v5118_v25, 0.0  ;;  %v6943_v49 = vmax.f32 %v6815_v54, 0.0  ;;  %v5116_v1 = vadd.f32 %v12112_v20, %v4988_v41  ;;  %v12500_v39 = vpop.f32.mrb[214].mxu0  ;;  %v12509_v35 = vpop.f32.mrb[214].mxu1 }
 0x29a   : > { %7706 = vst.msk [vmem:[%s11733_s10 + $0x114] sm:$0xf] %vm7636_vm3, %v9010_v0  ;;  %v9015_v52 = vpack.c.bf16 %v7070_v14, %v7070_v14  ;;  %v6813_v42 = vadd.f32 %v12112_v20, %v6685_v45  ;;  %v4993_v36 = vmul.f32 %v12092_v32, %v12388_v55  ;;  %v6690_v61 = vmul.f32 %v12092_v32, %v12397_v9  ;;  %v12511_v29 = vpop.f32.mrb[215].mxu0  ;;  %v12516_v60 = vpop.f32.mrb[215].mxu1  ;;  %v13492_v14 = vld [vmem:[#allocation40_spill] sm:$0xff] }
 0x29b   : > { %v7068_v12 = vmax.f32 %v5371_v27, %v6940_v30  ;;  %v5374_v10 = vmax.f32 %v13489_v2, %v5246_v4  ;;  %v5244_v21 = vmax.f32 %v5116_v1, 0.0  ;;  %v4991_v50 = vmul.f32 %v12092_v32, %v12399_v63 }
 0x29c   : > { %7711 = vst.msk [vmem:[%s11733_s10 + $0x128] sm:$0xf] %vm7636_vm3, %v9015_v52  ;;  %v6941_v55 = vmax.f32 %v6813_v42, 0.0  ;;  %v5121_v53 = vadd.f32 %v12112_v20, %v4993_v36  ;;  %v6818_v9 = vadd.f32 %v12112_v20, %v6690_v61  ;;  %v6688_v62 = vmul.f32 %v12092_v32, %v12404_v47 }
 0x29d   : > { %v9013_v58 = vpack.c.bf16 %v7068_v12, %v7068_v12  ;;  %v7071_v46 = vmax.f32 %v5374_v10, %v6943_v49  ;;  %v5372_v18 = vmax.f32 %v13490_v31, %v5244_v21  ;;  %v5119_v15 = vadd.f32 %v12112_v20, %v4991_v50  ;;  %v13493_v21 = vld [vmem:[#allocation41_spill] sm:$0xff]  ;;  %v13494_v31 = vld [vmem:[#allocation42_spill] sm:$0xff] }
 0x29e   : > { %v5249_v11 = vmax.f32 %v5121_v53, 0.0  ;;  %v6946_v63 = vmax.f32 %v6818_v9, 0.0  ;;  %v6816_v56 = vadd.f32 %v12112_v20, %v6688_v62  ;;  %v4994_v59 = vmul.f32 %v12092_v32, %v12406_v43 }
 0x29f   : > { %7709 = vst.msk [vmem:[%s11733_s10 + $0x120] sm:$0xf] %vm7636_vm3, %v9013_v58  ;;  %v9016_v51 = vpack.c.bf16 %v7071_v46, %v7071_v46  ;;  %v7069_v6 = vmax.f32 %v5372_v18, %v6941_v55  ;;  %v5247_v44 = vmax.f32 %v5119_v15, 0.0  ;;  %v6691_v47 = vmul.f32 %v12092_v32, %v12414_v8  ;;  %v12533_v26 = vpop.f32.mrb[216].mxu0  ;;  %v12539_v43 = vpop.f32.mrb[216].mxu1 }
 0x2a0   : > { %v5377_v33 = vmax.f32 %v13491_v23, %v5249_v11  ;;  %v6944_v7 = vmax.f32 %v6816_v56, 0.0  ;;  %v5122_v25 = vadd.f32 %v12112_v20, %v4994_v59  ;;  %v4992_v54 = vmul.f32 %v12092_v32, %v12416_v28  ;;  %v12541_v41 = vpop.f32.mrb[217].mxu0  ;;  %v12549_v37 = vpop.f32.mrb[217].mxu1 }
 0x2a1   : > { %7712 = vst.msk [vmem:[%s11733_s10 + $0x12c] sm:$0xf] %vm7636_vm3, %v9016_v51  ;;  %v9014_v0 = vpack.c.bf16 %v7069_v6, %v7069_v6  ;;  %v5375_v8 = vmax.f32 %v13492_v14, %v5247_v44  ;;  %v6819_v30 = vadd.f32 %v12112_v20, %v6691_v47  ;;  %v6689_v45 = vmul.f32 %v12092_v32, %v12420_v22  ;;  %v12551_v27 = vpop.f32.mrb[218].mxu0  ;;  %v12556_v52 = vpop.f32.mrb[218].mxu1  ;;  %v13495_v44 = vld [vmem:[#allocation43_spill] sm:$0xff] }
 0x2a2   : > { %v7074_v28 = vmax.f32 %v5377_v33, %v6946_v63  ;;  %v5250_v4 = vmax.f32 %v5122_v25, 0.0  ;;  %v5120_v49 = vadd.f32 %v12112_v20, %v4992_v54  ;;  %v4997_v1 = vmul.f32 %v12092_v32, %v12439_v34  ;;  %v12558_v42 = vpop.f32.mrb[219].mxu0  ;;  %v12565_v2 = vpop.f32.mrb[219].mxu1 }
 0x2a3   : > { %7710 = vst.msk [vmem:[%s11733_s10 + $0x124] sm:$0xf] %vm7636_vm3, %v9014_v0  ;;  %v7072_v36 = vmax.f32 %v5375_v8, %v6944_v7  ;;  %v6947_v22 = vmax.f32 %v6819_v30, 0.0  ;;  %v6817_v61 = vadd.f32 %v12112_v20, %v6689_v45  ;;  %v6694_v12 = vmul.f32 %v12092_v32, %v12444_v16 }
 0x2a4   : > { %v9019_v10 = vpack.c.bf16 %v7074_v28, %v7074_v28  ;;  %v5378_v34 = vmax.f32 %v13493_v21, %v5250_v4  ;;  %v5248_v50 = vmax.f32 %v5120_v49, 0.0  ;;  %v5125_v55 = vadd.f32 %v12112_v20, %v4997_v1  ;;  %v13496_v49 = vld [vmem:[#allocation44_spill] sm:$0xff] }
 0x2a5   : > { %v9017_v53 = vpack.c.bf16 %v7072_v36, %v7072_v36  ;;  %v6945_v9 = vmax.f32 %v6817_v61, 0.0  ;;  %v6822_v62 = vadd.f32 %v12112_v20, %v6694_v12  ;;  %v4995_v58 = vmul.f32 %v12092_v32, %v12446_v19 }
 0x2a6   : > { %7715 = vst.msk [vmem:[%s11733_s10 + $0x138] sm:$0xf] %vm7636_vm3, %v9019_v10  ;;  %v7075_v46 = vmax.f32 %v5378_v34, %v6947_v22  ;;  %v5376_v16 = vmax.f32 %v13494_v31, %v5248_v50  ;;  %v5253_v18 = vmax.f32 %v5125_v55, 0.0  ;;  %v6692_v15 = vmul.f32 %v12092_v32, %v12453_v13  ;;  %v13497_v50 = vld [vmem:[#allocation45_spill] sm:$0xff] }
 0x2a7   : > { %7713 = vst.msk [vmem:[%s11733_s10 + $0x130] sm:$0xf] %vm7636_vm3, %v9017_v53  ;;  %v6950_v11 = vmax.f32 %v6822_v62, 0.0  ;;  %v5123_v63 = vadd.f32 %v12112_v20, %v4995_v58  ;;  %v4998_v56 = vmul.f32 %v12092_v32, %v12455_v38  ;;  %v6695_v19 = vmul.f32 %v12092_v32, %v12459_v17  ;;  %v12584_v59 = vpop.f32.mrb[220].mxu0  ;;  %v12588_v23 = vpop.f32.mrb[220].mxu1 }
 0x2a8   : > { %v9020_v51 = vpack.c.bf16 %v7075_v46, %v7075_v46  ;;  %v7073_v6 = vmax.f32 %v5376_v16, %v6945_v9  ;;  %v5381_v47 = vmax.f32 %v13495_v44, %v5253_v18  ;;  %v6820_v13 = vadd.f32 %v12112_v20, %v6692_v15  ;;  %v12590_v33 = vpop.f32.mrb[221].mxu0  ;;  %v12596_v54 = vpop.f32.mrb[221].mxu1  ;;  %v13498_v16 = vld [vmem:[#allocation46_spill] sm:$0xff] }
 0x2a9   : > { %v5251_v7 = vmax.f32 %v5123_v63, 0.0  ;;  %v5126_v25 = vadd.f32 %v12112_v20, %v4998_v56  ;;  %v6823_v38 = vadd.f32 %v12112_v20, %v6695_v19  ;;  %v4996_v17 = vmul.f32 %v12092_v32, %v12461_v24  ;;  %v12598_v0 = vpop.f32.mrb[222].mxu0  ;;  %v12604_v28 = vpop.f32.mrb[222].mxu1 }
 0x2aa   : > { %7716 = vst.msk [vmem:[%s11733_s10 + $0x13c] sm:$0xf] %vm7636_vm3, %v9020_v51  ;;  %v9018_v14 = vpack.c.bf16 %v7073_v6, %v7073_v6  ;;  %v7078_v8 = vmax.f32 %v5381_v47, %v6950_v11  ;;  %v6948_v30 = vmax.f32 %v6820_v13, 0.0  ;;  %v6693_v45 = vmul.f32 %v12092_v32, %v12466_v57  ;;  %v12606_v4 = vpop.f32.mrb[223].mxu0  ;;  %v12610_v61 = vpop.f32.mrb[223].mxu1 }
 0x2ab   : > { %v5379_v1 = vmax.f32 %v13496_v49, %v5251_v7  ;;  %v5254_v24 = vmax.f32 %v5126_v25, 0.0  ;;  %v6951_v36 = vmax.f32 %v6823_v38, 0.0  ;;  %v5124_v22 = vadd.f32 %v12112_v20, %v4996_v17  ;;  %v13499_v38 = vld [vmem:[#allocation47_spill] sm:$0xff]  ;;  %v13500_v49 = vld [vmem:[#allocation48_spill] sm:$0xff] }
 0x2ac   : > { %7714 = vst.msk [vmem:[%s11733_s10 + $0x134] sm:$0xf] %vm7636_vm3, %v9018_v14  ;;  %v9023_v12 = vpack.c.bf16 %v7078_v8, %v7078_v8  ;;  %v6821_v10 = vadd.f32 %v12112_v20, %v6693_v45  ;;  %v5001_v57 = vmul.f32 %v12092_v32, %v12486_v3  ;;  %v6698_v21 = vmul.f32 %v12092_v32, %v12492_v48 }
 0x2ad   : > { %v7076_v34 = vmax.f32 %v5379_v1, %v6948_v30  ;;  %v5382_v55 = vmax.f32 %v13497_v50, %v5254_v24  ;;  %v5252_v53 = vmax.f32 %v5124_v22, 0.0  ;;  %v4999_v9 = vmul.f32 %v12092_v32, %v12494_v5 }
 0x2ae   : > { %7719 = vst.msk [vmem:[%s11733_s10 + $0x148] sm:$0xf] %vm7636_vm3, %v9023_v12  ;;  %v6949_v62 = vmax.f32 %v6821_v10, 0.0  ;;  %v5129_v58 = vadd.f32 %v12112_v20, %v5001_v57  ;;  %v6826_v46 = vadd.f32 %v12112_v20, %v6698_v21  ;;  %v6696_v3 = vmul.f32 %v12092_v32, %v12498_v40 }
 0x2af   : > { %v9021_v31 = vpack.c.bf16 %v7076_v34, %v7076_v34  ;;  %v7079_v48 = vmax.f32 %v5382_v55, %v6951_v36  ;;  %v5380_v18 = vmax.f32 %v13498_v16, %v5252_v53  ;;  %v5127_v15 = vadd.f32 %v12112_v20, %v4999_v9  ;;  %v12630_v11 = vpop.f32.mrb[224].mxu0  ;;  %v12635_v51 = vpop.f32.mrb[224].mxu1  ;;  %v13501_v9 = vld [vmem:[#allocation49_spill] sm:$0xff] }
 0x2b0   : > { %v5257_v5 = vmax.f32 %v5129_v58, 0.0  ;;  %v6954_v63 = vmax.f32 %v6826_v46, 0.0  ;;  %v6824_v56 = vadd.f32 %v12112_v20, %v6696_v3  ;;  %v5002_v19 = vmul.f32 %v12092_v32, %v12500_v39  ;;  %v12637_v6 = vpop.f32.mrb[225].mxu0  ;;  %v12643_v7 = vpop.f32.mrb[225].mxu1 }
 0x2b1   : > { %7717 = vst.msk [vmem:[%s11733_s10 + $0x140] sm:$0xf] %vm7636_vm3, %v9021_v31  ;;  %v9024_v40 = vpack.c.bf16 %v7079_v48, %v7079_v48  ;;  %v7077_v44 = vmax.f32 %v5380_v18, %v6949_v62  ;;  %v5255_v47 = vmax.f32 %v5127_v15, 0.0  ;;  %v6699_v13 = vmul.f32 %v12092_v32, %v12509_v35  ;;  %v12645_v25 = vpop.f32.mrb[226].mxu0  ;;  %v12651_v30 = vpop.f32.mrb[226].mxu1 }
 0x2b2   : > { %v5385_v17 = vmax.f32 %v13499_v38, %v5257_v5  ;;  %v6952_v39 = vmax.f32 %v6824_v56, 0.0  ;;  %v5130_v14 = vadd.f32 %v12112_v20, %v5002_v19  ;;  %v5000_v8 = vmul.f32 %v12092_v32, %v12511_v29  ;;  %v12653_v45 = vpop.f32.mrb[227].mxu0  ;;  %v12661_v22 = vpop.f32.mrb[227].mxu1 }
 0x2b3   : > { %7720 = vst.msk [vmem:[%s11733_s10 + $0x14c] sm:$0xf] %vm7636_vm3, %v9024_v40  ;;  %v9022_v35 = vpack.c.bf16 %v7077_v44, %v7077_v44  ;;  %v5383_v1 = vmax.f32 %v13500_v49, %v5255_v47  ;;  %v6827_v24 = vadd.f32 %v12112_v20, %v6699_v13  ;;  %v6697_v36 = vmul.f32 %v12092_v32, %v12516_v60  ;;  %v12672_v60 = vld [vmem:[%s13363_s5] ss:$0 sm:$0xff] }
 0x2b4   : > { %v7082_v12 = vmax.f32 %v5385_v17, %v6954_v63  ;;  %v5258_v10 = vmax.f32 %v5130_v14, 0.0  ;;  %v5128_v29 = vadd.f32 %v12112_v20, %v5000_v8  ;;  %v5005_v57 = vmul.f32 %v12092_v32, %v12533_v26  ;;  %v13503_v17 = vld [vmem:[#allocation51_spill] sm:$0xff] }
 0x2b5   : > { %7718 = vst.msk [vmem:[%s11733_s10 + $0x144] sm:$0xf] %vm7636_vm3, %v9022_v35  ;;  %v7080_v21 = vmax.f32 %v5383_v1, %v6952_v39  ;;  %v6955_v34 = vmax.f32 %v6827_v24, 0.0  ;;  %v6825_v50 = vadd.f32 %v12112_v20, %v6697_v36  ;;  %v6702_v55 = vmul.f32 %v12672_v60, %v12539_v43  ;;  %v13502_v43 = vld [vmem:[#allocation50_spill] sm:$0xff] }
 0x2b6   : > { %v9027_v53 = vpack.c.bf16 %v7082_v12, %v7082_v12  ;;  %v5386_v62 = vmax.f32 %v13501_v9, %v5258_v10  ;;  %v5256_v32 = vmax.f32 %v5128_v29, 0.0  ;;  %v5133_v26 = vadd.f32 %v12112_v20, %v5005_v57  ;;  %v13504_v57 = vld [vmem:[#allocation52_spill] sm:$0xff] }
 0x2b7   : > { %v9025_v58 = vpack.c.bf16 %v7080_v21, %v7080_v21  ;;  %v6953_v46 = vmax.f32 %v6825_v50, 0.0  ;;  %v6830_v3 = vadd.f32 %v12112_v20, %v6702_v55  ;;  %v5003_v31 = vmul.f32 %v12672_v60, %v12541_v41  ;;  %v12681_v48 = vpop.f32.mrb[228].mxu0  ;;  %v12688_v63 = vpop.f32.mrb[228].mxu1  ;;  %v12697_v41 = vld [vmem:[%s13364_s6] ss:$0 sm:$0xff] }
 0x2b8   : > { %7723 = vst.msk [vmem:[%s11733_s10 + $0x158] sm:$0xf] %vm7636_vm3, %v9027_v53  ;;  %v7083_v16 = vmax.f32 %v5386_v62, %v6955_v34  ;;  %v5384_v18 = vmax.f32 %v13502_v43, %v5256_v32  ;;  %v5261_v15 = vmax.f32 %v5133_v26, 0.0  ;;  %v6700_v5 = vmul.f32 %v12672_v60, %v12549_v37  ;;  %v12690_v56 = vpop.f32.mrb[229].mxu0  ;;  %v12704_v44 = vpop.f32.mrb[229].mxu1  ;;  %v13505_v26 = vld [vmem:[#allocation53_spill] sm:$0xff] }
 0x2b9   : > { %7721 = vst.msk [vmem:[%s11733_s10 + $0x150] sm:$0xf] %vm7636_vm3, %v9025_v58  ;;  %v6958_v20 = vmax.f32 %v6830_v3, 0.0  ;;  %v5131_v19 = vadd.f32 %v12697_v41, %v5003_v31  ;;  %v5006_v40 = vmul.f32 %v12672_v60, %v12551_v27  ;;  %v6703_v37 = vmul.f32 %v12672_v60, %v12556_v52  ;;  %v12706_v47 = vpop.f32.mrb[230].mxu0  ;;  %v12710_v8 = vpop.f32.mrb[230].mxu1 }
 0x2ba   : > { %v9028_v13 = vpack.c.bf16 %v7083_v16, %v7083_v16  ;;  %v7081_v38 = vmax.f32 %v5384_v18, %v6953_v46  ;;  %v5389_v39 = vmax.f32 %v13503_v17, %v5261_v15  ;;  %v6828_v14 = vadd.f32 %v12697_v41, %v6700_v5  ;;  %v12712_v35 = vpop.f32.mrb[231].mxu0  ;;  %v12718_v24 = vpop.f32.mrb[231].mxu1 }
 0x2bb   : > { %v5259_v49 = vmax.f32 %v5131_v19, 0.0  ;;  %v5134_v27 = vadd.f32 %v12697_v41, %v5006_v40  ;;  %v6831_v52 = vadd.f32 %v12697_v41, %v6703_v37  ;;  %v5004_v1 = vmul.f32 %v12672_v60, %v12558_v42 }
 0x2bc   : > { %7724 = vst.msk [vmem:[%s11733_s10 + $0x15c] sm:$0xf] %vm7636_vm3, %v9028_v13  ;;  %v9026_v36 = vpack.c.bf16 %v7081_v38, %v7081_v38  ;;  %v7086_v12 = vmax.f32 %v5389_v39, %v6958_v20  ;;  %v6956_v10 = vmax.f32 %v6828_v14, 0.0  ;;  %v6701_v29 = vmul.f32 %v12672_v60, %v12565_v2 }
 0x2bd   : > { %v5387_v21 = vmax.f32 %v13504_v57, %v5259_v49  ;;  %v5262_v34 = vmax.f32 %v5134_v27, 0.0  ;;  %v6959_v50 = vmax.f32 %v6831_v52, 0.0  ;;  %v5132_v55 = vadd.f32 %v12697_v41, %v5004_v1 }
 0x2be   : > { %7722 = vst.msk [vmem:[%s11733_s10 + $0x154] sm:$0xf] %vm7636_vm3, %v9026_v36  ;;  %v9031_v42 = vpack.c.bf16 %v7086_v12, %v7086_v12  ;;  %v6829_v53 = vadd.f32 %v12697_v41, %v6701_v29  ;;  %v5009_v9 = vmul.f32 %v12672_v60, %v12584_v59  ;;  %v6706_v62 = vmul.f32 %v12672_v60, %v12588_v23  ;;  %v13507_v12 = vld [vmem:[#allocation55_spill] sm:$0xff] }
 0x2bf   : > { %v7084_v32 = vmax.f32 %v5387_v21, %v6956_v10  ;;  %v5390_v2 = vmax.f32 %v13505_v26, %v5262_v34  ;;  %v5260_v58 = vmax.f32 %v5132_v55, 0.0  ;;  %v5007_v46 = vmul.f32 %v12672_v60, %v12590_v33  ;;  %v12736_v3 = vpop.f32.mrb[232].mxu0  ;;  %v12744_v23 = vpop.f32.mrb[232].mxu1  ;;  %v13506_v33 = vld [vmem:[#allocation54_spill] sm:$0xff]  ;;  %v13508_v34 = vld [vmem:[#allocation56_spill] sm:$0xff] }
 0x2c0   : > { %7727 = vst.msk [vmem:[%s11733_s10 + $0x168] sm:$0xf] %vm7636_vm3, %v9031_v42  ;;  %v6957_v31 = vmax.f32 %v6829_v53, 0.0  ;;  %v5137_v16 = vadd.f32 %v12697_v41, %v5009_v9  ;;  %v6834_v43 = vadd.f32 %v12697_v41, %v6706_v62  ;;  %v6704_v59 = vmul.f32 %v12672_v60, %v12596_v54  ;;  %v12746_v18 = vpop.f32.mrb[233].mxu0  ;;  %v12750_v40 = vpop.f32.mrb[233].mxu1 }
 0x2c1   : > { %v9029_v15 = vpack.c.bf16 %v7084_v32, %v7084_v32  ;;  %v7087_v5 = vmax.f32 %v5390_v2, %v6959_v50  ;;  %v5388_v20 = vmax.f32 %v13506_v33, %v5260_v58  ;;  %v5135_v19 = vadd.f32 %v12697_v41, %v5007_v46  ;;  %v12752_v37 = vpop.f32.mrb[234].mxu0  ;;  %v12757_v39 = vpop.f32.mrb[234].mxu1  ;;  %v13509_v46 = vld [vmem:[#allocation57_spill] sm:$0xff] }
 0x2c2   : > { %v5265_v13 = vmax.f32 %v5137_v16, 0.0  ;;  %v6962_v38 = vmax.f32 %v6834_v43, 0.0  ;;  %v6832_v17 = vadd.f32 %v12697_v41, %v6704_v59  ;;  %v5010_v54 = vmul.f32 %v12672_v60, %v12598_v0  ;;  %v12759_v14 = vpop.f32.mrb[235].mxu0  ;;  %v12765_v36 = vpop.f32.mrb[235].mxu1 }
 0x2c3   : > { %7725 = vst.msk [vmem:[%s11733_s10 + $0x160] sm:$0xf] %vm7636_vm3, %v9029_v15  ;;  %v9032_v49 = vpack.c.bf16 %v7087_v5, %v7087_v5  ;;  %v7085_v27 = vmax.f32 %v5388_v20, %v6957_v31  ;;  %v5263_v52 = vmax.f32 %v5135_v19, 0.0  ;;  %v6707_v1 = vmul.f32 %v12672_v60, %v12604_v28 }
 0x2c4   : > { %v5393_v10 = vmax.f32 %v13507_v12, %v5265_v13  ;;  %v6960_v29 = vmax.f32 %v6832_v17, 0.0  ;;  %v5138_v0 = vadd.f32 %v12697_v41, %v5010_v54  ;;  %v5008_v57 = vmul.f32 %v12672_v60, %v12606_v4 }
 0x2c5   : > { %7728 = vst.msk [vmem:[%s11733_s10 + $0x16c] sm:$0xf] %vm7636_vm3, %v9032_v49  ;;  %v9030_v21 = vpack.c.bf16 %v7085_v27, %v7085_v27  ;;  %v5391_v50 = vmax.f32 %v13508_v34, %v5263_v52  ;;  %v6835_v55 = vadd.f32 %v12697_v41, %v6707_v1  ;;  %v6705_v28 = vmul.f32 %v12672_v60, %v12610_v61 }
 0x2c6   : > { %v7090_v42 = vmax.f32 %v5393_v10, %v6962_v38  ;;  %v5266_v53 = vmax.f32 %v5138_v0, 0.0  ;;  %v5136_v9 = vadd.f32 %v12697_v41, %v5008_v57  ;;  %v5013_v62 = vmul.f32 %v12672_v60, %v12630_v11  ;;  %v13510_v38 = vld [vmem:[#allocation58_spill] sm:$0xff]  ;;  %v13511_v57 = vld [vmem:[#allocation59_spill] sm:$0xff] }
 0x2c7   : > { %7726 = vst.msk [vmem:[%s11733_s10 + $0x164] sm:$0xf] %vm7636_vm3, %v9030_v21  ;;  %v7088_v4 = vmax.f32 %v5391_v50, %v6960_v29  ;;  %v6963_v32 = vmax.f32 %v6835_v55, 0.0  ;;  %v6833_v26 = vadd.f32 %v12697_v41, %v6705_v28  ;;  %v6710_v2 = vmul.f32 %v12672_v60, %v12635_v51  ;;  %v12785_v58 = vpop.f32.mrb[236].mxu0  ;;  %v12789_v11 = vpop.f32.mrb[236].mxu1 }
 0x2c8   : > { %v9035_v61 = vpack.c.bf16 %v7090_v42, %v7090_v42  ;;  %v5394_v31 = vmax.f32 %v13509_v46, %v5266_v53  ;;  %v5264_v16 = vmax.f32 %v5136_v9, 0.0  ;;  %v5141_v43 = vadd.f32 %v12697_v41, %v5013_v62  ;;  %v12791_v59 = vpop.f32.mrb[237].mxu0  ;;  %v12796_v20 = vpop.f32.mrb[237].mxu1  ;;  %v13512_v62 = vld [vmem:[#allocation60_spill] sm:$0xff] }
 0x2c9   : > { %v9033_v15 = vpack.c.bf16 %v7088_v4, %v7088_v4  ;;  %v6961_v5 = vmax.f32 %v6833_v26, 0.0  ;;  %v6838_v33 = vadd.f32 %v12697_v41, %v6710_v2  ;;  %v5011_v51 = vmul.f32 %v12672_v60, %v12637_v6  ;;  %v12798_v19 = vpop.f32.mrb[238].mxu0  ;;  %v12805_v27 = vpop.f32.mrb[238].mxu1 }
 0x2ca   : > { %7731 = vst.msk [vmem:[%s11733_s10 + $0x178] sm:$0xf] %vm7636_vm3, %v9035_v61  ;;  %v7091_v13 = vmax.f32 %v5394_v31, %v6963_v32  ;;  %v5392_v17 = vmax.f32 %v13510_v38, %v5264_v16  ;;  %v5269_v54 = vmax.f32 %v5141_v43, 0.0  ;;  %v6708_v49 = vmul.f32 %v12672_v60, %v12643_v7  ;;  %v12807_v52 = vpop.f32.mrb[239].mxu0  ;;  %v12816_v29 = vpop.f32.mrb[239].mxu1 }
 0x2cb   : > { %7729 = vst.msk [vmem:[%s11733_s10 + $0x170] sm:$0xf] %vm7636_vm3, %v9033_v15  ;;  %v6966_v6 = vmax.f32 %v6838_v33, 0.0  ;;  %v5139_v1 = vadd.f32 %v12697_v41, %v5011_v51  ;;  %v5014_v12 = vmul.f32 %v12672_v60, %v12645_v25  ;;  %v6711_v10 = vmul.f32 %v12672_v60, %v12651_v30 }
 0x2cc   : > { %v9036_v0 = vpack.c.bf16 %v7091_v13, %v7091_v13  ;;  %v7089_v7 = vmax.f32 %v5392_v17, %v6961_v5  ;;  %v5397_v21 = vmax.f32 %v13511_v57, %v5269_v54  ;;  %v6836_v34 = vadd.f32 %v12697_v41, %v6708_v49  ;;  %v13513_v5 = vld [vmem:[#allocation61_spill] sm:$0xff] }
 0x2cd   : > { %v5267_v50 = vmax.f32 %v5139_v1, 0.0  ;;  %v5142_v55 = vadd.f32 %v12697_v41, %v5014_v12  ;;  %v6839_v28 = vadd.f32 %v12697_v41, %v6711_v10  ;;  %v5012_v25 = vmul.f32 %v12672_v60, %v12653_v45  ;;  %v13514_v10 = vld [vmem:[#allocation62_spill] sm:$0xff] }
 0x2ce   : > { %7732 = vst.msk [vmem:[%s11733_s10 + $0x17c] sm:$0xf] %vm7636_vm3, %v9036_v0  ;;  %v9034_v30 = vpack.c.bf16 %v7089_v7, %v7089_v7  ;;  %v7094_v42 = vmax.f32 %v5397_v21, %v6966_v6  ;;  %v6964_v53 = vmax.f32 %v6836_v34, 0.0  ;;  %v6709_v9 = vmul.f32 %v12672_v60, %v12661_v22 }
 0x2cf   : > { %v5395_v4 = vmax.f32 %v13512_v62, %v5267_v50  ;;  %v5270_v32 = vmax.f32 %v5142_v55, 0.0  ;;  %v6967_v26 = vmax.f32 %v6839_v28, 0.0  ;;  %v5140_v2 = vadd.f32 %v12697_v41, %v5012_v25  ;;  %v12830_v61 = vpop.f32.mrb[240].mxu0 }
 0x2d0   : > { %7730 = vst.msk [vmem:[%s11733_s10 + $0x174] sm:$0xf] %vm7636_vm3, %v9034_v30  ;;  %v9039_v45 = vpack.c.bf16 %v7094_v42, %v7094_v42  ;;  %v6837_v46 = vadd.f32 %v12697_v41, %v6709_v9  ;;  %v5017_v31 = vmul.f32 %v12672_v60, %v12681_v48  ;;  %v6714_v22 = vmul.f32 %v12672_v60, %v12688_v63  ;;  %v12839_v16 = vpop.f32.mrb[240].mxu1  ;;  %v12841_v43 = vpop.f32.mrb[241].mxu0  ;;  %v13515_v42 = vld [vmem:[#allocation63_spill] sm:$0xff] }
 0x2d1   : > { %v7092_v15 = vmax.f32 %v5395_v4, %v6964_v53  ;;  %v5398_v33 = vmax.f32 %v13513_v5, %v5270_v32  ;;  %v5268_v51 = vmax.f32 %v5140_v2, 0.0  ;;  %v5015_v13 = vmul.f32 %v12672_v60, %v12690_v56  ;;  %v12846_v38 = vpop.f32.mrb[241].mxu1  ;;  %v12848_v17 = vpop.f32.mrb[242].mxu0  ;;  %v13516_v32 = vld [vmem:[#allocation64_spill] sm:$0xff] }
 0x2d2   : > { %7735 = vst.msk [vmem:[%s11733_s10 + $0x188] sm:$0xf] %vm7636_vm3, %v9039_v45  ;;  %v6965_v48 = vmax.f32 %v6837_v46, 0.0  ;;  %v5145_v63 = vadd.f32 %v12697_v41, %v5017_v31  ;;  %v6842_v54 = vadd.f32 %v12697_v41, %v6714_v22  ;;  %v6712_v49 = vmul.f32 %v12672_v60, %v12704_v44  ;;  %v12856_v6 = vpop.f32.mrb[242].mxu1  ;;  %v12858_v1 = vpop.f32.mrb[243].mxu0 }
 0x2d3   : > { %v9037_v56 = vpack.c.bf16 %v7092_v15, %v7092_v15  ;;  %v7095_v12 = vmax.f32 %v5398_v33, %v6967_v26  ;;  %v5396_v0 = vmax.f32 %v13514_v10, %v5268_v51  ;;  %v5143_v7 = vadd.f32 %v12697_v41, %v5015_v13  ;;  %v12862_v57 = vpop.f32.mrb[243].mxu1 }
 0x2d4   : > { %v5273_v21 = vmax.f32 %v5145_v63, 0.0  ;;  %v6970_v34 = vmax.f32 %v6842_v54, 0.0  ;;  %v6840_v50 = vadd.f32 %v12697_v41, %v6712_v49  ;;  %v5018_v44 = vmul.f32 %v12672_v60, %v12706_v47 }
 0x2d5   : > { %7733 = vst.msk [vmem:[%s11733_s10 + $0x180] sm:$0xf] %vm7636_vm3, %v9037_v56  ;;  %v9040_v55 = vpack.c.bf16 %v7095_v12, %v7095_v12  ;;  %v7093_v28 = vmax.f32 %v5396_v0, %v6965_v48  ;;  %v5271_v25 = vmax.f32 %v5143_v7, 0.0  ;;  %v6715_v30 = vmul.f32 %v12672_v60, %v12710_v8 }
 0x2d6   : > { %v5401_v53 = vmax.f32 %v13515_v42, %v5273_v21  ;;  %v6968_v9 = vmax.f32 %v6840_v50, 0.0  ;;  %v5146_v62 = vadd.f32 %v12697_v41, %v5018_v44  ;;  %v5016_v4 = vmul.f32 %v12672_v60, %v12712_v35 }
 0x2d7   : > { %7736 = vst.msk [vmem:[%s11733_s10 + $0x18c] sm:$0xf] %vm7636_vm3, %v9040_v55  ;;  %v9038_v47 = vpack.c.bf16 %v7093_v28, %v7093_v28  ;;  %v5399_v26 = vmax.f32 %v13516_v32, %v5271_v25  ;;  %v6843_v2 = vadd.f32 %v12697_v41, %v6715_v30  ;;  %v6713_v45 = vmul.f32 %v12672_v60, %v12718_v24  ;;  %v12881_v8 = vpop.f32.mrb[244].mxu0  ;;  %v13518_v55 = vld [vmem:[#allocation66_spill] sm:$0xff] }
 0x2d8   : > { %v7098_v46 = vmax.f32 %v5401_v53, %v6970_v34  ;;  %v5274_v31 = vmax.f32 %v5146_v62, 0.0  ;;  %v5144_v22 = vadd.f32 %v12697_v41, %v5016_v4  ;;  %v5021_v15 = vmul.f32 %v12672_v60, %v12736_v3  ;;  %v12886_v35 = vpop.f32.mrb[244].mxu1  ;;  %v12888_v5 = vpop.f32.mrb[245].mxu0  ;;  %v13517_v3 = vld [vmem:[#allocation65_spill] sm:$0xff] }
 0x2d9   : > { %7734 = vst.msk [vmem:[%s11733_s10 + $0x184] sm:$0xf] %vm7636_vm3, %v9038_v47  ;;  %v7096_v33 = vmax.f32 %v5399_v26, %v6968_v9  ;;  %v6971_v51 = vmax.f32 %v6843_v2, 0.0  ;;  %v6841_v24 = vadd.f32 %v12697_v41, %v6713_v45  ;;  %v6718_v13 = vmul.f32 %v12672_v60, %v12744_v23  ;;  %v12895_v48 = vpop.f32.mrb[245].mxu1  ;;  %v12897_v63 = vpop.f32.mrb[246].mxu0  ;;  %v13519_v47 = vld [vmem:[#allocation67_spill] sm:$0xff] }
 0x2da   : > { %v9043_v54 = vpack.c.bf16 %v7098_v46, %v7098_v46  ;;  %v5402_v49 = vmax.f32 %v13517_v3, %v5274_v31  ;;  %v5272_v56 = vmax.f32 %v5144_v22, 0.0  ;;  %v5149_v12 = vadd.f32 %v12697_v41, %v5021_v15  ;;  %v12901_v10 = vpop.f32.mrb[246].mxu1  ;;  %v12903_v0 = vpop.f32.mrb[247].mxu0 }
 0x2db   : > { %v9041_v7 = vpack.c.bf16 %v7096_v33, %v7096_v33  ;;  %v6969_v21 = vmax.f32 %v6841_v24, 0.0  ;;  %v6846_v34 = vadd.f32 %v12697_v41, %v6718_v13  ;;  %v5019_v23 = vmul.f32 %v12672_v60, %v12746_v18  ;;  %v12908_v50 = vpop.f32.mrb[247].mxu1  ;;  %v13520_v24 = vld [vmem:[#allocation68_spill] sm:$0xff] }
 0x2dc   : > { %7739 = vst.msk [vmem:[%s11733_s10 + $0x198] sm:$0xf] %vm7636_vm3, %v9043_v54  ;;  %v7099_v44 = vmax.f32 %v5402_v49, %v6971_v51  ;;  %v5400_v28 = vmax.f32 %v13518_v55, %v5272_v56  ;;  %v5277_v25 = vmax.f32 %v5149_v12, 0.0  ;;  %v6716_v30 = vmul.f32 %v12672_v60, %v12750_v40  ;;  %v13521_v55 = vld [vmem:[#allocation69_spill] sm:$0xff] }
 0x2dd   : > { %7737 = vst.msk [vmem:[%s11733_s10 + $0x190] sm:$0xf] %vm7636_vm3, %v9041_v7  ;;  %v6974_v42 = vmax.f32 %v6846_v34, 0.0  ;;  %v5147_v53 = vadd.f32 %v12697_v41, %v5019_v23  ;;  %v5022_v18 = vmul.f32 %v12672_v60, %v12752_v37  ;;  %v6719_v9 = vmul.f32 %v12672_v60, %v12757_v39 }
 0x2de   : > { %v9044_v62 = vpack.c.bf16 %v7099_v44, %v7099_v44  ;;  %v7097_v4 = vmax.f32 %v5400_v28, %v6969_v21  ;;  %v5405_v32 = vmax.f32 %v13519_v47, %v5277_v25  ;;  %v6844_v26 = vadd.f32 %v12697_v41, %v6716_v30 }
 0x2df   : > { %v5275_v2 = vmax.f32 %v5147_v53, 0.0  ;;  %v5150_v40 = vadd.f32 %v12697_v41, %v5022_v18  ;;  %v6847_v45 = vadd.f32 %v12697_v41, %v6719_v9  ;;  %v5020_v46 = vmul.f32 %v12672_v60, %v12759_v14  ;;  %v12928_v31 = vpop.f32.mrb[248].mxu0 }
 0x2e0   : > { %7740 = vst.msk [vmem:[%s11733_s10 + $0x19c] sm:$0xf] %vm7636_vm3, %v9044_v62  ;;  %v9042_v37 = vpack.c.bf16 %v7097_v4, %v7097_v4  ;;  %v7102_v39 = vmax.f32 %v5405_v32, %v6974_v42  ;;  %v6972_v22 = vmax.f32 %v6844_v26, 0.0  ;;  %v6717_v15 = vmul.f32 %v12672_v60, %v12765_v36  ;;  %v12934_v33 = vpop.f32.mrb[248].mxu1  ;;  %v12936_v51 = vpop.f32.mrb[249].mxu0  ;;  %v13522_v4 = vld [vmem:[#allocation70_spill] sm:$0xff] }
 0x2e1   : > { %v5403_v13 = vmax.f32 %v13520_v24, %v5275_v2  ;;  %v5278_v54 = vmax.f32 %v5150_v40, 0.0  ;;  %v6975_v3 = vmax.f32 %v6847_v45, 0.0  ;;  %v5148_v14 = vadd.f32 %v12697_v41, %v5020_v46  ;;  %v12940_v49 = vpop.f32.mrb[249].mxu1  ;;  %v12942_v56 = vpop.f32.mrb[250].mxu0 }
 0x2e2   : > { %7738 = vst.msk [vmem:[%s11733_s10 + $0x194] sm:$0xf] %vm7636_vm3, %v9042_v37  ;;  %v9047_v12 = vpack.c.bf16 %v7102_v39, %v7102_v39  ;;  %v6845_v36 = vadd.f32 %v12697_v41, %v6717_v15  ;;  %v5025_v7 = vmul.f32 %v12672_v60, %v12785_v58  ;;  %v6722_v21 = vmul.f32 %v12672_v60, %v12789_v11  ;;  %v12951_v34 = vpop.f32.mrb[250].mxu1  ;;  %v12953_v23 = vpop.f32.mrb[251].mxu0 }
 0x2e3   : > { %v7100_v44 = vmax.f32 %v5403_v13, %v6972_v22  ;;  %v5406_v28 = vmax.f32 %v13521_v55, %v5278_v54  ;;  %v5276_v25 = vmax.f32 %v5148_v14, 0.0  ;;  %v5023_v30 = vmul.f32 %v12672_v60, %v12791_v59  ;;  %v12958_v42 = vpop.f32.mrb[251].mxu1  ;;  %v13523_v22 = vld [vmem:[#allocation71_spill] sm:$0xff] }
 0x2e4   : > { %7743 = vst.msk [vmem:[%s11733_s10 + $0x1a8] sm:$0xf] %vm7636_vm3, %v9047_v12  ;;  %v6973_v58 = vmax.f32 %v6845_v36, 0.0  ;;  %v5153_v53 = vadd.f32 %v12697_v41, %v5025_v7  ;;  %v6850_v11 = vadd.f32 %v12697_v41, %v6722_v21  ;;  %v6720_v18 = vmul.f32 %v12672_v60, %v12796_v20  ;;  %v13524_v12 = vld [vmem:[#allocation72_spill] sm:$0xff] }
 0x2e5   : > { %v9045_v9 = vpack.c.bf16 %v7100_v44, %v7100_v44  ;;  %v7103_v62 = vmax.f32 %v5406_v28, %v6975_v3  ;;  %v5404_v47 = vmax.f32 %v13522_v4, %v5276_v25  ;;  %v5151_v32 = vadd.f32 %v12697_v41, %v5023_v30  ;;  %v13525_v4 = vld [vmem:[#allocation73_spill] sm:$0xff] }
 0x2e6   : > { %v5281_v26 = vmax.f32 %v5153_v53, 0.0  ;;  %v6978_v59 = vmax.f32 %v6850_v11, 0.0  ;;  %v6848_v2 = vadd.f32 %v12697_v41, %v6720_v18  ;;  %v5026_v40 = vmul.f32 %v12672_v60, %v12798_v19 }
 0x2e7   : > { %7741 = vst.msk [vmem:[%s11733_s10 + $0x1a0] sm:$0xf] %vm7636_vm3, %v9045_v9  ;;  %v9048_v45 = vpack.c.bf16 %v7103_v62, %v7103_v62  ;;  %v7101_v46 = vmax.f32 %v5404_v47, %v6973_v58  ;;  %v5279_v37 = vmax.f32 %v5151_v32, 0.0  ;;  %v6723_v20 = vmul.f32 %v12672_v60, %v12805_v27  ;;  %v12975_v39 = vpop.f32.mrb[252].mxu0 }
 0x2e8   : > { %v5409_v15 = vmax.f32 %v13523_v22, %v5281_v26  ;;  %v6976_v24 = vmax.f32 %v6848_v2, 0.0  ;;  %v5154_v13 = vadd.f32 %v12697_v41, %v5026_v40  ;;  %v5024_v54 = vmul.f32 %v12672_v60, %v12807_v52  ;;  %v12981_v19 = vpop.f32.mrb[252].mxu1  ;;  %v12983_v3 = vpop.f32.mrb[253].mxu0 }
 0x2e9   : > { %7744 = vst.msk [vmem:[%s11733_s10 + $0x1ac] sm:$0xf] %vm7636_vm3, %v9048_v45  ;;  %v9046_v14 = vpack.c.bf16 %v7101_v46, %v7101_v46  ;;  %v5407_v27 = vmax.f32 %v13524_v12, %v5279_v37  ;;  %v6851_v36 = vadd.f32 %v12697_v41, %v6723_v20  ;;  %v6721_v7 = vmul.f32 %v12672_v60, %v12816_v29  ;;  %v12991_v21 = vpop.f32.mrb[253].mxu1  ;;  %v12993_v44 = vpop.f32.mrb[254].mxu0  ;;  %v13526_v46 = vld [vmem:[#allocation74_spill] sm:$0xff] }
 0x2ea   : > { %v7106_v52 = vmax.f32 %v5409_v15, %v6978_v59  ;;  %v5282_v55 = vmax.f32 %v5154_v13, 0.0  ;;  %v5152_v28 = vadd.f32 %v12697_v41, %v5024_v54  ;;  %v5029_v25 = vmul.f32 %v12672_v60, %v12830_v61  ;;  %v12998_v30 = vpop.f32.mrb[254].mxu1  ;;  %v13000_v58 = vpop.f32.mrb[255].mxu0 }
 0x2eb   : > { %7742 = vst.msk [vmem:[%s11733_s10 + $0x1a4] sm:$0xf] %vm7636_vm3, %v9046_v14  ;;  %v7104_v53 = vmax.f32 %v5407_v27, %v6976_v24  ;;  %v6979_v29 = vmax.f32 %v6851_v36, 0.0  ;;  %v6849_v11 = vadd.f32 %v12697_v41, %v6721_v7  ;;  %v6726_v18 = vmul.f32 %v12672_v60, %v12839_v16  ;;  %v13007_v9 = vpop.f32.mrb[255].mxu1  ;;  %v13527_v14 = vld [vmem:[#allocation75_spill] sm:$0xff] }
 0x2ec   : > { %v9051_v62 = vpack.c.bf16 %v7106_v52, %v7106_v52  ;;  %v5410_v61 = vmax.f32 %v13525_v4, %v5282_v55  ;;  %v5280_v47 = vmax.f32 %v5152_v28, 0.0  ;;  %v5157_v32 = vadd.f32 %v12697_v41, %v5029_v25  ;;  %v13528_v25 = vld [vmem:[#allocation76_spill] sm:$0xff] }
 0x2ed   : > { %v9049_v26 = vpack.c.bf16 %v7104_v53, %v7104_v53  ;;  %v6977_v59 = vmax.f32 %v6849_v11, 0.0  ;;  %v6854_v2 = vadd.f32 %v12697_v41, %v6726_v18  ;;  %v5027_v40 = vmul.f32 %v12672_v60, %v12841_v43 }
 0x2ee   : > { %7747 = vst.msk [vmem:[%s11733_s10 + $0x1b8] sm:$0xf] %vm7636_vm3, %v9051_v62  ;;  %v7107_v45 = vmax.f32 %v5410_v61, %v6979_v29  ;;  %v5408_v16 = vmax.f32 %v13526_v46, %v5280_v47  ;;  %v5285_v37 = vmax.f32 %v5157_v32, 0.0  ;;  %v6724_v20 = vmul.f32 %v12672_v60, %v12846_v38  ;;  %v13529_v32 = vld [vmem:[#allocation77_spill] sm:$0xff] }
 0x2ef   : > { %7745 = vst.msk [vmem:[%s11733_s10 + $0x1b0] sm:$0xf] %vm7636_vm3, %v9049_v26  ;;  %v6982_v22 = vmax.f32 %v6854_v2, 0.0  ;;  %v5155_v15 = vadd.f32 %v12697_v41, %v5027_v40  ;;  %v5030_v24 = vmul.f32 %v12672_v60, %v12848_v17  ;;  %v6727_v43 = vmul.f32 %v12672_v60, %v12856_v6 }
 0x2f0   : > { %v9052_v13 = vpack.c.bf16 %v7107_v45, %v7107_v45  ;;  %v7105_v54 = vmax.f32 %v5408_v16, %v6977_v59  ;;  %v5413_v12 = vmax.f32 %v13527_v14, %v5285_v37  ;;  %v6852_v27 = vadd.f32 %v12697_v41, %v6724_v20  ;;  %v13530_v16 = vld [vmem:[#allocation78_spill] sm:$0xff]  ;;  %v13531_v14 = vld [vmem:[#allocation79_spill] sm:$0xff] }
 0x2f1   : > { %v5283_v36 = vmax.f32 %v5155_v15, 0.0  ;;  %v5158_v38 = vadd.f32 %v12697_v41, %v5030_v24  ;;  %v6855_v7 = vadd.f32 %v12697_v41, %v6727_v43  ;;  %v5028_v52 = vmul.f32 %v12672_v60, %v12858_v1 }
 0x2f2   : > { %7748 = vst.msk [vmem:[%s11733_s10 + $0x1bc] sm:$0xf] %vm7636_vm3, %v9052_v13  ;;  %v9050_v17 = vpack.c.bf16 %v7105_v54, %v7105_v54  ;;  %v7110_v55 = vmax.f32 %v5413_v12, %v6982_v22  ;;  %v6980_v6 = vmax.f32 %v6852_v27, 0.0  ;;  %v6725_v28 = vmul.f32 %v12672_v60, %v12862_v57 }
 0x2f3   : > { %v5411_v53 = vmax.f32 %v13528_v25, %v5283_v36  ;;  %v5286_v29 = vmax.f32 %v5158_v38, 0.0  ;;  %v6983_v11 = vmax.f32 %v6855_v7, 0.0  ;;  %v5156_v18 = vadd.f32 %v12697_v41, %v5028_v52  ;;  %v13532_v7 = vld [vmem:[#allocation80_spill] sm:$0xff] }
 0x2f4   : > { %7746 = vst.msk [vmem:[%s11733_s10 + $0x1b4] sm:$0xf] %vm7636_vm3, %v9050_v17  ;;  %v9055_v62 = vpack.c.bf16 %v7110_v55, %v7110_v55  ;;  %v6853_v1 = vadd.f32 %v12697_v41, %v6725_v28  ;;  %v5033_v4 = vmul.f32 %v12672_v60, %v12881_v8  ;;  %v6730_v61 = vmul.f32 %v12672_v60, %v12886_v35 }
 0x2f5   : > { %v7108_v47 = vmax.f32 %v5411_v53, %v6980_v6  ;;  %v5414_v57 = vmax.f32 %v13529_v32, %v5286_v29  ;;  %v5284_v26 = vmax.f32 %v5156_v18, 0.0  ;;  %v5031_v59 = vmul.f32 %v12672_v60, %v12888_v5 }
 0x2f6   : > { %7751 = vst.msk [vmem:[%s11733_s10 + $0x1c8] sm:$0xf] %vm7636_vm3, %v9055_v62  ;;  %v6981_v2 = vmax.f32 %v6853_v1, 0.0  ;;  %v5161_v40 = vadd.f32 %v12697_v41, %v5033_v4  ;;  %v6858_v45 = vadd.f32 %v12697_v41, %v6730_v61  ;;  %v6728_v8 = vmul.f32 %v12672_v60, %v12895_v48 }
 0x2f7   : > { %v9053_v46 = vpack.c.bf16 %v7108_v47, %v7108_v47  ;;  %v7111_v35 = vmax.f32 %v5414_v57, %v6983_v11  ;;  %v5412_v37 = vmax.f32 %v13530_v16, %v5284_v26  ;;  %v5159_v20 = vadd.f32 %v12697_v41, %v5031_v59  ;;  %v13534_v26 = vld [vmem:[#allocation82_spill] sm:$0xff]  ;;  %v13535_v16 = vld [vmem:[#allocation83_spill] sm:$0xff] }
 0x2f8   : > { %v5289_v22 = vmax.f32 %v5161_v40, 0.0  ;;  %v6986_v15 = vmax.f32 %v6858_v45, 0.0  ;;  %v6856_v5 = vadd.f32 %v12697_v41, %v6728_v8  ;;  %v5034_v24 = vmul.f32 %v12672_v60, %v12897_v63 }
 0x2f9   : > { %7749 = vst.msk [vmem:[%s11733_s10 + $0x1c0] sm:$0xf] %vm7636_vm3, %v9053_v46  ;;  %v9056_v43 = vpack.c.bf16 %v7111_v35, %v7111_v35  ;;  %v7109_v13 = vmax.f32 %v5412_v37, %v6981_v2  ;;  %v5287_v48 = vmax.f32 %v5159_v20, 0.0  ;;  %v6731_v54 = vmul.f32 %v12672_v60, %v12901_v10 }
 0x2fa   : > { %v5417_v12 = vmax.f32 %v13531_v14, %v5289_v22  ;;  %v6984_v27 = vmax.f32 %v6856_v5, 0.0  ;;  %v5162_v36 = vadd.f32 %v12697_v41, %v5034_v24  ;;  %v5032_v38 = vmul.f32 %v12672_v60, %v12903_v0 }
 0x2fb   : > { %7752 = vst.msk [vmem:[%s11733_s10 + $0x1cc] sm:$0xf] %vm7636_vm3, %v9056_v43  ;;  %v9054_v63 = vpack.c.bf16 %v7109_v13, %v7109_v13  ;;  %v5415_v52 = vmax.f32 %v13532_v7, %v5287_v48  ;;  %v6859_v17 = vadd.f32 %v12697_v41, %v6731_v54  ;;  %v6729_v55 = vmul.f32 %v12672_v60, %v12908_v50  ;;  %v13533_v50 = vld [vmem:[#allocation81_spill] sm:$0xff]  ;;  %v13536_v13 = vld [vmem:[#allocation84_spill] sm:$0xff] }
 0x2fc   : > { %v7114_v6 = vmax.f32 %v5417_v12, %v6986_v15  ;;  %v5290_v10 = vmax.f32 %v5162_v36, 0.0  ;;  %v5160_v28 = vadd.f32 %v12697_v41, %v5032_v38  ;;  %v5037_v25 = vmul.f32 %v12672_v60, %v12928_v31  ;;  %v13537_v7 = vld [vmem:[#allocation85_spill] sm:$0xff] }
 0x2fd   : > { %7750 = vst.msk [vmem:[%s11733_s10 + $0x1c4] sm:$0xf] %vm7636_vm3, %v9054_v63  ;;  %v7112_v0 = vmax.f32 %v5415_v52, %v6984_v27  ;;  %v6987_v53 = vmax.f32 %v6859_v17, 0.0  ;;  %v6857_v29 = vadd.f32 %v12697_v41, %v6729_v55  ;;  %v6734_v11 = vmul.f32 %v12672_v60, %v12934_v33 }
 0x2fe   : > { %v9059_v18 = vpack.c.bf16 %v7114_v6, %v7114_v6  ;;  %v5418_v62 = vmax.f32 %v13533_v50, %v5290_v10  ;;  %v5288_v1 = vmax.f32 %v5160_v28, 0.0  ;;  %v5165_v4 = vadd.f32 %v12697_v41, %v5037_v25  ;;  %v13538_v25 = vld [vmem:[#allocation86_spill] sm:$0xff] }
 0x2ff   : > { %v9057_v61 = vpack.c.bf16 %v7112_v0, %v7112_v0  ;;  %v6985_v47 = vmax.f32 %v6857_v29, 0.0  ;;  %v6862_v31 = vadd.f32 %v12697_v41, %v6734_v11  ;;  %v5035_v32 = vmul.f32 %v12672_v60, %v12936_v51 }
 0x300   : > { %7755 = vst.msk [vmem:[%s11733_s10 + $0x1d8] sm:$0xf] %vm7636_vm3, %v9059_v18  ;;  %v7115_v57 = vmax.f32 %v5418_v62, %v6987_v53  ;;  %v5416_v59 = vmax.f32 %v13534_v26, %v5288_v1  ;;  %v5293_v33 = vmax.f32 %v5165_v4, 0.0  ;;  %v6732_v2 = vmul.f32 %v12672_v60, %v12940_v49  ;;  %v13539_v4 = vld [vmem:[#allocation87_spill] sm:$0xff] }
 0x301   : > { %7753 = vst.msk [vmem:[%s11733_s10 + $0x1d0] sm:$0xf] %vm7636_vm3, %v9057_v61  ;;  %v6990_v40 = vmax.f32 %v6862_v31, 0.0  ;;  %v5163_v45 = vadd.f32 %v12697_v41, %v5035_v32  ;;  %v5038_v8 = vmul.f32 %v12672_v60, %v12942_v56  ;;  %v6735_v51 = vmul.f32 %v12672_v60, %v12951_v34 }
 0x302   : > { %v9060_v46 = vpack.c.bf16 %v7115_v57, %v7115_v57  ;;  %v7113_v35 = vmax.f32 %v5416_v59, %v6985_v47  ;;  %v5421_v37 = vmax.f32 %v13535_v16, %v5293_v33  ;;  %v6860_v20 = vadd.f32 %v12697_v41, %v6732_v2  ;;  %v13540_v57 = vld [vmem:[#allocation88_spill] sm:$0xff] }
 0x303   : > { %v5291_v22 = vmax.f32 %v5163_v45, 0.0  ;;  %v5166_v49 = vadd.f32 %v12697_v41, %v5038_v8  ;;  %v6863_v15 = vadd.f32 %v12697_v41, %v6735_v51  ;;  %v5036_v5 = vmul.f32 %v12672_v60, %v12953_v23  ;;  %v13541_v51 = vld [vmem:[#allocation89_spill] sm:$0xff] }
 0x304   : > { %7756 = vst.msk [vmem:[%s11733_s10 + $0x1dc] sm:$0xf] %vm7636_vm3, %v9060_v46  ;;  %v9058_v56 = vpack.c.bf16 %v7113_v35, %v7113_v35  ;;  %v7118_v24 = vmax.f32 %v5421_v37, %v6990_v40  ;;  %v6988_v34 = vmax.f32 %v6860_v20, 0.0  ;;  %v6733_v43 = vmul.f32 %v12672_v60, %v12958_v42 }
 0x305   : > { %v5419_v48 = vmax.f32 %v13536_v13, %v5291_v22  ;;  %v5294_v54 = vmax.f32 %v5166_v49, 0.0  ;;  %v6991_v14 = vmax.f32 %v6863_v15, 0.0  ;;  %v5164_v12 = vadd.f32 %v12697_v41, %v5036_v5 }
 0x306   : > { %7754 = vst.msk [vmem:[%s11733_s10 + $0x1d4] sm:$0xf] %vm7636_vm3, %v9058_v56  ;;  %v9063_v27 = vpack.c.bf16 %v7118_v24, %v7118_v24  ;;  %v6861_v23 = vadd.f32 %v12697_v41, %v6733_v43  ;;  %v5041_v36 = vmul.f32 %v12672_v60, %v12975_v39  ;;  %v6738_v38 = vmul.f32 %v12672_v60, %v12981_v19 }
 0x307   : > { %v7116_v63 = vmax.f32 %v5419_v48, %v6988_v34  ;;  %v5422_v42 = vmax.f32 %v13537_v7, %v5294_v54  ;;  %v5292_v52 = vmax.f32 %v5164_v12, 0.0  ;;  %v5039_v17 = vmul.f32 %v12672_v60, %v12983_v3 }
 0x308   : > { %7759 = vst.msk [vmem:[%s11733_s10 + $0x1e8] sm:$0xf] %vm7636_vm3, %v9063_v27  ;;  %v6989_v55 = vmax.f32 %v6861_v23, 0.0  ;;  %v5169_v6 = vadd.f32 %v12697_v41, %v5041_v36  ;;  %v6866_v10 = vadd.f32 %v12697_v41, %v6738_v38  ;;  %v6736_v39 = vmul.f32 %v12672_v60, %v12991_v21 }
 0x309   : > { %v9061_v28 = vpack.c.bf16 %v7116_v63, %v7116_v63  ;;  %v7119_v19 = vmax.f32 %v5422_v42, %v6991_v14  ;;  %v5420_v0 = vmax.f32 %v13538_v25, %v5292_v52  ;;  %v5167_v53 = vadd.f32 %v12697_v41, %v5039_v17 }
 0x30a   : > { %v5297_v29 = vmax.f32 %v5169_v6, 0.0  ;;  %v6994_v11 = vmax.f32 %v6866_v10, 0.0  ;;  %v6864_v3 = vadd.f32 %v12697_v41, %v6736_v39  ;;  %v5042_v18 = vmul.f32 %v12672_v60, %v12993_v44 }
 0x30b   : > { %7757 = vst.msk [vmem:[%s11733_s10 + $0x1e0] sm:$0xf] %vm7636_vm3, %v9061_v28  ;;  %v9064_v50 = vpack.c.bf16 %v7119_v19, %v7119_v19  ;;  %v7117_v62 = vmax.f32 %v5420_v0, %v6989_v55  ;;  %v5295_v21 = vmax.f32 %v5167_v53, 0.0  ;;  %v6739_v1 = vmul.f32 %v12672_v60, %v12998_v30 }
 0x30c   : > { %v5425_v61 = vmax.f32 %v13539_v4, %v5297_v29  ;;  %v6992_v47 = vmax.f32 %v6864_v3, 0.0  ;;  %v5170_v31 = vadd.f32 %v12697_v41, %v5042_v18  ;;  %v5040_v32 = vmul.f32 %v12672_v60, %v13000_v58 }
 0x30d   : > { %7760 = vst.msk [vmem:[%s11733_s10 + $0x1ec] sm:$0xf] %vm7636_vm3, %v9064_v50  ;;  %v9062_v44 = vpack.c.bf16 %v7117_v62, %v7117_v62  ;;  %v5423_v26 = vmax.f32 %v13540_v57, %v5295_v21  ;;  %v6867_v59 = vadd.f32 %v12697_v41, %v6739_v1  ;;  %v6737_v33 = vmul.f32 %v12672_v60, %v13007_v9  ;;  %v13542_v9 = vld [vmem:[#allocation90_spill] sm:$0xff] }
 0x30e   : > { %v7122_v30 = vmax.f32 %v5425_v61, %v6994_v11  ;;  %v5298_v2 = vmax.f32 %v5170_v31, 0.0  ;;  %v5168_v40 = vadd.f32 %v12697_v41, %v5040_v32 }
 0x30f   : > { %7758 = vst.msk [vmem:[%s11733_s10 + $0x1e4] sm:$0xf] %vm7636_vm3, %v9062_v44  ;;  %v7120_v58 = vmax.f32 %v5423_v26, %v6992_v47  ;;  %v6865_v45 = vadd.f32 %v12697_v41, %v6737_v33  ;;  %v6995_v35 = vmax.f32 %v6867_v59, 0.0 }
 0x310   : > { %v9067_v8 = vpack.c.bf16 %v7122_v30, %v7122_v30  ;;  %v5426_v46 = vmax.f32 %v13541_v51, %v5298_v2  ;;  %v5296_v16 = vmax.f32 %v5168_v40, 0.0 }
 0x311   : > { %v9065_v37 = vpack.c.bf16 %v7120_v58, %v7120_v58  ;;  %v6993_v22 = vmax.f32 %v6865_v45, 0.0 }
 0x312   : > { %7763 = vst.msk [vmem:[%s11733_s10 + $0x1f8] sm:$0xf] %vm7636_vm3, %v9067_v8  ;;  %v7123_v60 = vmax.f32 %v5426_v46, %v6995_v35  ;;  %v5424_v20 = vmax.f32 %v13542_v9, %v5296_v16  ;;  %7771 = sbr.rel (!%p10375_p4) target bundleno = 884 (0x374), region = 52 }
 0x313   : > { %7761 = vst.msk [vmem:[%s11733_s10 + $0x1f0] sm:$0xf] %vm7636_vm3, %v9065_v37 }
 0x314   : > { %v9068_v49 = vpack.c.bf16 %v7123_v60, %v7123_v60  ;;  %v7121_v15 = vmax.f32 %v5424_v20, %v6993_v22 }
 0x316   : > { %7764 = vst.msk [vmem:[%s11733_s10 + $0x1fc] sm:$0xf] %vm7636_vm3, %v9068_v49  ;;  %v9066_v5 = vpack.c.bf16 %v7121_v15, %v7121_v15 }
 0x318   : > { %7762 = vst.msk [vmem:[%s11733_s10 + $0x1f4] sm:$0xf] %vm7636_vm3, %v9066_v5 }
 0x319   : > { %s13550_s23 = smov (!%p7774_p8, %s7773_s23), 128 }
 0x31a   : > { %s8926_s13 = sshll.u32 %s13550_s23, 6 }
 0x31b   : > { %p8929_p9 = scmp.eq.s32.totalorder %s8926_s13, 0 }
 0x31c   : > { %s13172_s15 = sshrl.u32 (!%p8929_p9), %s13550_s23, 6 }
 0x31d   : > { %7782 = sbr.rel (%p8929_p9) target bundleno = 884 (0x374), region = 56  ;;  %p8930_p10 = scmp.le.s32.totalorder (!%p8929_p9), %s13172_s15, 0 }
 0x324   : > { %8205 = sbr.rel (%p8930_p10) target bundleno = 863 (0x35f), region = 137  ;;  %s13543_s27 = smov (!%p8930_p10), %s13166_s12 }
 0x325   : > { %s13544_s9 = smov (!%p8930_p10), %s11733_s10  ;;  %s13181_s14 = smov (!%p8930_p10), 0  }
 0x326   : > { %s13183_s16 = smov (!%p8930_p10), 0  }
 0x32b LB: >> { %v7798_v41 = vld [vmem:[%s10283_s9] sm:$0xf]  ;;  %v7800_v56 = vld [vmem:[%s10283_s9 + $0x4] sm:$0xf]  ;;  %v7802_v24 = vld [vmem:[%s10283_s9 + $0x8] sm:$0xf]  ;;  %s10291_s16 = sphi %s13183_s16, %s7792_s16   ;;  %s10287_s14 = sphi %s13181_s14, %s13545_s14   ;;  %s10283_s9 = sphi %s13544_s9, %s7931_s9   ;;  %s10279_s27 = sphi %s13543_s27, %s7932_s27  }
 0x32c   : >> { %7799 = vst [vmem:[%s10279_s27] sm:$0xf] %v7798_v41  ;;  %7801 = vst [vmem:[%s10279_s27 + $0x4] sm:$0xf] %v7800_v56  ;;  %v7804_v34 = vld [vmem:[%s10283_s9 + $0xc] sm:$0xf]  ;;  %s7926_s29 = sadd.s32 1, %s10287_s14 }
 0x32d   : >> { %7803 = vst [vmem:[%s10279_s27 + $0x8] sm:$0xf] %v7802_v24  ;;  %v7806_v43 = vld [vmem:[%s10283_s9 + $0x10] sm:$0xf]  ;;  %v7808_v13 = vld [vmem:[%s10283_s9 + $0x14] sm:$0xf]  ;;  %p7927_p11 = scmp.ge.s32.totalorder %s7926_s29, %s13172_s15 }
 0x32e   : >> { %7805 = vst [vmem:[%s10279_s27 + $0xc] sm:$0xf] %v7804_v34  ;;  %7807 = vst [vmem:[%s10279_s27 + $0x10] sm:$0xf] %v7806_v43  ;;  %v7810_v48 = vld [vmem:[%s10283_s9 + $0x18] sm:$0xf] }
 0x32f   : >> { %7809 = vst [vmem:[%s10279_s27 + $0x14] sm:$0xf] %v7808_v13  ;;  %v7812_v54 = vld [vmem:[%s10283_s9 + $0x1c] sm:$0xf]  ;;  %v7814_v14 = vld [vmem:[%s10283_s9 + $0x20] sm:$0xf] }
 0x330   : >> { %7811 = vst [vmem:[%s10279_s27 + $0x18] sm:$0xf] %v7810_v48  ;;  %7813 = vst [vmem:[%s10279_s27 + $0x1c] sm:$0xf] %v7812_v54  ;;  %v7816_v12 = vld [vmem:[%s10283_s9 + $0x24] sm:$0xf] }
 0x331   : >> { %7815 = vst [vmem:[%s10279_s27 + $0x20] sm:$0xf] %v7814_v14  ;;  %v7818_v27 = vld [vmem:[%s10283_s9 + $0x28] sm:$0xf]  ;;  %v7820_v23 = vld [vmem:[%s10283_s9 + $0x2c] sm:$0xf] }
 0x332   : >> { %7817 = vst [vmem:[%s10279_s27 + $0x24] sm:$0xf] %v7816_v12  ;;  %7819 = vst [vmem:[%s10279_s27 + $0x28] sm:$0xf] %v7818_v27  ;;  %v7822_v36 = vld [vmem:[%s10283_s9 + $0x30] sm:$0xf] }
 0x333   : >> { %7821 = vst [vmem:[%s10279_s27 + $0x2c] sm:$0xf] %v7820_v23  ;;  %v7824_v38 = vld [vmem:[%s10283_s9 + $0x34] sm:$0xf]  ;;  %v7826_v63 = vld [vmem:[%s10283_s9 + $0x38] sm:$0xf] }
 0x334   : >> { %7823 = vst [vmem:[%s10279_s27 + $0x30] sm:$0xf] %v7822_v36  ;;  %7825 = vst [vmem:[%s10279_s27 + $0x34] sm:$0xf] %v7824_v38  ;;  %v7828_v7 = vld [vmem:[%s10283_s9 + $0x3c] sm:$0xf] }
 0x335   : >> { %7827 = vst [vmem:[%s10279_s27 + $0x38] sm:$0xf] %v7826_v63  ;;  %v7830_v42 = vld [vmem:[%s10283_s9 + $0x40] sm:$0xf]  ;;  %v7832_v52 = vld [vmem:[%s10283_s9 + $0x44] sm:$0xf] }
 0x336   : >> { %7829 = vst [vmem:[%s10279_s27 + $0x3c] sm:$0xf] %v7828_v7  ;;  %7831 = vst [vmem:[%s10279_s27 + $0x40] sm:$0xf] %v7830_v42  ;;  %v7834_v17 = vld [vmem:[%s10283_s9 + $0x48] sm:$0xf] }
 0x337   : >> { %7833 = vst [vmem:[%s10279_s27 + $0x44] sm:$0xf] %v7832_v52  ;;  %v7836_v55 = vld [vmem:[%s10283_s9 + $0x4c] sm:$0xf]  ;;  %v7838_v6 = vld [vmem:[%s10283_s9 + $0x50] sm:$0xf] }
 0x338   : >> { %7835 = vst [vmem:[%s10279_s27 + $0x48] sm:$0xf] %v7834_v17  ;;  %7837 = vst [vmem:[%s10279_s27 + $0x4c] sm:$0xf] %v7836_v55  ;;  %v7840_v10 = vld [vmem:[%s10283_s9 + $0x54] sm:$0xf] }
 0x339   : >> { %7839 = vst [vmem:[%s10279_s27 + $0x50] sm:$0xf] %v7838_v6  ;;  %v7842_v39 = vld [vmem:[%s10283_s9 + $0x58] sm:$0xf]  ;;  %v7844_v28 = vld [vmem:[%s10283_s9 + $0x5c] sm:$0xf] }
 0x33a   : >> { %7841 = vst [vmem:[%s10279_s27 + $0x54] sm:$0xf] %v7840_v10  ;;  %7843 = vst [vmem:[%s10279_s27 + $0x58] sm:$0xf] %v7842_v39  ;;  %v7846_v19 = vld [vmem:[%s10283_s9 + $0x60] sm:$0xf] }
 0x33b   : >> { %7845 = vst [vmem:[%s10279_s27 + $0x5c] sm:$0xf] %v7844_v28  ;;  %v7848_v25 = vld [vmem:[%s10283_s9 + $0x64] sm:$0xf]  ;;  %v7850_v0 = vld [vmem:[%s10283_s9 + $0x68] sm:$0xf] }
 0x33c   : >> { %7847 = vst [vmem:[%s10279_s27 + $0x60] sm:$0xf] %v7846_v19  ;;  %7849 = vst [vmem:[%s10279_s27 + $0x64] sm:$0xf] %v7848_v25  ;;  %v7852_v53 = vld [vmem:[%s10283_s9 + $0x6c] sm:$0xf] }
 0x33d   : >> { %7851 = vst [vmem:[%s10279_s27 + $0x68] sm:$0xf] %v7850_v0  ;;  %v7854_v29 = vld [vmem:[%s10283_s9 + $0x70] sm:$0xf]  ;;  %v7856_v11 = vld [vmem:[%s10283_s9 + $0x74] sm:$0xf] }
 0x33e   : >> { %7853 = vst [vmem:[%s10279_s27 + $0x6c] sm:$0xf] %v7852_v53  ;;  %7855 = vst [vmem:[%s10279_s27 + $0x70] sm:$0xf] %v7854_v29  ;;  %v7858_v3 = vld [vmem:[%s10283_s9 + $0x78] sm:$0xf] }
 0x33f   : >> { %7857 = vst [vmem:[%s10279_s27 + $0x74] sm:$0xf] %v7856_v11  ;;  %v7860_v18 = vld [vmem:[%s10283_s9 + $0x7c] sm:$0xf]  ;;  %v7862_v50 = vld [vmem:[%s10283_s9 + $0x80] sm:$0xf] }
 0x340   : >> { %7859 = vst [vmem:[%s10279_s27 + $0x78] sm:$0xf] %v7858_v3  ;;  %7861 = vst [vmem:[%s10279_s27 + $0x7c] sm:$0xf] %v7860_v18  ;;  %v7864_v62 = vld [vmem:[%s10283_s9 + $0x84] sm:$0xf] }
 0x341   : >> { %7863 = vst [vmem:[%s10279_s27 + $0x80] sm:$0xf] %v7862_v50  ;;  %v7866_v21 = vld [vmem:[%s10283_s9 + $0x88] sm:$0xf]  ;;  %v7868_v1 = vld [vmem:[%s10283_s9 + $0x8c] sm:$0xf] }
 0x342   : >> { %7865 = vst [vmem:[%s10279_s27 + $0x84] sm:$0xf] %v7864_v62  ;;  %7867 = vst [vmem:[%s10279_s27 + $0x88] sm:$0xf] %v7866_v21  ;;  %v7870_v4 = vld [vmem:[%s10283_s9 + $0x90] sm:$0xf] }
 0x343   : >> { %7869 = vst [vmem:[%s10279_s27 + $0x8c] sm:$0xf] %v7868_v1  ;;  %v7872_v61 = vld [vmem:[%s10283_s9 + $0x94] sm:$0xf]  ;;  %v7874_v47 = vld [vmem:[%s10283_s9 + $0x98] sm:$0xf] }
 0x344   : >> { %7871 = vst [vmem:[%s10279_s27 + $0x90] sm:$0xf] %v7870_v4  ;;  %7873 = vst [vmem:[%s10279_s27 + $0x94] sm:$0xf] %v7872_v61  ;;  %v7876_v31 = vld [vmem:[%s10283_s9 + $0x9c] sm:$0xf] }
 0x345   : >> { %7875 = vst [vmem:[%s10279_s27 + $0x98] sm:$0xf] %v7874_v47  ;;  %v7878_v32 = vld [vmem:[%s10283_s9 + $0xa0] sm:$0xf]  ;;  %v7880_v44 = vld [vmem:[%s10283_s9 + $0xa4] sm:$0xf] }
 0x346   : >> { %7877 = vst [vmem:[%s10279_s27 + $0x9c] sm:$0xf] %v7876_v31  ;;  %7879 = vst [vmem:[%s10279_s27 + $0xa0] sm:$0xf] %v7878_v32  ;;  %v7882_v57 = vld [vmem:[%s10283_s9 + $0xa8] sm:$0xf] }
 0x347   : >> { %7881 = vst [vmem:[%s10279_s27 + $0xa4] sm:$0xf] %v7880_v44  ;;  %v7884_v26 = vld [vmem:[%s10283_s9 + $0xac] sm:$0xf]  ;;  %v7886_v59 = vld [vmem:[%s10283_s9 + $0xb0] sm:$0xf] }
 0x348   : >> { %7883 = vst [vmem:[%s10279_s27 + $0xa8] sm:$0xf] %v7882_v57  ;;  %7885 = vst [vmem:[%s10279_s27 + $0xac] sm:$0xf] %v7884_v26  ;;  %v7888_v33 = vld [vmem:[%s10283_s9 + $0xb4] sm:$0xf] }
 0x349   : >> { %7887 = vst [vmem:[%s10279_s27 + $0xb0] sm:$0xf] %v7886_v59  ;;  %v7890_v30 = vld [vmem:[%s10283_s9 + $0xb8] sm:$0xf]  ;;  %v7892_v2 = vld [vmem:[%s10283_s9 + $0xbc] sm:$0xf] }
 0x34a   : >> { %7889 = vst [vmem:[%s10279_s27 + $0xb4] sm:$0xf] %v7888_v33  ;;  %7891 = vst [vmem:[%s10279_s27 + $0xb8] sm:$0xf] %v7890_v30  ;;  %v7894_v40 = vld [vmem:[%s10283_s9 + $0xc0] sm:$0xf] }
 0x34b   : >> { %7893 = vst [vmem:[%s10279_s27 + $0xbc] sm:$0xf] %v7892_v2  ;;  %v7896_v58 = vld [vmem:[%s10283_s9 + $0xc4] sm:$0xf]  ;;  %v7898_v45 = vld [vmem:[%s10283_s9 + $0xc8] sm:$0xf] }
 0x34c   : >> { %7895 = vst [vmem:[%s10279_s27 + $0xc0] sm:$0xf] %v7894_v40  ;;  %7897 = vst [vmem:[%s10279_s27 + $0xc4] sm:$0xf] %v7896_v58  ;;  %v7900_v8 = vld [vmem:[%s10283_s9 + $0xcc] sm:$0xf] }
 0x34d   : >> { %7899 = vst [vmem:[%s10279_s27 + $0xc8] sm:$0xf] %v7898_v45  ;;  %v7902_v51 = vld [vmem:[%s10283_s9 + $0xd0] sm:$0xf]  ;;  %v7904_v46 = vld [vmem:[%s10283_s9 + $0xd4] sm:$0xf] }
 0x34e   : >> { %7901 = vst [vmem:[%s10279_s27 + $0xcc] sm:$0xf] %v7900_v8  ;;  %7903 = vst [vmem:[%s10279_s27 + $0xd0] sm:$0xf] %v7902_v51  ;;  %v7906_v35 = vld [vmem:[%s10283_s9 + $0xd8] sm:$0xf] }
 0x34f   : >> { %7905 = vst [vmem:[%s10279_s27 + $0xd4] sm:$0xf] %v7904_v46  ;;  %v7908_v16 = vld [vmem:[%s10283_s9 + $0xdc] sm:$0xf]  ;;  %v7910_v37 = vld [vmem:[%s10283_s9 + $0xe0] sm:$0xf] }
 0x350   : >> { %7907 = vst [vmem:[%s10279_s27 + $0xd8] sm:$0xf] %v7906_v35  ;;  %7909 = vst [vmem:[%s10279_s27 + $0xdc] sm:$0xf] %v7908_v16  ;;  %v7912_v60 = vld [vmem:[%s10283_s9 + $0xe4] sm:$0xf] }
 0x351   : >> { %7911 = vst [vmem:[%s10279_s27 + $0xe0] sm:$0xf] %v7910_v37  ;;  %v7914_v9 = vld [vmem:[%s10283_s9 + $0xe8] sm:$0xf]  ;;  %v7916_v20 = vld [vmem:[%s10283_s9 + $0xec] sm:$0xf] }
 0x352   : >> { %7913 = vst [vmem:[%s10279_s27 + $0xe4] sm:$0xf] %v7912_v60  ;;  %7915 = vst [vmem:[%s10279_s27 + $0xe8] sm:$0xf] %v7914_v9  ;;  %v7918_v22 = vld [vmem:[%s10283_s9 + $0xf0] sm:$0xf] }
 0x353   : >> { %7917 = vst [vmem:[%s10279_s27 + $0xec] sm:$0xf] %v7916_v20  ;;  %v7920_v49 = vld [vmem:[%s10283_s9 + $0xf4] sm:$0xf]  ;;  %v7922_v15 = vld [vmem:[%s10283_s9 + $0xf8] sm:$0xf] }
 0x354   : >> { %7919 = vst [vmem:[%s10279_s27 + $0xf0] sm:$0xf] %v7918_v22  ;;  %7921 = vst [vmem:[%s10279_s27 + $0xf4] sm:$0xf] %v7920_v49  ;;  %v7924_v5 = vld [vmem:[%s10283_s9 + $0xfc] sm:$0xf] }
 0x355   : >> { %7923 = vst [vmem:[%s10279_s27 + $0xf8] sm:$0xf] %v7922_v15  ;;  %7925 = vst [vmem:[%s10279_s27 + $0xfc] sm:$0xf] %v7924_v5  ;;  %s13552_s29 = smov (%p7927_p11, %s7926_s29), 0  ;;  %s7792_s16 = sadd.s32 1, %s10291_s16  }
 0x356   : >> { %s8931_s11 = sshll.u32 %s13552_s29, 8  ;;  %p7791_p12 = scmp.ge.s32.totalorder %s7792_s16, %s13172_s15 }
 0x357   : >> { %s7931_s9 = scalar_lea.vmem %s11733_s10, %s8931_s11 [#allocation2]   ;;  %s7932_s27 = scalar_lea.vmem %s13166_s12, %s8931_s11  }
 0x358   : >> { %s13545_s14 = smov %s13552_s29  ;;  %7794 = sbr.rel (!%p7791_p12) target bundleno = 811 (0x32b), region = 143 }
 0x35f PF: > { %s13340_s17 = sand.u32 63, %s13550_s23   ;;  %s9070_s18 = sshll.u32 %s13172_s15, 8 }
 0x360   : > { %s7937_s19 = scalar_lea.vmem %s11733_s10, %s9070_s18 [#allocation2]   ;;  %s7939_s20 = scalar_lea.vmem %s13166_s12, %s9070_s18  }
 0x361   : > { %p8936_p13 = scmp.le.s32.totalorder %s13340_s17, 0 }
 0x362   : > { %s10293_s21 = smov (!%p8936_p13), %s7939_s20   ;;  %s10297_s22 = smov (!%p8936_p13), %s7937_s19  }
 0x363   : > { %8219 = sbr.rel (%p8936_p13) target bundleno = 884 (0x374), region = 148  ;;  %s10301_s26 = smov (!%p8936_p13), 0  }
 0x364   : > { %s10305_s30 = smov (!%p8936_p13), 0  }
 0x36a LB: >> { %v7949_v41 = vld [vmem:[%s10299_s22] sm:$0xf]  ;;  %s7951_s23 = sadd.s32 1, %s10303_s26  ;;  %s7943_s30 = sadd.s32 1, %s10307_s30   ;;  %s10307_s30 = sphi %s10305_s30, %s7943_s30   ;;  %s10303_s26 = sphi %s10301_s26, %s10302_s26   ;;  %s10299_s22 = sphi %s10297_s22, %s7956_s22   ;;  %s10295_s21 = sphi %s10293_s21, %s7957_s21  }
 0x36b   : >> { %7950 = vst [vmem:[%s10295_s21] sm:$0xf] %v7949_v41  ;;  %p7952_p0 = scmp.ge.s32.totalorder %s7951_s23, %s13340_s17  ;;  %p7942_p1 = scmp.ge.s32.totalorder %s7943_s30, %s13340_s17 }
 0x36d   : >> { %s13554_s23 = smov (%p7952_p0, %s7951_s23), 0  ;;  %7945 = sbr.rel (!%p7942_p1) target bundleno = 874 (0x36a), region = 154 }
 0x36e   : >> { %s8937_s10 = sshll.u32 %s13554_s23, 2  ;;  %s10302_s26 = smov %s13554_s23  }
 0x36f   : >> { %s7956_s22 = scalar_lea.vmem %s7937_s19, %s8937_s10 [#allocation2]   ;;  %s7957_s21 = scalar_lea.vmem %s7939_s20, %s8937_s10  }
 0x374 PF: > { %p14_p2 = scmp.ge.s32.totalorder %s10365_s28, 8   ;;  %s13546_s24 = smov %s10271_s25 }
 0x375   : > { %s13547_s25 = smov %s10373_s8  ;;  %s13548_s26 = smov %s10365_s28 }
 0x376   :  { %16 = sbr.rel (!%p14_p2) target bundleno = 2 (0x2), region = 165 }

// kernel: cnn_forward.5
= control target key start
LH: loop header
LB: loop body
LE: loop exit
PB: predicated region body
PF: predicated region fallthrough
CT: control target
= control target key end

     0   :  { %s4648_s24 = smov 0   ;;  %s4650_s25 = smov 0   ;;  %s5806_s0 = inlined_call_operand.vmem [shape: bf16[338,144], index: 0, kind: input, shape index: {}]   ;;  %s5807_s1 = inlined_call_operand.vmem [shape: bf16[338,144], index: 1, kind: input, shape index: {}]   ;;  %s5808_s2 = inlined_call_operand.vmem [shape: bf16[338,144], index: 2, kind: input, shape index: {}]   ;;  %s5809_s3 = inlined_call_operand.vmem [shape: bf16[338,144], index: 3, kind: input, shape index: {}]   ;;  %s5810_s4 = inlined_call_operand.vmem [shape: bf16[144,32], index: 4, kind: input, shape index: {}]   ;;  %s5811_s5 = inlined_call_operand.vmem [shape: f32[1,32], index: 5, kind: input, shape index: {}]   ;;  %s5812_s6 = inlined_call_operand.vmem [shape: f32[1,32], index: 6, kind: input, shape index: {}]   ;;  %s5813_s7 = inlined_call_operand.vmem [shape: bf16[338,32], index: 7, kind: output, shape index: {}]  }
   0x1   :  { %s4652_s26 = smov 0  }
   0x2 LB: > { %s4661_s27 = sadd.s32 4294967295, %s4573_s26   ;;  %s4663_s28 = sadd.s32 1, %s4573_s26   ;;  %s4573_s26 = sphi %s4652_s26, %s5820_s26   ;;  %s4569_s25 = sphi %s4650_s25, %s5819_s25   ;;  %s4565_s24 = sphi %s4648_s24, %s5818_s24  }
   0x3   : > { %s188_s29 = ssub.s32 %s4573_s26, %s4663_s28  ;;  %s191_s30 = sadd.s32 1, %s4569_s25 }
   0x4   : > { %p189_p0 = scmp.eq.s32.totalorder %s188_s29, 0  ;;  %p201_p1 = scmp.ne.s32.totalorder %s4569_s25, %s4565_s24 }
   0x5   : > { %p202_p2 = scmp.eq.s32.totalorder %s4661_s27, 1  ;;  %p3786_p3 = scmp.ge.s32.totalorder %s4573_s26, 1 }
   0x6   : > { %s4671_s8 = scalar_select %p189_p0, %s4569_s25, %s191_s30  }
   0x7   : > { %p4673_p4 = por %p202_p2, %p201_p1  ;;  %p315_p5 = scmp.lt.s32.totalorder %s4573_s26, 3 }
   0x9   : > { %p316_p6 = pnand %p3786_p3, %p315_p5 }
   0xa   : > { %v4680_v0 = vld [vmem:[%s5810_s4] sm:$0xff] (!%p316_p6)   ;;  %v4607_v1 = vmov (!%p316_p6), 0   ;;  %s4685_s12 = smul.u32 (!%p316_p6), 42, %s4661_s27  ;;  %v4692_v2 = vld [vmem:[%s5810_s4 + $0x8] sm:$0xff] (!%p316_p6)   ;;  %v4703_v3 = vld [vmem:[%s5810_s4 + $0x10] sm:$0xff] (!%p316_p6)   ;;  %vm764_vm0 = vcmask (!%p316_p6), 130048  }
   0xb   : > { %319 = sbr.rel (%p316_p6) target bundleno = 691 (0x2b3), region = 48  ;;  %828 = vmatprep.subr.bf16.mxu0 (!%p316_p6), %v4607_v1  ;;  %1461 = vmatprep.subr.bf16.mxu1 (!%p316_p6), %v4607_v1  ;;  %v4724_v4 = vld [vmem:[%s5810_s4 + $0x18] sm:$0xff] (!%p316_p6)   ;;  %v4739_v7 = vld [vmem:[%s5810_s4 + $0x20] sm:$0xff] (!%p316_p6)   ;;  %v4748_v8 = vld [vmem:[%s5810_s4 + $0x28] sm:$0xff] (!%p316_p6)   ;;  %s382_s20 = sand.u32 (!%p316_p6), 1, %s4565_s24   ;;  %vm3324_vm1 = vcmask (!%p316_p6), 257024  }
   0xc   : > { %829 = vmatpush1.bf16.msra.mxu0 (!%p316_p6), %v4680_v0  ;;  %1462 = vmatpush1.bf16.msra.mxu1 (!%p316_p6), %v4680_v0  ;;  %p391_p7 = scmp.lt.s32.totalorder (!%p316_p6), %s4685_s12, 42  ;;  %v4757_v9 = vld [vmem:[%s5810_s4 + $0x30] sm:$0xff] (!%p316_p6)   ;;  %v4766_v10 = vld [vmem:[%s5810_s4 + $0x38] sm:$0xff] (!%p316_p6)   ;;  %v4775_v11 = vld [vmem:[%s5810_s4 + $0x40] sm:$0xff] (!%p316_p6)   ;;  %s4159_s22 = smul.u32 (!%p316_p6), 168, %s382_s20 }
   0xd   : > { %830 = vmatprep.subr.bf16.mxu0 (!%p316_p6), %v4607_v1  ;;  %1463 = vmatprep.subr.bf16.mxu1 (!%p316_p6), %v4607_v1 }
   0xe   : > { %s5366_s24 = scalar_lea.vmem (!%p316_p6), [#allocation2], %s4159_s22  }
  0x10   : > { %831 = vmatpush1.bf16.msra.mxu0 (!%p316_p6), %v4692_v2  ;;  %1464 = vmatpush1.bf16.msra.mxu1 (!%p316_p6), %v4692_v2 }
  0x11   : > { %832 = vmatprep.subr.bf16.mxu0 (!%p316_p6), %v4607_v1  ;;  %1465 = vmatprep.subr.bf16.mxu1 (!%p316_p6), %v4607_v1 }
  0x12   : > { %s392_s15 = scalar_select %p391_p7, %s4685_s12, 42 }
  0x13   : > { %s3375_s11 = ssub.s32 (%p4673_p4), 43, %s4685_s12 }
  0x14   : > { %s4707_s18 = sshll.u32 %s392_s15, 3  ;;  %833 = vmatpush1.bf16.msra.mxu0 %v4703_v3  ;;  %1466 = vmatpush1.bf16.msra.mxu1 %v4703_v3  ;;  %p3376_p8 = scmp.lt.s32.totalorder (%p4673_p4), %s3375_s11, 42 }
  0x15   : > { %s4713_s21 = scalar_lea.vmem %s5806_s0, %s4707_s18  ;;  %s4719_s26 = scalar_lea.vmem %s5807_s1, %s4707_s18  ;;  %834 = vmatprep.subr.bf16.mxu0 %v4607_v1  ;;  %1467 = vmatprep.subr.bf16.mxu1 %v4607_v1 }
  0x16   : > { %v4261_v5 = vld [vmem:[%s4713_s21 + $0x4] ss:$8 sps:$4 sm:$0xff]   ;;  %v4259_v12 = vld [vmem:[%s4713_s21] ss:$8 sps:$4 sm:$0xff]   ;;  %v4265_v14 = vld [vmem:[%s4713_s21 + $0x14] ss:$8 sps:$4 sm:$0xff]   ;;  %s4847_s30 = scalar_lea.vmem %s5808_s2, %s4707_s18  ;;  %s4855_s13 = scalar_lea.vmem %s5809_s3, %s4707_s18 }
  0x17   : > { %v4264_v6 = vld [vmem:[%s4719_s26 + $0x4] ss:$8 sps:$4 sm:$0xff]   ;;  %3846 = vmatprep.mubr.msk.bf16.mxu0 %vm764_vm0, %v4261_v5  ;;  %v4262_v13 = vld [vmem:[%s4719_s26] ss:$8 sps:$4 sm:$0xff]   ;;  %v4267_v15 = vld [vmem:[%s4719_s26 + $0x14] ss:$8 sps:$4 sm:$0xff]  }
  0x18   : > { %3911 = vmatprep.mubr.msk.bf16.mxu1 %vm764_vm0, %v4264_v6  ;;  %835 = vmatpush1.bf16.msra.mxu0 %v4724_v4  ;;  %v4269_v16 = vld [vmem:[%s4713_s21 + $0x10] ss:$8 sps:$4 sm:$0xff]   ;;  %v4271_v18 = vld [vmem:[%s4713_s21 + $0x24] ss:$8 sps:$4 sm:$0xff]   ;;  %v4275_v20 = vld [vmem:[%s4713_s21 + $0x20] ss:$8 sps:$4 sm:$0xff]  }
  0x19   : > { %1468 = vmatpush1.bf16.msra.mxu1 %v4724_v4  ;;  %836 = vmatprep.subr.bf16.mxu0 %v4607_v1  ;;  %v4270_v17 = vld [vmem:[%s4719_s26 + $0x10] ss:$8 sps:$4 sm:$0xff]   ;;  %v4273_v19 = vld [vmem:[%s4719_s26 + $0x24] ss:$8 sps:$4 sm:$0xff]   ;;  %v4276_v21 = vld [vmem:[%s4719_s26 + $0x20] ss:$8 sps:$4 sm:$0xff]  }
  0x1a   : > { %1469 = vmatprep.subr.bf16.mxu1 %v4607_v1  ;;  %v4277_v22 = vld [vmem:[%s4713_s21 + $0x34] ss:$8 sps:$4 sm:$0xff]   ;;  %v4281_v24 = vld [vmem:[%s4713_s21 + $0x30] ss:$8 sps:$4 sm:$0xff]   ;;  %v4283_v26 = vld [vmem:[%s4713_s21 + $0x44] ss:$8 sps:$4 sm:$0xff]  }
  0x1b   : > { %v4279_v23 = vld [vmem:[%s4719_s26 + $0x34] ss:$8 sps:$4 sm:$0xff]   ;;  %v4282_v25 = vld [vmem:[%s4719_s26 + $0x30] ss:$8 sps:$4 sm:$0xff]   ;;  %v4285_v27 = vld [vmem:[%s4719_s26 + $0x44] ss:$8 sps:$4 sm:$0xff]  }
  0x1c   : > { %837 = vmatpush1.bf16.msra.mxu0 %v4739_v7  ;;  %v4287_v28 = vld [vmem:[%s4713_s21 + $0x40] ss:$8 sps:$4 sm:$0xff]   ;;  %v4289_v30 = vld [vmem:[%s4713_s21 + $0x54] ss:$8 sps:$4 sm:$0xff]   ;;  %v4293_v32 = vld [vmem:[%s4713_s21 + $0x50] ss:$8 sps:$4 sm:$0xff]  }
  0x1d   : > { %1470 = vmatpush1.bf16.msra.mxu1 %v4739_v7  ;;  %838 = vmatprep.subr.bf16.mxu0 %v4607_v1  ;;  %v4288_v29 = vld [vmem:[%s4719_s26 + $0x40] ss:$8 sps:$4 sm:$0xff]   ;;  %v4291_v31 = vld [vmem:[%s4719_s26 + $0x54] ss:$8 sps:$4 sm:$0xff]   ;;  %v4294_v33 = vld [vmem:[%s4719_s26 + $0x50] ss:$8 sps:$4 sm:$0xff]  }
  0x1e   : > { %1471 = vmatprep.subr.bf16.mxu1 %v4607_v1  ;;  %v4295_v34 = vld [vmem:[%s4713_s21 + $0x64] ss:$8 sps:$4 sm:$0xff]   ;;  %v4299_v36 = vld [vmem:[%s4713_s21 + $0x60] ss:$8 sps:$4 sm:$0xff]   ;;  %v4301_v38 = vld [vmem:[%s4713_s21 + $0x74] ss:$8 sps:$4 sm:$0xff]  }
  0x1f   : > { %v4297_v35 = vld [vmem:[%s4719_s26 + $0x64] ss:$8 sps:$4 sm:$0xff]   ;;  %v4300_v37 = vld [vmem:[%s4719_s26 + $0x60] ss:$8 sps:$4 sm:$0xff]   ;;  %v4303_v39 = vld [vmem:[%s4719_s26 + $0x74] ss:$8 sps:$4 sm:$0xff]  }
  0x20   : > { %839 = vmatpush1.bf16.msra.mxu0 %v4748_v8  ;;  %v4305_v40 = vld [vmem:[%s4713_s21 + $0x70] ss:$8 sps:$4 sm:$0xff]   ;;  %v4307_v42 = vld [vmem:[%s4713_s21 + $0x84] ss:$8 sps:$4 sm:$0xff]   ;;  %v4311_v44 = vld [vmem:[%s4713_s21 + $0x80] ss:$8 sps:$4 sm:$0xff]  }
  0x21   : > { %1472 = vmatpush1.bf16.msra.mxu1 %v4748_v8  ;;  %840 = vmatprep.subr.bf16.mxu0 %v4607_v1  ;;  %v4306_v41 = vld [vmem:[%s4719_s26 + $0x70] ss:$8 sps:$4 sm:$0xff]   ;;  %v4309_v43 = vld [vmem:[%s4719_s26 + $0x84] ss:$8 sps:$4 sm:$0xff]   ;;  %v4312_v45 = vld [vmem:[%s4719_s26 + $0x80] ss:$8 sps:$4 sm:$0xff]  }
  0x22   : > { %1473 = vmatprep.subr.bf16.mxu1 %v4607_v1  ;;  %v4313_v46 = vld [vmem:[%s4713_s21 + $0x94] ss:$8 sps:$4 sm:$0xff]   ;;  %v4317_v48 = vld [vmem:[%s4713_s21 + $0x90] ss:$8 sps:$4 sm:$0xff]   ;;  %v4319_v50 = vld [vmem:[%s4713_s21 + $0xa4] ss:$8 sps:$4 sm:$0xff]  }
  0x23   : > { %v4315_v47 = vld [vmem:[%s4719_s26 + $0x94] ss:$8 sps:$4 sm:$0xff]   ;;  %v4318_v49 = vld [vmem:[%s4719_s26 + $0x90] ss:$8 sps:$4 sm:$0xff]   ;;  %v4321_v51 = vld [vmem:[%s4719_s26 + $0xa4] ss:$8 sps:$4 sm:$0xff]  }
  0x24   : > { %841 = vmatpush1.bf16.msra.mxu0 %v4757_v9  ;;  %v4323_v52 = vld [vmem:[%s4713_s21 + $0xa0] ss:$8 sps:$4 sm:$0xff]   ;;  %v4325_v54 = vld [vmem:[%s4713_s21 + $0xb4] ss:$8 sps:$4 sm:$0xff]   ;;  %v4329_v56 = vld [vmem:[%s4713_s21 + $0xb0] ss:$8 sps:$4 sm:$0xff]  }
  0x25   : > { %1474 = vmatpush1.bf16.msra.mxu1 %v4757_v9  ;;  %842 = vmatprep.subr.bf16.mxu0 %v4607_v1  ;;  %v4324_v53 = vld [vmem:[%s4719_s26 + $0xa0] ss:$8 sps:$4 sm:$0xff]   ;;  %v4327_v55 = vld [vmem:[%s4719_s26 + $0xb4] ss:$8 sps:$4 sm:$0xff]   ;;  %v4330_v57 = vld [vmem:[%s4719_s26 + $0xb0] ss:$8 sps:$4 sm:$0xff]  }
  0x26   : > { %1475 = vmatprep.subr.bf16.mxu1 %v4607_v1  ;;  %v4331_v58 = vld [vmem:[%s4713_s21 + $0xc4] ss:$8 sps:$4 sm:$0xff]   ;;  %v4335_v60 = vld [vmem:[%s4713_s21 + $0xc0] ss:$8 sps:$4 sm:$0xff]   ;;  %v4337_v62 = vld [vmem:[%s4713_s21 + $0xd4] ss:$8 sps:$4 sm:$0xff]  }
  0x27   : > { %v4333_v59 = vld [vmem:[%s4719_s26 + $0xc4] ss:$8 sps:$4 sm:$0xff]   ;;  %v4336_v61 = vld [vmem:[%s4719_s26 + $0xc0] ss:$8 sps:$4 sm:$0xff]   ;;  %v4339_v63 = vld [vmem:[%s4719_s26 + $0xd4] ss:$8 sps:$4 sm:$0xff]  }
  0x28   : > { %843 = vmatpush1.bf16.msra.mxu0 %v4766_v10  ;;  %v4348_v5 = vld [vmem:[%s4719_s26 + $0xe0] ss:$8 sps:$4 sm:$0xff]   ;;  %v4349_v6 = vld [vmem:[%s4713_s21 + $0xf4] ss:$8 sps:$4 sm:$0xff]  }
  0x29   : > { %1476 = vmatpush1.bf16.msra.mxu1 %v4766_v10  ;;  %844 = vmatprep.subr.bf16.mxu0 %v4607_v1 }
  0x2a   : > { %1477 = vmatprep.subr.bf16.mxu1 %v4607_v1 }
  0x2c   : > { %845 = vmatpush1.bf16.msra.mxu0 %v4775_v11 }
  0x2d   : > { %1478 = vmatpush1.bf16.msra.mxu1 %v4775_v11  ;;  %2124 = vmatprep.subr.bf16.mxu0 %v4607_v1 }
  0x2e   : > { %2787 = vmatprep.subr.bf16.mxu1 %v4607_v1 }
  0x2f   : > { %861 = vmatmul.mubr.bf16.vlgmr.msra.gmra.mrb[0].mxu0 %v4259_v12  ;;  %v4359_v12 = vld [vmem:[%s4713_s21 + $0x100] ss:$8 sps:$4 sm:$0xff]  }
  0x30   : > { %1494 = vmatmul.mubr.bf16.vlgmr.msra.gmra.mrb[0].mxu1 %v4262_v13  ;;  %2125 = vmatpush1.bf16.msra.mxu0 %v4680_v0  ;;  %v4360_v13 = vld [vmem:[%s4719_s26 + $0x100] ss:$8 sps:$4 sm:$0xff]  }
  0x31   : > { %2788 = vmatpush1.bf16.msra.mxu1 %v4680_v0  ;;  %3847 = vmatprep.mubr.msk.bf16.mxu0 %vm764_vm0, %v4265_v14  ;;  %v4341_v0 = vld [vmem:[%s4713_s21 + $0xd0] ss:$8 sps:$4 sm:$0xff]   ;;  %v4361_v14 = vld [vmem:[%s4713_s21 + $0x114] ss:$8 sps:$4 sm:$0xff]  }
  0x32   : > { %3912 = vmatprep.mubr.msk.bf16.mxu1 %vm764_vm0, %v4267_v15  ;;  %2126 = vmatprep.subr.bf16.mxu0 %v4607_v1  ;;  %v4363_v15 = vld [vmem:[%s4719_s26 + $0x114] ss:$8 sps:$4 sm:$0xff]  }
  0x33   : > { %2789 = vmatprep.subr.bf16.mxu1 %v4607_v1 }
  0x34   : > { %2127 = vmatpush1.bf16.msra.mxu0 %v4692_v2 }
  0x35   : > { %2790 = vmatpush1.bf16.msra.mxu1 %v4692_v2  ;;  %2128 = vmatprep.subr.bf16.mxu0 %v4607_v1  ;;  %v4343_v2 = vld [vmem:[%s4713_s21 + $0xe4] ss:$8 sps:$4 sm:$0xff]  }
  0x36   : > { %2791 = vmatprep.subr.bf16.mxu1 %v4607_v1 }
  0x37   : > { %869 = vmatmul.mubr.bf16.gmra.mrb[4].mxu0 %v4269_v16  ;;  %v4365_v16 = vld [vmem:[%s4713_s21 + $0x110] ss:$8 sps:$4 sm:$0xff]  }
  0x38   : > { %1502 = vmatmul.mubr.bf16.gmra.mrb[4].mxu1 %v4270_v17  ;;  %3848 = vmatprep.mubr.msk.bf16.mxu0 %vm764_vm0, %v4271_v18  ;;  %v4366_v17 = vld [vmem:[%s4719_s26 + $0x110] ss:$8 sps:$4 sm:$0xff]   ;;  %v4367_v18 = vld [vmem:[%s4713_s21 + $0x124] ss:$8 sps:$4 sm:$0xff]  }
  0x39   : > { %3913 = vmatprep.mubr.msk.bf16.mxu1 %vm764_vm0, %v4273_v19  ;;  %2129 = vmatpush1.bf16.msra.mxu0 %v4703_v3  ;;  %v4369_v19 = vld [vmem:[%s4719_s26 + $0x124] ss:$8 sps:$4 sm:$0xff]  }
  0x3a   : > { %2792 = vmatpush1.bf16.msra.mxu1 %v4703_v3  ;;  %2130 = vmatprep.subr.bf16.mxu0 %v4607_v1  ;;  %v4345_v3 = vld [vmem:[%s4719_s26 + $0xe4] ss:$8 sps:$4 sm:$0xff]  }
  0x3b   : > { %2793 = vmatprep.subr.bf16.mxu1 %v4607_v1 }
  0x3d   : > { %2131 = vmatpush1.bf16.msra.mxu0 %v4724_v4 }
  0x3e   : > { %2794 = vmatpush1.bf16.msra.mxu1 %v4724_v4  ;;  %2132 = vmatprep.subr.bf16.mxu0 %v4607_v1  ;;  %v4347_v4 = vld [vmem:[%s4713_s21 + $0xe0] ss:$8 sps:$4 sm:$0xff]  }
  0x3f   : > { %2795 = vmatprep.subr.bf16.mxu1 %v4607_v1  ;;  %877 = vmatmul.mubr.bf16.gmra.mrb[8].mxu0 %v4275_v20  ;;  %v4371_v20 = vld [vmem:[%s4713_s21 + $0x120] ss:$8 sps:$4 sm:$0xff]  }
  0x40   : > { %1510 = vmatmul.mubr.bf16.gmra.mrb[8].mxu1 %v4276_v21  ;;  %3849 = vmatprep.mubr.msk.bf16.mxu0 %vm764_vm0, %v4277_v22  ;;  %v4372_v21 = vld [vmem:[%s4719_s26 + $0x120] ss:$8 sps:$4 sm:$0xff]   ;;  %v4373_v22 = vld [vmem:[%s4713_s21 + $0x134] ss:$8 sps:$4 sm:$0xff]  }
  0x41   : > { %3914 = vmatprep.mubr.msk.bf16.mxu1 %vm764_vm0, %v4279_v23  ;;  %2133 = vmatpush1.bf16.msra.mxu0 %v4739_v7  ;;  %v4375_v23 = vld [vmem:[%s4719_s26 + $0x134] ss:$8 sps:$4 sm:$0xff]  }
  0x42   : > { %2796 = vmatpush1.bf16.msra.mxu1 %v4739_v7  ;;  %2134 = vmatprep.subr.bf16.mxu0 %v4607_v1  ;;  %v4351_v7 = vld [vmem:[%s4719_s26 + $0xf4] ss:$8 sps:$4 sm:$0xff]  }
  0x43   : > { %2797 = vmatprep.subr.bf16.mxu1 %v4607_v1 }
  0x45   : > { %2135 = vmatpush1.bf16.msra.mxu0 %v4748_v8 }
  0x46   : > { %2798 = vmatpush1.bf16.msra.mxu1 %v4748_v8  ;;  %2136 = vmatprep.subr.bf16.mxu0 %v4607_v1  ;;  %v4353_v8 = vld [vmem:[%s4713_s21 + $0xf0] ss:$8 sps:$4 sm:$0xff]  }
  0x47   : > { %2799 = vmatprep.subr.bf16.mxu1 %v4607_v1  ;;  %885 = vmatmul.mubr.bf16.gmra.mrb[12].mxu0 %v4281_v24  ;;  %v4377_v24 = vld [vmem:[%s4713_s21 + $0x130] ss:$8 sps:$4 sm:$0xff]  }
  0x48   : > { %1518 = vmatmul.mubr.bf16.gmra.mrb[12].mxu1 %v4282_v25  ;;  %3850 = vmatprep.mubr.msk.bf16.mxu0 %vm764_vm0, %v4283_v26  ;;  %v4378_v25 = vld [vmem:[%s4719_s26 + $0x130] ss:$8 sps:$4 sm:$0xff]   ;;  %v4379_v26 = vld [vmem:[%s4713_s21 + $0x144] ss:$8 sps:$4 sm:$0xff]  }
  0x49   : > { %3915 = vmatprep.mubr.msk.bf16.mxu1 %vm764_vm0, %v4285_v27  ;;  %2137 = vmatpush1.bf16.msra.mxu0 %v4757_v9  ;;  %v4381_v27 = vld [vmem:[%s4719_s26 + $0x144] ss:$8 sps:$4 sm:$0xff]  }
  0x4a   : > { %2800 = vmatpush1.bf16.msra.mxu1 %v4757_v9  ;;  %2138 = vmatprep.subr.bf16.mxu0 %v4607_v1  ;;  %v4354_v9 = vld [vmem:[%s4719_s26 + $0xf0] ss:$8 sps:$4 sm:$0xff]  }
  0x4b   : > { %2801 = vmatprep.subr.bf16.mxu1 %v4607_v1 }
  0x4d   : > { %2139 = vmatpush1.bf16.msra.mxu0 %v4766_v10 }
  0x4e   : > { %2802 = vmatpush1.bf16.msra.mxu1 %v4766_v10  ;;  %2140 = vmatprep.subr.bf16.mxu0 %v4607_v1  ;;  %v4355_v10 = vld [vmem:[%s4713_s21 + $0x104] ss:$8 sps:$4 sm:$0xff]  }
  0x4f   : > { %2803 = vmatprep.subr.bf16.mxu1 %v4607_v1  ;;  %893 = vmatmul.mubr.bf16.gmra.mrb[16].mxu0 %v4287_v28  ;;  %v4342_v1 = vld [vmem:[%s4719_s26 + $0xd0] ss:$8 sps:$4 sm:$0xff]   ;;  %v4383_v28 = vld [vmem:[%s4713_s21 + $0x140] ss:$8 sps:$4 sm:$0xff]  }
  0x50   : > { %1526 = vmatmul.mubr.bf16.gmra.mrb[16].mxu1 %v4288_v29  ;;  %3851 = vmatprep.mubr.msk.bf16.mxu0 %vm764_vm0, %v4289_v30  ;;  %v4384_v29 = vld [vmem:[%s4719_s26 + $0x140] ss:$8 sps:$4 sm:$0xff]   ;;  %v4387_v30 = vld [vmem:[%s4847_s30 + $0x4] ss:$8 sps:$4 sm:$0xff]  }
  0x51   : > { %3916 = vmatprep.mubr.msk.bf16.mxu1 %vm764_vm0, %v4291_v31  ;;  %2141 = vmatpush1.bf16.msra.mxu0 %v4775_v11  ;;  %v4390_v31 = vld [vmem:[%s4855_s13 + $0x4] ss:$8 sps:$4 sm:$0xff]  }
  0x52   : > { %2804 = vmatpush1.bf16.msra.mxu1 %v4775_v11  ;;  %v4357_v11 = vld [vmem:[%s4719_s26 + $0x104] ss:$8 sps:$4 sm:$0xff]  }
  0x57   : > { %901 = vmatmul.mubr.bf16.gmra.mrb[20].mxu0 %v4293_v32  ;;  %v4385_v32 = vld [vmem:[%s4847_s30] ss:$8 sps:$4 sm:$0xff]  }
  0x58   : > { %1534 = vmatmul.mubr.bf16.gmra.mrb[20].mxu1 %v4294_v33  ;;  %3852 = vmatprep.mubr.msk.bf16.mxu0 %vm764_vm0, %v4295_v34  ;;  %v4388_v33 = vld [vmem:[%s4855_s13] ss:$8 sps:$4 sm:$0xff]   ;;  %v4391_v34 = vld [vmem:[%s4847_s30 + $0x14] ss:$8 sps:$4 sm:$0xff]  }
  0x59   : > { %3917 = vmatprep.mubr.msk.bf16.mxu1 %vm764_vm0, %v4297_v35  ;;  %v4393_v35 = vld [vmem:[%s4855_s13 + $0x14] ss:$8 sps:$4 sm:$0xff]  }
  0x5f   : > { %909 = vmatmul.mubr.bf16.gmra.mrb[24].mxu0 %v4299_v36  ;;  %v4395_v36 = vld [vmem:[%s4847_s30 + $0x10] ss:$8 sps:$4 sm:$0xff]  }
  0x60   : > { %1542 = vmatmul.mubr.bf16.gmra.mrb[24].mxu1 %v4300_v37  ;;  %3853 = vmatprep.mubr.msk.bf16.mxu0 %vm764_vm0, %v4301_v38  ;;  %v4396_v37 = vld [vmem:[%s4855_s13 + $0x10] ss:$8 sps:$4 sm:$0xff]   ;;  %v4397_v38 = vld [vmem:[%s4847_s30 + $0x24] ss:$8 sps:$4 sm:$0xff]  }
  0x61   : > { %3918 = vmatprep.mubr.msk.bf16.mxu1 %vm764_vm0, %v4303_v39  ;;  %v4399_v39 = vld [vmem:[%s4855_s13 + $0x24] ss:$8 sps:$4 sm:$0xff]  }
  0x67   : > { %917 = vmatmul.mubr.bf16.gmra.mrb[28].mxu0 %v4305_v40  ;;  %v4401_v40 = vld [vmem:[%s4847_s30 + $0x20] ss:$8 sps:$4 sm:$0xff]  }
  0x68   : > { %1550 = vmatmul.mubr.bf16.gmra.mrb[28].mxu1 %v4306_v41  ;;  %3854 = vmatprep.mubr.msk.bf16.mxu0 %vm764_vm0, %v4307_v42  ;;  %v4402_v41 = vld [vmem:[%s4855_s13 + $0x20] ss:$8 sps:$4 sm:$0xff]   ;;  %v4403_v42 = vld [vmem:[%s4847_s30 + $0x34] ss:$8 sps:$4 sm:$0xff]  }
  0x69   : > { %3919 = vmatprep.mubr.msk.bf16.mxu1 %vm764_vm0, %v4309_v43  ;;  %v4405_v43 = vld [vmem:[%s4855_s13 + $0x34] ss:$8 sps:$4 sm:$0xff]  }
  0x6f   : > { %925 = vmatmul.mubr.bf16.gmra.mrb[32].mxu0 %v4311_v44  ;;  %v4407_v44 = vld [vmem:[%s4847_s30 + $0x30] ss:$8 sps:$4 sm:$0xff]  }
  0x70   : > { %1558 = vmatmul.mubr.bf16.gmra.mrb[32].mxu1 %v4312_v45  ;;  %3855 = vmatprep.mubr.msk.bf16.mxu0 %vm764_vm0, %v4313_v46  ;;  %v4408_v45 = vld [vmem:[%s4855_s13 + $0x30] ss:$8 sps:$4 sm:$0xff]   ;;  %v4409_v46 = vld [vmem:[%s4847_s30 + $0x44] ss:$8 sps:$4 sm:$0xff]  }
  0x71   : > { %3920 = vmatprep.mubr.msk.bf16.mxu1 %vm764_vm0, %v4315_v47  ;;  %v4411_v47 = vld [vmem:[%s4855_s13 + $0x44] ss:$8 sps:$4 sm:$0xff]  }
  0x77   : > { %933 = vmatmul.mubr.bf16.gmra.mrb[36].mxu0 %v4317_v48  ;;  %v4413_v48 = vld [vmem:[%s4847_s30 + $0x40] ss:$8 sps:$4 sm:$0xff]  }
  0x78   : > { %1566 = vmatmul.mubr.bf16.gmra.mrb[36].mxu1 %v4318_v49  ;;  %3856 = vmatprep.mubr.msk.bf16.mxu0 %vm764_vm0, %v4319_v50  ;;  %v4414_v49 = vld [vmem:[%s4855_s13 + $0x40] ss:$8 sps:$4 sm:$0xff]   ;;  %v4415_v50 = vld [vmem:[%s4847_s30 + $0x54] ss:$8 sps:$4 sm:$0xff]  }
  0x79   : > { %3921 = vmatprep.mubr.msk.bf16.mxu1 %vm764_vm0, %v4321_v51  ;;  %v4417_v51 = vld [vmem:[%s4855_s13 + $0x54] ss:$8 sps:$4 sm:$0xff]  }
  0x7f   : > { %941 = vmatmul.mubr.bf16.gmra.mrb[40].mxu0 %v4323_v52  ;;  %v4419_v52 = vld [vmem:[%s4847_s30 + $0x50] ss:$8 sps:$4 sm:$0xff]  }
  0x80   : > { %1574 = vmatmul.mubr.bf16.gmra.mrb[40].mxu1 %v4324_v53  ;;  %3857 = vmatprep.mubr.msk.bf16.mxu0 %vm764_vm0, %v4325_v54  ;;  %v4420_v53 = vld [vmem:[%s4855_s13 + $0x50] ss:$8 sps:$4 sm:$0xff]   ;;  %v4421_v54 = vld [vmem:[%s4847_s30 + $0x64] ss:$8 sps:$4 sm:$0xff]  }
  0x81   : > { %3922 = vmatprep.mubr.msk.bf16.mxu1 %vm764_vm0, %v4327_v55  ;;  %v4423_v55 = vld [vmem:[%s4855_s13 + $0x64] ss:$8 sps:$4 sm:$0xff]  }
  0x87   : > { %949 = vmatmul.mubr.bf16.gmra.mrb[44].mxu0 %v4329_v56  ;;  %v4992_v56 = vld [vmem:[%s5811_s5] ss:$0 sm:$0xff] }
  0x88   : > { %1582 = vmatmul.mubr.bf16.gmra.mrb[44].mxu1 %v4330_v57  ;;  %3858 = vmatprep.mubr.msk.bf16.mxu0 %vm764_vm0, %v4331_v58  ;;  %v4999_v57 = vld [vmem:[%s5812_s6] ss:$0 sm:$0xff] }
  0x89   : > { %3923 = vmatprep.mubr.msk.bf16.mxu1 %vm764_vm0, %v4333_v59 }
  0x8f   : > { %957 = vmatmul.mubr.bf16.gmra.mrb[48].mxu0 %v4335_v60 }
  0x90   : > { %1590 = vmatmul.mubr.bf16.gmra.mrb[48].mxu1 %v4336_v61  ;;  %3859 = vmatprep.mubr.msk.bf16.mxu0 %vm764_vm0, %v4337_v62 }
  0x91   : > { %3924 = vmatprep.mubr.msk.bf16.mxu1 %vm764_vm0, %v4339_v63 }
  0x97   : > { %965 = vmatmul.mubr.bf16.gmra.mrb[52].mxu0 %v4341_v0  ;;  %v4425_v0 = vld [vmem:[%s4847_s30 + $0x60] ss:$8 sps:$4 sm:$0xff]  }
  0x98   : > { %1598 = vmatmul.mubr.bf16.gmra.mrb[52].mxu1 %v4342_v1  ;;  %3860 = vmatprep.mubr.msk.bf16.mxu0 %vm764_vm0, %v4343_v2  ;;  %v4426_v1 = vld [vmem:[%s4855_s13 + $0x60] ss:$8 sps:$4 sm:$0xff]  }
  0x99   : > { %3925 = vmatprep.mubr.msk.bf16.mxu1 %vm764_vm0, %v4345_v3 }
  0x9f   : > { %973 = vmatmul.mubr.bf16.gmra.mrb[56].mxu0 %v4347_v4  ;;  %v4427_v4 = vld [vmem:[%s4847_s30 + $0x74] ss:$8 sps:$4 sm:$0xff]  }
  0xa0   : > { %1606 = vmatmul.mubr.bf16.gmra.mrb[56].mxu1 %v4348_v5  ;;  %3861 = vmatprep.mubr.msk.bf16.mxu0 %vm764_vm0, %v4349_v6  ;;  %v4429_v5 = vld [vmem:[%s4855_s13 + $0x74] ss:$8 sps:$4 sm:$0xff]  }
  0xa1   : > { %3926 = vmatprep.mubr.msk.bf16.mxu1 %vm764_vm0, %v4351_v7 }
  0xa7   : > { %981 = vmatmul.mubr.bf16.gmra.mrb[60].mxu0 %v4353_v8 }
  0xa8   : > { %1614 = vmatmul.mubr.bf16.gmra.mrb[60].mxu1 %v4354_v9  ;;  %3862 = vmatprep.mubr.msk.bf16.mxu0 %vm764_vm0, %v4355_v10 }
  0xa9   : > { %3927 = vmatprep.mubr.msk.bf16.mxu1 %vm764_vm0, %v4357_v11 }
  0xaf   : > { %989 = vmatmul.mubr.bf16.gmra.mrb[64].mxu0 %v4359_v12 }
  0xb0   : > { %1622 = vmatmul.mubr.bf16.gmra.mrb[64].mxu1 %v4360_v13  ;;  %3863 = vmatprep.mubr.msk.bf16.mxu0 %vm764_vm0, %v4361_v14 }
  0xb1   : > { %3928 = vmatprep.mubr.msk.bf16.mxu1 %vm764_vm0, %v4363_v15 }
  0xb7   : > { %997 = vmatmul.mubr.bf16.gmra.mrb[68].mxu0 %v4365_v16 }
  0xb8   : > { %1630 = vmatmul.mubr.bf16.gmra.mrb[68].mxu1 %v4366_v17  ;;  %3864 = vmatprep.mubr.msk.bf16.mxu0 %vm764_vm0, %v4367_v18 }
  0xb9   : > { %3929 = vmatprep.mubr.msk.bf16.mxu1 %vm764_vm0, %v4369_v19 }
  0xbf   : > { %1005 = vmatmul.mubr.bf16.gmra.mrb[72].mxu0 %v4371_v20 }
  0xc0   : > { %1638 = vmatmul.mubr.bf16.gmra.mrb[72].mxu1 %v4372_v21  ;;  %3865 = vmatprep.mubr.msk.bf16.mxu0 %vm764_vm0, %v4373_v22 }
  0xc1   : > { %3930 = vmatprep.mubr.msk.bf16.mxu1 %vm764_vm0, %v4375_v23 }
  0xc7   : > { %1013 = vmatmul.mubr.bf16.gmra.mrb[76].mxu0 %v4377_v24 }
  0xc8   : > { %1646 = vmatmul.mubr.bf16.gmra.mrb[76].mxu1 %v4378_v25  ;;  %3866 = vmatprep.mubr.msk.bf16.mxu0 %vm764_vm0, %v4379_v26  ;;  %v4431_v26 = vld [vmem:[%s4847_s30 + $0x70] ss:$8 sps:$4 sm:$0xff]  }
  0xc9   : > { %3931 = vmatprep.mubr.msk.bf16.mxu1 %vm764_vm0, %v4381_v27  ;;  %v4432_v27 = vld [vmem:[%s4855_s13 + $0x70] ss:$8 sps:$4 sm:$0xff]  }
  0xcf   : > { %1021 = vmatmul.mubr.bf16.gmra.mrb[80].mxu0 %v4383_v28 }
  0xd0   : > { %1654 = vmatmul.mubr.bf16.gmra.mrb[80].mxu1 %v4384_v29  ;;  %3974 = vmatprep.mubr.msk.bf16.mxu0 %vm764_vm0, %v4387_v30  ;;  %v4433_v30 = vld [vmem:[%s4847_s30 + $0x84] ss:$8 sps:$4 sm:$0xff]  }
  0xd1   : > { %4037 = vmatprep.mubr.msk.bf16.mxu1 %vm764_vm0, %v4390_v31  ;;  %v4435_v31 = vld [vmem:[%s4855_s13 + $0x84] ss:$8 sps:$4 sm:$0xff]  }
  0xd7   : > { %2157 = vmatmul.mubr.bf16.vlgmr.msra.gmra.mrb[84].mxu0 %v4385_v32 }
  0xd8   : > { %2820 = vmatmul.mubr.bf16.vlgmr.msra.gmra.mrb[84].mxu1 %v4388_v33  ;;  %3975 = vmatprep.mubr.msk.bf16.mxu0 %vm764_vm0, %v4391_v34 }
  0xd9   : > { %4038 = vmatprep.mubr.msk.bf16.mxu1 %vm764_vm0, %v4393_v35 }
  0xdf   : > { %2165 = vmatmul.mubr.bf16.gmra.mrb[88].mxu0 %v4395_v36 }
  0xe0   : > { %2828 = vmatmul.mubr.bf16.gmra.mrb[88].mxu1 %v4396_v37  ;;  %3976 = vmatprep.mubr.msk.bf16.mxu0 %vm764_vm0, %v4397_v38 }
  0xe1   : > { %4039 = vmatprep.mubr.msk.bf16.mxu1 %vm764_vm0, %v4399_v39 }
  0xe7   : > { %2173 = vmatmul.mubr.bf16.gmra.mrb[92].mxu0 %v4401_v40 }
  0xe8   : > { %2836 = vmatmul.mubr.bf16.gmra.mrb[92].mxu1 %v4402_v41  ;;  %3977 = vmatprep.mubr.msk.bf16.mxu0 %vm764_vm0, %v4403_v42 }
  0xe9   : > { %4040 = vmatprep.mubr.msk.bf16.mxu1 %vm764_vm0, %v4405_v43 }
  0xef   : > { %2181 = vmatmul.mubr.bf16.gmra.mrb[96].mxu0 %v4407_v44 }
  0xf0   : > { %2844 = vmatmul.mubr.bf16.gmra.mrb[96].mxu1 %v4408_v45  ;;  %3978 = vmatprep.mubr.msk.bf16.mxu0 %vm764_vm0, %v4409_v46 }
  0xf1   : > { %4041 = vmatprep.mubr.msk.bf16.mxu1 %vm764_vm0, %v4411_v47 }
  0xf7   : > { %2189 = vmatmul.mubr.bf16.gmra.mrb[100].mxu0 %v4413_v48 }
  0xf8   : > { %2852 = vmatmul.mubr.bf16.gmra.mrb[100].mxu1 %v4414_v49  ;;  %3979 = vmatprep.mubr.msk.bf16.mxu0 %vm764_vm0, %v4415_v50 }
  0xf9   : > { %4042 = vmatprep.mubr.msk.bf16.mxu1 %vm764_vm0, %v4417_v51 }
  0xff   : > { %2197 = vmatmul.mubr.bf16.gmra.mrb[104].mxu0 %v4419_v52  ;;  %v4437_v52 = vld [vmem:[%s4847_s30 + $0x80] ss:$8 sps:$4 sm:$0xff]  }
 0x100   : > { %2860 = vmatmul.mubr.bf16.gmra.mrb[104].mxu1 %v4420_v53  ;;  %3980 = vmatprep.mubr.msk.bf16.mxu0 %vm764_vm0, %v4421_v54  ;;  %v4438_v53 = vld [vmem:[%s4855_s13 + $0x80] ss:$8 sps:$4 sm:$0xff]  }
 0x101   : > { %4043 = vmatprep.mubr.msk.bf16.mxu1 %vm764_vm0, %v4423_v55 }
 0x102   : > { %v862_v58 = vpop.f32.mrb[0].mxu0 }
 0x103   : > { %v1495_v59 = vpop.f32.mrb[0].mxu1  ;;  %v1035_v60 = vmul.f32 %v4992_v56, %v862_v58  ;;  %v864_v62 = vpop.f32.mrb[1].mxu0  ;;  %v4439_v58 = vld [vmem:[%s4847_s30 + $0x94] ss:$8 sps:$4 sm:$0xff]  }
 0x104   : > { %v1662_v61 = vmul.f32 %v4992_v56, %v1495_v59  ;;  %v1497_v63 = vpop.f32.mrb[1].mxu1  ;;  %v865_v2 = vpop.f32.mrb[2].mxu0  ;;  %v4441_v59 = vld [vmem:[%s4855_s13 + $0x94] ss:$8 sps:$4 sm:$0xff]  }
 0x105   : > { %v1498_v3 = vpop.f32.mrb[2].mxu1  ;;  %v1083_v6 = vadd.f32 %v4999_v57, %v1035_v60  ;;  %v1036_v8 = vmul.f32 %v4992_v56, %v865_v2  ;;  %v867_v10 = vpop.f32.mrb[3].mxu0 }
 0x106   : > { %v1704_v7 = vadd.f32 %v4999_v57, %v1662_v61  ;;  %v1663_v9 = vmul.f32 %v4992_v56, %v1498_v3  ;;  %v1500_v11 = vpop.f32.mrb[3].mxu1 }
 0x107   : > { %v1125_v12 = vmax.f32 %v1083_v6, 0.0  ;;  %v1084_v14 = vadd.f32 %v4999_v57, %v1036_v8  ;;  %2205 = vmatmul.mubr.bf16.gmra.mrb[108].mxu0 %v4425_v0 }
 0x108   : > { %v1746_v13 = vmax.f32 %v1704_v7, 0.0  ;;  %v1705_v15 = vadd.f32 %v4999_v57, %v1663_v9  ;;  %2868 = vmatmul.mubr.bf16.gmra.mrb[108].mxu1 %v4426_v1  ;;  %3981 = vmatprep.mubr.msk.bf16.mxu0 %vm764_vm0, %v4427_v4 }
 0x109   : > { %4044 = vmatprep.mubr.msk.bf16.mxu1 %vm764_vm0, %v4429_v5  ;;  %v1126_v17 = vmax.f32 %v1084_v14, 0.0 }
 0x10a   : > { %v5015_v16 = vmax.f32 %v1125_v12, %v1746_v13  ;;  %v1747_v18 = vmax.f32 %v1705_v15, 0.0  ;;  %v870_v19 = vpop.f32.mrb[4].mxu0 }
 0x10b   : > { %v1503_v20 = vpop.f32.mrb[4].mxu1  ;;  %v1037_v22 = vmul.f32 %v4992_v56, %v870_v19  ;;  %v872_v24 = vpop.f32.mrb[5].mxu0 }
 0x10c   : > { %v5017_v21 = vmax.f32 %v1126_v17, %v1747_v18  ;;  %v1664_v23 = vmul.f32 %v4992_v56, %v1503_v20  ;;  %v1505_v25 = vpop.f32.mrb[5].mxu1  ;;  %v873_v28 = vpop.f32.mrb[6].mxu0  ;;  %v4443_v17 = vld [vmem:[%s4847_s30 + $0x90] ss:$8 sps:$4 sm:$0xff]  }
 0x10d   : > { %v1506_v29 = vpop.f32.mrb[6].mxu1  ;;  %v1085_v32 = vadd.f32 %v4999_v57, %v1037_v22  ;;  %v1038_v34 = vmul.f32 %v4992_v56, %v873_v28  ;;  %v875_v36 = vpop.f32.mrb[7].mxu0  ;;  %v4444_v18 = vld [vmem:[%s4855_s13 + $0x90] ss:$8 sps:$4 sm:$0xff]   ;;  %v4445_v22 = vld [vmem:[%s4847_s30 + $0xa4] ss:$8 sps:$4 sm:$0xff]  }
 0x10e   : > { %v1706_v33 = vadd.f32 %v4999_v57, %v1664_v23  ;;  %v1665_v35 = vmul.f32 %v4992_v56, %v1506_v29  ;;  %v1508_v37 = vpop.f32.mrb[7].mxu1  ;;  %v4447_v23 = vld [vmem:[%s4855_s13 + $0xa4] ss:$8 sps:$4 sm:$0xff]  }
 0x10f   : > { %v1127_v38 = vmax.f32 %v1085_v32, 0.0  ;;  %v1086_v40 = vadd.f32 %v4999_v57, %v1038_v34  ;;  %2213 = vmatmul.mubr.bf16.gmra.mrb[112].mxu0 %v4431_v26 }
 0x110   : > { %v1748_v39 = vmax.f32 %v1706_v33, 0.0  ;;  %v1707_v41 = vadd.f32 %v4999_v57, %v1665_v35  ;;  %2876 = vmatmul.mubr.bf16.gmra.mrb[112].mxu1 %v4432_v27  ;;  %3982 = vmatprep.mubr.msk.bf16.mxu0 %vm764_vm0, %v4433_v30 }
 0x111   : > { %4045 = vmatprep.mubr.msk.bf16.mxu1 %vm764_vm0, %v4435_v31  ;;  %v1128_v43 = vmax.f32 %v1086_v40, 0.0 }
 0x112   : > { %v5033_v42 = vmax.f32 %v1127_v38, %v1748_v39  ;;  %v1749_v44 = vmax.f32 %v1707_v41, 0.0  ;;  %v878_v45 = vpop.f32.mrb[8].mxu0 }
 0x113   : > { %v1511_v46 = vpop.f32.mrb[8].mxu1  ;;  %v1039_v48 = vmul.f32 %v4992_v56, %v878_v45  ;;  %v880_v50 = vpop.f32.mrb[9].mxu0  ;;  %v4449_v45 = vld [vmem:[%s4847_s30 + $0xa0] ss:$8 sps:$4 sm:$0xff]  }
 0x114   : > { %v5035_v47 = vmax.f32 %v1128_v43, %v1749_v44  ;;  %v1666_v49 = vmul.f32 %v4992_v56, %v1511_v46  ;;  %v1513_v51 = vpop.f32.mrb[9].mxu1  ;;  %v881_v54 = vpop.f32.mrb[10].mxu0  ;;  %v4450_v46 = vld [vmem:[%s4855_s13 + $0xa0] ss:$8 sps:$4 sm:$0xff]   ;;  %v4451_v50 = vld [vmem:[%s4847_s30 + $0xb4] ss:$8 sps:$4 sm:$0xff]  }
 0x115   : > { %v1514_v55 = vpop.f32.mrb[10].mxu1  ;;  %v1087_v60 = vadd.f32 %v4999_v57, %v1039_v48  ;;  %v1040_v62 = vmul.f32 %v4992_v56, %v881_v54  ;;  %v883_v0 = vpop.f32.mrb[11].mxu0  ;;  %v4453_v51 = vld [vmem:[%s4855_s13 + $0xb4] ss:$8 sps:$4 sm:$0xff]  }
 0x116   : > { %v1708_v61 = vadd.f32 %v4999_v57, %v1666_v49  ;;  %v1667_v63 = vmul.f32 %v4992_v56, %v1514_v55  ;;  %v1516_v1 = vpop.f32.mrb[11].mxu1 }
 0x117   : > { %v1129_v2 = vmax.f32 %v1087_v60, 0.0  ;;  %v1088_v4 = vadd.f32 %v4999_v57, %v1040_v62  ;;  %2221 = vmatmul.mubr.bf16.gmra.mrb[116].mxu0 %v4437_v52 }
 0x118   : > { %v1750_v3 = vmax.f32 %v1708_v61, 0.0  ;;  %v1709_v5 = vadd.f32 %v4999_v57, %v1667_v63  ;;  %2884 = vmatmul.mubr.bf16.gmra.mrb[116].mxu1 %v4438_v53  ;;  %3983 = vmatprep.mubr.msk.bf16.mxu0 %vm764_vm0, %v4439_v58 }
 0x119   : > { %4046 = vmatprep.mubr.msk.bf16.mxu1 %vm764_vm0, %v4441_v59  ;;  %v1130_v7 = vmax.f32 %v1088_v4, 0.0 }
 0x11a   : > { %v5051_v6 = vmax.f32 %v1129_v2, %v1750_v3  ;;  %v1751_v8 = vmax.f32 %v1709_v5, 0.0  ;;  %v886_v9 = vpop.f32.mrb[12].mxu0 }
 0x11b   : > { %v1519_v10 = vpop.f32.mrb[12].mxu1  ;;  %v1041_v12 = vmul.f32 %v4992_v56, %v886_v9  ;;  %v888_v14 = vpop.f32.mrb[13].mxu0 }
 0x11c   : > { %v5053_v11 = vmax.f32 %v1130_v7, %v1751_v8  ;;  %v1668_v13 = vmul.f32 %v4992_v56, %v1519_v10  ;;  %v1521_v15 = vpop.f32.mrb[13].mxu1  ;;  %v889_v19 = vpop.f32.mrb[14].mxu0 }
 0x11d   : > { %v1522_v20 = vpop.f32.mrb[14].mxu1  ;;  %v1089_v24 = vadd.f32 %v4999_v57, %v1041_v12  ;;  %v1042_v26 = vmul.f32 %v4992_v56, %v889_v19  ;;  %v891_v28 = vpop.f32.mrb[15].mxu0  ;;  %v4455_v12 = vld [vmem:[%s4847_s30 + $0xb0] ss:$8 sps:$4 sm:$0xff]  }
 0x11e   : > { %v1710_v25 = vadd.f32 %v4999_v57, %v1668_v13  ;;  %v1669_v27 = vmul.f32 %v4992_v56, %v1522_v20  ;;  %v1524_v29 = vpop.f32.mrb[15].mxu1  ;;  %v4456_v13 = vld [vmem:[%s4855_s13 + $0xb0] ss:$8 sps:$4 sm:$0xff]  }
 0x11f   : > { %v1131_v30 = vmax.f32 %v1089_v24, 0.0  ;;  %v1090_v32 = vadd.f32 %v4999_v57, %v1042_v26  ;;  %2229 = vmatmul.mubr.bf16.gmra.mrb[120].mxu0 %v4443_v17  ;;  %v4457_v17 = vld [vmem:[%s4847_s30 + $0xc4] ss:$8 sps:$4 sm:$0xff]  }
 0x120   : > { %v1752_v31 = vmax.f32 %v1710_v25, 0.0  ;;  %v1711_v33 = vadd.f32 %v4999_v57, %v1669_v27  ;;  %2892 = vmatmul.mubr.bf16.gmra.mrb[120].mxu1 %v4444_v18  ;;  %3984 = vmatprep.mubr.msk.bf16.mxu0 %vm764_vm0, %v4445_v22  ;;  %v4459_v18 = vld [vmem:[%s4855_s13 + $0xc4] ss:$8 sps:$4 sm:$0xff]  }
 0x121   : > { %4047 = vmatprep.mubr.msk.bf16.mxu1 %vm764_vm0, %v4447_v23  ;;  %v1132_v35 = vmax.f32 %v1090_v32, 0.0 }
 0x122   : > { %v5069_v34 = vmax.f32 %v1131_v30, %v1752_v31  ;;  %v1753_v36 = vmax.f32 %v1711_v33, 0.0  ;;  %v894_v37 = vpop.f32.mrb[16].mxu0 }
 0x123   : > { %v1527_v38 = vpop.f32.mrb[16].mxu1  ;;  %v1043_v40 = vmul.f32 %v4992_v56, %v894_v37  ;;  %v896_v43 = vpop.f32.mrb[17].mxu0 }
 0x124   : > { %v5071_v39 = vmax.f32 %v1132_v35, %v1753_v36  ;;  %v1670_v41 = vmul.f32 %v4992_v56, %v1527_v38  ;;  %v1529_v44 = vpop.f32.mrb[17].mxu1  ;;  %v897_v48 = vpop.f32.mrb[18].mxu0  ;;  %v4461_v43 = vld [vmem:[%s4847_s30 + $0xc0] ss:$8 sps:$4 sm:$0xff]  }
 0x125   : > { %v1530_v49 = vpop.f32.mrb[18].mxu1  ;;  %v1091_v52 = vadd.f32 %v4999_v57, %v1043_v40  ;;  %v1044_v54 = vmul.f32 %v4992_v56, %v897_v48  ;;  %v899_v58 = vpop.f32.mrb[19].mxu0  ;;  %v4462_v44 = vld [vmem:[%s4855_s13 + $0xc0] ss:$8 sps:$4 sm:$0xff]   ;;  %v4463_v48 = vld [vmem:[%s4847_s30 + $0xd4] ss:$8 sps:$4 sm:$0xff]  }
 0x126   : > { %v1712_v53 = vadd.f32 %v4999_v57, %v1670_v41  ;;  %v1671_v55 = vmul.f32 %v4992_v56, %v1530_v49  ;;  %v1532_v59 = vpop.f32.mrb[19].mxu1  ;;  %v4465_v49 = vld [vmem:[%s4855_s13 + $0xd4] ss:$8 sps:$4 sm:$0xff]  }
 0x127   : > { %v1133_v60 = vmax.f32 %v1091_v52, 0.0  ;;  %v1092_v62 = vadd.f32 %v4999_v57, %v1044_v54  ;;  %2237 = vmatmul.mubr.bf16.gmra.mrb[124].mxu0 %v4449_v45 }
 0x128   : > { %v1754_v61 = vmax.f32 %v1712_v53, 0.0  ;;  %v1713_v63 = vadd.f32 %v4999_v57, %v1671_v55  ;;  %2900 = vmatmul.mubr.bf16.gmra.mrb[124].mxu1 %v4450_v46  ;;  %3985 = vmatprep.mubr.msk.bf16.mxu0 %vm764_vm0, %v4451_v50 }
 0x129   : > { %4048 = vmatprep.mubr.msk.bf16.mxu1 %vm764_vm0, %v4453_v51  ;;  %v1134_v1 = vmax.f32 %v1092_v62, 0.0 }
 0x12a   : > { %v5087_v0 = vmax.f32 %v1133_v60, %v1754_v61  ;;  %v1755_v2 = vmax.f32 %v1713_v63, 0.0  ;;  %v902_v3 = vpop.f32.mrb[20].mxu0 }
 0x12b   : > { %v1535_v4 = vpop.f32.mrb[20].mxu1  ;;  %v1045_v7 = vmul.f32 %v4992_v56, %v902_v3  ;;  %v904_v9 = vpop.f32.mrb[21].mxu0 }
 0x12c   : > { %v5089_v5 = vmax.f32 %v1134_v1, %v1755_v2  ;;  %v1672_v8 = vmul.f32 %v4992_v56, %v1535_v4  ;;  %v1537_v10 = vpop.f32.mrb[21].mxu1  ;;  %v905_v14 = vpop.f32.mrb[22].mxu0 }
 0x12d   : > { %v1538_v15 = vpop.f32.mrb[22].mxu1  ;;  %v1093_v19 = vadd.f32 %v4999_v57, %v1045_v7  ;;  %v1046_v22 = vmul.f32 %v4992_v56, %v905_v14  ;;  %v907_v24 = vpop.f32.mrb[23].mxu0 }
 0x12e   : > { %v1714_v20 = vadd.f32 %v4999_v57, %v1672_v8  ;;  %v1673_v23 = vmul.f32 %v4992_v56, %v1538_v15  ;;  %v1540_v25 = vpop.f32.mrb[23].mxu1 }
 0x12f   : > { %v1135_v26 = vmax.f32 %v1093_v19, 0.0  ;;  %v1094_v28 = vadd.f32 %v4999_v57, %v1046_v22  ;;  %2245 = vmatmul.mubr.bf16.gmra.mrb[128].mxu0 %v4455_v12  ;;  %v4467_v12 = vld [vmem:[%s4847_s30 + $0xd0] ss:$8 sps:$4 sm:$0xff]  }
 0x130   : > { %v1756_v27 = vmax.f32 %v1714_v20, 0.0  ;;  %v1715_v29 = vadd.f32 %v4999_v57, %v1673_v23  ;;  %2908 = vmatmul.mubr.bf16.gmra.mrb[128].mxu1 %v4456_v13  ;;  %3986 = vmatprep.mubr.msk.bf16.mxu0 %vm764_vm0, %v4457_v17  ;;  %v4468_v13 = vld [vmem:[%s4855_s13 + $0xd0] ss:$8 sps:$4 sm:$0xff]   ;;  %v4469_v17 = vld [vmem:[%s4847_s30 + $0xe4] ss:$8 sps:$4 sm:$0xff]  }
 0x131   : > { %4049 = vmatprep.mubr.msk.bf16.mxu1 %vm764_vm0, %v4459_v18  ;;  %v1136_v31 = vmax.f32 %v1094_v28, 0.0  ;;  %v4471_v18 = vld [vmem:[%s4855_s13 + $0xe4] ss:$8 sps:$4 sm:$0xff]  }
 0x132   : > { %v5105_v30 = vmax.f32 %v1135_v26, %v1756_v27  ;;  %v1757_v32 = vmax.f32 %v1715_v29, 0.0  ;;  %v910_v33 = vpop.f32.mrb[24].mxu0 }
 0x133   : > { %v1543_v35 = vpop.f32.mrb[24].mxu1  ;;  %v1047_v37 = vmul.f32 %v4992_v56, %v910_v33  ;;  %v912_v40 = vpop.f32.mrb[25].mxu0 }
 0x134   : > { %v5107_v36 = vmax.f32 %v1136_v31, %v1757_v32  ;;  %v1674_v38 = vmul.f32 %v4992_v56, %v1543_v35  ;;  %v1545_v41 = vpop.f32.mrb[25].mxu1  ;;  %v913_v45 = vpop.f32.mrb[26].mxu0 }
 0x135   : > { %v1546_v46 = vpop.f32.mrb[26].mxu1  ;;  %v1095_v50 = vadd.f32 %v4999_v57, %v1047_v37  ;;  %v1048_v52 = vmul.f32 %v4992_v56, %v913_v45  ;;  %v915_v54 = vpop.f32.mrb[27].mxu0  ;;  %v4473_v45 = vld [vmem:[%s4847_s30 + $0xe0] ss:$8 sps:$4 sm:$0xff]  }
 0x136   : > { %v1716_v51 = vadd.f32 %v4999_v57, %v1674_v38  ;;  %v1675_v53 = vmul.f32 %v4992_v56, %v1546_v46  ;;  %v1548_v55 = vpop.f32.mrb[27].mxu1  ;;  %v4474_v46 = vld [vmem:[%s4855_s13 + $0xe0] ss:$8 sps:$4 sm:$0xff]  }
 0x137   : > { %v1137_v58 = vmax.f32 %v1095_v50, 0.0  ;;  %v1096_v60 = vadd.f32 %v4999_v57, %v1048_v52  ;;  %2253 = vmatmul.mubr.bf16.gmra.mrb[132].mxu0 %v4461_v43  ;;  %v4475_v50 = vld [vmem:[%s4847_s30 + $0xf4] ss:$8 sps:$4 sm:$0xff]  }
 0x138   : > { %v1758_v59 = vmax.f32 %v1716_v51, 0.0  ;;  %v1717_v61 = vadd.f32 %v4999_v57, %v1675_v53  ;;  %2916 = vmatmul.mubr.bf16.gmra.mrb[132].mxu1 %v4462_v44  ;;  %3987 = vmatprep.mubr.msk.bf16.mxu0 %vm764_vm0, %v4463_v48  ;;  %v4477_v51 = vld [vmem:[%s4855_s13 + $0xf4] ss:$8 sps:$4 sm:$0xff]  }
 0x139   : > { %4050 = vmatprep.mubr.msk.bf16.mxu1 %vm764_vm0, %v4465_v49  ;;  %v1138_v63 = vmax.f32 %v1096_v60, 0.0 }
 0x13a   : > { %v5123_v62 = vmax.f32 %v1137_v58, %v1758_v59  ;;  %v1759_v1 = vmax.f32 %v1717_v61, 0.0  ;;  %v918_v2 = vpop.f32.mrb[28].mxu0 }
 0x13b   : > { %v1551_v3 = vpop.f32.mrb[28].mxu1  ;;  %v1049_v7 = vmul.f32 %v4992_v56, %v918_v2  ;;  %v920_v9 = vpop.f32.mrb[29].mxu0 }
 0x13c   : > { %v5125_v4 = vmax.f32 %v1138_v63, %v1759_v1  ;;  %v1676_v8 = vmul.f32 %v4992_v56, %v1551_v3  ;;  %v1553_v10 = vpop.f32.mrb[29].mxu1  ;;  %v921_v14 = vpop.f32.mrb[30].mxu0 }
 0x13d   : > { %v1554_v15 = vpop.f32.mrb[30].mxu1  ;;  %v1097_v19 = vadd.f32 %v4999_v57, %v1049_v7  ;;  %v1050_v22 = vmul.f32 %v4992_v56, %v921_v14  ;;  %v923_v24 = vpop.f32.mrb[31].mxu0 }
 0x13e   : > { %v1718_v20 = vadd.f32 %v4999_v57, %v1676_v8  ;;  %v1677_v23 = vmul.f32 %v4992_v56, %v1554_v15  ;;  %v1556_v25 = vpop.f32.mrb[31].mxu1 }
 0x13f   : > { %v1139_v26 = vmax.f32 %v1097_v19, 0.0  ;;  %v1098_v28 = vadd.f32 %v4999_v57, %v1050_v22  ;;  %2261 = vmatmul.mubr.bf16.gmra.mrb[136].mxu0 %v4467_v12  ;;  %v4481_v22 = vld [vmem:[%s4847_s30 + $0x104] ss:$8 sps:$4 sm:$0xff]  }
 0x140   : > { %v1760_v27 = vmax.f32 %v1718_v20, 0.0  ;;  %v1719_v29 = vadd.f32 %v4999_v57, %v1677_v23  ;;  %2924 = vmatmul.mubr.bf16.gmra.mrb[136].mxu1 %v4468_v13  ;;  %3988 = vmatprep.mubr.msk.bf16.mxu0 %vm764_vm0, %v4469_v17  ;;  %v4479_v17 = vld [vmem:[%s4847_s30 + $0xf0] ss:$8 sps:$4 sm:$0xff]   ;;  %v4483_v23 = vld [vmem:[%s4855_s13 + $0x104] ss:$8 sps:$4 sm:$0xff]  }
 0x141   : > { %4051 = vmatprep.mubr.msk.bf16.mxu1 %vm764_vm0, %v4471_v18  ;;  %v1140_v32 = vmax.f32 %v1098_v28, 0.0  ;;  %v4480_v18 = vld [vmem:[%s4855_s13 + $0xf0] ss:$8 sps:$4 sm:$0xff]  }
 0x142   : > { %v5141_v31 = vmax.f32 %v1139_v26, %v1760_v27  ;;  %v1761_v33 = vmax.f32 %v1719_v29, 0.0  ;;  %v926_v35 = vpop.f32.mrb[32].mxu0 }
 0x143   : > { %v1559_v37 = vpop.f32.mrb[32].mxu1  ;;  %v1051_v40 = vmul.f32 %v4992_v56, %v926_v35  ;;  %v928_v43 = vpop.f32.mrb[33].mxu0 }
 0x144   : > { %v5143_v38 = vmax.f32 %v1140_v32, %v1761_v33  ;;  %v1678_v41 = vmul.f32 %v4992_v56, %v1559_v37  ;;  %v1561_v44 = vpop.f32.mrb[33].mxu1  ;;  %v929_v48 = vpop.f32.mrb[34].mxu0 }
 0x145   : > { %v1562_v49 = vpop.f32.mrb[34].mxu1  ;;  %v1099_v52 = vadd.f32 %v4999_v57, %v1051_v40  ;;  %v1052_v54 = vmul.f32 %v4992_v56, %v929_v48  ;;  %v931_v58 = vpop.f32.mrb[35].mxu0 }
 0x146   : > { %v1720_v53 = vadd.f32 %v4999_v57, %v1678_v41  ;;  %v1679_v55 = vmul.f32 %v4992_v56, %v1562_v49  ;;  %v1564_v59 = vpop.f32.mrb[35].mxu1  ;;  %v4487_v58 = vld [vmem:[%s4847_s30 + $0x114] ss:$8 sps:$4 sm:$0xff]  }
 0x147   : > { %v1141_v60 = vmax.f32 %v1099_v52, 0.0  ;;  %v1100_v63 = vadd.f32 %v4999_v57, %v1052_v54  ;;  %2269 = vmatmul.mubr.bf16.gmra.mrb[140].mxu0 %v4473_v45  ;;  %v4485_v52 = vld [vmem:[%s4847_s30 + $0x100] ss:$8 sps:$4 sm:$0xff]   ;;  %v4489_v59 = vld [vmem:[%s4855_s13 + $0x114] ss:$8 sps:$4 sm:$0xff]  }
 0x148   : > { %v1762_v61 = vmax.f32 %v1720_v53, 0.0  ;;  %v1721_v1 = vadd.f32 %v4999_v57, %v1679_v55  ;;  %2932 = vmatmul.mubr.bf16.gmra.mrb[140].mxu1 %v4474_v46  ;;  %3989 = vmatprep.mubr.msk.bf16.mxu0 %vm764_vm0, %v4475_v50  ;;  %v4486_v53 = vld [vmem:[%s4855_s13 + $0x100] ss:$8 sps:$4 sm:$0xff]  }
 0x149   : > { %4052 = vmatprep.mubr.msk.bf16.mxu1 %vm764_vm0, %v4477_v51  ;;  %v1142_v3 = vmax.f32 %v1100_v63, 0.0 }
 0x14a   : > { %v5159_v2 = vmax.f32 %v1141_v60, %v1762_v61  ;;  %v1763_v7 = vmax.f32 %v1721_v1, 0.0  ;;  %v934_v8 = vpop.f32.mrb[36].mxu0 }
 0x14b   : > { %v1567_v9 = vpop.f32.mrb[36].mxu1  ;;  %v1053_v12 = vmul.f32 %v4992_v56, %v934_v8  ;;  %v936_v14 = vpop.f32.mrb[37].mxu0 }
 0x14c   : > { %v5161_v10 = vmax.f32 %v1142_v3, %v1763_v7  ;;  %v1680_v13 = vmul.f32 %v4992_v56, %v1567_v9  ;;  %v1569_v15 = vpop.f32.mrb[37].mxu1  ;;  %v937_v19 = vpop.f32.mrb[38].mxu0 }
 0x14d   : > { %v1570_v20 = vpop.f32.mrb[38].mxu1  ;;  %v1101_v24 = vadd.f32 %v4999_v57, %v1053_v12  ;;  %v1054_v26 = vmul.f32 %v4992_v56, %v937_v19  ;;  %v939_v28 = vpop.f32.mrb[39].mxu0 }
 0x14e   : > { %v1722_v25 = vadd.f32 %v4999_v57, %v1680_v13  ;;  %v1681_v27 = vmul.f32 %v4992_v56, %v1570_v20  ;;  %v1572_v29 = vpop.f32.mrb[39].mxu1 }
 0x14f   : > { %v1143_v32 = vmax.f32 %v1101_v24, 0.0  ;;  %v1102_v35 = vadd.f32 %v4999_v57, %v1054_v26  ;;  %2277 = vmatmul.mubr.bf16.gmra.mrb[144].mxu0 %v4479_v17  ;;  %v4491_v26 = vld [vmem:[%s4847_s30 + $0x110] ss:$8 sps:$4 sm:$0xff]  }
 0x150   : > { %v1764_v33 = vmax.f32 %v1722_v25, 0.0  ;;  %v1723_v37 = vadd.f32 %v4999_v57, %v1681_v27  ;;  %2940 = vmatmul.mubr.bf16.gmra.mrb[144].mxu1 %v4480_v18  ;;  %3990 = vmatprep.mubr.msk.bf16.mxu0 %vm764_vm0, %v4481_v22  ;;  %v4492_v27 = vld [vmem:[%s4855_s13 + $0x110] ss:$8 sps:$4 sm:$0xff]  }
 0x151   : > { %4053 = vmatprep.mubr.msk.bf16.mxu1 %vm764_vm0, %v4483_v23  ;;  %v1144_v41 = vmax.f32 %v1102_v35, 0.0 }
 0x152   : > { %v5177_v40 = vmax.f32 %v1143_v32, %v1764_v33  ;;  %v1765_v43 = vmax.f32 %v1723_v37, 0.0  ;;  %v942_v44 = vpop.f32.mrb[40].mxu0  ;;  %v4493_v32 = vld [vmem:[%s4847_s30 + $0x124] ss:$8 sps:$4 sm:$0xff]  }
 0x153   : > { %v1575_v45 = vpop.f32.mrb[40].mxu1  ;;  %v1055_v48 = vmul.f32 %v4992_v56, %v942_v44  ;;  %v944_v50 = vpop.f32.mrb[41].mxu0  ;;  %v4495_v33 = vld [vmem:[%s4855_s13 + $0x124] ss:$8 sps:$4 sm:$0xff]  }
 0x154   : > { %v5179_v46 = vmax.f32 %v1144_v41, %v1765_v43  ;;  %v1682_v49 = vmul.f32 %v4992_v56, %v1575_v45  ;;  %v1577_v51 = vpop.f32.mrb[41].mxu1  ;;  %v945_v54 = vpop.f32.mrb[42].mxu0 }
 0x155   : > { %v1578_v55 = vpop.f32.mrb[42].mxu1  ;;  %v1103_v60 = vadd.f32 %v4999_v57, %v1055_v48  ;;  %v1056_v63 = vmul.f32 %v4992_v56, %v945_v54  ;;  %v947_v3 = vpop.f32.mrb[43].mxu0 }
 0x156   : > { %v1724_v61 = vadd.f32 %v4999_v57, %v1682_v49  ;;  %v1683_v1 = vmul.f32 %v4992_v56, %v1578_v55  ;;  %v1580_v7 = vpop.f32.mrb[43].mxu1  ;;  %v4497_v3 = vld [vmem:[%s4847_s30 + $0x120] ss:$8 sps:$4 sm:$0xff]  }
 0x157   : > { %v1145_v8 = vmax.f32 %v1103_v60, 0.0  ;;  %v1104_v12 = vadd.f32 %v4999_v57, %v1056_v63  ;;  %2285 = vmatmul.mubr.bf16.gmra.mrb[148].mxu0 %v4485_v52  ;;  %v4498_v7 = vld [vmem:[%s4855_s13 + $0x120] ss:$8 sps:$4 sm:$0xff]  }
 0x158   : > { %v1766_v9 = vmax.f32 %v1724_v61, 0.0  ;;  %v1725_v13 = vadd.f32 %v4999_v57, %v1683_v1  ;;  %2948 = vmatmul.mubr.bf16.gmra.mrb[148].mxu1 %v4486_v53  ;;  %3991 = vmatprep.mubr.msk.bf16.mxu0 %vm764_vm0, %v4487_v58 }
 0x159   : > { %4054 = vmatprep.mubr.msk.bf16.mxu1 %vm764_vm0, %v4489_v59  ;;  %v1146_v15 = vmax.f32 %v1104_v12, 0.0  ;;  %v4499_v12 = vld [vmem:[%s4847_s30 + $0x134] ss:$8 sps:$4 sm:$0xff]  }
 0x15a   : > { %v5195_v14 = vmax.f32 %v1145_v8, %v1766_v9  ;;  %v1767_v17 = vmax.f32 %v1725_v13, 0.0  ;;  %v950_v18 = vpop.f32.mrb[44].mxu0  ;;  %v4501_v13 = vld [vmem:[%s4855_s13 + $0x134] ss:$8 sps:$4 sm:$0xff]  }
 0x15b   : > { %v1583_v19 = vpop.f32.mrb[44].mxu1  ;;  %v1057_v22 = vmul.f32 %v4992_v56, %v950_v18  ;;  %v952_v24 = vpop.f32.mrb[45].mxu0 }
 0x15c   : > { %v5197_v20 = vmax.f32 %v1146_v15, %v1767_v17  ;;  %v1684_v23 = vmul.f32 %v4992_v56, %v1583_v19  ;;  %v1585_v25 = vpop.f32.mrb[45].mxu1  ;;  %v953_v28 = vpop.f32.mrb[46].mxu0 }
 0x15d   : > { %v1586_v29 = vpop.f32.mrb[46].mxu1  ;;  %v1105_v35 = vadd.f32 %v4999_v57, %v1057_v22  ;;  %v1058_v41 = vmul.f32 %v4992_v56, %v953_v28  ;;  %v955_v44 = vpop.f32.mrb[47].mxu0 }
 0x15e   : > { %v1726_v37 = vadd.f32 %v4999_v57, %v1684_v23  ;;  %v1685_v43 = vmul.f32 %v4992_v56, %v1586_v29  ;;  %v1588_v45 = vpop.f32.mrb[47].mxu1 }
 0x15f   : > { %v1147_v48 = vmax.f32 %v1105_v35, 0.0  ;;  %v1106_v50 = vadd.f32 %v4999_v57, %v1058_v41  ;;  %2293 = vmatmul.mubr.bf16.gmra.mrb[152].mxu0 %v4491_v26 }
 0x160   : > { %v1768_v49 = vmax.f32 %v1726_v37, 0.0  ;;  %v1727_v51 = vadd.f32 %v4999_v57, %v1685_v43  ;;  %2956 = vmatmul.mubr.bf16.gmra.mrb[152].mxu1 %v4492_v27  ;;  %3992 = vmatprep.mubr.msk.bf16.mxu0 %vm764_vm0, %v4493_v32 }
 0x161   : > { %4055 = vmatprep.mubr.msk.bf16.mxu1 %vm764_vm0, %v4495_v33  ;;  %v1148_v53 = vmax.f32 %v1106_v50, 0.0 }
 0x162   : > { %v5213_v52 = vmax.f32 %v1147_v48, %v1768_v49  ;;  %v1769_v54 = vmax.f32 %v1727_v51, 0.0  ;;  %v958_v55 = vpop.f32.mrb[48].mxu0  ;;  %v4503_v48 = vld [vmem:[%s4847_s30 + $0x130] ss:$8 sps:$4 sm:$0xff]  }
 0x163   : > { %v1591_v58 = vpop.f32.mrb[48].mxu1  ;;  %v1059_v60 = vmul.f32 %v4992_v56, %v958_v55  ;;  %v960_v63 = vpop.f32.mrb[49].mxu0  ;;  %v4504_v49 = vld [vmem:[%s4855_s13 + $0x130] ss:$8 sps:$4 sm:$0xff]  }
 0x164   : > { %v5215_v59 = vmax.f32 %v1148_v53, %v1769_v54  ;;  %v1686_v61 = vmul.f32 %v4992_v56, %v1591_v58  ;;  %v1593_v1 = vpop.f32.mrb[49].mxu1  ;;  %v961_v8 = vpop.f32.mrb[50].mxu0  ;;  %v4505_v53 = vld [vmem:[%s4847_s30 + $0x144] ss:$8 sps:$4 sm:$0xff]  }
 0x165   : > { %v1594_v9 = vpop.f32.mrb[50].mxu1  ;;  %v1107_v15 = vadd.f32 %v4999_v57, %v1059_v60  ;;  %v1060_v18 = vmul.f32 %v4992_v56, %v961_v8  ;;  %v963_v22 = vpop.f32.mrb[51].mxu0  ;;  %v4507_v54 = vld [vmem:[%s4855_s13 + $0x144] ss:$8 sps:$4 sm:$0xff]  }
 0x166   : > { %v1728_v17 = vadd.f32 %v4999_v57, %v1686_v61  ;;  %v1687_v19 = vmul.f32 %v4992_v56, %v1594_v9  ;;  %v1596_v23 = vpop.f32.mrb[51].mxu1 }
 0x167   : > { %v1149_v24 = vmax.f32 %v1107_v15, 0.0  ;;  %v1108_v26 = vadd.f32 %v4999_v57, %v1060_v18  ;;  %2301 = vmatmul.mubr.bf16.gmra.mrb[156].mxu0 %v4497_v3 }
 0x168   : > { %v1770_v25 = vmax.f32 %v1728_v17, 0.0  ;;  %v1729_v27 = vadd.f32 %v4999_v57, %v1687_v19  ;;  %2964 = vmatmul.mubr.bf16.gmra.mrb[156].mxu1 %v4498_v7  ;;  %3993 = vmatprep.mubr.msk.bf16.mxu0 %vm764_vm0, %v4499_v12 }
 0x169   : > { %4056 = vmatprep.mubr.msk.bf16.mxu1 %vm764_vm0, %v4501_v13  ;;  %v1150_v29 = vmax.f32 %v1108_v26, 0.0  ;;  %v4509_v26 = vld [vmem:[%s4847_s30 + $0x140] ss:$8 sps:$4 sm:$0xff]  }
 0x16a   : > { %v5231_v28 = vmax.f32 %v1149_v24, %v1770_v25  ;;  %v1771_v32 = vmax.f32 %v1729_v27, 0.0  ;;  %v966_v33 = vpop.f32.mrb[52].mxu0  ;;  %v4510_v27 = vld [vmem:[%s4855_s13 + $0x140] ss:$8 sps:$4 sm:$0xff]   ;;  %s4158_s13 = smul.u32 (%p4673_p4), 168, %s4661_s27 }
 0x16b   : > { %v1599_v35 = vpop.f32.mrb[52].mxu1  ;;  %v1061_v41 = vmul.f32 %v4992_v56, %v966_v33  ;;  %v968_v44 = vpop.f32.mrb[53].mxu0 }
 0x16c   : > { %v5233_v37 = vmax.f32 %v1150_v29, %v1771_v32  ;;  %v1688_v43 = vmul.f32 %v4992_v56, %v1599_v35  ;;  %v1601_v45 = vpop.f32.mrb[53].mxu1  ;;  %v969_v50 = vpop.f32.mrb[54].mxu0  ;;  %s5663_s26 = scalar_lea.vmem (%p4673_p4), %s5813_s7, %s4158_s13  }
 0x16d   : > { %v1602_v51 = vpop.f32.mrb[54].mxu1  ;;  %v1109_v55 = vadd.f32 %v4999_v57, %v1061_v41  ;;  %v1062_v60 = vmul.f32 %v4992_v56, %v969_v50  ;;  %v971_v63 = vpop.f32.mrb[55].mxu0 }
 0x16e   : > { %v1730_v58 = vadd.f32 %v4999_v57, %v1688_v43  ;;  %v1689_v61 = vmul.f32 %v4992_v56, %v1602_v51  ;;  %v1604_v1 = vpop.f32.mrb[55].mxu1 }
 0x16f   : > { %v1151_v3 = vmax.f32 %v1109_v55, 0.0  ;;  %v1110_v8 = vadd.f32 %v4999_v57, %v1062_v60  ;;  %2309 = vmatmul.mubr.bf16.gmra.mrb[160].mxu0 %v4503_v48 }
 0x170   : > { %v1772_v7 = vmax.f32 %v1730_v58, 0.0  ;;  %v1731_v9 = vadd.f32 %v4999_v57, %v1689_v61  ;;  %2972 = vmatmul.mubr.bf16.gmra.mrb[160].mxu1 %v4504_v49  ;;  %3994 = vmatprep.mubr.msk.bf16.mxu0 %vm764_vm0, %v4505_v53 }
 0x171   : > { %4057 = vmatprep.mubr.msk.bf16.mxu1 %vm764_vm0, %v4507_v54  ;;  %v1152_v13 = vmax.f32 %v1110_v8, 0.0 }
 0x172   : > { %v5249_v12 = vmax.f32 %v1151_v3, %v1772_v7  ;;  %v1773_v15 = vmax.f32 %v1731_v9, 0.0  ;;  %v974_v17 = vpop.f32.mrb[56].mxu0 }
 0x173   : > { %v1607_v18 = vpop.f32.mrb[56].mxu1  ;;  %v1063_v22 = vmul.f32 %v4992_v56, %v974_v17  ;;  %v976_v24 = vpop.f32.mrb[57].mxu0 }
 0x174   : > { %v5251_v19 = vmax.f32 %v1152_v13, %v1773_v15  ;;  %v1690_v23 = vmul.f32 %v4992_v56, %v1607_v18  ;;  %v1609_v25 = vpop.f32.mrb[57].mxu1  ;;  %v977_v29 = vpop.f32.mrb[58].mxu0 }
 0x175   : > { %v1610_v32 = vpop.f32.mrb[58].mxu1  ;;  %v1111_v33 = vadd.f32 %v4999_v57, %v1063_v22  ;;  %v1064_v41 = vmul.f32 %v4992_v56, %v977_v29  ;;  %v979_v44 = vpop.f32.mrb[59].mxu0 }
 0x176   : > { %v1732_v35 = vadd.f32 %v4999_v57, %v1690_v23  ;;  %v1691_v43 = vmul.f32 %v4992_v56, %v1610_v32  ;;  %v1612_v45 = vpop.f32.mrb[59].mxu1 }
 0x177   : > { %v1153_v48 = vmax.f32 %v1111_v33, 0.0  ;;  %v1112_v50 = vadd.f32 %v4999_v57, %v1064_v41  ;;  %2317 = vmatmul.mubr.bf16.gmra.mrb[164].mxu0 %v4509_v26 }
 0x178   : > { %v1774_v49 = vmax.f32 %v1732_v35, 0.0  ;;  %v1733_v51 = vadd.f32 %v4999_v57, %v1691_v43  ;;  %2980 = vmatmul.mubr.bf16.gmra.mrb[164].mxu1 %v4510_v27 }
 0x179   : > { %v1154_v54 = vmax.f32 %v1112_v50, 0.0 }
 0x17a   : > { %v5263_v53 = vmax.f32 %v1153_v48, %v1774_v49  ;;  %v1775_v55 = vmax.f32 %v1733_v51, 0.0  ;;  %v982_v58 = vpop.f32.mrb[60].mxu0 }
 0x17b   : > { %v1615_v60 = vpop.f32.mrb[60].mxu1  ;;  %v1065_v63 = vmul.f32 %v4992_v56, %v982_v58  ;;  %v984_v3 = vpop.f32.mrb[61].mxu0 }
 0x17c   : > { %v5265_v61 = vmax.f32 %v1154_v54, %v1775_v55  ;;  %v1692_v1 = vmul.f32 %v4992_v56, %v1615_v60  ;;  %v1617_v7 = vpop.f32.mrb[61].mxu1  ;;  %v985_v8 = vpop.f32.mrb[62].mxu0 }
 0x17d   : > { %v1618_v9 = vpop.f32.mrb[62].mxu1  ;;  %v1113_v13 = vadd.f32 %v4999_v57, %v1065_v63  ;;  %v1066_v17 = vmul.f32 %v4992_v56, %v985_v8  ;;  %v987_v22 = vpop.f32.mrb[63].mxu0 }
 0x17e   : > { %v1734_v15 = vadd.f32 %v4999_v57, %v1692_v1  ;;  %v1693_v18 = vmul.f32 %v4992_v56, %v1618_v9  ;;  %v1620_v23 = vpop.f32.mrb[63].mxu1 }
 0x17f   : > { %v1155_v24 = vmax.f32 %v1113_v13, 0.0  ;;  %v1114_v26 = vadd.f32 %v4999_v57, %v1066_v17 }
 0x180   : > { %v1776_v25 = vmax.f32 %v1734_v15, 0.0  ;;  %v1735_v27 = vadd.f32 %v4999_v57, %v1693_v18 }
 0x181   : > { %v1156_v32 = vmax.f32 %v1114_v26, 0.0 }
 0x182   : > { %v5275_v29 = vmax.f32 %v1155_v24, %v1776_v25  ;;  %v1777_v33 = vmax.f32 %v1735_v27, 0.0  ;;  %v990_v35 = vpop.f32.mrb[64].mxu0 }
 0x183   : > { %v1623_v41 = vpop.f32.mrb[64].mxu1  ;;  %v1067_v44 = vmul.f32 %v4992_v56, %v990_v35  ;;  %v992_v48 = vpop.f32.mrb[65].mxu0 }
 0x184   : > { %v5277_v43 = vmax.f32 %v1156_v32, %v1777_v33  ;;  %v1694_v45 = vmul.f32 %v4992_v56, %v1623_v41  ;;  %v1625_v49 = vpop.f32.mrb[65].mxu1  ;;  %v993_v50 = vpop.f32.mrb[66].mxu0 }
 0x185   : > { %v1626_v51 = vpop.f32.mrb[66].mxu1  ;;  %v1115_v54 = vadd.f32 %v4999_v57, %v1067_v44  ;;  %v1068_v58 = vmul.f32 %v4992_v56, %v993_v50  ;;  %v995_v63 = vpop.f32.mrb[67].mxu0 }
 0x186   : > { %v1736_v55 = vadd.f32 %v4999_v57, %v1694_v45  ;;  %v1695_v60 = vmul.f32 %v4992_v56, %v1626_v51  ;;  %v1628_v1 = vpop.f32.mrb[67].mxu1 }
 0x187   : > { %v1157_v3 = vmax.f32 %v1115_v54, 0.0  ;;  %v1116_v8 = vadd.f32 %v4999_v57, %v1068_v58 }
 0x188   : > { %v1778_v7 = vmax.f32 %v1736_v55, 0.0  ;;  %v1737_v9 = vadd.f32 %v4999_v57, %v1695_v60 }
 0x189   : > { %v1158_v15 = vmax.f32 %v1116_v8, 0.0 }
 0x18a   : > { %v5287_v13 = vmax.f32 %v1157_v3, %v1778_v7  ;;  %v1779_v17 = vmax.f32 %v1737_v9, 0.0  ;;  %v998_v18 = vpop.f32.mrb[68].mxu0 }
 0x18b   : > { %v1631_v22 = vpop.f32.mrb[68].mxu1  ;;  %v1069_v24 = vmul.f32 %v4992_v56, %v998_v18  ;;  %v1000_v26 = vpop.f32.mrb[69].mxu0 }
 0x18c   : > { %v5289_v23 = vmax.f32 %v1158_v15, %v1779_v17  ;;  %v1696_v25 = vmul.f32 %v4992_v56, %v1631_v22  ;;  %v1633_v27 = vpop.f32.mrb[69].mxu1  ;;  %v1001_v32 = vpop.f32.mrb[70].mxu0  ;;  %v5313_v22 = vld [vmem:[%s5812_s6] ss:$0 sm:$0xff] }
 0x18d   : > { %v1634_v33 = vpop.f32.mrb[70].mxu1  ;;  %v1117_v35 = vadd.f32 %v4999_v57, %v1069_v24  ;;  %v1070_v44 = vmul.f32 %v4992_v56, %v1001_v32  ;;  %v1003_v48 = vpop.f32.mrb[71].mxu0 }
 0x18e   : > { %v1738_v41 = vadd.f32 %v4999_v57, %v1696_v25  ;;  %v1697_v45 = vmul.f32 %v4992_v56, %v1634_v33  ;;  %v1636_v49 = vpop.f32.mrb[71].mxu1  ;;  %v5306_v56 = vld [vmem:[%s5811_s5] ss:$0 sm:$0xff] }
 0x18f   : > { %v1159_v50 = vmax.f32 %v1117_v35, 0.0  ;;  %v1118_v54 = vadd.f32 %v4999_v57, %v1070_v44 }
 0x190   : > { %v1780_v51 = vmax.f32 %v1738_v41, 0.0  ;;  %v1739_v55 = vadd.f32 %v4999_v57, %v1697_v45 }
 0x191   : > { %v1160_v60 = vmax.f32 %v1118_v54, 0.0 }
 0x192   : > { %v5299_v58 = vmax.f32 %v1159_v50, %v1780_v51  ;;  %v1781_v63 = vmax.f32 %v1739_v55, 0.0  ;;  %v1006_v1 = vpop.f32.mrb[72].mxu0 }
 0x193   : > { %v1639_v3 = vpop.f32.mrb[72].mxu1  ;;  %v1071_v8 = vmul.f32 %v5306_v56, %v1006_v1  ;;  %v1008_v15 = vpop.f32.mrb[73].mxu0 }
 0x194   : > { %v5301_v7 = vmax.f32 %v1160_v60, %v1781_v63  ;;  %v1698_v9 = vmul.f32 %v5306_v56, %v1639_v3  ;;  %v1641_v17 = vpop.f32.mrb[73].mxu1  ;;  %v1009_v57 = vpop.f32.mrb[74].mxu0 }
 0x195   : > { %v1642_v18 = vpop.f32.mrb[74].mxu1  ;;  %v1119_v24 = vadd.f32 %v5313_v22, %v1071_v8  ;;  %v1072_v26 = vmul.f32 %v5306_v56, %v1009_v57  ;;  %v1011_v32 = vpop.f32.mrb[75].mxu0 }
 0x196   : > { %v1740_v25 = vadd.f32 %v5313_v22, %v1698_v9  ;;  %v1699_v27 = vmul.f32 %v5306_v56, %v1642_v18  ;;  %v1644_v33 = vpop.f32.mrb[75].mxu1 }
 0x197   : > { %v1161_v35 = vmax.f32 %v1119_v24, 0.0  ;;  %v1120_v44 = vadd.f32 %v5313_v22, %v1072_v26 }
 0x198   : > { %v1782_v41 = vmax.f32 %v1740_v25, 0.0  ;;  %v1741_v45 = vadd.f32 %v5313_v22, %v1699_v27 }
 0x199   : > { %v1162_v49 = vmax.f32 %v1120_v44, 0.0 }
 0x19a   : > { %v5321_v48 = vmax.f32 %v1161_v35, %v1782_v41  ;;  %v1783_v50 = vmax.f32 %v1741_v45, 0.0  ;;  %v1014_v51 = vpop.f32.mrb[76].mxu0 }
 0x19b   : > { %v1647_v54 = vpop.f32.mrb[76].mxu1  ;;  %v1073_v60 = vmul.f32 %v5306_v56, %v1014_v51  ;;  %v1016_v1 = vpop.f32.mrb[77].mxu0 }
 0x19c   : > { %v5323_v55 = vmax.f32 %v1162_v49, %v1783_v50  ;;  %v1700_v63 = vmul.f32 %v5306_v56, %v1647_v54  ;;  %v1649_v3 = vpop.f32.mrb[77].mxu1  ;;  %v1017_v8 = vpop.f32.mrb[78].mxu0 }
 0x19d   : > { %v1650_v9 = vpop.f32.mrb[78].mxu1  ;;  %v1121_v15 = vadd.f32 %v5313_v22, %v1073_v60  ;;  %v1074_v57 = vmul.f32 %v5306_v56, %v1017_v8  ;;  %v1019_v24 = vpop.f32.mrb[79].mxu0 }
 0x19e   : > { %v1742_v17 = vadd.f32 %v5313_v22, %v1700_v63  ;;  %v1701_v18 = vmul.f32 %v5306_v56, %v1650_v9  ;;  %v1652_v25 = vpop.f32.mrb[79].mxu1 }
 0x19f   : > { %v1163_v26 = vmax.f32 %v1121_v15, 0.0  ;;  %v1122_v32 = vadd.f32 %v5313_v22, %v1074_v57 }
 0x1a0   : > { %v1784_v27 = vmax.f32 %v1742_v17, 0.0  ;;  %v1743_v33 = vadd.f32 %v5313_v22, %v1701_v18 }
 0x1a1   : > { %v1164_v41 = vmax.f32 %v1122_v32, 0.0 }
 0x1a2   : > { %v5333_v35 = vmax.f32 %v1163_v26, %v1784_v27  ;;  %v1785_v44 = vmax.f32 %v1743_v33, 0.0  ;;  %v1022_v45 = vpop.f32.mrb[80].mxu0 }
 0x1a3   : > { %v1655_v49 = vpop.f32.mrb[80].mxu1  ;;  %v1075_v51 = vmul.f32 %v5306_v56, %v1022_v45  ;;  %v1024_v60 = vpop.f32.mrb[81].mxu0 }
 0x1a4   : > { %v5335_v50 = vmax.f32 %v1164_v41, %v1785_v44  ;;  %v1702_v54 = vmul.f32 %v5306_v56, %v1655_v49  ;;  %v1657_v63 = vpop.f32.mrb[81].mxu1  ;;  %v1025_v1 = vpop.f32.mrb[82].mxu0 }
 0x1a5   : > { %v1658_v3 = vpop.f32.mrb[82].mxu1  ;;  %v1123_v8 = vadd.f32 %v5313_v22, %v1075_v51  ;;  %v1076_v15 = vmul.f32 %v5306_v56, %v1025_v1  ;;  %v1027_v57 = vpop.f32.mrb[83].mxu0 }
 0x1a6   : > { %v1744_v9 = vadd.f32 %v5313_v22, %v1702_v54  ;;  %v1703_v17 = vmul.f32 %v5306_v56, %v1658_v3  ;;  %v1660_v18 = vpop.f32.mrb[83].mxu1 }
 0x1a7   : > { %v1165_v24 = vmax.f32 %v1123_v8, 0.0  ;;  %v1124_v26 = vadd.f32 %v5313_v22, %v1076_v15 }
 0x1a8   : > { %v1786_v25 = vmax.f32 %v1744_v9, 0.0  ;;  %v1745_v27 = vadd.f32 %v5313_v22, %v1703_v17 }
 0x1a9   : > { %v1166_v33 = vmax.f32 %v1124_v26, 0.0 }
 0x1aa   : > { %v5345_v32 = vmax.f32 %v1165_v24, %v1786_v25  ;;  %v1787_v41 = vmax.f32 %v1745_v27, 0.0  ;;  %v2158_v44 = vpop.f32.mrb[84].mxu0 }
 0x1ab   : > { %v2821_v45 = vpop.f32.mrb[84].mxu1  ;;  %v2325_v51 = vmul.f32 %v5306_v56, %v2158_v44  ;;  %v2160_v60 = vpop.f32.mrb[85].mxu0 }
 0x1ac   : > { %v5347_v49 = vmax.f32 %v1166_v33, %v1787_v41  ;;  %v2988_v54 = vmul.f32 %v5306_v56, %v2821_v45  ;;  %v2823_v63 = vpop.f32.mrb[85].mxu1  ;;  %v2161_v1 = vpop.f32.mrb[86].mxu0 }
 0x1ad   : > { %v2824_v3 = vpop.f32.mrb[86].mxu1  ;;  %v2367_v8 = vadd.f32 %v5313_v22, %v2325_v51  ;;  %v2326_v15 = vmul.f32 %v5306_v56, %v2161_v1  ;;  %v2163_v57 = vpop.f32.mrb[87].mxu0 }
 0x1ae   : > { %v3030_v9 = vadd.f32 %v5313_v22, %v2988_v54  ;;  %v2989_v17 = vmul.f32 %v5306_v56, %v2824_v3  ;;  %v2826_v18 = vpop.f32.mrb[87].mxu1 }
 0x1af   : > { %v2409_v24 = vmax.f32 %v2367_v8, 0.0  ;;  %v2368_v26 = vadd.f32 %v5313_v22, %v2326_v15 }
 0x1b0   : > { %v3072_v25 = vmax.f32 %v3030_v9, 0.0  ;;  %v3031_v27 = vadd.f32 %v5313_v22, %v2989_v17 }
 0x1b1   : > { %v2451_v33 = vmax.f32 %v5015_v16, %v2409_v24  ;;  %v2410_v41 = vmax.f32 %v2368_v26, 0.0 }
 0x1b2   : > { %v3073_v44 = vmax.f32 %v3031_v27, 0.0  ;;  %v2166_v45 = vpop.f32.mrb[88].mxu0 }
 0x1b3   : > { %v2829_v51 = vpop.f32.mrb[88].mxu1  ;;  %v3114_v54 = vmax.f32 %v2451_v33, %v3072_v25  ;;  %v2452_v60 = vmax.f32 %v5017_v21, %v2410_v41  ;;  %v2327_v63 = vmul.f32 %v5306_v56, %v2166_v45  ;;  %v2168_v3 = vpop.f32.mrb[89].mxu0 }
 0x1b4   : > { %v2990_v1 = vmul.f32 %v5306_v56, %v2829_v51  ;;  %v2831_v8 = vpop.f32.mrb[89].mxu1  ;;  %v2169_v9 = vpop.f32.mrb[90].mxu0 }
 0x1b5   : > { %v2832_v15 = vpop.f32.mrb[90].mxu1  ;;  %v4116_v17 = vpack.c.bf16 %v3114_v54, %v3114_v54  ;;  %v3115_v57 = vmax.f32 %v2452_v60, %v3073_v44  ;;  %v2369_v16 = vadd.f32 %v5313_v22, %v2327_v63  ;;  %v2171_v24 = vpop.f32.mrb[91].mxu0  ;;  %v2328_v25 = vmul.f32 %v5306_v56, %v2169_v9 }
 0x1b6   : > { %v3032_v18 = vadd.f32 %v5313_v22, %v2990_v1  ;;  %v2834_v26 = vpop.f32.mrb[91].mxu1  ;;  %v2991_v21 = vmul.f32 %v5306_v56, %v2832_v15 }
 0x1b7   : > { %3325 = vst.msk [vmem:[%s5366_s24] sm:$0xf] %vm3324_vm1, %v4116_v17  ;;  %v4117_v27 = vpack.c.bf16 %v3115_v57, %v3115_v57  ;;  %v2411_v33 = vmax.f32 %v2369_v16, 0.0  ;;  %v2370_v44 = vadd.f32 %v5313_v22, %v2328_v25 }
 0x1b8   : > { %v3074_v41 = vmax.f32 %v3032_v18, 0.0  ;;  %v3033_v45 = vadd.f32 %v5313_v22, %v2991_v21 }
 0x1b9   : > { %3326 = vst.msk [vmem:[%s5366_s24 + $0x4] sm:$0xf] %vm3324_vm1, %v4117_v27  ;;  %v2453_v51 = vmax.f32 %v5033_v42, %v2411_v33  ;;  %v2412_v54 = vmax.f32 %v2370_v44, 0.0 }
 0x1ba   : > { %v2174_v60 = vpop.f32.mrb[92].mxu0  ;;  %v3075_v57 = vmax.f32 %v3033_v45, 0.0 }
 0x1bb   : > { %v2837_v63 = vpop.f32.mrb[92].mxu1  ;;  %v3116_v1 = vmax.f32 %v2453_v51, %v3074_v41  ;;  %v2329_v3 = vmul.f32 %v5306_v56, %v2174_v60  ;;  %v2176_v9 = vpop.f32.mrb[93].mxu0  ;;  %v2454_v17 = vmax.f32 %v5035_v47, %v2412_v54 }
 0x1bc   : > { %v2992_v8 = vmul.f32 %v5306_v56, %v2837_v63  ;;  %v2839_v15 = vpop.f32.mrb[93].mxu1  ;;  %v2177_v16 = vpop.f32.mrb[94].mxu0 }
 0x1bd   : > { %v2840_v18 = vpop.f32.mrb[94].mxu1  ;;  %v4118_v24 = vpack.c.bf16 %v3116_v1, %v3116_v1  ;;  %v2371_v42 = vadd.f32 %v5313_v22, %v2329_v3  ;;  %v2330_v25 = vmul.f32 %v5306_v56, %v2177_v16  ;;  %v2179_v21 = vpop.f32.mrb[95].mxu0  ;;  %v3117_v33 = vmax.f32 %v2454_v17, %v3075_v57 }
 0x1be   : > { %v3034_v26 = vadd.f32 %v5313_v22, %v2992_v8  ;;  %v2842_v27 = vpop.f32.mrb[95].mxu1  ;;  %v2993_v41 = vmul.f32 %v5306_v56, %v2840_v18 }
 0x1bf   : > { %3327 = vst.msk [vmem:[%s5366_s24 + $0x8] sm:$0xf] %vm3324_vm1, %v4118_v24  ;;  %v2413_v44 = vmax.f32 %v2371_v42, 0.0  ;;  %v2372_v45 = vadd.f32 %v5313_v22, %v2330_v25  ;;  %v4119_v51 = vpack.c.bf16 %v3117_v33, %v3117_v33 }
 0x1c0   : > { %v3076_v47 = vmax.f32 %v3034_v26, 0.0  ;;  %v3035_v54 = vadd.f32 %v5313_v22, %v2993_v41 }
 0x1c1   : > { %v2455_v60 = vmax.f32 %v5051_v6, %v2413_v44  ;;  %v2414_v63 = vmax.f32 %v2372_v45, 0.0  ;;  %3328 = vst.msk [vmem:[%s5366_s24 + $0xc] sm:$0xf] %vm3324_vm1, %v4119_v51 }
 0x1c2   : > { %v3077_v1 = vmax.f32 %v3035_v54, 0.0  ;;  %v2182_v3 = vpop.f32.mrb[96].mxu0 }
 0x1c3   : > { %v2845_v8 = vpop.f32.mrb[96].mxu1  ;;  %v3118_v9 = vmax.f32 %v2455_v60, %v3076_v47  ;;  %v2456_v15 = vmax.f32 %v5053_v11, %v2414_v63  ;;  %v2331_v17 = vmul.f32 %v5306_v56, %v2182_v3  ;;  %v2184_v16 = vpop.f32.mrb[97].mxu0 }
 0x1c4   : > { %v2994_v57 = vmul.f32 %v5306_v56, %v2845_v8  ;;  %v2847_v18 = vpop.f32.mrb[97].mxu1  ;;  %v2185_v24 = vpop.f32.mrb[98].mxu0 }
 0x1c5   : > { %v2848_v42 = vpop.f32.mrb[98].mxu1  ;;  %v4120_v6 = vpack.c.bf16 %v3118_v9, %v3118_v9  ;;  %v3119_v26 = vmax.f32 %v2456_v15, %v3077_v1  ;;  %v2373_v25 = vadd.f32 %v5313_v22, %v2331_v17  ;;  %v2187_v27 = vpop.f32.mrb[99].mxu0  ;;  %v2332_v41 = vmul.f32 %v5306_v56, %v2185_v24 }
 0x1c6   : > { %v3036_v21 = vadd.f32 %v5313_v22, %v2994_v57  ;;  %v2850_v33 = vpop.f32.mrb[99].mxu1  ;;  %v2995_v11 = vmul.f32 %v5306_v56, %v2848_v42 }
 0x1c7   : > { %3329 = vst.msk [vmem:[%s5366_s24 + $0x10] sm:$0xf] %vm3324_vm1, %v4120_v6  ;;  %v4121_v44 = vpack.c.bf16 %v3119_v26, %v3119_v26  ;;  %v2415_v47 = vmax.f32 %v2373_v25, 0.0  ;;  %v2374_v51 = vadd.f32 %v5313_v22, %v2332_v41 }
 0x1c8   : > { %v3078_v45 = vmax.f32 %v3036_v21, 0.0  ;;  %v3037_v54 = vadd.f32 %v5313_v22, %v2995_v11 }
 0x1c9   : > { %3330 = vst.msk [vmem:[%s5366_s24 + $0x14] sm:$0xf] %vm3324_vm1, %v4121_v44  ;;  %v2457_v60 = vmax.f32 %v5069_v34, %v2415_v47  ;;  %v2416_v63 = vmax.f32 %v2374_v51, 0.0 }
 0x1ca   : > { %v2190_v1 = vpop.f32.mrb[100].mxu0  ;;  %v3079_v18 = vmax.f32 %v3037_v54, 0.0 }
 0x1cb   : > { %v2853_v3 = vpop.f32.mrb[100].mxu1  ;;  %v3120_v8 = vmax.f32 %v2457_v60, %v3078_v45  ;;  %v2333_v9 = vmul.f32 %v5306_v56, %v2190_v1  ;;  %v2192_v17 = vpop.f32.mrb[101].mxu0  ;;  %v2458_v16 = vmax.f32 %v5071_v39, %v2416_v63 }
 0x1cc   : > { %v2996_v15 = vmul.f32 %v5306_v56, %v2853_v3  ;;  %v2855_v57 = vpop.f32.mrb[101].mxu1  ;;  %v2193_v24 = vpop.f32.mrb[102].mxu0 }
 0x1cd   : > { %v2856_v42 = vpop.f32.mrb[102].mxu1  ;;  %v4122_v6 = vpack.c.bf16 %v3120_v8, %v3120_v8  ;;  %v2375_v34 = vadd.f32 %v5313_v22, %v2333_v9  ;;  %v2334_v25 = vmul.f32 %v5306_v56, %v2193_v24  ;;  %v2195_v21 = vpop.f32.mrb[103].mxu0  ;;  %v3121_v33 = vmax.f32 %v2458_v16, %v3079_v18 }
 0x1ce   : > { %v3038_v26 = vadd.f32 %v5313_v22, %v2996_v15  ;;  %v2858_v27 = vpop.f32.mrb[103].mxu1  ;;  %v2997_v41 = vmul.f32 %v5306_v56, %v2856_v42 }
 0x1cf   : > { %3331 = vst.msk [vmem:[%s5366_s24 + $0x18] sm:$0xf] %vm3324_vm1, %v4122_v6  ;;  %v2417_v11 = vmax.f32 %v2375_v34, 0.0  ;;  %v2376_v44 = vadd.f32 %v5313_v22, %v2334_v25  ;;  %v4123_v47 = vpack.c.bf16 %v3121_v33, %v3121_v33 }
 0x1d0   : > { %v3080_v39 = vmax.f32 %v3038_v26, 0.0  ;;  %v3039_v45 = vadd.f32 %v5313_v22, %v2997_v41 }
 0x1d1   : > { %v2459_v51 = vmax.f32 %v5087_v0, %v2417_v11  ;;  %v2418_v54 = vmax.f32 %v2376_v44, 0.0  ;;  %3332 = vst.msk [vmem:[%s5366_s24 + $0x1c] sm:$0xf] %vm3324_vm1, %v4123_v47 }
 0x1d2   : > { %v3081_v60 = vmax.f32 %v3039_v45, 0.0  ;;  %v2198_v63 = vpop.f32.mrb[104].mxu0 }
 0x1d3   : > { %v2861_v1 = vpop.f32.mrb[104].mxu1  ;;  %v3122_v3 = vmax.f32 %v2459_v51, %v3080_v39  ;;  %v2460_v8 = vmax.f32 %v5089_v5, %v2418_v54  ;;  %v2335_v9 = vmul.f32 %v5306_v56, %v2198_v63  ;;  %v2200_v17 = vpop.f32.mrb[105].mxu0 }
 0x1d4   : > { %v2998_v15 = vmul.f32 %v5306_v56, %v2861_v1  ;;  %v2863_v57 = vpop.f32.mrb[105].mxu1  ;;  %v2201_v16 = vpop.f32.mrb[106].mxu0 }
 0x1d5   : > { %v2864_v18 = vpop.f32.mrb[106].mxu1  ;;  %v4124_v0 = vpack.c.bf16 %v3122_v3, %v3122_v3  ;;  %v3123_v24 = vmax.f32 %v2460_v8, %v3081_v60  ;;  %v2377_v42 = vadd.f32 %v5313_v22, %v2335_v9  ;;  %v2203_v34 = vpop.f32.mrb[107].mxu0  ;;  %v2336_v25 = vmul.f32 %v5306_v56, %v2201_v16 }
 0x1d6   : > { %v3040_v6 = vadd.f32 %v5313_v22, %v2998_v15  ;;  %v2866_v26 = vpop.f32.mrb[107].mxu1  ;;  %v2999_v5 = vmul.f32 %v5306_v56, %v2864_v18 }
 0x1d7   : > { %3333 = vst.msk [vmem:[%s5366_s24 + $0x20] sm:$0xf] %vm3324_vm1, %v4124_v0  ;;  %v4125_v21 = vpack.c.bf16 %v3123_v24, %v3123_v24  ;;  %v2419_v27 = vmax.f32 %v2377_v42, 0.0  ;;  %v2378_v41 = vadd.f32 %v5313_v22, %v2336_v25 }
 0x1d8   : > { %v3082_v33 = vmax.f32 %v3040_v6, 0.0  ;;  %v3041_v11 = vadd.f32 %v5313_v22, %v2999_v5 }
 0x1d9   : > { %3334 = vst.msk [vmem:[%s5366_s24 + $0x24] sm:$0xf] %vm3324_vm1, %v4125_v21  ;;  %v2461_v39 = vmax.f32 %v5105_v30, %v2419_v27  ;;  %v2420_v44 = vmax.f32 %v2378_v41, 0.0 }
 0x1da   : > { %v2206_v47 = vpop.f32.mrb[108].mxu0  ;;  %v3083_v8 = vmax.f32 %v3041_v11, 0.0 }
 0x1db   : > { %v2869_v45 = vpop.f32.mrb[108].mxu1  ;;  %v3124_v51 = vmax.f32 %v2461_v39, %v3082_v33  ;;  %v2337_v54 = vmul.f32 %v5306_v56, %v2206_v47  ;;  %v2208_v63 = vpop.f32.mrb[109].mxu0  ;;  %v2462_v3 = vmax.f32 %v5107_v36, %v2420_v44 }
 0x1dc   : > { %v3000_v60 = vmul.f32 %v5306_v56, %v2869_v45  ;;  %v2871_v1 = vpop.f32.mrb[109].mxu1  ;;  %v2209_v9 = vpop.f32.mrb[110].mxu0 }
 0x1dd   : > { %v2872_v15 = vpop.f32.mrb[110].mxu1  ;;  %v4126_v17 = vpack.c.bf16 %v3124_v51, %v3124_v51  ;;  %v2379_v30 = vadd.f32 %v5313_v22, %v2337_v54  ;;  %v2338_v16 = vmul.f32 %v5306_v56, %v2209_v9  ;;  %v2211_v18 = vpop.f32.mrb[111].mxu0  ;;  %v3125_v24 = vmax.f32 %v2462_v3, %v3083_v8 }
 0x1de   : > { %v3042_v57 = vadd.f32 %v5313_v22, %v3000_v60  ;;  %v2874_v0 = vpop.f32.mrb[111].mxu1  ;;  %v3001_v42 = vmul.f32 %v5306_v56, %v2872_v15 }
 0x1df   : > { %3335 = vst.msk [vmem:[%s5366_s24 + $0x28] sm:$0xf] %vm3324_vm1, %v4126_v17  ;;  %v2421_v6 = vmax.f32 %v2379_v30, 0.0  ;;  %v2380_v34 = vadd.f32 %v5313_v22, %v2338_v16  ;;  %v4127_v26 = vpack.c.bf16 %v3125_v24, %v3125_v24 }
 0x1e0   : > { %v3084_v36 = vmax.f32 %v3042_v57, 0.0  ;;  %v3043_v25 = vadd.f32 %v5313_v22, %v3001_v42 }
 0x1e1   : > { %v2463_v5 = vmax.f32 %v5123_v62, %v2421_v6  ;;  %v2422_v21 = vmax.f32 %v2380_v34, 0.0  ;;  %3336 = vst.msk [vmem:[%s5366_s24 + $0x2c] sm:$0xf] %vm3324_vm1, %v4127_v26 }
 0x1e2   : > { %v3085_v27 = vmax.f32 %v3043_v25, 0.0  ;;  %v2214_v33 = vpop.f32.mrb[112].mxu0 }
 0x1e3   : > { %v2877_v41 = vpop.f32.mrb[112].mxu1  ;;  %v3126_v11 = vmax.f32 %v2463_v5, %v3084_v36  ;;  %v2464_v39 = vmax.f32 %v5125_v4, %v2422_v21  ;;  %v2339_v44 = vmul.f32 %v5306_v56, %v2214_v33  ;;  %v2216_v45 = vpop.f32.mrb[113].mxu0 }
 0x1e4   : > { %v3002_v47 = vmul.f32 %v5306_v56, %v2877_v41  ;;  %v2879_v51 = vpop.f32.mrb[113].mxu1  ;;  %v2217_v54 = vpop.f32.mrb[114].mxu0 }
 0x1e5   : > { %v2880_v60 = vpop.f32.mrb[114].mxu1  ;;  %v4128_v62 = vpack.c.bf16 %v3126_v11, %v3126_v11  ;;  %v3127_v63 = vmax.f32 %v2464_v39, %v3085_v27  ;;  %v2381_v1 = vadd.f32 %v5313_v22, %v2339_v44  ;;  %v2219_v8 = vpop.f32.mrb[115].mxu0  ;;  %v2340_v15 = vmul.f32 %v5306_v56, %v2217_v54 }
 0x1e6   : > { %v3044_v3 = vadd.f32 %v5313_v22, %v3002_v47  ;;  %v2882_v9 = vpop.f32.mrb[115].mxu1  ;;  %v3003_v4 = vmul.f32 %v5306_v56, %v2880_v60 }
 0x1e7   : > { %3337 = vst.msk [vmem:[%s5366_s24 + $0x30] sm:$0xf] %vm3324_vm1, %v4128_v62  ;;  %v4129_v17 = vpack.c.bf16 %v3127_v63, %v3127_v63  ;;  %v2423_v30 = vmax.f32 %v2381_v1, 0.0  ;;  %v2382_v16 = vadd.f32 %v5313_v22, %v2340_v15 }
 0x1e8   : > { %v3086_v57 = vmax.f32 %v3044_v3, 0.0  ;;  %v3045_v18 = vadd.f32 %v5313_v22, %v3003_v4 }
 0x1e9   : > { %3338 = vst.msk [vmem:[%s5366_s24 + $0x34] sm:$0xf] %vm3324_vm1, %v4129_v17  ;;  %v2465_v0 = vmax.f32 %v5141_v31, %v2423_v30  ;;  %v2424_v24 = vmax.f32 %v2382_v16, 0.0 }
 0x1ea   : > { %v2222_v42 = vpop.f32.mrb[116].mxu0  ;;  %v3087_v27 = vmax.f32 %v3045_v18, 0.0 }
 0x1eb   : > { %v2885_v6 = vpop.f32.mrb[116].mxu1  ;;  %v3128_v36 = vmax.f32 %v2465_v0, %v3086_v57  ;;  %v2341_v34 = vmul.f32 %v5306_v56, %v2222_v42  ;;  %v2224_v25 = vpop.f32.mrb[117].mxu0  ;;  %v2466_v21 = vmax.f32 %v5143_v38, %v2424_v24 }
 0x1ec   : > { %v3004_v26 = vmul.f32 %v5306_v56, %v2885_v6  ;;  %v2887_v5 = vpop.f32.mrb[117].mxu1  ;;  %v2225_v33 = vpop.f32.mrb[118].mxu0 }
 0x1ed   : > { %v2888_v41 = vpop.f32.mrb[118].mxu1  ;;  %v4130_v11 = vpack.c.bf16 %v3128_v36, %v3128_v36  ;;  %v2383_v31 = vadd.f32 %v5313_v22, %v2341_v34  ;;  %v2342_v44 = vmul.f32 %v5306_v56, %v2225_v33  ;;  %v2227_v47 = vpop.f32.mrb[119].mxu0  ;;  %v3129_v51 = vmax.f32 %v2466_v21, %v3087_v27 }
 0x1ee   : > { %v3046_v39 = vadd.f32 %v5313_v22, %v3004_v26  ;;  %v2890_v45 = vpop.f32.mrb[119].mxu1  ;;  %v3005_v54 = vmul.f32 %v5306_v56, %v2888_v41 }
 0x1ef   : > { %3339 = vst.msk [vmem:[%s5366_s24 + $0x38] sm:$0xf] %vm3324_vm1, %v4130_v11  ;;  %v2425_v60 = vmax.f32 %v2383_v31, 0.0  ;;  %v2384_v62 = vadd.f32 %v5313_v22, %v2342_v44  ;;  %v4131_v63 = vpack.c.bf16 %v3129_v51, %v3129_v51 }
 0x1f0   : > { %v3088_v38 = vmax.f32 %v3046_v39, 0.0  ;;  %v3047_v1 = vadd.f32 %v5313_v22, %v3005_v54 }
 0x1f1   : > { %v2467_v3 = vmax.f32 %v5159_v2, %v2425_v60  ;;  %v2426_v8 = vmax.f32 %v2384_v62, 0.0  ;;  %3340 = vst.msk [vmem:[%s5366_s24 + $0x3c] sm:$0xf] %vm3324_vm1, %v4131_v63 }
 0x1f2   : > { %v3089_v9 = vmax.f32 %v3047_v1, 0.0  ;;  %v2230_v15 = vpop.f32.mrb[120].mxu0 }
 0x1f3   : > { %v2893_v4 = vpop.f32.mrb[120].mxu1  ;;  %v3130_v17 = vmax.f32 %v2467_v3, %v3088_v38  ;;  %v2468_v30 = vmax.f32 %v5161_v10, %v2426_v8  ;;  %v2343_v57 = vmul.f32 %v5306_v56, %v2230_v15  ;;  %v2232_v18 = vpop.f32.mrb[121].mxu0 }
 0x1f4   : > { %v3006_v16 = vmul.f32 %v5306_v56, %v2893_v4  ;;  %v2895_v0 = vpop.f32.mrb[121].mxu1  ;;  %v2233_v24 = vpop.f32.mrb[122].mxu0 }
 0x1f5   : > { %v2896_v42 = vpop.f32.mrb[122].mxu1  ;;  %v4132_v2 = vpack.c.bf16 %v3130_v17, %v3130_v17  ;;  %v3131_v6 = vmax.f32 %v2468_v30, %v3089_v9  ;;  %v2385_v36 = vadd.f32 %v5313_v22, %v2343_v57  ;;  %v2235_v26 = vpop.f32.mrb[123].mxu0  ;;  %v2344_v5 = vmul.f32 %v5306_v56, %v2233_v24 }
 0x1f6   : > { %v3048_v34 = vadd.f32 %v5313_v22, %v3006_v16  ;;  %v2898_v25 = vpop.f32.mrb[123].mxu1  ;;  %v3007_v10 = vmul.f32 %v5306_v56, %v2896_v42 }
 0x1f7   : > { %3341 = vst.msk [vmem:[%s5366_s24 + $0x40] sm:$0xf] %vm3324_vm1, %v4132_v2  ;;  %v4133_v21 = vpack.c.bf16 %v3131_v6, %v3131_v6  ;;  %v2427_v27 = vmax.f32 %v2385_v36, 0.0  ;;  %v2386_v41 = vadd.f32 %v5313_v22, %v2344_v5 }
 0x1f8   : > { %v3090_v33 = vmax.f32 %v3048_v34, 0.0  ;;  %v3049_v11 = vadd.f32 %v5313_v22, %v3007_v10 }
 0x1f9   : > { %3342 = vst.msk [vmem:[%s5366_s24 + $0x44] sm:$0xf] %vm3324_vm1, %v4133_v21  ;;  %v2469_v31 = vmax.f32 %v5177_v40, %v2427_v27  ;;  %v2428_v39 = vmax.f32 %v2386_v41, 0.0 }
 0x1fa   : > { %v2238_v44 = vpop.f32.mrb[124].mxu0  ;;  %v3091_v63 = vmax.f32 %v3049_v11, 0.0 }
 0x1fb   : > { %v2901_v47 = vpop.f32.mrb[124].mxu1  ;;  %v3132_v45 = vmax.f32 %v2469_v31, %v3090_v33  ;;  %v2345_v51 = vmul.f32 %v5306_v56, %v2238_v44  ;;  %v2240_v60 = vpop.f32.mrb[125].mxu0  ;;  %v2470_v62 = vmax.f32 %v5179_v46, %v2428_v39 }
 0x1fc   : > { %v3008_v54 = vmul.f32 %v5306_v56, %v2901_v47  ;;  %v2903_v38 = vpop.f32.mrb[125].mxu1  ;;  %v2241_v1 = vpop.f32.mrb[126].mxu0 }
 0x1fd   : > { %v2904_v3 = vpop.f32.mrb[126].mxu1  ;;  %v4134_v8 = vpack.c.bf16 %v3132_v45, %v3132_v45  ;;  %v2387_v40 = vadd.f32 %v5313_v22, %v2345_v51  ;;  %v2346_v15 = vmul.f32 %v5306_v56, %v2241_v1  ;;  %v2243_v4 = vpop.f32.mrb[127].mxu0  ;;  %v3133_v30 = vmax.f32 %v2470_v62, %v3091_v63 }
 0x1fe   : > { %v3050_v9 = vadd.f32 %v5313_v22, %v3008_v54  ;;  %v2906_v17 = vpop.f32.mrb[127].mxu1  ;;  %v3009_v57 = vmul.f32 %v5306_v56, %v2904_v3 }
 0x1ff   : > { %3343 = vst.msk [vmem:[%s5366_s24 + $0x48] sm:$0xf] %vm3324_vm1, %v4134_v8  ;;  %v2429_v16 = vmax.f32 %v2387_v40, 0.0  ;;  %v2388_v18 = vadd.f32 %v5313_v22, %v2346_v15  ;;  %v4135_v0 = vpack.c.bf16 %v3133_v30, %v3133_v30 }
 0x200   : > { %v3092_v46 = vmax.f32 %v3050_v9, 0.0  ;;  %v3051_v24 = vadd.f32 %v5313_v22, %v3009_v57 }
 0x201   : > { %v2471_v42 = vmax.f32 %v5195_v14, %v2429_v16  ;;  %v2430_v2 = vmax.f32 %v2388_v18, 0.0  ;;  %3344 = vst.msk [vmem:[%s5366_s24 + $0x4c] sm:$0xf] %vm3324_vm1, %v4135_v0 }
 0x202   : > { %v3093_v6 = vmax.f32 %v3051_v24, 0.0  ;;  %v2246_v36 = vpop.f32.mrb[128].mxu0 }
 0x203   : > { %v2909_v34 = vpop.f32.mrb[128].mxu1  ;;  %v3134_v26 = vmax.f32 %v2471_v42, %v3092_v46  ;;  %v2472_v25 = vmax.f32 %v5197_v20, %v2430_v2  ;;  %v2347_v5 = vmul.f32 %v5306_v56, %v2246_v36  ;;  %v2248_v21 = vpop.f32.mrb[129].mxu0 }
 0x204   : > { %v3010_v10 = vmul.f32 %v5306_v56, %v2909_v34  ;;  %v2911_v27 = vpop.f32.mrb[129].mxu1  ;;  %v2249_v33 = vpop.f32.mrb[130].mxu0 }
 0x205   : > { %v2912_v41 = vpop.f32.mrb[130].mxu1  ;;  %v4136_v14 = vpack.c.bf16 %v3134_v26, %v3134_v26  ;;  %v3135_v11 = vmax.f32 %v2472_v25, %v3093_v6  ;;  %v2389_v31 = vadd.f32 %v5313_v22, %v2347_v5  ;;  %v2251_v44 = vpop.f32.mrb[131].mxu0  ;;  %v2348_v45 = vmul.f32 %v5306_v56, %v2249_v33 }
 0x206   : > { %v3052_v39 = vadd.f32 %v5313_v22, %v3010_v10  ;;  %v2914_v47 = vpop.f32.mrb[131].mxu1  ;;  %v3011_v20 = vmul.f32 %v5306_v56, %v2912_v41 }
 0x207   : > { %3345 = vst.msk [vmem:[%s5366_s24 + $0x50] sm:$0xf] %vm3324_vm1, %v4136_v14  ;;  %v4137_v51 = vpack.c.bf16 %v3135_v11, %v3135_v11  ;;  %v2431_v54 = vmax.f32 %v2389_v31, 0.0  ;;  %v2390_v38 = vadd.f32 %v5313_v22, %v2348_v45 }
 0x208   : > { %v3094_v60 = vmax.f32 %v3052_v39, 0.0  ;;  %v3053_v62 = vadd.f32 %v5313_v22, %v3011_v20 }
 0x209   : > { %3346 = vst.msk [vmem:[%s5366_s24 + $0x54] sm:$0xf] %vm3324_vm1, %v4137_v51  ;;  %v2473_v63 = vmax.f32 %v5213_v52, %v2431_v54  ;;  %v2432_v1 = vmax.f32 %v2390_v38, 0.0 }
 0x20a   : > { %v2254_v3 = vpop.f32.mrb[132].mxu0  ;;  %v3095_v57 = vmax.f32 %v3053_v62, 0.0 }
 0x20b   : > { %v2917_v8 = vpop.f32.mrb[132].mxu1  ;;  %v3136_v40 = vmax.f32 %v2473_v63, %v3094_v60  ;;  %v2349_v9 = vmul.f32 %v5306_v56, %v2254_v3  ;;  %v2256_v4 = vpop.f32.mrb[133].mxu0  ;;  %v2474_v30 = vmax.f32 %v5215_v59, %v2432_v1 }
 0x20c   : > { %v3012_v15 = vmul.f32 %v5306_v56, %v2917_v8  ;;  %v2919_v17 = vpop.f32.mrb[133].mxu1  ;;  %v2257_v16 = vpop.f32.mrb[134].mxu0 }
 0x20d   : > { %v2920_v46 = vpop.f32.mrb[134].mxu1  ;;  %v4138_v18 = vpack.c.bf16 %v3136_v40, %v3136_v40  ;;  %v2391_v52 = vadd.f32 %v5313_v22, %v2349_v9  ;;  %v2350_v24 = vmul.f32 %v5306_v56, %v2257_v16  ;;  %v2259_v42 = vpop.f32.mrb[135].mxu0  ;;  %v3137_v6 = vmax.f32 %v2474_v30, %v3095_v57 }
 0x20e   : > { %v3054_v0 = vadd.f32 %v5313_v22, %v3012_v15  ;;  %v2922_v2 = vpop.f32.mrb[135].mxu1  ;;  %v3013_v36 = vmul.f32 %v5306_v56, %v2920_v46 }
 0x20f   : > { %3347 = vst.msk [vmem:[%s5366_s24 + $0x58] sm:$0xf] %vm3324_vm1, %v4138_v18  ;;  %v2433_v34 = vmax.f32 %v2391_v52, 0.0  ;;  %v2392_v26 = vadd.f32 %v5313_v22, %v2350_v24  ;;  %v4139_v25 = vpack.c.bf16 %v3137_v6, %v3137_v6 }
 0x210   : > { %v3096_v59 = vmax.f32 %v3054_v0, 0.0  ;;  %v3055_v5 = vadd.f32 %v5313_v22, %v3013_v36 }
 0x211   : > { %v2475_v10 = vmax.f32 %v5231_v28, %v2433_v34  ;;  %v2434_v21 = vmax.f32 %v2392_v26, 0.0  ;;  %3348 = vst.msk [vmem:[%s5366_s24 + $0x5c] sm:$0xf] %vm3324_vm1, %v4139_v25 }
 0x212   : > { %v3097_v27 = vmax.f32 %v3055_v5, 0.0  ;;  %v2262_v33 = vpop.f32.mrb[136].mxu0 }
 0x213   : > { %v2925_v41 = vpop.f32.mrb[136].mxu1  ;;  %v3138_v14 = vmax.f32 %v2475_v10, %v3096_v59  ;;  %v2476_v11 = vmax.f32 %v5233_v37, %v2434_v21  ;;  %v2351_v31 = vmul.f32 %v5306_v56, %v2262_v33  ;;  %v2264_v44 = vpop.f32.mrb[137].mxu0 }
 0x214   : > { %v3014_v39 = vmul.f32 %v5306_v56, %v2925_v41  ;;  %v2927_v47 = vpop.f32.mrb[137].mxu1  ;;  %v2265_v45 = vpop.f32.mrb[138].mxu0 }
 0x215   : > { %v2928_v20 = vpop.f32.mrb[138].mxu1  ;;  %v4140_v28 = vpack.c.bf16 %v3138_v14, %v3138_v14  ;;  %v3139_v51 = vmax.f32 %v2476_v11, %v3097_v27  ;;  %v2393_v54 = vadd.f32 %v5313_v22, %v2351_v31  ;;  %v2267_v38 = vpop.f32.mrb[139].mxu0  ;;  %v2352_v63 = vmul.f32 %v5306_v56, %v2265_v45 }
 0x216   : > { %v3056_v60 = vadd.f32 %v5313_v22, %v3014_v39  ;;  %v2930_v62 = vpop.f32.mrb[139].mxu1  ;;  %v3015_v37 = vmul.f32 %v5306_v56, %v2928_v20 }
 0x217   : > { %3349 = vst.msk [vmem:[%s5366_s24 + $0x60] sm:$0xf] %vm3324_vm1, %v4140_v28  ;;  %v4141_v1 = vpack.c.bf16 %v3139_v51, %v3139_v51  ;;  %v2435_v3 = vmax.f32 %v2393_v54, 0.0  ;;  %v2394_v40 = vadd.f32 %v5313_v22, %v2352_v63 }
 0x218   : > { %v3098_v8 = vmax.f32 %v3056_v60, 0.0  ;;  %v3057_v9 = vadd.f32 %v5313_v22, %v3015_v37 }
 0x219   : > { %3350 = vst.msk [vmem:[%s5366_s24 + $0x64] sm:$0xf] %vm3324_vm1, %v4141_v1  ;;  %v2477_v15 = vmax.f32 %v5249_v12, %v2435_v3  ;;  %v2436_v4 = vmax.f32 %v2394_v40, 0.0 }
 0x21a   : > { %v2270_v17 = vpop.f32.mrb[140].mxu0  ;;  %v3099_v24 = vmax.f32 %v3057_v9, 0.0 }
 0x21b   : > { %v2933_v30 = vpop.f32.mrb[140].mxu1  ;;  %v3140_v57 = vmax.f32 %v2477_v15, %v3098_v8  ;;  %v2353_v16 = vmul.f32 %v5306_v56, %v2270_v17  ;;  %v2272_v18 = vpop.f32.mrb[141].mxu0  ;;  %v2478_v0 = vmax.f32 %v5251_v19, %v2436_v4 }
 0x21c   : > { %v3016_v46 = vmul.f32 %v5306_v56, %v2933_v30  ;;  %v2935_v52 = vpop.f32.mrb[141].mxu1  ;;  %v2273_v42 = vpop.f32.mrb[142].mxu0 }
 0x21d   : > { %v2936_v2 = vpop.f32.mrb[142].mxu1  ;;  %v4142_v6 = vpack.c.bf16 %v3140_v57, %v3140_v57  ;;  %v2395_v12 = vadd.f32 %v5313_v22, %v2353_v16  ;;  %v2354_v34 = vmul.f32 %v5306_v56, %v2273_v42  ;;  %v2275_v59 = vpop.f32.mrb[143].mxu0  ;;  %v3141_v25 = vmax.f32 %v2478_v0, %v3099_v24  ;;  %v5575_v52 = vld [vmem:[%s5811_s5] ss:$0 sm:$0xff] }
 0x21e   : > { %v3058_v36 = vadd.f32 %v5313_v22, %v3016_v46  ;;  %v2938_v26 = vpop.f32.mrb[143].mxu1  ;;  %v3017_v5 = vmul.f32 %v5306_v56, %v2936_v2 }
 0x21f   : > { %3351 = vst.msk [vmem:[%s5366_s24 + $0x68] sm:$0xf] %vm3324_vm1, %v4142_v6  ;;  %v2437_v10 = vmax.f32 %v2395_v12, 0.0  ;;  %v2396_v21 = vadd.f32 %v5313_v22, %v2354_v34  ;;  %v4143_v27 = vpack.c.bf16 %v3141_v25, %v3141_v25 }
 0x220   : > { %v3100_v19 = vmax.f32 %v3058_v36, 0.0  ;;  %v3059_v33 = vadd.f32 %v5313_v22, %v3017_v5 }
 0x221   : > { %v2479_v41 = vmax.f32 %v5263_v53, %v2437_v10  ;;  %v2438_v14 = vmax.f32 %v2396_v21, 0.0  ;;  %3352 = vst.msk [vmem:[%s5366_s24 + $0x6c] sm:$0xf] %vm3324_vm1, %v4143_v27 }
 0x222   : > { %v3101_v11 = vmax.f32 %v3059_v33, 0.0  ;;  %v2278_v31 = vpop.f32.mrb[144].mxu0 }
 0x223   : > { %v2941_v39 = vpop.f32.mrb[144].mxu1  ;;  %v3142_v44 = vmax.f32 %v2479_v41, %v3100_v19  ;;  %v2480_v47 = vmax.f32 %v5265_v61, %v2438_v14  ;;  %v2355_v45 = vmul.f32 %v5306_v56, %v2278_v31  ;;  %v2280_v28 = vpop.f32.mrb[145].mxu0 }
 0x224   : > { %v3018_v20 = vmul.f32 %v5306_v56, %v2941_v39  ;;  %v2943_v51 = vpop.f32.mrb[145].mxu1  ;;  %v2281_v54 = vpop.f32.mrb[146].mxu0 }
 0x225   : > { %v2944_v60 = vpop.f32.mrb[146].mxu1  ;;  %v4144_v53 = vpack.c.bf16 %v3142_v44, %v3142_v44  ;;  %v3143_v38 = vmax.f32 %v2480_v47, %v3101_v11  ;;  %v2397_v62 = vadd.f32 %v5313_v22, %v2355_v45  ;;  %v2283_v37 = vpop.f32.mrb[147].mxu0  ;;  %v2356_v3 = vmul.f32 %v5306_v56, %v2281_v54 }
 0x226   : > { %v3060_v63 = vadd.f32 %v5313_v22, %v3018_v20  ;;  %v2946_v1 = vpop.f32.mrb[147].mxu1  ;;  %v3019_v61 = vmul.f32 %v5306_v56, %v2944_v60 }
 0x227   : > { %3353 = vst.msk [vmem:[%s5366_s24 + $0x70] sm:$0xf] %vm3324_vm1, %v4144_v53  ;;  %v4145_v8 = vpack.c.bf16 %v3143_v38, %v3143_v38  ;;  %v2439_v40 = vmax.f32 %v2397_v62, 0.0  ;;  %v2398_v15 = vadd.f32 %v5313_v22, %v2356_v3 }
 0x228   : > { %v3102_v9 = vmax.f32 %v3060_v63, 0.0  ;;  %v3061_v4 = vadd.f32 %v5313_v22, %v3019_v61 }
 0x229   : > { %3354 = vst.msk [vmem:[%s5366_s24 + $0x74] sm:$0xf] %vm3324_vm1, %v4145_v8  ;;  %v2481_v17 = vmax.f32 %v5275_v29, %v2439_v40  ;;  %v2440_v30 = vmax.f32 %v2398_v15, 0.0 }
 0x22a   : > { %v2286_v57 = vpop.f32.mrb[148].mxu0  ;;  %v3103_v2 = vmax.f32 %v3061_v4, 0.0 }
 0x22b   : > { %v2949_v16 = vpop.f32.mrb[148].mxu1  ;;  %v3144_v46 = vmax.f32 %v2481_v17, %v3102_v9  ;;  %v2357_v18 = vmul.f32 %v5306_v56, %v2286_v57  ;;  %v2288_v24 = vpop.f32.mrb[149].mxu0  ;;  %v2482_v42 = vmax.f32 %v5277_v43, %v2440_v30  ;;  %v5582_v56 = vld [vmem:[%s5812_s6] ss:$0 sm:$0xff] }
 0x22c   : > { %v3020_v0 = vmul.f32 %v5575_v52, %v2949_v16  ;;  %v2951_v22 = vpop.f32.mrb[149].mxu1  ;;  %v2289_v29 = vpop.f32.mrb[150].mxu0 }
 0x22d   : > { %v2952_v6 = vpop.f32.mrb[150].mxu1  ;;  %v4146_v12 = vpack.c.bf16 %v3144_v46, %v3144_v46  ;;  %v2399_v36 = vadd.f32 %v5582_v56, %v2357_v18  ;;  %v2358_v59 = vmul.f32 %v5575_v52, %v2289_v29  ;;  %v2291_v26 = vpop.f32.mrb[151].mxu0  ;;  %v3145_v5 = vmax.f32 %v2482_v42, %v3103_v2 }
 0x22e   : > { %v3062_v34 = vadd.f32 %v5582_v56, %v3020_v0  ;;  %v2954_v25 = vpop.f32.mrb[151].mxu1  ;;  %v3021_v43 = vmul.f32 %v5575_v52, %v2952_v6 }
 0x22f   : > { %3355 = vst.msk [vmem:[%s5366_s24 + $0x78] sm:$0xf] %vm3324_vm1, %v4146_v12  ;;  %v2441_v10 = vmax.f32 %v2399_v36, 0.0  ;;  %v2400_v21 = vadd.f32 %v5582_v56, %v2358_v59  ;;  %v4147_v27 = vpack.c.bf16 %v3145_v5, %v3145_v5 }
 0x230   : > { %v3104_v19 = vmax.f32 %v3062_v34, 0.0  ;;  %v3063_v33 = vadd.f32 %v5582_v56, %v3021_v43 }
 0x231   : > { %v2483_v41 = vmax.f32 %v5287_v13, %v2441_v10  ;;  %v2442_v14 = vmax.f32 %v2400_v21, 0.0  ;;  %3356 = vst.msk [vmem:[%s5366_s24 + $0x7c] sm:$0xf] %vm3324_vm1, %v4147_v27 }
 0x232   : > { %v3105_v11 = vmax.f32 %v3063_v33, 0.0  ;;  %v2294_v31 = vpop.f32.mrb[152].mxu0 }
 0x233   : > { %v2957_v39 = vpop.f32.mrb[152].mxu1  ;;  %v3146_v44 = vmax.f32 %v2483_v41, %v3104_v19  ;;  %v2484_v47 = vmax.f32 %v5289_v23, %v2442_v14  ;;  %v2359_v45 = vmul.f32 %v5575_v52, %v2294_v31  ;;  %v2296_v28 = vpop.f32.mrb[153].mxu0 }
 0x234   : > { %v3022_v20 = vmul.f32 %v5575_v52, %v2957_v39  ;;  %v2959_v51 = vpop.f32.mrb[153].mxu1  ;;  %v2297_v54 = vpop.f32.mrb[154].mxu0 }
 0x235   : > { %v2960_v60 = vpop.f32.mrb[154].mxu1  ;;  %v4148_v13 = vpack.c.bf16 %v3146_v44, %v3146_v44  ;;  %v3147_v53 = vmax.f32 %v2484_v47, %v3105_v11  ;;  %v2401_v38 = vadd.f32 %v5582_v56, %v2359_v45  ;;  %v2299_v63 = vpop.f32.mrb[155].mxu0  ;;  %v2360_v1 = vmul.f32 %v5575_v52, %v2297_v54 }
 0x236   : > { %v3064_v62 = vadd.f32 %v5582_v56, %v3022_v20  ;;  %v2962_v37 = vpop.f32.mrb[155].mxu1  ;;  %v3023_v23 = vmul.f32 %v5575_v52, %v2960_v60 }
 0x237   : > { %3357 = vst.msk [vmem:[%s5366_s24 + $0x80] sm:$0xf] %vm3324_vm1, %v4148_v13  ;;  %v4149_v3 = vpack.c.bf16 %v3147_v53, %v3147_v53  ;;  %v2443_v61 = vmax.f32 %v2401_v38, 0.0  ;;  %v2402_v40 = vadd.f32 %v5582_v56, %v2360_v1 }
 0x238   : > { %v3106_v8 = vmax.f32 %v3064_v62, 0.0  ;;  %v3065_v9 = vadd.f32 %v5582_v56, %v3023_v23 }
 0x239   : > { %3358 = vst.msk [vmem:[%s5366_s24 + $0x84] sm:$0xf] %vm3324_vm1, %v4149_v3  ;;  %v2485_v15 = vmax.f32 %v5299_v58, %v2443_v61  ;;  %v2444_v4 = vmax.f32 %v2402_v40, 0.0 }
 0x23a   : > { %v2302_v17 = vpop.f32.mrb[156].mxu0  ;;  %v3107_v22 = vmax.f32 %v3065_v9, 0.0 }
 0x23b   : > { %v2965_v30 = vpop.f32.mrb[156].mxu1  ;;  %v3148_v57 = vmax.f32 %v2485_v15, %v3106_v8  ;;  %v2361_v16 = vmul.f32 %v5575_v52, %v2302_v17  ;;  %v2304_v18 = vpop.f32.mrb[157].mxu0  ;;  %v2486_v24 = vmax.f32 %v5301_v7, %v2444_v4 }
 0x23c   : > { %v3024_v46 = vmul.f32 %v5575_v52, %v2965_v30  ;;  %v2967_v0 = vpop.f32.mrb[157].mxu1  ;;  %v2305_v42 = vpop.f32.mrb[158].mxu0 }
 0x23d   : > { %v2968_v2 = vpop.f32.mrb[158].mxu1  ;;  %v4150_v29 = vpack.c.bf16 %v3148_v57, %v3148_v57  ;;  %v2403_v58 = vadd.f32 %v5582_v56, %v2361_v16  ;;  %v2362_v12 = vmul.f32 %v5575_v52, %v2305_v42  ;;  %v2307_v36 = vpop.f32.mrb[159].mxu0  ;;  %v3149_v59 = vmax.f32 %v2486_v24, %v3107_v22 }
 0x23e   : > { %v3066_v6 = vadd.f32 %v5582_v56, %v3024_v46  ;;  %v2970_v34 = vpop.f32.mrb[159].mxu1  ;;  %v3025_v26 = vmul.f32 %v5575_v52, %v2968_v2 }
 0x23f   : > { %3359 = vst.msk [vmem:[%s5366_s24 + $0x88] sm:$0xf] %vm3324_vm1, %v4150_v29  ;;  %v2445_v25 = vmax.f32 %v2403_v58, 0.0  ;;  %v2404_v5 = vadd.f32 %v5582_v56, %v2362_v12  ;;  %v4151_v43 = vpack.c.bf16 %v3149_v59, %v3149_v59 }
 0x240   : > { %v3108_v7 = vmax.f32 %v3066_v6, 0.0  ;;  %v3067_v10 = vadd.f32 %v5582_v56, %v3025_v26 }
 0x241   : > { %v2487_v19 = vmax.f32 %v5321_v48, %v2445_v25  ;;  %v2446_v21 = vmax.f32 %v2404_v5, 0.0  ;;  %3360 = vst.msk [vmem:[%s5366_s24 + $0x8c] sm:$0xf] %vm3324_vm1, %v4151_v43 }
 0x242   : > { %v3109_v27 = vmax.f32 %v3067_v10, 0.0  ;;  %v2310_v33 = vpop.f32.mrb[160].mxu0 }
 0x243   : > { %v2973_v41 = vpop.f32.mrb[160].mxu1  ;;  %v3150_v14 = vmax.f32 %v2487_v19, %v3108_v7  ;;  %v2488_v11 = vmax.f32 %v5323_v55, %v2446_v21  ;;  %v2363_v31 = vmul.f32 %v5575_v52, %v2310_v33  ;;  %v2312_v44 = vpop.f32.mrb[161].mxu0 }
 0x244   : > { %v3026_v39 = vmul.f32 %v5575_v52, %v2973_v41  ;;  %v2975_v47 = vpop.f32.mrb[161].mxu1  ;;  %v2313_v45 = vpop.f32.mrb[162].mxu0 }
 0x245   : > { %v2976_v20 = vpop.f32.mrb[162].mxu1  ;;  %v4152_v48 = vpack.c.bf16 %v3150_v14, %v3150_v14  ;;  %v3151_v28 = vmax.f32 %v2488_v11, %v3109_v27  ;;  %v2405_v51 = vadd.f32 %v5582_v56, %v2363_v31  ;;  %v2315_v60 = vpop.f32.mrb[163].mxu0  ;;  %v2364_v53 = vmul.f32 %v5575_v52, %v2313_v45 }
 0x246   : > { %v3068_v54 = vadd.f32 %v5582_v56, %v3026_v39  ;;  %v2978_v13 = vpop.f32.mrb[163].mxu1  ;;  %v3027_v55 = vmul.f32 %v5575_v52, %v2976_v20 }
 0x247   : > { %3361 = vst.msk [vmem:[%s5366_s24 + $0x90] sm:$0xf] %vm3324_vm1, %v4152_v48  ;;  %v4153_v38 = vpack.c.bf16 %v3151_v28, %v3151_v28  ;;  %v2447_v62 = vmax.f32 %v2405_v51, 0.0  ;;  %v2406_v37 = vadd.f32 %v5582_v56, %v2364_v53 }
 0x248   : > { %v3110_v63 = vmax.f32 %v3068_v54, 0.0  ;;  %v3069_v1 = vadd.f32 %v5582_v56, %v3027_v55 }
 0x249   : > { %3362 = vst.msk [vmem:[%s5366_s24 + $0x94] sm:$0xf] %vm3324_vm1, %v4153_v38  ;;  %v2489_v23 = vmax.f32 %v5333_v35, %v2447_v62  ;;  %v2448_v3 = vmax.f32 %v2406_v37, 0.0 }
 0x24a   : > { %v2318_v61 = vpop.f32.mrb[164].mxu0  ;;  %v3111_v57 = vmax.f32 %v3069_v1, 0.0 }
 0x24b   : > { %v2981_v8 = vpop.f32.mrb[164].mxu1  ;;  %v3152_v40 = vmax.f32 %v2489_v23, %v3110_v63  ;;  %v2365_v9 = vmul.f32 %v5575_v52, %v2318_v61  ;;  %v2320_v4 = vpop.f32.mrb[165].mxu0  ;;  %v2490_v30 = vmax.f32 %v5335_v50, %v2448_v3 }
 0x24c   : > { %v3028_v15 = vmul.f32 %v5575_v52, %v2981_v8  ;;  %v2983_v17 = vpop.f32.mrb[165].mxu1  ;;  %v2321_v16 = vpop.f32.mrb[166].mxu0 }
 0x24d   : > { %v2984_v46 = vpop.f32.mrb[166].mxu1  ;;  %v4154_v18 = vpack.c.bf16 %v3152_v40, %v3152_v40  ;;  %v2407_v35 = vadd.f32 %v5582_v56, %v2365_v9  ;;  %v2366_v24 = vmul.f32 %v5575_v52, %v2321_v16  ;;  %v2323_v22 = vpop.f32.mrb[167].mxu0  ;;  %v3153_v2 = vmax.f32 %v2490_v30, %v3111_v57 }
 0x24e   : > { %v3070_v0 = vadd.f32 %v5582_v56, %v3028_v15  ;;  %v2986_v42 = vpop.f32.mrb[167].mxu1  ;;  %v3029_v29 = vmul.f32 %v5575_v52, %v2984_v46 }
 0x24f   : > { %3363 = vst.msk [vmem:[%s5366_s24 + $0x98] sm:$0xf] %vm3324_vm1, %v4154_v18  ;;  %v2449_v50 = vmax.f32 %v2407_v35, 0.0  ;;  %v2408_v6 = vadd.f32 %v5582_v56, %v2366_v24  ;;  %v4155_v12 = vpack.c.bf16 %v3153_v2, %v3153_v2 }
 0x250   : > { %v3112_v58 = vmax.f32 %v3070_v0, 0.0  ;;  %v3071_v36 = vadd.f32 %v5582_v56, %v3029_v29 }
 0x251   : > { %v2491_v34 = vmax.f32 %v5345_v32, %v2449_v50  ;;  %v2450_v59 = vmax.f32 %v2408_v6, 0.0  ;;  %3364 = vst.msk [vmem:[%s5366_s24 + $0x9c] sm:$0xf] %vm3324_vm1, %v4155_v12 }
 0x252   : > { %v3113_v7 = vmax.f32 %v3071_v36, 0.0 }
 0x253   : > { %v3154_v26 = vmax.f32 %v2491_v34, %v3112_v58  ;;  %v2492_v25 = vmax.f32 %v5347_v49, %v2450_v59  ;;  %3373 = sbr.rel (!%p4673_p4) target bundleno = 691 (0x2b3), region = 52 }
 0x255   : > { %v4156_v52 = vpack.c.bf16 %v3154_v26, %v3154_v26  ;;  %v3155_v5 = vmax.f32 %v2492_v25, %v3113_v7 }
 0x257   : > { %3365 = vst.msk [vmem:[%s5366_s24 + $0xa0] sm:$0xf] %vm3324_vm1, %v4156_v52  ;;  %v4157_v43 = vpack.c.bf16 %v3155_v5, %v3155_v5 }
 0x259   : > { %3366 = vst.msk [vmem:[%s5366_s24 + $0xa4] sm:$0xf] %vm3324_vm1, %v4157_v43 }
 0x25a   : > { %s5822_s11 = smov (!%p3376_p8, %s3375_s11), 42 }
 0x25b   : > { %s4100_s14 = sshll.u32 %s5822_s11, 6 }
 0x25c   : > { %p4103_p9 = scmp.eq.s32.totalorder %s4100_s14, 0 }
 0x25d   : > { %4515 = sdivrem.u32 (!%p4103_p9), %s5822_s11, 42 }
 0x25e   : > { %3384 = sbr.rel (%p4103_p9) target bundleno = 691 (0x2b3), region = 56 }
 0x266   : > { %s5669_s9 = spop.drf %4515 }
 0x267   : > { %p4104_p10 = scmp.le.s32.totalorder %s5669_s9, 0 }
 0x268   : > { %s5815_s27 = smov (!%p4104_p10), %s5663_s26  ;;  %s5816_s12 = smov (!%p4104_p10), %s5366_s24 }
 0x269   : > { %3721 = sbr.rel (%p4104_p10) target bundleno = 662 (0x296), region = 137  ;;  %s5678_s15 = smov (!%p4104_p10), 0  }
 0x26a   : > { %s5680_s16 = smov (!%p4104_p10), 0  }
 0x270 LB: >> { %v3401_v32 = vld [vmem:[%s4581_s12] sm:$0xf]  ;;  %v3403_v49 = vld [vmem:[%s4581_s12 + $0x4] sm:$0xf]  ;;  %v3405_v56 = vld [vmem:[%s4581_s12 + $0x8] sm:$0xf]  ;;  %s4589_s16 = sphi %s5680_s16, %s3395_s16   ;;  %s4585_s15 = sphi %s5678_s15, %s5817_s15   ;;  %s4581_s12 = sphi %s5816_s12, %s3490_s12   ;;  %s4577_s27 = sphi %s5815_s27, %s3491_s27  }
 0x271   : >> { %3402 = vst [vmem:[%s4577_s27] sm:$0xf] %v3401_v32  ;;  %3404 = vst [vmem:[%s4577_s27 + $0x4] sm:$0xf] %v3403_v49  ;;  %v3407_v10 = vld [vmem:[%s4581_s12 + $0xc] sm:$0xf]  ;;  %s3485_s17 = sadd.s32 1, %s4585_s15 }
 0x272   : >> { %3406 = vst [vmem:[%s4577_s27 + $0x8] sm:$0xf] %v3405_v56  ;;  %v3409_v19 = vld [vmem:[%s4581_s12 + $0x10] sm:$0xf]  ;;  %v3411_v21 = vld [vmem:[%s4581_s12 + $0x14] sm:$0xf]  ;;  %p3486_p11 = scmp.ge.s32.totalorder %s3485_s17, %s5669_s9 }
 0x273   : >> { %3408 = vst [vmem:[%s4577_s27 + $0xc] sm:$0xf] %v3407_v10  ;;  %3410 = vst [vmem:[%s4577_s27 + $0x10] sm:$0xf] %v3409_v19  ;;  %v3413_v27 = vld [vmem:[%s4581_s12 + $0x18] sm:$0xf] }
 0x274   : >> { %3412 = vst [vmem:[%s4577_s27 + $0x14] sm:$0xf] %v3411_v21  ;;  %v3415_v33 = vld [vmem:[%s4581_s12 + $0x1c] sm:$0xf]  ;;  %v3417_v41 = vld [vmem:[%s4581_s12 + $0x20] sm:$0xf] }
 0x275   : >> { %3414 = vst [vmem:[%s4577_s27 + $0x18] sm:$0xf] %v3413_v27  ;;  %3416 = vst [vmem:[%s4577_s27 + $0x1c] sm:$0xf] %v3415_v33  ;;  %v3419_v14 = vld [vmem:[%s4581_s12 + $0x24] sm:$0xf] }
 0x276   : >> { %3418 = vst [vmem:[%s4577_s27 + $0x20] sm:$0xf] %v3417_v41  ;;  %v3421_v11 = vld [vmem:[%s4581_s12 + $0x28] sm:$0xf]  ;;  %v3423_v31 = vld [vmem:[%s4581_s12 + $0x2c] sm:$0xf] }
 0x277   : >> { %3420 = vst [vmem:[%s4577_s27 + $0x24] sm:$0xf] %v3419_v14  ;;  %3422 = vst [vmem:[%s4577_s27 + $0x28] sm:$0xf] %v3421_v11  ;;  %v3425_v39 = vld [vmem:[%s4581_s12 + $0x30] sm:$0xf] }
 0x278   : >> { %3424 = vst [vmem:[%s4577_s27 + $0x2c] sm:$0xf] %v3423_v31  ;;  %v3427_v44 = vld [vmem:[%s4581_s12 + $0x34] sm:$0xf]  ;;  %v3429_v47 = vld [vmem:[%s4581_s12 + $0x38] sm:$0xf] }
 0x279   : >> { %3426 = vst [vmem:[%s4577_s27 + $0x30] sm:$0xf] %v3425_v39  ;;  %3428 = vst [vmem:[%s4577_s27 + $0x34] sm:$0xf] %v3427_v44  ;;  %v3431_v45 = vld [vmem:[%s4581_s12 + $0x3c] sm:$0xf] }
 0x27a   : >> { %3430 = vst [vmem:[%s4577_s27 + $0x38] sm:$0xf] %v3429_v47  ;;  %v3433_v20 = vld [vmem:[%s4581_s12 + $0x40] sm:$0xf]  ;;  %v3435_v48 = vld [vmem:[%s4581_s12 + $0x44] sm:$0xf] }
 0x27b   : >> { %3432 = vst [vmem:[%s4577_s27 + $0x3c] sm:$0xf] %v3431_v45  ;;  %3434 = vst [vmem:[%s4577_s27 + $0x40] sm:$0xf] %v3433_v20  ;;  %v3437_v28 = vld [vmem:[%s4581_s12 + $0x48] sm:$0xf] }
 0x27c   : >> { %3436 = vst [vmem:[%s4577_s27 + $0x44] sm:$0xf] %v3435_v48  ;;  %v3439_v51 = vld [vmem:[%s4581_s12 + $0x4c] sm:$0xf]  ;;  %v3441_v54 = vld [vmem:[%s4581_s12 + $0x50] sm:$0xf] }
 0x27d   : >> { %3438 = vst [vmem:[%s4577_s27 + $0x48] sm:$0xf] %v3437_v28  ;;  %3440 = vst [vmem:[%s4577_s27 + $0x4c] sm:$0xf] %v3439_v51  ;;  %v3443_v60 = vld [vmem:[%s4581_s12 + $0x54] sm:$0xf] }
 0x27e   : >> { %3442 = vst [vmem:[%s4577_s27 + $0x50] sm:$0xf] %v3441_v54  ;;  %v3445_v13 = vld [vmem:[%s4581_s12 + $0x58] sm:$0xf]  ;;  %v3447_v53 = vld [vmem:[%s4581_s12 + $0x5c] sm:$0xf] }
 0x27f   : >> { %3444 = vst [vmem:[%s4577_s27 + $0x54] sm:$0xf] %v3443_v60  ;;  %3446 = vst [vmem:[%s4577_s27 + $0x58] sm:$0xf] %v3445_v13  ;;  %v3449_v55 = vld [vmem:[%s4581_s12 + $0x60] sm:$0xf] }
 0x280   : >> { %3448 = vst [vmem:[%s4577_s27 + $0x5c] sm:$0xf] %v3447_v53  ;;  %v3451_v38 = vld [vmem:[%s4581_s12 + $0x64] sm:$0xf]  ;;  %v3453_v62 = vld [vmem:[%s4581_s12 + $0x68] sm:$0xf] }
 0x281   : >> { %3450 = vst [vmem:[%s4577_s27 + $0x60] sm:$0xf] %v3449_v55  ;;  %3452 = vst [vmem:[%s4577_s27 + $0x64] sm:$0xf] %v3451_v38  ;;  %v3455_v63 = vld [vmem:[%s4581_s12 + $0x6c] sm:$0xf] }
 0x282   : >> { %3454 = vst [vmem:[%s4577_s27 + $0x68] sm:$0xf] %v3453_v62  ;;  %v3457_v37 = vld [vmem:[%s4581_s12 + $0x70] sm:$0xf]  ;;  %v3459_v1 = vld [vmem:[%s4581_s12 + $0x74] sm:$0xf] }
 0x283   : >> { %3456 = vst [vmem:[%s4577_s27 + $0x6c] sm:$0xf] %v3455_v63  ;;  %3458 = vst [vmem:[%s4577_s27 + $0x70] sm:$0xf] %v3457_v37  ;;  %v3461_v23 = vld [vmem:[%s4581_s12 + $0x78] sm:$0xf] }
 0x284   : >> { %3460 = vst [vmem:[%s4577_s27 + $0x74] sm:$0xf] %v3459_v1  ;;  %v3463_v3 = vld [vmem:[%s4581_s12 + $0x7c] sm:$0xf]  ;;  %v3465_v61 = vld [vmem:[%s4581_s12 + $0x80] sm:$0xf] }
 0x285   : >> { %3462 = vst [vmem:[%s4577_s27 + $0x78] sm:$0xf] %v3461_v23  ;;  %3464 = vst [vmem:[%s4577_s27 + $0x7c] sm:$0xf] %v3463_v3  ;;  %v3467_v8 = vld [vmem:[%s4581_s12 + $0x84] sm:$0xf] }
 0x286   : >> { %3466 = vst [vmem:[%s4577_s27 + $0x80] sm:$0xf] %v3465_v61  ;;  %v3469_v40 = vld [vmem:[%s4581_s12 + $0x88] sm:$0xf]  ;;  %v3471_v9 = vld [vmem:[%s4581_s12 + $0x8c] sm:$0xf] }
 0x287   : >> { %3468 = vst [vmem:[%s4577_s27 + $0x84] sm:$0xf] %v3467_v8  ;;  %3470 = vst [vmem:[%s4577_s27 + $0x88] sm:$0xf] %v3469_v40  ;;  %v3473_v15 = vld [vmem:[%s4581_s12 + $0x90] sm:$0xf] }
 0x288   : >> { %3472 = vst [vmem:[%s4577_s27 + $0x8c] sm:$0xf] %v3471_v9  ;;  %v3475_v4 = vld [vmem:[%s4581_s12 + $0x94] sm:$0xf]  ;;  %v3477_v17 = vld [vmem:[%s4581_s12 + $0x98] sm:$0xf] }
 0x289   : >> { %3474 = vst [vmem:[%s4577_s27 + $0x90] sm:$0xf] %v3473_v15  ;;  %3476 = vst [vmem:[%s4577_s27 + $0x94] sm:$0xf] %v3475_v4  ;;  %v3479_v30 = vld [vmem:[%s4581_s12 + $0x9c] sm:$0xf] }
 0x28a   : >> { %3478 = vst [vmem:[%s4577_s27 + $0x98] sm:$0xf] %v3477_v17  ;;  %v3481_v57 = vld [vmem:[%s4581_s12 + $0xa0] sm:$0xf]  ;;  %v3483_v16 = vld [vmem:[%s4581_s12 + $0xa4] sm:$0xf] }
 0x28b   : >> { %3480 = vst [vmem:[%s4577_s27 + $0x9c] sm:$0xf] %v3479_v30  ;;  %3482 = vst [vmem:[%s4577_s27 + $0xa0] sm:$0xf] %v3481_v57  ;;  %s5824_s17 = smov (%p3486_p11, %s3485_s17), 0  ;;  %s3395_s16 = sadd.s32 1, %s4589_s16  }
 0x28c   : >> { %3484 = vst [vmem:[%s4577_s27 + $0xa4] sm:$0xf] %v3483_v16  ;;  %s3488_s19 = smul.u32 168, %s5824_s17  ;;  %p3394_p12 = scmp.ge.s32.totalorder %s3395_s16, %s5669_s9 }
 0x28d   : >> { %s5817_s15 = smov %s5824_s17 }
 0x28e   : >> { %s3490_s12 = scalar_lea.vmem %s5366_s24, %s3488_s19 [#allocation2]   ;;  %s3491_s27 = scalar_lea.vmem %s5663_s26, %s3488_s19  }
 0x28f   : > { %3397 = sbr.rel (!%p3394_p12) target bundleno = 624 (0x270), region = 143 }
 0x296 PF: > { %4517 = sdivrem.u32 %s5822_s11, 42 }
 0x297   : > { %s4105_s20 = smul.u32 168, %s5669_s9 }
 0x299   : > { %s3496_s22 = scalar_lea.vmem %s5366_s24, %s4105_s20 [#allocation2]   ;;  %s3498_s23 = scalar_lea.vmem %s5663_s26, %s4105_s20  }
 0x29f   : > { %s4518_s29 = spop.drf %4517 }
 0x2a0   : > { %p4107_p13 = scmp.le.s32.totalorder %s4518_s29, 0 }
 0x2a1   : > { %s4591_s30 = smov (!%p4107_p13), %s3498_s23   ;;  %s4595_s10 = smov (!%p4107_p13), %s3496_s22  }
 0x2a2   : > { %3735 = sbr.rel (%p4107_p13) target bundleno = 691 (0x2b3), region = 148  ;;  %s4599_s13 = smov (!%p4107_p13), 0  }
 0x2a3   : > { %s4603_s18 = smov (!%p4107_p13), 0  }
 0x2a9 LB: >> { %v3508_v46 = vld [vmem:[%s4597_s10] sm:$0xf]  ;;  %s3510_s21 = sadd.s32 1, %s4601_s13  ;;  %s3502_s18 = sadd.s32 1, %s4605_s18   ;;  %s4605_s18 = sphi %s4603_s18, %s3502_s18   ;;  %s4601_s13 = sphi %s4599_s13, %s4600_s13   ;;  %s4597_s10 = sphi %s4595_s10, %s3515_s10   ;;  %s4593_s30 = sphi %s4591_s30, %s3516_s30  }
 0x2aa   : >> { %3509 = vst [vmem:[%s4593_s30] sm:$0xf] %v3508_v46  ;;  %p3511_p0 = scmp.ge.s32.totalorder %s3510_s21, %s4518_s29  ;;  %p3501_p1 = scmp.ge.s32.totalorder %s3502_s18, %s4518_s29 }
 0x2ac   : >> { %s5826_s21 = smov (%p3511_p0, %s3510_s21), 0  ;;  %3504 = sbr.rel (!%p3501_p1) target bundleno = 681 (0x2a9), region = 154 }
 0x2ad   : >> { %s4108_s24 = sshll.u32 %s5826_s21, 2  ;;  %s4600_s13 = smov %s5826_s21  }
 0x2ae   : >> { %s3515_s10 = scalar_lea.vmem %s3496_s22, %s4108_s24 [#allocation2]   ;;  %s3516_s30 = scalar_lea.vmem %s3498_s23, %s4108_s24  }
 0x2b3 PF: > { %p14_p2 = scmp.ge.s32.totalorder %s4663_s28, 4   ;;  %s5818_s24 = smov %s4569_s25 }
 0x2b4   : > { %s5819_s25 = smov %s4671_s8  ;;  %s5820_s26 = smov %s4663_s28 }
 0x2b5   :  { %16 = sbr.rel (!%p14_p2) target bundleno = 2 (0x2), region = 165 }

// kernel: cnn_forward.6
= control target key start
LH: loop header
LB: loop body
LE: loop exit
PB: predicated region body
PF: predicated region fallthrough
CT: control target
= control target key end

     0   :  { %s1789_s24 = smov 0   ;;  %s1791_s25 = smov 0   ;;  %s2105_s0 = inlined_call_operand.vmem [shape: bf16[18,288], index: 0, kind: input, shape index: {}]   ;;  %s2106_s1 = inlined_call_operand.vmem [shape: bf16[18,288], index: 1, kind: input, shape index: {}]   ;;  %s2107_s2 = inlined_call_operand.vmem [shape: bf16[18,288], index: 2, kind: input, shape index: {}]   ;;  %s2108_s3 = inlined_call_operand.vmem [shape: bf16[18,288], index: 3, kind: input, shape index: {}]   ;;  %s2109_s4 = inlined_call_operand.vmem [shape: bf16[288,64], index: 4, kind: input, shape index: {}]   ;;  %s2110_s5 = inlined_call_operand.vmem [shape: f32[1,64], index: 5, kind: input, shape index: {}]   ;;  %s2111_s6 = inlined_call_operand.vmem [shape: f32[1,64], index: 6, kind: input, shape index: {}]   ;;  %s2112_s7 = inlined_call_operand.vmem [shape: bf16[18,64], index: 7, kind: output, shape index: {}]  }
   0x1   :  { %s1793_s26 = smov 0  }
   0x2 LB: > { %s1802_s27 = sadd.s32 4294967295, %s1713_s26   ;;  %s1804_s28 = sadd.s32 1, %s1713_s26   ;;  %s1713_s26 = sphi %s1793_s26, %s2116_s26   ;;  %s1709_s25 = sphi %s1791_s25, %s2115_s25   ;;  %s1705_s24 = sphi %s1789_s24, %s2114_s24  }
   0x3   : > { %s188_s29 = ssub.s32 %s1713_s26, %s1804_s28  ;;  %s191_s30 = sadd.s32 1, %s1709_s25 }
   0x4   : > { %p189_p0 = scmp.eq.s32.totalorder %s188_s29, 0  ;;  %p201_p1 = scmp.ne.s32.totalorder %s1709_s25, %s1705_s24 }
   0x5   : > { %p202_p2 = scmp.eq.s32.totalorder %s1802_s27, 1  ;;  %p1332_p3 = scmp.ge.s32.totalorder %s1713_s26, 1 }
   0x6   : > { %s1812_s8 = scalar_select %p189_p0, %s1709_s25, %s191_s30  }
   0x7   : > { %p1814_p4 = por %p202_p2, %p201_p1  ;;  %p315_p5 = scmp.lt.s32.totalorder %s1713_s26, 3 }
   0x9   : > { %p316_p6 = pnand %p1332_p3, %p315_p5 }
   0xa   : > { %v1821_v0 = vld [vmem:[%s2109_s4 + $0x40] sm:$0xff] (!%p316_p6)   ;;  %v1747_v1 = vmov (!%p316_p6), 0.0   ;;  %vm1748_vm0 = vmmov (!%p316_p6), 0   ;;  %s1838_s16 = sshll.u32 (!%p316_p6), %s1802_s27, 1  ;;  %v1844_v4 = vld [vmem:[%s2109_s4 + $0x48] sm:$0xff] (!%p316_p6)   ;;  %v1864_v7 = vld [vmem:[%s2109_s4 + $0x50] sm:$0xff] (!%p316_p6)  }
   0xb   : > { %319 = sbr.rel (%p316_p6) target bundleno = 375 (0x177), region = 48  ;;  %1502 = vmatprep.subr.bf16.mxu1 (!%p316_p6), %v1747_v1  ;;  %v1827_v2 = vld [vmem:[%s2109_s4 + $0x80] sm:$0xff] (!%p316_p6)   ;;  %1402 = vmatprep.subr.bf16.mxu0 (!%p316_p6), %v1821_v0  ;;  %p391_p7 = scmp.lt.s32.totalorder (!%p316_p6), %s1838_s16, 2  ;;  %v1852_v5 = vld [vmem:[%s2109_s4 + $0x88] sm:$0xff] (!%p316_p6)   ;;  %v1874_v8 = vld [vmem:[%s2109_s4 + $0x10] sm:$0xff] (!%p316_p6)   ;;  %vm624_vm1 = vcmask (!%p316_p6), 261120  }
   0xc   : > { %v1833_v3 = vld [vmem:[%s2109_s4] sm:$0xff] (!%p316_p6)   ;;  %1506 = vmatprep.mubr.msk.bf16.mxu1 (!%p316_p6), %vm1748_vm0, %v1747_v1  ;;  %1503 = vmatpush3.bf16.msra.mxu1 (!%p316_p6), %v1827_v2  ;;  %v1858_v6 = vld [vmem:[%s2109_s4 + $0x8] sm:$0xff] (!%p316_p6)   ;;  %v1886_v9 = vld [vmem:[%s2109_s4 + $0x58] sm:$0xff] (!%p316_p6)   ;;  %s382_s19 = sand.u32 (!%p316_p6), 1, %s1705_s24   ;;  %vm1072_vm2 = vcmask (!%p316_p6), 519168  }
   0xd   : > { %1403 = vmatpush3.bf16.msra.mxu0 (!%p316_p6), %v1833_v3  ;;  %1504 = vmatprep.subr.bf16.mxu1 (!%p316_p6), %v1747_v1  ;;  %v1894_v11 = vld [vmem:[%s2109_s4 + $0x18] sm:$0xff] (!%p316_p6)   ;;  %v1901_v12 = vld [vmem:[%s2109_s4 + $0x60] sm:$0xff] (!%p316_p6)   ;;  %v1915_v14 = vld [vmem:[%s2109_s4 + $0x68] sm:$0xff] (!%p316_p6)   ;;  %s1333_s20 = sshll.u32 (!%p316_p6), %s382_s19, 3 }
   0xe   : > { %1404 = vmatprep.subr.bf16.mxu0 (!%p316_p6), %v1844_v4  ;;  %v1908_v13 = vld [vmem:[%s2109_s4 + $0x20] sm:$0xff] (!%p316_p6)   ;;  %v1927_v15 = vld [vmem:[%s2109_s4 + $0x28] sm:$0xff] (!%p316_p6)   ;;  %v1936_v17 = vld [vmem:[%s2109_s4 + $0x70] sm:$0xff] (!%p316_p6)  }
   0xf   : > { %v1950_v19 = vld [vmem:[%s2109_s4 + $0x30] sm:$0xff] (!%p316_p6)   ;;  %v1963_v20 = vld [vmem:[%s2109_s4 + $0x78] sm:$0xff] (!%p316_p6)   ;;  %v2046_v43 = vld [vmem:[%s2110_s5] ss:$0 sm:$0xff] (!%p316_p6) }
  0x10   : > { %1505 = vmatpush3.bf16.msra.mxu1 (!%p316_p6), %v1852_v5  ;;  %v1970_v21 = vld [vmem:[%s2109_s4 + $0x38] sm:$0xff] (!%p316_p6)   ;;  %v1365_v53 = vld [vmem:[%s2111_s6] ss:$0 sm:$0xff] (!%p316_p6) }
  0x11   : > { %1405 = vmatpush3.bf16.msra.mxu0 (!%p316_p6), %v1858_v6  ;;  %1427 = vmatprep.subr.bf16.mxu1 (!%p316_p6), %v1821_v0 }
  0x12   : > { %s392_s23 = scalar_select %p391_p7, %s1838_s16, 2  ;;  %1406 = vmatprep.subr.bf16.mxu0 %v1864_v7 }
  0x13   : > { %s1083_s24 = ssub.s32 (%p1814_p4), 3, %s1838_s16  ;;  %s1399_s22 = sshll.u32 (%p1814_p4), %s1802_s27, 3 }
  0x14   : > { %s1867_s30 = smul.u32 12, %s392_s23  ;;  %p1084_p8 = scmp.lt.s32.totalorder (%p1814_p4), %s1083_s24, 2 }
  0x15   : > { %1407 = vmatpush3.bf16.msra.mxu0 %v1874_v8  ;;  %s2071_s29 = scalar_lea.vmem (%p1814_p4), %s2112_s7, %s1399_s22  }
  0x16   : > { %s1881_s14 = scalar_lea.vmem %s2105_s0, %s1867_s30  ;;  %1408 = vmatprep.subr.bf16.mxu0 %v1886_v9  ;;  %s1922_s12 = scalar_lea.vmem %s2106_s1, %s1867_s30 }
  0x17   : > { %v1632_v10 = vld [vmem:[%s1881_s14 + $0x8] ss:$12 sps:$4 sm:$0xff]   ;;  %v1646_v16 = vld [vmem:[%s1881_s14 + $0x4] ss:$12 sps:$4 sm:$0xff]   ;;  %s1943_s21 = scalar_lea.vmem %s2107_s2, %s1867_s30  ;;  %s1956_s10 = scalar_lea.vmem %s2108_s3, %s1867_s30  ;;  %v1644_v22 = vld [vmem:[%s1881_s14] ss:$12 sps:$4 sm:$0xff]  }
  0x18   : > { %1507 = vmatmul.mubr.msk.bf16.vlgmr.msra.gmra.mrb[0].mxu1 %vm624_vm1, %v1632_v10  ;;  %v1649_v18 = vld [vmem:[%s1922_s12 + $0x4] ss:$12 sps:$4 sm:$0xff]   ;;  %660 = vmatprep.mubr.bf16.mxu0 %v1646_v16  ;;  %v1650_v23 = vld [vmem:[%s1922_s12 + $0x8] ss:$12 sps:$4 sm:$0xff]   ;;  %v1647_v24 = vld [vmem:[%s1922_s12] ss:$12 sps:$4 sm:$0xff]  }
  0x19   : > { %1428 = vmatpush3.bf16.msra.mxu1 %v1833_v3  ;;  %1409 = vmatpush3.bf16.msra.mxu0 %v1894_v11  ;;  %v1654_v25 = vld [vmem:[%s1943_s21 + $0x4] ss:$12 sps:$4 sm:$0xff]   ;;  %v1651_v26 = vld [vmem:[%s1943_s21 + $0x8] ss:$12 sps:$4 sm:$0xff]   ;;  %v1652_v28 = vld [vmem:[%s1943_s21] ss:$12 sps:$4 sm:$0xff]  }
  0x1a   : > { %1429 = vmatprep.subr.bf16.mxu1 %v1844_v4  ;;  %1410 = vmatprep.subr.bf16.mxu0 %v1901_v12  ;;  %v1657_v27 = vld [vmem:[%s1956_s10 + $0x4] ss:$12 sps:$4 sm:$0xff]   ;;  %v1658_v29 = vld [vmem:[%s1956_s10 + $0x8] ss:$12 sps:$4 sm:$0xff]   ;;  %v1655_v30 = vld [vmem:[%s1956_s10] ss:$12 sps:$4 sm:$0xff]  }
  0x1b   : > { %782 = vmatprep.mubr.bf16.mxu1 %v1649_v18  ;;  %s2060_s21 = scalar_lea.vmem [#allocation2], %s1333_s20  }
  0x1d   : > { %1430 = vmatpush3.bf16.msra.mxu1 %v1858_v6  ;;  %1411 = vmatpush3.bf16.msra.mxu0 %v1908_v13 }
  0x1e   : > { %1431 = vmatprep.subr.bf16.mxu1 %v1864_v7  ;;  %1412 = vmatprep.subr.bf16.mxu0 %v1915_v14 }
  0x21   : > { %1432 = vmatpush3.bf16.msra.mxu1 %v1874_v8  ;;  %1413 = vmatpush3.bf16.msra.mxu0 %v1927_v15 }
  0x22   : > { %1433 = vmatprep.subr.bf16.mxu1 %v1886_v9  ;;  %1414 = vmatprep.subr.bf16.mxu0 %v1936_v17 }
  0x25   : > { %1434 = vmatpush3.bf16.msra.mxu1 %v1894_v11  ;;  %1415 = vmatpush3.bf16.msra.mxu0 %v1950_v19 }
  0x26   : > { %1435 = vmatprep.subr.bf16.mxu1 %v1901_v12  ;;  %1416 = vmatprep.subr.bf16.mxu0 %v1963_v20 }
  0x29   : > { %1436 = vmatpush3.bf16.msra.mxu1 %v1908_v13  ;;  %1417 = vmatpush3.bf16.msra.mxu0 %v1970_v21 }
  0x2a   : > { %1437 = vmatprep.subr.bf16.mxu1 %v1915_v14  ;;  %1510 = vmatprep.subr.bf16.mxu0 %v1747_v1 }
  0x2c   : > { %661 = vmatmul.mubr.bf16.vlgmr.msra.gmra.mrb[0].mxu0 %v1644_v22 }
  0x2d   : > { %1438 = vmatpush3.bf16.msra.mxu1 %v1927_v15  ;;  %1511 = vmatpush3.bf16.msra.mxu0 %v1827_v2 }
  0x2e   : > { %1439 = vmatprep.subr.bf16.mxu1 %v1936_v17  ;;  %1514 = vmatprep.mubr.msk.bf16.mxu0 %vm1748_vm0, %v1747_v1 }
  0x2f   : > { %1512 = vmatprep.subr.bf16.mxu0 %v1747_v1 }
  0x31   : > { %1440 = vmatpush3.bf16.msra.mxu1 %v1950_v19  ;;  %1513 = vmatpush3.bf16.msra.mxu0 %v1852_v5 }
  0x32   : > { %1441 = vmatprep.subr.bf16.mxu1 %v1963_v20  ;;  %1452 = vmatprep.subr.bf16.mxu0 %v1821_v0 }
  0x34   : > { %1515 = vmatmul.mubr.msk.bf16.vlgmr.msra.gmra.mrb[4].mxu0 %vm624_vm1, %v1650_v23 }
  0x35   : > { %1442 = vmatpush3.bf16.msra.mxu1 %v1970_v21  ;;  %1453 = vmatpush3.bf16.msra.mxu0 %v1833_v3 }
  0x36   : > { %1518 = vmatprep.subr.bf16.mxu1 %v1747_v1  ;;  %1454 = vmatprep.subr.bf16.mxu0 %v1844_v4 }
  0x37   : > { %894 = vmatprep.mubr.bf16.mxu0 %v1654_v25 }
  0x38   : > { %783 = vmatmul.mubr.bf16.vlgmr.msra.gmra.mrb[4].mxu1 %v1647_v24 }
  0x39   : > { %1519 = vmatpush3.bf16.msra.mxu1 %v1827_v2  ;;  %1522 = vmatprep.mubr.msk.bf16.mxu1 %vm1748_vm0, %v1747_v1 }
  0x3a   : > { %1520 = vmatprep.subr.bf16.mxu1 %v1747_v1  ;;  %1455 = vmatpush3.bf16.msra.mxu0 %v1858_v6 }
  0x3b   : > { %1456 = vmatprep.subr.bf16.mxu0 %v1864_v7 }
  0x3d   : > { %1521 = vmatpush3.bf16.msra.mxu1 %v1852_v5 }
  0x3e   : > { %1477 = vmatprep.subr.bf16.mxu1 %v1821_v0  ;;  %1457 = vmatpush3.bf16.msra.mxu0 %v1874_v8 }
  0x3f   : > { %1458 = vmatprep.subr.bf16.mxu0 %v1886_v9 }
  0x40   : > { %1523 = vmatmul.mubr.msk.bf16.vlgmr.msra.gmra.mrb[8].mxu1 %vm624_vm1, %v1651_v26 }
  0x41   : > { %1478 = vmatpush3.bf16.msra.mxu1 %v1833_v3  ;;  %1006 = vmatprep.mubr.bf16.mxu1 %v1657_v27 }
  0x42   : > { %1479 = vmatprep.subr.bf16.mxu1 %v1844_v4  ;;  %1459 = vmatpush3.bf16.msra.mxu0 %v1894_v11 }
  0x43   : > { %1460 = vmatprep.subr.bf16.mxu0 %v1901_v12 }
  0x45   : > { %1480 = vmatpush3.bf16.msra.mxu1 %v1858_v6 }
  0x46   : > { %1481 = vmatprep.subr.bf16.mxu1 %v1864_v7  ;;  %1461 = vmatpush3.bf16.msra.mxu0 %v1908_v13 }
  0x47   : > { %1462 = vmatprep.subr.bf16.mxu0 %v1915_v14 }
  0x49   : > { %1482 = vmatpush3.bf16.msra.mxu1 %v1874_v8 }
  0x4a   : > { %1483 = vmatprep.subr.bf16.mxu1 %v1886_v9  ;;  %1463 = vmatpush3.bf16.msra.mxu0 %v1927_v15 }
  0x4b   : > { %1464 = vmatprep.subr.bf16.mxu0 %v1936_v17 }
  0x4d   : > { %1484 = vmatpush3.bf16.msra.mxu1 %v1894_v11 }
  0x4e   : > { %1485 = vmatprep.subr.bf16.mxu1 %v1901_v12  ;;  %1465 = vmatpush3.bf16.msra.mxu0 %v1950_v19 }
  0x4f   : > { %1466 = vmatprep.subr.bf16.mxu0 %v1963_v20 }
  0x51   : > { %1486 = vmatpush3.bf16.msra.mxu1 %v1908_v13 }
  0x52   : > { %1487 = vmatprep.subr.bf16.mxu1 %v1915_v14  ;;  %1467 = vmatpush3.bf16.msra.mxu0 %v1970_v21 }
  0x53   : > { %1526 = vmatprep.subr.bf16.mxu0 %v1747_v1 }
  0x55   : > { %1488 = vmatpush3.bf16.msra.mxu1 %v1927_v15  ;;  %895 = vmatmul.mubr.bf16.vlgmr.msra.gmra.mrb[8].mxu0 %v1652_v28 }
  0x56   : > { %1489 = vmatprep.subr.bf16.mxu1 %v1936_v17  ;;  %1527 = vmatpush3.bf16.msra.mxu0 %v1827_v2 }
  0x57   : > { %1530 = vmatprep.mubr.msk.bf16.mxu0 %vm1748_vm0, %v1747_v1  ;;  %1528 = vmatprep.subr.bf16.mxu0 %v1747_v1 }
  0x59   : > { %1490 = vmatpush3.bf16.msra.mxu1 %v1950_v19 }
  0x5a   : > { %1491 = vmatprep.subr.bf16.mxu1 %v1963_v20  ;;  %1529 = vmatpush3.bf16.msra.mxu0 %v1852_v5 }
  0x5d   : > { %1492 = vmatpush3.bf16.msra.mxu1 %v1970_v21  ;;  %1531 = vmatmul.mubr.msk.bf16.vlgmr.msra.gmra.mrb[12].mxu0 %vm624_vm1, %v1658_v29 }
  0x60   : > { %1007 = vmatmul.mubr.bf16.vlgmr.msra.gmra.mrb[12].mxu1 %v1655_v30 }
  0xeb   : > { %v703_v31 = vpop.f32.mrb[0].mxu1 }
  0xec   : > { %v1508_v32 = vpop.f32.mrb[1].mxu1 }
  0xed   : > { %v706_v33 = vpop.f32.mrb[2].mxu1 }
  0xee   : > { %v1509_v34 = vpop.f32.mrb[3].mxu1 }
  0xff   : > { %v1418_v35 = vpop.f32.mrb[0].mxu0 }
 0x100   : > { %v1419_v36 = vpop.f32.mrb[1].mxu0 }
 0x101   : > { %v1420_v37 = vadd.f32 %v1419_v36, %v1418_v35  ;;  %v1421_v38 = vpop.f32.mrb[2].mxu0 }
 0x102   : > { %v1422_v39 = vpop.f32.mrb[3].mxu0 }
 0x103   : > { %v704_v40 = vadd.f32 %v1420_v37, %v703_v31  ;;  %v1423_v41 = vadd.f32 %v1422_v39, %v1421_v38 }
 0x105   : > { %v707_v42 = vadd.f32 %v1423_v41, %v706_v33  ;;  %v716_v49 = vmul.f32 %v2046_v43, %v704_v40 }
 0x107   : > { %v825_v44 = vpop.f32.mrb[4].mxu0  ;;  %v717_v55 = vmul.f32 %v2046_v43, %v707_v42  ;;  %v724_v58 = vadd.f32 %v1365_v53, %v716_v49 }
 0x108   : > { %v1516_v46 = vpop.f32.mrb[5].mxu0 }
 0x109   : > { %v828_v48 = vpop.f32.mrb[6].mxu0  ;;  %v725_v61 = vadd.f32 %v1365_v53, %v717_v55  ;;  %v726_v2 = vmax.f32 %v724_v58, 0.0 }
 0x10a   : > { %v1517_v52 = vpop.f32.mrb[7].mxu0 }
 0x10b   : > { %v1443_v45 = vpop.f32.mrb[4].mxu1  ;;  %v727_v7 = vmax.f32 %v725_v61, 0.0 }
 0x10c   : > { %v1444_v47 = vpop.f32.mrb[5].mxu1 }
 0x10d   : > { %v1445_v50 = vadd.f32 %v1444_v47, %v1443_v45  ;;  %v1446_v51 = vpop.f32.mrb[6].mxu1 }
 0x10e   : > { %v1447_v54 = vpop.f32.mrb[7].mxu1 }
 0x10f   : > { %v826_v56 = vadd.f32 %v1445_v50, %v825_v44  ;;  %v1448_v57 = vadd.f32 %v1447_v54, %v1446_v51 }
 0x111   : > { %v832_v59 = vmul.f32 %v2046_v43, %v826_v56  ;;  %v829_v60 = vadd.f32 %v1448_v57, %v828_v48 }
 0x113   : > { %v834_v62 = vadd.f32 %v1365_v53, %v832_v59  ;;  %v833_v63 = vmul.f32 %v2046_v43, %v829_v60  ;;  %v937_v0 = vpop.f32.mrb[8].mxu1 }
 0x114   : > { %v1524_v1 = vpop.f32.mrb[9].mxu1 }
 0x115   : > { %v836_v3 = vmax.f32 %v834_v62, 0.0  ;;  %v835_v4 = vadd.f32 %v1365_v53, %v833_v63  ;;  %v940_v5 = vpop.f32.mrb[10].mxu1 }
 0x116   : > { %v1525_v6 = vpop.f32.mrb[11].mxu1 }
 0x117   : > { %v838_v8 = vmax.f32 %v726_v2, %v836_v3  ;;  %v837_v9 = vmax.f32 %v835_v4, 0.0 }
 0x119   : > { %v839_v10 = vmax.f32 %v727_v7, %v837_v9 }
 0x128   : > { %v1468_v11 = vpop.f32.mrb[8].mxu0 }
 0x129   : > { %v1469_v12 = vpop.f32.mrb[9].mxu0 }
 0x12a   : > { %v1470_v13 = vadd.f32 %v1469_v12, %v1468_v11  ;;  %v1471_v14 = vpop.f32.mrb[10].mxu0 }
 0x12b   : > { %v1472_v15 = vpop.f32.mrb[11].mxu0 }
 0x12c   : > { %v938_v16 = vadd.f32 %v1470_v13, %v937_v0  ;;  %v1473_v17 = vadd.f32 %v1472_v15, %v1471_v14 }
 0x12e   : > { %v944_v18 = vmul.f32 %v2046_v43, %v938_v16  ;;  %v941_v19 = vadd.f32 %v1473_v17, %v940_v5 }
 0x130   : > { %v946_v20 = vadd.f32 %v1365_v53, %v944_v18  ;;  %v945_v21 = vmul.f32 %v2046_v43, %v941_v19  ;;  %v1049_v22 = vpop.f32.mrb[12].mxu0 }
 0x131   : > { %v1532_v24 = vpop.f32.mrb[13].mxu0 }
 0x132   : > { %v948_v25 = vmax.f32 %v946_v20, 0.0  ;;  %v947_v26 = vadd.f32 %v1365_v53, %v945_v21  ;;  %v1052_v28 = vpop.f32.mrb[14].mxu0 }
 0x133   : > { %v1493_v23 = vpop.f32.mrb[12].mxu1  ;;  %v1533_v31 = vpop.f32.mrb[15].mxu0 }
 0x134   : > { %v1494_v27 = vpop.f32.mrb[13].mxu1  ;;  %v949_v32 = vmax.f32 %v947_v26, 0.0  ;;  %v950_v33 = vmax.f32 %v838_v8, %v948_v25 }
 0x135   : > { %v1495_v29 = vadd.f32 %v1494_v27, %v1493_v23  ;;  %v1496_v30 = vpop.f32.mrb[14].mxu1 }
 0x136   : > { %v1497_v34 = vpop.f32.mrb[15].mxu1  ;;  %v951_v37 = vmax.f32 %v839_v10, %v949_v32 }
 0x137   : > { %v1050_v35 = vadd.f32 %v1495_v29, %v1049_v22  ;;  %v1498_v36 = vadd.f32 %v1497_v34, %v1496_v30 }
 0x139   : > { %v1056_v38 = vmul.f32 %v2046_v43, %v1050_v35  ;;  %v1053_v39 = vadd.f32 %v1498_v36, %v1052_v28 }
 0x13b   : > { %v1058_v40 = vadd.f32 %v1365_v53, %v1056_v38  ;;  %v1057_v41 = vmul.f32 %v2046_v43, %v1053_v39 }
 0x13d   : > { %v1060_v42 = vmax.f32 %v1058_v40, 0.0  ;;  %v1059_v44 = vadd.f32 %v1365_v53, %v1057_v41 }
 0x13f   : > { %v1062_v45 = vmax.f32 %v950_v33, %v1060_v42  ;;  %v1061_v46 = vmax.f32 %v1059_v44, 0.0  ;;  %1081 = sbr.rel (!%p1814_p4) target bundleno = 375 (0x177), region = 52 }
 0x141   : > { %v1397_v47 = vpack.c.bf16 %v1062_v45, %v1062_v45  ;;  %v1063_v48 = vmax.f32 %v951_v37, %v1061_v46 }
 0x143   : > { %1073 = vst.msk [vmem:[%s2060_s21] sm:$0xf] %vm1072_vm2, %v1397_v47  ;;  %v1398_v49 = vpack.c.bf16 %v1063_v48, %v1063_v48 }
 0x145   : > { %1074 = vst.msk [vmem:[%s2060_s21 + $0x4] sm:$0xf] %vm1072_vm2, %v1398_v49 }
 0x146   : > { %s2118_s24 = smov (!%p1084_p8, %s1083_s24), 2 }
 0x147   : > { %s1382_s10 = sshll.u32 %s2118_s24, 6 }
 0x148   : > { %p1385_p9 = scmp.eq.s32.totalorder %s1382_s10, 0 }
 0x149   : > { %s2077_s11 = sshrl.u32 (!%p1385_p9), %s2118_s24, 1 }
 0x14a   : > { %1092 = sbr.rel (%p1385_p9) target bundleno = 375 (0x177), region = 56  ;;  %p1386_p10 = scmp.le.s32.totalorder (!%p1385_p9), %s2077_s11, 0 }
 0x151   : > { %1267 = sbr.rel (%p1386_p10) target bundleno = 354 (0x162), region = 137  ;;  %s1715_s27 = smov (!%p1386_p10), %s2071_s29  }
 0x152   : > { %s1719_s9 = smov (!%p1386_p10), %s2060_s21   ;;  %s1723_s16 = smov (!%p1386_p10), 0  }
 0x153   : > { %s1727_s13 = smov (!%p1386_p10), 0  }
 0x158 LB: >> { %v1108_v43 = vld [vmem:[%s1721_s9] sm:$0xf]  ;;  %v1110_v50 = vld [vmem:[%s1721_s9 + $0x4] sm:$0xf]  ;;  %s1112_s15 = sadd.s32 1, %s1725_s16  ;;  %s1102_s13 = sadd.s32 1, %s1729_s13   ;;  %s1729_s13 = sphi %s1727_s13, %s1102_s13   ;;  %s1725_s16 = sphi %s1723_s16, %s1724_s16   ;;  %s1721_s9 = sphi %s1719_s9, %s1117_s9   ;;  %s1717_s27 = sphi %s1715_s27, %s1118_s27  }
 0x159   : >> { %1109 = vst [vmem:[%s1717_s27] sm:$0xf] %v1108_v43  ;;  %1111 = vst [vmem:[%s1717_s27 + $0x4] sm:$0xf] %v1110_v50  ;;  %p1113_p11 = scmp.ge.s32.totalorder %s1112_s15, %s2077_s11  ;;  %p1101_p12 = scmp.ge.s32.totalorder %s1102_s13, %s2077_s11 }
 0x15b   : >> { %s2120_s15 = smov (%p1113_p11, %s1112_s15), 0  ;;  %1104 = sbr.rel (!%p1101_p12) target bundleno = 344 (0x158), region = 143 }
 0x15c   : >> { %s1387_s17 = sshll.u32 %s2120_s15, 3  ;;  %s1724_s16 = smov %s2120_s15  }
 0x15d   : >> { %s1117_s9 = scalar_lea.vmem %s2060_s21, %s1387_s17 [#allocation2]   ;;  %s1118_s27 = scalar_lea.vmem %s2071_s29, %s1387_s17  }
 0x162 PF: > { %s2087_s30 = sand.u32 1, %s2118_s24   ;;  %s1400_s14 = sshll.u32 %s2077_s11, 3 }
 0x163   : > { %s1123_s12 = scalar_lea.vmem %s2060_s21, %s1400_s14 [#allocation2]   ;;  %s1125_s18 = scalar_lea.vmem %s2071_s29, %s1400_s14  }
 0x164   : > { %p1392_p13 = scmp.le.s32.totalorder %s2087_s30, 0 }
 0x165   : > { %s1731_s19 = smov (!%p1392_p13), %s1125_s18   ;;  %s1735_s20 = smov (!%p1392_p13), %s1123_s12  }
 0x166   : > { %1281 = sbr.rel (%p1392_p13) target bundleno = 375 (0x177), region = 148  ;;  %s1739_s22 = smov (!%p1392_p13), 0  }
 0x167   : > { %s1743_s23 = smov (!%p1392_p13), 0  }
 0x16d LB: >> { %v1135_v51 = vld [vmem:[%s1737_s20] sm:$0xf]  ;;  %s1137_s24 = sadd.s32 1, %s1741_s22  ;;  %s1129_s23 = sadd.s32 1, %s1745_s23   ;;  %s1745_s23 = sphi %s1743_s23, %s1129_s23   ;;  %s1741_s22 = sphi %s1739_s22, %s1740_s22   ;;  %s1737_s20 = sphi %s1735_s20, %s1142_s20   ;;  %s1733_s19 = sphi %s1731_s19, %s1143_s19  }
 0x16e   : >> { %1136 = vst [vmem:[%s1733_s19] sm:$0xf] %v1135_v51  ;;  %p1138_p0 = scmp.ge.s32.totalorder %s1137_s24, %s2087_s30  ;;  %p1128_p1 = scmp.ge.s32.totalorder %s1129_s23, %s2087_s30 }
 0x170   : >> { %s2122_s24 = smov (%p1138_p0, %s1137_s24), 0  ;;  %1131 = sbr.rel (!%p1128_p1) target bundleno = 365 (0x16d), region = 154 }
 0x171   : >> { %s1393_s21 = sshll.u32 %s2122_s24, 2  ;;  %s1740_s22 = smov %s2122_s24  }
 0x172   : >> { %s1142_s20 = scalar_lea.vmem %s1123_s12, %s1393_s21 [#allocation2]   ;;  %s1143_s19 = scalar_lea.vmem %s1125_s18, %s1393_s21  }
 0x177 PF: > { %p14_p2 = scmp.ge.s32.totalorder %s1804_s28, 4   ;;  %s2114_s24 = smov %s1709_s25 }
 0x178   : > { %s2115_s25 = smov %s1812_s8  ;;  %s2116_s26 = smov %s1804_s28 }
 0x179   :  { %16 = sbr.rel (!%p14_p2) target bundleno = 2 (0x2), region = 165 }

// kernel: cnn_forward.7
= control target key start
LH: loop header
LB: loop body
LE: loop exit
PB: predicated region body
PF: predicated region fallthrough
CT: control target
= control target key end

     0   :  { %v689_v35 = vmov 0.0   ;;  %vm690_vm0 = vmmov 0   ;;  %vm336_vm1 = vcmask 523264   ;;  %vm480_vm2 = vcmask 1044480   ;;  %s850_s1 = inlined_call_operand.vmem [shape: bf16[576,10], index: 1, kind: input, shape index: {}]   ;;  %s851_s0 = inlined_call_operand.vmem [shape: bf16[8,576], index: 0, kind: input, shape index: {}]   ;;  %s852_s3 = inlined_call_operand.vmem [shape: bf16[10,2], index: 3, kind: input, shape index: {}]   ;;  %s853_s2 = inlined_call_operand.vmem [shape: f32[1,10], index: 2, kind: input, shape index: {}]   ;;  %s854_s4 = inlined_call_operand.vmem [shape: f32[1,2], index: 4, kind: input, shape index: {}]   ;;  %s855_s5 = inlined_call_operand.vmem [shape: f32[8,2], index: 5, kind: output, shape index: {}]  }
   0x1   :  { %v647_v0 = vld [vmem:[%s850_s1 + $0x40] sm:$0xff]   ;;  %v651_v4 = vld [vmem:[%s850_s1 + $0x48] sm:$0xff]   ;;  %v655_v8 = vld [vmem:[%s850_s1 + $0x50] sm:$0xff]   ;;  %vm476_vm3 = vcmask 80896   ;;  %vm524_vm4 = vcmask 15360  }
   0x2   :  { %v648_v1 = vld [vmem:[%s850_s1] sm:$0xff]   ;;  %576 = vmatprep.subr.bf16.mxu0 %v647_v0  ;;  %v652_v5 = vld [vmem:[%s850_s1 + $0x8] sm:$0xff]   ;;  %v656_v9 = vld [vmem:[%s850_s1 + $0x10] sm:$0xff]  }
   0x3   :  { %v649_v2 = vld [vmem:[%s850_s1 + $0xc0] sm:$0xff]   ;;  %577 = vmatpush3.bf16.msra.mxu0 %v648_v1  ;;  %v653_v6 = vld [vmem:[%s850_s1 + $0xc8] sm:$0xff]   ;;  %v657_v10 = vld [vmem:[%s850_s1 + $0xd0] sm:$0xff]  }
   0x4   :  { %v650_v3 = vld [vmem:[%s850_s1 + $0x80] sm:$0xff]   ;;  %598 = vmatprep.subr.bf16.mxu1 %v649_v2  ;;  %578 = vmatprep.subr.bf16.mxu0 %v651_v4  ;;  %v654_v7 = vld [vmem:[%s850_s1 + $0x88] sm:$0xff]   ;;  %v658_v11 = vld [vmem:[%s850_s1 + $0x90] sm:$0xff]  }
   0x5   :  { %599 = vmatpush3.bf16.msra.mxu1 %v650_v3  ;;  %v659_v12 = vld [vmem:[%s850_s1 + $0x58] sm:$0xff]   ;;  %v663_v16 = vld [vmem:[%s850_s1 + $0x60] sm:$0xff]   ;;  %v667_v20 = vld [vmem:[%s850_s1 + $0x68] sm:$0xff]  }
   0x6   :  { %600 = vmatprep.subr.bf16.mxu1 %v653_v6  ;;  %v660_v13 = vld [vmem:[%s850_s1 + $0x18] sm:$0xff]   ;;  %v664_v17 = vld [vmem:[%s850_s1 + $0x20] sm:$0xff]   ;;  %v668_v21 = vld [vmem:[%s850_s1 + $0x28] sm:$0xff]  }
   0x7   :  { %579 = vmatpush3.bf16.msra.mxu0 %v652_v5  ;;  %v661_v14 = vld [vmem:[%s850_s1 + $0xd8] sm:$0xff]   ;;  %v665_v18 = vld [vmem:[%s850_s1 + $0xe0] sm:$0xff]   ;;  %v669_v22 = vld [vmem:[%s850_s1 + $0xe8] sm:$0xff]  }
   0x8   :  { %580 = vmatprep.subr.bf16.mxu0 %v655_v8  ;;  %v662_v15 = vld [vmem:[%s850_s1 + $0x98] sm:$0xff]   ;;  %v666_v19 = vld [vmem:[%s850_s1 + $0xa0] sm:$0xff]   ;;  %v670_v23 = vld [vmem:[%s850_s1 + $0xa8] sm:$0xff]  }
   0x9   :  { %601 = vmatpush3.bf16.msra.mxu1 %v654_v7  ;;  %v671_v24 = vld [vmem:[%s850_s1 + $0x70] sm:$0xff]   ;;  %v675_v28 = vld [vmem:[%s850_s1 + $0x78] sm:$0xff]   ;;  %v21_v31 = vld [vmem:[%s851_s0] sm:$0xff] }
   0xa   :  { %602 = vmatprep.subr.bf16.mxu1 %v657_v10  ;;  %v672_v25 = vld [vmem:[%s850_s1 + $0x30] sm:$0xff]   ;;  %v676_v29 = vld [vmem:[%s850_s1 + $0x38] sm:$0xff]   ;;  %v531_v32 = vcombine.low %v21_v31, %v21_v31  ;;  %v532_v33 = vcombine.high %v21_v31, %v21_v31  ;;  %v22_v36 = vld [vmem:[%s851_s0 + $0x8] sm:$0xff] }
   0xb   :  { %581 = vmatpush3.bf16.msra.mxu0 %v656_v9  ;;  %v673_v26 = vld [vmem:[%s850_s1 + $0xf0] sm:$0xff]   ;;  %v677_v30 = vld [vmem:[%s850_s1 + $0xf8] sm:$0xff]   ;;  %v533_v37 = vcombine.low %v22_v36, %v22_v36  ;;  %v534_v38 = vcombine.high %v22_v36, %v22_v36  ;;  %v684_v39 = vld [vmem:[%s850_s1 + $0x100] sm:$0xff]  }
   0xc   :  { %582 = vmatprep.subr.bf16.mxu0 %v659_v12  ;;  %v674_v27 = vld [vmem:[%s850_s1 + $0xb0] sm:$0xff]   ;;  %v681_v34 = vld [vmem:[%s850_s1 + $0xb8] sm:$0xff]   ;;  %372 = vmatprep.mubr.bf16.mxu0 %v532_v33  ;;  %v685_v40 = vld [vmem:[%s850_s1 + $0x108] sm:$0xff]  }
   0xd   :  { %603 = vmatpush3.bf16.msra.mxu1 %v658_v11  ;;  %412 = vmatprep.mubr.bf16.mxu1 %v534_v38  ;;  %v686_v41 = vld [vmem:[%s850_s1 + $0x110] sm:$0xff]   ;;  %v687_v42 = vld [vmem:[%s850_s1 + $0x118] sm:$0xff]   ;;  %v688_v44 = vld [vmem:[%s852_s3] sm:$0x1f]  }
   0xe   :  { %604 = vmatprep.subr.bf16.mxu1 %v661_v14  ;;  %v680_v43 = vld [vmem:[%s851_s0 + $0x10] ss:$0 sps:$4 sm:$0xff]   ;;  %v482_v45 = vsel %vm480_vm2, %v688_v44, 0  ;;  %v530_v47 = vld [vmem:[%s853_s2] ss:$0 sm:$0xff] }
   0xf   :  { %583 = vmatpush3.bf16.msra.mxu0 %v660_v13  ;;  %v573_v2 = vld [vmem:[%s854_s4] ss:$0 sm:$0xff] }
  0x10   :  { %584 = vmatprep.subr.bf16.mxu0 %v663_v16 }
  0x11   :  { %605 = vmatpush3.bf16.msra.mxu1 %v662_v15 }
  0x12   :  { %606 = vmatprep.subr.bf16.mxu1 %v665_v18 }
  0x13   :  { %585 = vmatpush3.bf16.msra.mxu0 %v664_v17 }
  0x14   :  { %586 = vmatprep.subr.bf16.mxu0 %v667_v20 }
  0x15   :  { %607 = vmatpush3.bf16.msra.mxu1 %v666_v19 }
  0x16   :  { %608 = vmatprep.subr.bf16.mxu1 %v669_v22 }
  0x17   :  { %587 = vmatpush3.bf16.msra.mxu0 %v668_v21 }
  0x18   :  { %588 = vmatprep.subr.bf16.mxu0 %v671_v24 }
  0x19   :  { %609 = vmatpush3.bf16.msra.mxu1 %v670_v23 }
  0x1a   :  { %610 = vmatprep.subr.bf16.mxu1 %v673_v26 }
  0x1b   :  { %589 = vmatpush3.bf16.msra.mxu0 %v672_v25 }
  0x1c   :  { %590 = vmatprep.subr.bf16.mxu0 %v675_v28 }
  0x1d   :  { %611 = vmatpush3.bf16.msra.mxu1 %v674_v27 }
  0x1e   :  { %612 = vmatprep.subr.bf16.mxu1 %v677_v30 }
  0x1f   :  { %591 = vmatpush3.bf16.msra.mxu0 %v676_v29 }
  0x20   :  { %627 = vmatprep.subr.bf16.mxu0 %v689_v35 }
  0x21   :  { %613 = vmatpush3.bf16.msra.mxu1 %v681_v34 }
  0x22   :  { %373 = vmatmul.mubr.bf16.vlgmr.msra.gmra.mrb[0].mxu0 %v531_v32  ;;  %639 = vmatprep.subr.bf16.mxu1 %v689_v35 }
  0x23   :  { %628 = vmatpush3.bf16.msra.mxu0 %v684_v39  ;;  %635 = vmatprep.mubr.msk.bf16.mxu0 %vm690_vm0, %v689_v35 }
  0x24   :  { %413 = vmatmul.mubr.bf16.vlgmr.msra.gmra.mrb[0].mxu1 %v533_v37  ;;  %629 = vmatprep.subr.bf16.mxu0 %v689_v35 }
  0x25   :  { %641 = vmatprep.mubr.msk.bf16.mxu1 %vm690_vm0, %v689_v35  ;;  %640 = vmatpush3.bf16.msra.mxu1 %v482_v45 }
  0x27   :  { %630 = vmatpush3.bf16.msra.mxu0 %v685_v40 }
  0x28   :  { %631 = vmatprep.subr.bf16.mxu0 %v689_v35 }
  0x2b   :  { %632 = vmatpush3.bf16.msra.mxu0 %v686_v41 }
  0x2c   :  { %633 = vmatprep.subr.bf16.mxu0 %v689_v35 }
  0x2f   :  { %634 = vmatpush3.bf16.msra.mxu0 %v687_v42 }
  0x32   :  { %636 = vmatmul.mubr.msk.bf16.vlgmr.msra.gmra.mrb[4].mxu0 %vm336_vm1, %v680_v43 }
  0xf5   :  { %v592_v46 = vpop.f32.mrb[0].mxu0 }
  0xf6   :  { %v593_v48 = vpop.f32.mrb[1].mxu0 }
  0xf7   :  { %v594_v49 = vadd.f32 %v593_v48, %v592_v46  ;;  %v595_v50 = vpop.f32.mrb[2].mxu0  ;;  %v614_v51 = vpop.f32.mrb[0].mxu1 }
  0xf8   :  { %v596_v52 = vpop.f32.mrb[3].mxu0  ;;  %v615_v53 = vpop.f32.mrb[1].mxu1 }
  0xf9   :  { %v375_v54 = vadd.f32 %v594_v49, %v530_v47  ;;  %v616_v55 = vadd.f32 %v615_v53, %v614_v51  ;;  %v617_v56 = vpop.f32.mrb[2].mxu1 }
  0xfa   :  { %v618_v57 = vpop.f32.mrb[3].mxu1 }
  0xfb   :  { %v415_v58 = vadd.f32 %v616_v55, %v375_v54 }
 0x105   :  { %v454_v59 = vpop.f32.mrb[4].mxu0 }
 0x106   :  { %v455_v60 = vadd.f32 %v454_v59, %v415_v58  ;;  %v637_v61 = vpop.f32.mrb[5].mxu0 }
 0x107   :  { %v457_v62 = vpop.f32.mrb[6].mxu0 }
 0x108   :  { %v460_v63 = vmax.f32 %v455_v60, 0.0  ;;  %v638_v0 = vpop.f32.mrb[7].mxu0 }
 0x10a   :  { %v461_v1 = vpack.c.bf16 %v460_v63, %v460_v63 }
 0x10c   :  { %642 = vmatmul.mubr.msk.bf16.vlgmr.msra.gmra.mrb[4].mxu1 %vm476_vm3, %v461_v1 }
 0x1df   :  { %v518_v3 = vpop.f32.mrb[4].mxu1 }
 0x1e0   :  { %v519_v4 = vadd.f32 %v573_v2, %v518_v3  ;;  %v643_v5 = vpop.f32.mrb[5].mxu1 }
 0x1e1   :  { %v521_v6 = vpop.f32.mrb[6].mxu1 }
 0x1e2   :  { %525 = vst.msk [vmem:[%s855_s5] sm:$0xff] %vm524_vm4, %v519_v4  ;;  %v644_v7 = vpop.f32.mrb[7].mxu1 }

</bundles_post_ra>
